<compile_context>
chip_gen: v7x
topology: tpu7x:2x2x1
jax: 0.10.0
libtpu: 0.0.40
codegen_flags: <defaults>
</compile_context>

<pallas_src>
import numpy as np
import jax
import jax.numpy as jnp
from jax import lax
from jax.experimental import pallas as pl
from jax.experimental.pallas import tpu as pltpu

# Static geometry implied by the module: AvgPool2d(5, 3) + fc1 = Linear(2048, 1024)
# and a 128-channel 1x1 conv  =>  pooled spatial is 4x4  =>  input H = W = 14.
POOL_K, POOL_S = 5, 3
POOL_OUT = 4                       # floor((14 - 5)/3) + 1
N_POS = POOL_OUT * POOL_OUT        # 16
CONV_OUT_CH = 128
FC1_IN = CONV_OUT_CH * N_POS       # 2048
FC1_OUT = 1024
H_IN = W_IN = 14
HW = H_IN * W_IN                   # 196


def _pooling_matrix():
    """(16, 196) matrix implementing AvgPool2d(kernel=5, stride=3) on a 14x14 map."""
    p = np.zeros((N_POS, HW), np.float32)
    for oh in range(POOL_OUT):
        for ow in range(POOL_OUT):
            r = oh * POOL_OUT + ow
            for kh in range(POOL_K):
                for kw in range(POOL_K):
                    q = (POOL_S * oh + kh) * W_IN + (POOL_S * ow + kw)
                    p[r, q] = 1.0 / (POOL_K * POOL_K)
    return jnp.asarray(p)


def inception_aux_kernel(x_ref, pt_ref, cw_ref, cb_ref, w1_ref, b1_ref,
                         w2_ref, b2_ref, out_ref):
    # x_ref : (TB, C_in, 196)     NCHW activations with HW flattened (bf16 or f32)
    # pt_ref: (196, 16)           pooling matrix P^T (same dtype as x)
    # cw_ref: (C_in, 128)         1x1 conv weight, pre-transposed
    # cb_ref: (1, 128)            conv bias (f32)
    # w1_ref: (16, 128, 1024)     fc1 weight, rearranged to [pos, conv_ch, out]
    # b1_ref: (1, 1024)           fc1 bias (f32)
    # w2_ref: (1024, OUT_PAD)     fc2 weight, transposed + lane-padded
    # b2_ref: (1, OUT_PAD)        fc2 bias (f32)
    # out_ref: (TB, OUT_PAD)      f32 output tile
    tb, c_in, hw = x_ref.shape
    cdt = cw_ref.dtype                                  # matmul operand dtype (bf16/f32)

    xb = x_ref[...]
    # AvgPool2d(5, stride 3) as one 2-D MXU matmul over the flattened spatial axis.
    pooled = jnp.dot(xb.reshape(tb * c_in, hw), pt_ref[...],
                     preferred_element_type=jnp.float32)          # (TB*C_in, 16), f32
    pooled = pooled.reshape(tb, c_in, N_POS)
    pooled = jnp.transpose(pooled, (0, 2, 1))                      # (TB, 16, C_in) small transpose
    pooled = pooled.reshape(tb * N_POS, c_in).astype(cdt)

    # 1x1 conv + ReLU as a single (TB*16, C_in) @ (C_in, 128) matmul.
    conv = jnp.dot(pooled, cw_ref[...],
                   preferred_element_type=jnp.float32) + cb_ref[...]
    conv = jnp.maximum(conv, 0.0).astype(cdt)
    conv = conv.reshape(tb, N_POS, CONV_OUT_CH)                    # free split (16 % 8 == 0)

    # dropout(0.5) in eval mode == identity.
    # fc1 as an unrolled 16-step K accumulation: no sublane->lane flatten relayout;
    # the torch flatten permutation is baked into w1_ref's [pos, conv_ch, out] layout.
    acc = jnp.dot(conv[:, 0, :], w1_ref[0],
                  preferred_element_type=jnp.float32) + b1_ref[...]
    for p in range(1, N_POS):
        acc = acc + jnp.dot(conv[:, p, :], w1_ref[p],
                            preferred_element_type=jnp.float32)
    h = jnp.maximum(acc, 0.0).astype(cdt)                          # (TB, 1024)

    # dropout(0.5) in eval mode == identity.
    out_ref[...] = jnp.dot(h, w2_ref[...],
                           preferred_element_type=jnp.float32) + b2_ref[...]


def inception_aux_forward(x, conv_w, conv_b, fc1_w, fc1_b, fc2_w, fc2_b,
                          *, batch_tile=32, use_bf16=True,
                          vmem_limit_bytes=48 << 20):
    """x: (N, C_in, 14, 14) NCHW, f32.  Weights in PyTorch conventions:
       conv_w (128, C_in, 1, 1), conv_b (128,),
       fc1_w (1024, 2048), fc1_b (1024,),
       fc2_w (num_classes, 1024), fc2_b (num_classes,).

       batch_tile: main tuning knob (multiple of 16). 32 is safe on v7x (64 MiB VMEM);
       on v5e/v6e raise batch_tile to 64-128 together with vmem_limit_bytes ~96 MiB."""
    n, c_in, h, w = x.shape
    assert h == H_IN and w == W_IN, "InceptionAux geometry requires 14x14 input"
    assert batch_tile % 16 == 0
    num_classes = fc2_w.shape[0]
    out_pad = max(128, ((num_classes + 127) // 128) * 128)
    wdt = jnp.bfloat16 if use_bf16 else jnp.float32

    # --- plain-JAX glue (free reshapes / static weight rearrangements only) ---
    x_r = x.reshape(n, c_in, HW).astype(wdt)                       # free view of NCHW
    n_pad = ((n + batch_tile - 1) // batch_tile) * batch_tile
    if n_pad != n:
        x_r = jnp.pad(x_r, ((0, n_pad - n), (0, 0), (0, 0)))

    pool_t = _pooling_matrix().T.astype(wdt)                       # (196, 16)
    cw_t = conv_w.reshape(CONV_OUT_CH, c_in).T.astype(wdt)         # (C_in, 128)
    cb2 = conv_b.reshape(1, CONV_OUT_CH).astype(jnp.float32)

    # Torch flatten of (N,128,4,4) has column o*16 + p; the kernel contracts per position,
    # so rearrange fc1 weight to [p, o, :].
    w1_r = (fc1_w.T.reshape(CONV_OUT_CH, N_POS, FC1_OUT)
            .transpose(1, 0, 2).astype(wdt))                        # (16, 128, 1024)
    b1_2 = fc1_b.reshape(1, FC1_OUT).astype(jnp.float32)

    w2_p = jnp.pad(fc2_w.T, ((0, 0), (0, out_pad - num_classes))).astype(wdt)
    b2_p = jnp.pad(fc2_b.reshape(1, num_classes),
                   ((0, 0), (0, out_pad - num_classes))).astype(jnp.float32)

    grid = (n_pad // batch_tile,)
    resident = dict(pipeline_mode=pl.Buffered(1))   # single-buffer constant operands

    flops = 2 * n_pad * (c_in * HW * N_POS
                         + N_POS * c_in * CONV_OUT_CH
                         + FC1_IN * FC1_OUT
                         + FC1_OUT * out_pad)
    params = (pool_t, cw_t, cb2, w1_r, b1_2, w2_p, b2_p)
    bytes_accessed = (x_r.size * x_r.dtype.itemsize
                      + sum(int(p.size) * p.dtype.itemsize for p in params)
                      + n_pad * out_pad * 4)

    out = pl.pallas_call(
        inception_aux_kernel,
        out_shape=jax.ShapeDtypeStruct((n_pad, out_pad), jnp.float32),
        grid_spec=pltpu.PrefetchScalarGridSpec(
            num_scalar_prefetch=0,
            grid=grid,
            in_specs=[
                pl.BlockSpec((batch_tile, c_in, HW), lambda i: (i, 0, 0)),        # x (tiled)
                pl.BlockSpec((HW, N_POS), lambda i: (0, 0), **resident),          # pool P^T
                pl.BlockSpec((c_in, CONV_OUT_CH), lambda i: (0, 0), **resident),  # conv w
                pl.BlockSpec((1, CONV_OUT_CH), lambda i: (0, 0), **resident),     # conv b
                pl.BlockSpec((N_POS, CONV_OUT_CH, FC1_OUT),
                             lambda i: (0, 0, 0), **resident),                    # fc1 w
                pl.BlockSpec((1, FC1_OUT), lambda i: (0, 0), **resident),         # fc1 b
                pl.BlockSpec((FC1_OUT, out_pad), lambda i: (0, 0), **resident),   # fc2 w
                pl.BlockSpec((1, out_pad), lambda i: (0, 0), **resident),         # fc2 b
            ],
            out_specs=pl.BlockSpec((batch_tile, out_pad), lambda i: (i, 0)),
        ),
        compiler_params=pltpu.CompilerParams(
            dimension_semantics=("parallel",),
            vmem_limit_bytes=vmem_limit_bytes,
        ),
        cost_estimate=pl.CostEstimate(flops=int(flops), transcendentals=0,
                                      bytes_accessed=int(bytes_accessed)),
    )(x_r, pool_t, cw_t, cb2, w1_r, b1_2, w2_p, b2_p)

    return out[:n, :num_classes]


def reference_forward(x, conv_w, conv_b, fc1_w, fc1_b, fc2_w, fc2_b):
    """Pure-JAX f32 reference matching the PyTorch module in eval mode."""
    pooled = lax.reduce_window(x, 0.0, lax.add,
                               (1, 1, POOL_K, POOL_K),
                               (1, 1, POOL_S, POOL_S), "VALID") / 25.0
    cw = conv_w.reshape(CONV_OUT_CH, x.shape[1])
    conv = jnp.einsum("nchw,oc->nohw", pooled, cw) + conv_b[None, :, None, None]
    conv = jnp.maximum(conv, 0.0)
    flat = conv.reshape(x.shape[0], -1)
    h = jnp.maximum(flat @ fc1_w.T + fc1_b, 0.0)
    return h @ fc2_w.T + fc2_b


if __name__ == "__main__":
    key = jax.random.PRNGKey(0)
    ks = jax.random.split(key, 8)

    N, C_IN, H, W = 2, 4, 14, 14
    NUM_CLASSES = 10

    x = jax.random.normal(ks[0], (N, C_IN, H, W), dtype=jnp.float32)
    conv_w = jax.random.normal(ks[1], (CONV_OUT_CH, C_IN, 1, 1), jnp.float32) * 0.1
    conv_b = jax.random.normal(ks[2], (CONV_OUT_CH,), jnp.float32) * 0.1
    fc1_w = jax.random.normal(ks[3], (FC1_OUT, FC1_IN), jnp.float32) * 0.02
    fc1_b = jax.random.normal(ks[4], (FC1_OUT,), jnp.float32) * 0.02
    fc2_w = jax.random.normal(ks[5], (NUM_CLASSES, FC1_OUT), jnp.float32) * 0.02
    fc2_b = jax.random.normal(ks[6], (NUM_CLASSES,), jnp.float32) * 0.02

    # Test 1: small batch (padded up to one batch tile), default batch_tile=32.
    out = inception_aux_forward(x, conv_w, conv_b, fc1_w, fc1_b, fc2_w, fc2_b)
    out = jax.block_until_ready(out)
    ref = reference_forward(x, conv_w, conv_b, fc1_w, fc1_b, fc2_w, fc2_b)
    assert out.shape == (N, NUM_CLASSES)
    # bf16 matmul operands (f32 accumulation) => ~1e-2 agreement with f32 reference.
    assert jnp.allclose(out, ref, atol=2e-2, rtol=2e-2), "mismatch vs reference (N=2)"

    # Test 2: batch exercising a multi-step grid (20 -> pad 32 -> 2 tiles of 16).
    N2 = 20
    x2 = jax.random.normal(ks[7], (N2, C_IN, H, W), dtype=jnp.float32)
    out2 = inception_aux_forward(x2, conv_w, conv_b, fc1_w, fc1_b, fc2_w, fc2_b,
                                 batch_tile=16)
    out2 = jax.block_until_ready(out2)
    ref2 = reference_forward(x2, conv_w, conv_b, fc1_w, fc1_b, fc2_w, fc2_b)
    assert out2.shape == (N2, NUM_CLASSES)
    assert jnp.allclose(out2, ref2, atol=2e-2, rtol=2e-2), "mismatch vs reference (N=20)"

    print("KERNEL_OK")
</pallas_src>

<mosaic_0001>
module attributes {stable_mosaic.version = 11 : i64} {
  func.func @inception_aux_kernel(%arg0: i32, %arg1: memref<32x4x196xbf16, #tpu.memory_space<vmem>>, %arg2: memref<196x16xbf16, #tpu.memory_space<vmem>>, %arg3: memref<4x128xbf16, #tpu.memory_space<vmem>>, %arg4: memref<1x128xf32, #tpu.memory_space<vmem>>, %arg5: memref<16x128x1024xbf16, #tpu.memory_space<vmem>>, %arg6: memref<1x1024xf32, #tpu.memory_space<vmem>>, %arg7: memref<1024x128xbf16, #tpu.memory_space<vmem>>, %arg8: memref<1x128xf32, #tpu.memory_space<vmem>>, %arg9: memref<32x128xf32, #tpu.memory_space<vmem>>) attributes {dimension_semantics = [#tpu.dimension_semantics<parallel>], iteration_bounds = array<i64: 1>, scalar_prefetch = 0 : i64, scratch_operands = 0 : i64, tpu.core_type = #tpu.core_type<tc>, window_params = [{transform_indices = @transform_0, window_bounds = array<i64: 32, 4, 196>}, {pipeline_mode = #tpu.pipeline_mode<synchronous>, transform_indices = @transform_1, window_bounds = array<i64: 196, 16>}, {pipeline_mode = #tpu.pipeline_mode<synchronous>, transform_indices = @transform_2, window_bounds = array<i64: 4, 128>}, {pipeline_mode = #tpu.pipeline_mode<synchronous>, transform_indices = @transform_3, window_bounds = array<i64: 1, 128>}, {pipeline_mode = #tpu.pipeline_mode<synchronous>, transform_indices = @transform_4, window_bounds = array<i64: 16, 128, 1024>}, {pipeline_mode = #tpu.pipeline_mode<synchronous>, transform_indices = @transform_5, window_bounds = array<i64: 1, 1024>}, {pipeline_mode = #tpu.pipeline_mode<synchronous>, transform_indices = @transform_6, window_bounds = array<i64: 1024, 128>}, {pipeline_mode = #tpu.pipeline_mode<synchronous>, transform_indices = @transform_7, window_bounds = array<i64: 1, 128>}, {transform_indices = @transform_8, window_bounds = array<i64: 32, 128>}]} {
    %c0 = arith.constant 0 : index
    %c0_0 = arith.constant 0 : index
    %c0_1 = arith.constant 0 : index
    %0 = vector.load %arg1[%c0, %c0_0, %c0_1] : memref<32x4x196xbf16, #tpu.memory_space<vmem>>, vector<32x4x196xbf16>
    %1 = vector.shape_cast %0 : vector<32x4x196xbf16> to vector<128x196xbf16>
    %c0_2 = arith.constant 0 : index
    %c0_3 = arith.constant 0 : index
    %2 = vector.load %arg2[%c0_2, %c0_3] : memref<196x16xbf16, #tpu.memory_space<vmem>>, vector<196x16xbf16>
    %cst = arith.constant dense<0.000000e+00> : vector<128x16xf32>
    %3 = tpu.matmul %1, %2, %cst {dimension_numbers = #tpu.dot_dimension_numbers<[1], [0], [0], [1], [0, 0, 1, 1], [], []>} : vector<128x196xbf16>, vector<196x16xbf16>, vector<128x16xf32> -> vector<128x16xf32>
    %4 = vector.shape_cast %3 : vector<128x16xf32> to vector<32x4x16xf32>
    %5 = tpu.transpose %4, [0, 2, 1] : vector<32x4x16xf32> -> vector<32x16x4xf32>
    %6 = vector.shape_cast %5 : vector<32x16x4xf32> to vector<512x4xf32>
    %7 = arith.truncf %6 : vector<512x4xf32> to vector<512x4xbf16>
    %c0_4 = arith.constant 0 : index
    %c0_5 = arith.constant 0 : index
    %8 = vector.load %arg3[%c0_4, %c0_5] : memref<4x128xbf16, #tpu.memory_space<vmem>>, vector<4x128xbf16>
    %cst_6 = arith.constant dense<0.000000e+00> : vector<512x128xf32>
    %9 = tpu.matmul %7, %8, %cst_6 {dimension_numbers = #tpu.dot_dimension_numbers<[1], [0], [0], [1], [0, 0, 1, 1], [], []>} : vector<512x4xbf16>, vector<4x128xbf16>, vector<512x128xf32> -> vector<512x128xf32>
    %c0_7 = arith.constant 0 : index
    %c0_8 = arith.constant 0 : index
    %10 = vector.load %arg4[%c0_7, %c0_8] : memref<1x128xf32, #tpu.memory_space<vmem>>, vector<1x128xf32>
    %11 = vector.broadcast %10 : vector<1x128xf32> to vector<512x128xf32>
    %12 = arith.addf %9, %11 : vector<512x128xf32>
    %cst_9 = arith.constant 0.000000e+00 : f32
    %13 = vector.broadcast %cst_9 : f32 to vector<512x128xf32>
    %14 = arith.maximumf %12, %13 : vector<512x128xf32>
    %15 = arith.truncf %14 : vector<512x128xf32> to vector<512x128xbf16>
    %16 = vector.shape_cast %15 : vector<512x128xbf16> to vector<32x16x128xbf16>
    %17 = vector.extract_strided_slice %16 {offsets = [0, 0, 0], sizes = [32, 1, 128], strides = [1, 1, 1]} : vector<32x16x128xbf16> to vector<32x1x128xbf16>
    %18 = vector.shape_cast %17 : vector<32x1x128xbf16> to vector<32x128xbf16>
    %c0_10 = arith.constant 0 : index
    %c0_11 = arith.constant 0 : index
    %c0_12 = arith.constant 0 : index
    %19 = vector.load %arg5[%c0_10, %c0_11, %c0_12] : memref<16x128x1024xbf16, #tpu.memory_space<vmem>>, vector<1x128x1024xbf16>
    %20 = vector.shape_cast %19 : vector<1x128x1024xbf16> to vector<128x1024xbf16>
    %cst_13 = arith.constant dense<0.000000e+00> : vector<32x1024xf32>
    %21 = tpu.matmul %18, %20, %cst_13 {dimension_numbers = #tpu.dot_dimension_numbers<[1], [0], [0], [1], [0, 0, 1, 1], [], []>} : vector<32x128xbf16>, vector<128x1024xbf16>, vector<32x1024xf32> -> vector<32x1024xf32>
    %c0_14 = arith.constant 0 : index
    %c0_15 = arith.constant 0 : index
    %22 = vector.load %arg6[%c0_14, %c0_15] : memref<1x1024xf32, #tpu.memory_space<vmem>>, vector<1x1024xf32>
    %23 = vector.broadcast %22 : vector<1x1024xf32> to vector<32x1024xf32>
    %24 = arith.addf %21, %23 : vector<32x1024xf32>
    %25 = vector.extract_strided_slice %16 {offsets = [0, 1, 0], sizes = [32, 1, 128], strides = [1, 1, 1]} : vector<32x16x128xbf16> to vector<32x1x128xbf16>
    %26 = vector.shape_cast %25 : vector<32x1x128xbf16> to vector<32x128xbf16>
    %c1 = arith.constant 1 : index
    %c0_16 = arith.constant 0 : index
    %c0_17 = arith.constant 0 : index
    %27 = vector.load %arg5[%c1, %c0_16, %c0_17] : memref<16x128x1024xbf16, #tpu.memory_space<vmem>>, vector<1x128x1024xbf16>
    %28 = vector.shape_cast %27 : vector<1x128x1024xbf16> to vector<128x1024xbf16>
    %cst_18 = arith.constant dense<0.000000e+00> : vector<32x1024xf32>
    %29 = tpu.matmul %26, %28, %cst_18 {dimension_numbers = #tpu.dot_dimension_numbers<[1], [0], [0], [1], [0, 0, 1, 1], [], []>} : vector<32x128xbf16>, vector<128x1024xbf16>, vector<32x1024xf32> -> vector<32x1024xf32>
    %30 = arith.addf %24, %29 : vector<32x1024xf32>
    %31 = vector.extract_strided_slice %16 {offsets = [0, 2, 0], sizes = [32, 1, 128], strides = [1, 1, 1]} : vector<32x16x128xbf16> to vector<32x1x128xbf16>
    %32 = vector.shape_cast %31 : vector<32x1x128xbf16> to vector<32x128xbf16>
    %c2 = arith.constant 2 : index
    %c0_19 = arith.constant 0 : index
    %c0_20 = arith.constant 0 : index
    %33 = vector.load %arg5[%c2, %c0_19, %c0_20] : memref<16x128x1024xbf16, #tpu.memory_space<vmem>>, vector<1x128x1024xbf16>
    %34 = vector.shape_cast %33 : vector<1x128x1024xbf16> to vector<128x1024xbf16>
    %cst_21 = arith.constant dense<0.000000e+00> : vector<32x1024xf32>
    %35 = tpu.matmul %32, %34, %cst_21 {dimension_numbers = #tpu.dot_dimension_numbers<[1], [0], [0], [1], [0, 0, 1, 1], [], []>} : vector<32x128xbf16>, vector<128x1024xbf16>, vector<32x1024xf32> -> vector<32x1024xf32>
    %36 = arith.addf %30, %35 : vector<32x1024xf32>
    %37 = vector.extract_strided_slice %16 {offsets = [0, 3, 0], sizes = [32, 1, 128], strides = [1, 1, 1]} : vector<32x16x128xbf16> to vector<32x1x128xbf16>
    %38 = vector.shape_cast %37 : vector<32x1x128xbf16> to vector<32x128xbf16>
    %c3 = arith.constant 3 : index
    %c0_22 = arith.constant 0 : index
    %c0_23 = arith.constant 0 : index
    %39 = vector.load %arg5[%c3, %c0_22, %c0_23] : memref<16x128x1024xbf16, #tpu.memory_space<vmem>>, vector<1x128x1024xbf16>
    %40 = vector.shape_cast %39 : vector<1x128x1024xbf16> to vector<128x1024xbf16>
    %cst_24 = arith.constant dense<0.000000e+00> : vector<32x1024xf32>
    %41 = tpu.matmul %38, %40, %cst_24 {dimension_numbers = #tpu.dot_dimension_numbers<[1], [0], [0], [1], [0, 0, 1, 1], [], []>} : vector<32x128xbf16>, vector<128x1024xbf16>, vector<32x1024xf32> -> vector<32x1024xf32>
    %42 = arith.addf %36, %41 : vector<32x1024xf32>
    %43 = vector.extract_strided_slice %16 {offsets = [0, 4, 0], sizes = [32, 1, 128], strides = [1, 1, 1]} : vector<32x16x128xbf16> to vector<32x1x128xbf16>
    %44 = vector.shape_cast %43 : vector<32x1x128xbf16> to vector<32x128xbf16>
    %c4 = arith.constant 4 : index
    %c0_25 = arith.constant 0 : index
    %c0_26 = arith.constant 0 : index
    %45 = vector.load %arg5[%c4, %c0_25, %c0_26] : memref<16x128x1024xbf16, #tpu.memory_space<vmem>>, vector<1x128x1024xbf16>
    %46 = vector.shape_cast %45 : vector<1x128x1024xbf16> to vector<128x1024xbf16>
    %cst_27 = arith.constant dense<0.000000e+00> : vector<32x1024xf32>
    %47 = tpu.matmul %44, %46, %cst_27 {dimension_numbers = #tpu.dot_dimension_numbers<[1], [0], [0], [1], [0, 0, 1, 1], [], []>} : vector<32x128xbf16>, vector<128x1024xbf16>, vector<32x1024xf32> -> vector<32x1024xf32>
    %48 = arith.addf %42, %47 : vector<32x1024xf32>
    %49 = vector.extract_strided_slice %16 {offsets = [0, 5, 0], sizes = [32, 1, 128], strides = [1, 1, 1]} : vector<32x16x128xbf16> to vector<32x1x128xbf16>
    %50 = vector.shape_cast %49 : vector<32x1x128xbf16> to vector<32x128xbf16>
    %c5 = arith.constant 5 : index
    %c0_28 = arith.constant 0 : index
    %c0_29 = arith.constant 0 : index
    %51 = vector.load %arg5[%c5, %c0_28, %c0_29] : memref<16x128x1024xbf16, #tpu.memory_space<vmem>>, vector<1x128x1024xbf16>
    %52 = vector.shape_cast %51 : vector<1x128x1024xbf16> to vector<128x1024xbf16>
    %cst_30 = arith.constant dense<0.000000e+00> : vector<32x1024xf32>
    %53 = tpu.matmul %50, %52, %cst_30 {dimension_numbers = #tpu.dot_dimension_numbers<[1], [0], [0], [1], [0, 0, 1, 1], [], []>} : vector<32x128xbf16>, vector<128x1024xbf16>, vector<32x1024xf32> -> vector<32x1024xf32>
    %54 = arith.addf %48, %53 : vector<32x1024xf32>
    %55 = vector.extract_strided_slice %16 {offsets = [0, 6, 0], sizes = [32, 1, 128], strides = [1, 1, 1]} : vector<32x16x128xbf16> to vector<32x1x128xbf16>
    %56 = vector.shape_cast %55 : vector<32x1x128xbf16> to vector<32x128xbf16>
    %c6 = arith.constant 6 : index
    %c0_31 = arith.constant 0 : index
    %c0_32 = arith.constant 0 : index
    %57 = vector.load %arg5[%c6, %c0_31, %c0_32] : memref<16x128x1024xbf16, #tpu.memory_space<vmem>>, vector<1x128x1024xbf16>
    %58 = vector.shape_cast %57 : vector<1x128x1024xbf16> to vector<128x1024xbf16>
    %cst_33 = arith.constant dense<0.000000e+00> : vector<32x1024xf32>
    %59 = tpu.matmul %56, %58, %cst_33 {dimension_numbers = #tpu.dot_dimension_numbers<[1], [0], [0], [1], [0, 0, 1, 1], [], []>} : vector<32x128xbf16>, vector<128x1024xbf16>, vector<32x1024xf32> -> vector<32x1024xf32>
    %60 = arith.addf %54, %59 : vector<32x1024xf32>
    %61 = vector.extract_strided_slice %16 {offsets = [0, 7, 0], sizes = [32, 1, 128], strides = [1, 1, 1]} : vector<32x16x128xbf16> to vector<32x1x128xbf16>
    %62 = vector.shape_cast %61 : vector<32x1x128xbf16> to vector<32x128xbf16>
    %c7 = arith.constant 7 : index
    %c0_34 = arith.constant 0 : index
    %c0_35 = arith.constant 0 : index
    %63 = vector.load %arg5[%c7, %c0_34, %c0_35] : memref<16x128x1024xbf16, #tpu.memory_space<vmem>>, vector<1x128x1024xbf16>
    %64 = vector.shape_cast %63 : vector<1x128x1024xbf16> to vector<128x1024xbf16>
    %cst_36 = arith.constant dense<0.000000e+00> : vector<32x1024xf32>
    %65 = tpu.matmul %62, %64, %cst_36 {dimension_numbers = #tpu.dot_dimension_numbers<[1], [0], [0], [1], [0, 0, 1, 1], [], []>} : vector<32x128xbf16>, vector<128x1024xbf16>, vector<32x1024xf32> -> vector<32x1024xf32>
    %66 = arith.addf %60, %65 : vector<32x1024xf32>
    %67 = vector.extract_strided_slice %16 {offsets = [0, 8, 0], sizes = [32, 1, 128], strides = [1, 1, 1]} : vector<32x16x128xbf16> to vector<32x1x128xbf16>
    %68 = vector.shape_cast %67 : vector<32x1x128xbf16> to vector<32x128xbf16>
    %c8 = arith.constant 8 : index
    %c0_37 = arith.constant 0 : index
    %c0_38 = arith.constant 0 : index
    %69 = vector.load %arg5[%c8, %c0_37, %c0_38] : memref<16x128x1024xbf16, #tpu.memory_space<vmem>>, vector<1x128x1024xbf16>
    %70 = vector.shape_cast %69 : vector<1x128x1024xbf16> to vector<128x1024xbf16>
    %cst_39 = arith.constant dense<0.000000e+00> : vector<32x1024xf32>
    %71 = tpu.matmul %68, %70, %cst_39 {dimension_numbers = #tpu.dot_dimension_numbers<[1], [0], [0], [1], [0, 0, 1, 1], [], []>} : vector<32x128xbf16>, vector<128x1024xbf16>, vector<32x1024xf32> -> vector<32x1024xf32>
    %72 = arith.addf %66, %71 : vector<32x1024xf32>
    %73 = vector.extract_strided_slice %16 {offsets = [0, 9, 0], sizes = [32, 1, 128], strides = [1, 1, 1]} : vector<32x16x128xbf16> to vector<32x1x128xbf16>
    %74 = vector.shape_cast %73 : vector<32x1x128xbf16> to vector<32x128xbf16>
    %c9 = arith.constant 9 : index
    %c0_40 = arith.constant 0 : index
    %c0_41 = arith.constant 0 : index
    %75 = vector.load %arg5[%c9, %c0_40, %c0_41] : memref<16x128x1024xbf16, #tpu.memory_space<vmem>>, vector<1x128x1024xbf16>
    %76 = vector.shape_cast %75 : vector<1x128x1024xbf16> to vector<128x1024xbf16>
    %cst_42 = arith.constant dense<0.000000e+00> : vector<32x1024xf32>
    %77 = tpu.matmul %74, %76, %cst_42 {dimension_numbers = #tpu.dot_dimension_numbers<[1], [0], [0], [1], [0, 0, 1, 1], [], []>} : vector<32x128xbf16>, vector<128x1024xbf16>, vector<32x1024xf32> -> vector<32x1024xf32>
    %78 = arith.addf %72, %77 : vector<32x1024xf32>
    %79 = vector.extract_strided_slice %16 {offsets = [0, 10, 0], sizes = [32, 1, 128], strides = [1, 1, 1]} : vector<32x16x128xbf16> to vector<32x1x128xbf16>
    %80 = vector.shape_cast %79 : vector<32x1x128xbf16> to vector<32x128xbf16>
    %c10 = arith.constant 10 : index
    %c0_43 = arith.constant 0 : index
    %c0_44 = arith.constant 0 : index
    %81 = vector.load %arg5[%c10, %c0_43, %c0_44] : memref<16x128x1024xbf16, #tpu.memory_space<vmem>>, vector<1x128x1024xbf16>
    %82 = vector.shape_cast %81 : vector<1x128x1024xbf16> to vector<128x1024xbf16>
    %cst_45 = arith.constant dense<0.000000e+00> : vector<32x1024xf32>
    %83 = tpu.matmul %80, %82, %cst_45 {dimension_numbers = #tpu.dot_dimension_numbers<[1], [0], [0], [1], [0, 0, 1, 1], [], []>} : vector<32x128xbf16>, vector<128x1024xbf16>, vector<32x1024xf32> -> vector<32x1024xf32>
    %84 = arith.addf %78, %83 : vector<32x1024xf32>
    %85 = vector.extract_strided_slice %16 {offsets = [0, 11, 0], sizes = [32, 1, 128], strides = [1, 1, 1]} : vector<32x16x128xbf16> to vector<32x1x128xbf16>
    %86 = vector.shape_cast %85 : vector<32x1x128xbf16> to vector<32x128xbf16>
    %c11 = arith.constant 11 : index
    %c0_46 = arith.constant 0 : index
    %c0_47 = arith.constant 0 : index
    %87 = vector.load %arg5[%c11, %c0_46, %c0_47] : memref<16x128x1024xbf16, #tpu.memory_space<vmem>>, vector<1x128x1024xbf16>
    %88 = vector.shape_cast %87 : vector<1x128x1024xbf16> to vector<128x1024xbf16>
    %cst_48 = arith.constant dense<0.000000e+00> : vector<32x1024xf32>
    %89 = tpu.matmul %86, %88, %cst_48 {dimension_numbers = #tpu.dot_dimension_numbers<[1], [0], [0], [1], [0, 0, 1, 1], [], []>} : vector<32x128xbf16>, vector<128x1024xbf16>, vector<32x1024xf32> -> vector<32x1024xf32>
    %90 = arith.addf %84, %89 : vector<32x1024xf32>
    %91 = vector.extract_strided_slice %16 {offsets = [0, 12, 0], sizes = [32, 1, 128], strides = [1, 1, 1]} : vector<32x16x128xbf16> to vector<32x1x128xbf16>
    %92 = vector.shape_cast %91 : vector<32x1x128xbf16> to vector<32x128xbf16>
    %c12 = arith.constant 12 : index
    %c0_49 = arith.constant 0 : index
    %c0_50 = arith.constant 0 : index
    %93 = vector.load %arg5[%c12, %c0_49, %c0_50] : memref<16x128x1024xbf16, #tpu.memory_space<vmem>>, vector<1x128x1024xbf16>
    %94 = vector.shape_cast %93 : vector<1x128x1024xbf16> to vector<128x1024xbf16>
    %cst_51 = arith.constant dense<0.000000e+00> : vector<32x1024xf32>
    %95 = tpu.matmul %92, %94, %cst_51 {dimension_numbers = #tpu.dot_dimension_numbers<[1], [0], [0], [1], [0, 0, 1, 1], [], []>} : vector<32x128xbf16>, vector<128x1024xbf16>, vector<32x1024xf32> -> vector<32x1024xf32>
    %96 = arith.addf %90, %95 : vector<32x1024xf32>
    %97 = vector.extract_strided_slice %16 {offsets = [0, 13, 0], sizes = [32, 1, 128], strides = [1, 1, 1]} : vector<32x16x128xbf16> to vector<32x1x128xbf16>
    %98 = vector.shape_cast %97 : vector<32x1x128xbf16> to vector<32x128xbf16>
    %c13 = arith.constant 13 : index
    %c0_52 = arith.constant 0 : index
    %c0_53 = arith.constant 0 : index
    %99 = vector.load %arg5[%c13, %c0_52, %c0_53] : memref<16x128x1024xbf16, #tpu.memory_space<vmem>>, vector<1x128x1024xbf16>
    %100 = vector.shape_cast %99 : vector<1x128x1024xbf16> to vector<128x1024xbf16>
    %cst_54 = arith.constant dense<0.000000e+00> : vector<32x1024xf32>
    %101 = tpu.matmul %98, %100, %cst_54 {dimension_numbers = #tpu.dot_dimension_numbers<[1], [0], [0], [1], [0, 0, 1, 1], [], []>} : vector<32x128xbf16>, vector<128x1024xbf16>, vector<32x1024xf32> -> vector<32x1024xf32>
    %102 = arith.addf %96, %101 : vector<32x1024xf32>
    %103 = vector.extract_strided_slice %16 {offsets = [0, 14, 0], sizes = [32, 1, 128], strides = [1, 1, 1]} : vector<32x16x128xbf16> to vector<32x1x128xbf16>
    %104 = vector.shape_cast %103 : vector<32x1x128xbf16> to vector<32x128xbf16>
    %c14 = arith.constant 14 : index
    %c0_55 = arith.constant 0 : index
    %c0_56 = arith.constant 0 : index
    %105 = vector.load %arg5[%c14, %c0_55, %c0_56] : memref<16x128x1024xbf16, #tpu.memory_space<vmem>>, vector<1x128x1024xbf16>
    %106 = vector.shape_cast %105 : vector<1x128x1024xbf16> to vector<128x1024xbf16>
    %cst_57 = arith.constant dense<0.000000e+00> : vector<32x1024xf32>
    %107 = tpu.matmul %104, %106, %cst_57 {dimension_numbers = #tpu.dot_dimension_numbers<[1], [0], [0], [1], [0, 0, 1, 1], [], []>} : vector<32x128xbf16>, vector<128x1024xbf16>, vector<32x1024xf32> -> vector<32x1024xf32>
    %108 = arith.addf %102, %107 : vector<32x1024xf32>
    %109 = vector.extract_strided_slice %16 {offsets = [0, 15, 0], sizes = [32, 1, 128], strides = [1, 1, 1]} : vector<32x16x128xbf16> to vector<32x1x128xbf16>
    %110 = vector.shape_cast %109 : vector<32x1x128xbf16> to vector<32x128xbf16>
    %c15 = arith.constant 15 : index
    %c0_58 = arith.constant 0 : index
    %c0_59 = arith.constant 0 : index
    %111 = vector.load %arg5[%c15, %c0_58, %c0_59] : memref<16x128x1024xbf16, #tpu.memory_space<vmem>>, vector<1x128x1024xbf16>
    %112 = vector.shape_cast %111 : vector<1x128x1024xbf16> to vector<128x1024xbf16>
    %cst_60 = arith.constant dense<0.000000e+00> : vector<32x1024xf32>
    %113 = tpu.matmul %110, %112, %cst_60 {dimension_numbers = #tpu.dot_dimension_numbers<[1], [0], [0], [1], [0, 0, 1, 1], [], []>} : vector<32x128xbf16>, vector<128x1024xbf16>, vector<32x1024xf32> -> vector<32x1024xf32>
    %114 = arith.addf %108, %113 : vector<32x1024xf32>
    %cst_61 = arith.constant 0.000000e+00 : f32
    %115 = vector.broadcast %cst_61 : f32 to vector<32x1024xf32>
    %116 = arith.maximumf %114, %115 : vector<32x1024xf32>
    %117 = arith.truncf %116 : vector<32x1024xf32> to vector<32x1024xbf16>
    %c0_62 = arith.constant 0 : index
    %c0_63 = arith.constant 0 : index
    %118 = vector.load %arg7[%c0_62, %c0_63] : memref<1024x128xbf16, #tpu.memory_space<vmem>>, vector<1024x128xbf16>
    %cst_64 = arith.constant dense<0.000000e+00> : vector<32x128xf32>
    %119 = tpu.matmul %117, %118, %cst_64 {dimension_numbers = #tpu.dot_dimension_numbers<[1], [0], [0], [1], [0, 0, 1, 1], [], []>} : vector<32x1024xbf16>, vector<1024x128xbf16>, vector<32x128xf32> -> vector<32x128xf32>
    %c0_65 = arith.constant 0 : index
    %c0_66 = arith.constant 0 : index
    %120 = vector.load %arg8[%c0_65, %c0_66] : memref<1x128xf32, #tpu.memory_space<vmem>>, vector<1x128xf32>
    %121 = vector.broadcast %120 : vector<1x128xf32> to vector<32x128xf32>
    %122 = arith.addf %119, %121 : vector<32x128xf32>
    %c0_67 = arith.constant 0 : index
    %c0_68 = arith.constant 0 : index
    %123 = vector.load %arg9[%c0_67, %c0_68] : memref<32x128xf32, #tpu.memory_space<vmem>>, vector<32x128xf32>
    tpu.vector_store %arg9[%c0_67, %c0_68], %122 {strides = array<i32>} : memref<32x128xf32, #tpu.memory_space<vmem>>, vector<32x128xf32>,
    return
  }
  func.func @transform_0(%arg0: i32) -> (i32, i32, i32) {
    %c0_i32 = arith.constant 0 : i32
    %c0_i32_0 = arith.constant 0 : i32
    %c0_i32_1 = arith.constant 0 : i32
    return %arg0, %c0_i32, %c0_i32_0 : i32, i32, i32
  }
  func.func @transform_1(%arg0: i32) -> (i32, i32) {
    %c0_i32 = arith.constant 0 : i32
    %c0_i32_0 = arith.constant 0 : i32
    %c0_i32_1 = arith.constant 0 : i32
    return %c0_i32, %c0_i32_0 : i32, i32
  }
  func.func @transform_2(%arg0: i32) -> (i32, i32) {
    %c0_i32 = arith.constant 0 : i32
    %c0_i32_0 = arith.constant 0 : i32
    %c0_i32_1 = arith.constant 0 : i32
    return %c0_i32, %c0_i32_0 : i32, i32
  }
  func.func @transform_3(%arg0: i32) -> (i32, i32) {
    %c0_i32 = arith.constant 0 : i32
    %c0_i32_0 = arith.constant 0 : i32
    %c0_i32_1 = arith.constant 0 : i32
    return %c0_i32, %c0_i32_0 : i32, i32
  }
  func.func @transform_4(%arg0: i32) -> (i32, i32, i32) {
    %c0_i32 = arith.constant 0 : i32
    %c0_i32_0 = arith.constant 0 : i32
    %c0_i32_1 = arith.constant 0 : i32
    %c0_i32_2 = arith.constant 0 : i32
    return %c0_i32, %c0_i32_0, %c0_i32_1 : i32, i32, i32
  }
  func.func @transform_5(%arg0: i32) -> (i32, i32) {
    %c0_i32 = arith.constant 0 : i32
    %c0_i32_0 = arith.constant 0 : i32
    %c0_i32_1 = arith.constant 0 : i32
    return %c0_i32, %c0_i32_0 : i32, i32
  }
  func.func @transform_6(%arg0: i32) -> (i32, i32) {
    %c0_i32 = arith.constant 0 : i32
    %c0_i32_0 = arith.constant 0 : i32
    %c0_i32_1 = arith.constant 0 : i32
    return %c0_i32, %c0_i32_0 : i32, i32
  }
  func.func @transform_7(%arg0: i32) -> (i32, i32) {
    %c0_i32 = arith.constant 0 : i32
    %c0_i32_0 = arith.constant 0 : i32
    %c0_i32_1 = arith.constant 0 : i32
    return %c0_i32, %c0_i32_0 : i32, i32
  }
  func.func @transform_8(%arg0: i32) -> (i32, i32) {
    %c0_i32 = arith.constant 0 : i32
    %c0_i32_0 = arith.constant 0 : i32
    return %arg0, %c0_i32 : i32, i32
  }
}

</mosaic_0001>

<bundles_post_ra>
// kernel: tpu_custom_call.1
= control target key start
LH: loop header
LB: loop body
LE: loop exit
PB: predicated region body
PF: predicated region fallthrough
CT: control target
= control target key end

     0   :  { %13 = vsyncpa [#allocation3], 0  ;;  %s18418_s0 = inlined_call_operand.hbm [shape: bf16[32,4,196], index: 0, kind: input, shape index: {}]   ;;  %s18419_s1 = inlined_call_operand.vmem [shape: bf16[196,16], index: 1, kind: input, shape index: {}]   ;;  %s18420_s2 = inlined_call_operand.hbm [shape: bf16[4,128], index: 2, kind: input, shape index: {}]   ;;  %s18421_s3 = inlined_call_operand.hbm [shape: f32[1,128], index: 3, kind: input, shape index: {}]   ;;  %s18422_s4 = inlined_call_operand.hbm [shape: bf16[16,128,1024], index: 4, kind: input, shape index: {}]   ;;  %s18423_s5 = inlined_call_operand.hbm [shape: f32[1,1024], index: 5, kind: input, shape index: {}]   ;;  %s18424_s6 = inlined_call_operand.hbm [shape: bf16[1024,128], index: 6, kind: input, shape index: {}]   ;;  %s18425_s7 = inlined_call_operand.hbm [shape: f32[1,128], index: 7, kind: input, shape index: {}]   ;;  %s18426_s8 = inlined_call_operand.hbm [shape: f32[32,128], index: 8, kind: output, shape index: {}]  }
   0x1   :  { %14 = vsyncpa [#allocation6], 0 }
   0x2   :  { %15 = vsyncpa [#allocation9], 0 }
   0x3   :  { %16 = vsyncpa [#allocation12], 0 }
   0x4   :  { %17 = vsyncpa [#allocation4], 0  ;;  %s16451_s27 = smov [#allocation5]   ;;  %s16452_s29 = smov [#allocation8]  }
   0x5   :  { %s38_s28 = sshll.u32 %s16451_s27, 4  ;;  %s57_s30 = sshll.u32 %s16452_s29, 4  ;;  %s39_s28 = int_to_ptr.vmem [resolvable:$true] %s38_s28  ;;  %s16511_s30 = int_to_ptr.vmem [resolvable:$true] %s57_s30 }
   0x6   :  { %s16265_s11 = scalar_lea.hbm %s18420_s2, 32 }
   0x7   :  { %p16266_p0 = scmp.ne.s32.totalorder %s18420_s2, %s16265_s11  ;;  %p16269_p1 = scmp.lt.u32.totalorder %s16265_s11, %s18420_s2 }
   0x9   :  { %p16271_p2 = pnand %p16269_p1, %p16266_p0 }
   0xb   :  { %16274 = shalt.err (!%p16271_p2)
}
   0xc   :  { %s16275_s16 = scalar_lea.vmem %s39_s28, 32  ;;  %p16280_p4 = scmp.lt.s32.totalorder %s39_s28, %s39_s28 }
   0xd   :  { %p16276_p3 = scmp.ne.s32.totalorder %s39_s28, %s16275_s16  ;;  %p16281_p5 = scmp.lt.s32.totalorder %s16275_s16, %s16275_s16 }
   0xf   :  { %p16282_p6 = por %p16281_p5, %p16280_p4 }
  0x11   :  { %p16283_p7 = pnand %p16282_p6, %p16276_p3 }
  0x13   :  { %16286 = shalt.err (!%p16283_p7)
}
  0x14   :  { %41 = dma.hbm_to_vmem [thread:$0]  %s18420_s2, 32, %s39_s28, [#allocation6]  }
  0x15   :  { %s16287_s21 = scalar_lea.hbm %s18422_s4, 131072 }
  0x16   :  { %p16288_p8 = scmp.ne.s32.totalorder %s18422_s4, %s16287_s21  ;;  %p16291_p9 = scmp.lt.u32.totalorder %s16287_s21, %s18422_s4 }
  0x18   :  { %p16293_p10 = pnand %p16291_p9, %p16288_p8 }
  0x1a   :  { %16296 = shalt.err (!%p16293_p10)
}
  0x1b   :  { %s16297_s26 = scalar_lea.vmem %s16511_s30, 131072  ;;  %p16302_p12 = scmp.lt.s32.totalorder %s16511_s30, %s16511_s30 }
  0x1c   :  { %p16298_p11 = scmp.ne.s32.totalorder %s16511_s30, %s16297_s26  ;;  %p16303_p13 = scmp.lt.s32.totalorder %s16297_s26, %s16297_s26 }
  0x1e   :  { %p16304_p0 = por %p16303_p13, %p16302_p12 }
  0x20   :  { %p16305_p1 = pnand %p16304_p0, %p16298_p11 }
  0x22   :  { %16308 = shalt.err (!%p16305_p1)
}
  0x23   :  { %s16453_s2 = smov 512   ;;  %s16454_s27 = smov 32  }
  0x24   :  { %63 = dma.hbm_to_vmem [thread:$0]  %s18422_s4, 131072, %s16511_s30, [#allocation9], %s16453_s2, %s16453_s2, %s16454_s27  }
  0x25   :  { %s16455_s9 = smov [#allocation11]   ;;  %s16456_s11 = smov [#allocation2]  }
  0x26   :  { %s79_s10 = sshll.u32 %s16455_s9, 4  ;;  %s23_s12 = sshll.u32 %s16456_s11, 4  ;;  %s80_s10 = int_to_ptr.vmem [resolvable:$true] %s79_s10  ;;  %s16542_s12 = int_to_ptr.vmem [resolvable:$true] %s23_s12 }
  0x27   :  { %s16309_s15 = scalar_lea.hbm %s18424_s6, 8192 }
  0x28   :  { %p16310_p2 = scmp.ne.s32.totalorder %s18424_s6, %s16309_s15  ;;  %p16313_p3 = scmp.lt.u32.totalorder %s16309_s15, %s18424_s6 }
  0x2a   :  { %p16315_p4 = pnand %p16313_p3, %p16310_p2 }
  0x2c   :  { %16318 = shalt.err (!%p16315_p4)
}
  0x2d   :  { %s16319_s4 = scalar_lea.vmem %s80_s10, 8192  ;;  %p16324_p6 = scmp.lt.s32.totalorder %s80_s10, %s80_s10 }
  0x2e   :  { %p16320_p5 = scmp.ne.s32.totalorder %s80_s10, %s16319_s4  ;;  %p16325_p7 = scmp.lt.s32.totalorder %s16319_s4, %s16319_s4 }
  0x30   :  { %p16326_p8 = por %p16325_p7, %p16324_p6 }
  0x32   :  { %p16327_p9 = pnand %p16326_p8, %p16320_p5 }
  0x34   :  { %16330 = shalt.err (!%p16327_p9)
}
  0x35   :  { %s16457_s30 = smov 64   ;;  %s16458_s20 = smov 4  }
  0x36   :  { %85 = dma.hbm_to_vmem [thread:$0]  %s18424_s6, 8192, %s80_s10, [#allocation12], %s16457_s30, %s16457_s30, %s16458_s20  }
  0x37   :  { %s16331_s25 = scalar_lea.hbm %s18418_s0, 2048 }
  0x38   :  { %p16332_p10 = scmp.ne.s32.totalorder %s18418_s0, %s16331_s25  ;;  %p16335_p11 = scmp.lt.u32.totalorder %s16331_s25, %s18418_s0 }
  0x3a   :  { %p16337_p12 = pnand %p16335_p11, %p16332_p10 }
  0x3c   :  { %16340 = shalt.err (!%p16337_p12)
}
  0x3d   :  { %s16341_s29 = scalar_lea.vmem %s16542_s12, 2048  ;;  %p16346_p0 = scmp.lt.s32.totalorder %s16542_s12, %s16542_s12 }
  0x3e   :  { %p16342_p13 = scmp.ne.s32.totalorder %s16542_s12, %s16341_s29  ;;  %p16347_p1 = scmp.lt.s32.totalorder %s16341_s29, %s16341_s29 }
  0x40   :  { %p16348_p2 = por %p16347_p1, %p16346_p0 }
  0x42   :  { %p16349_p3 = pnand %p16348_p2, %p16342_p13 }
  0x44   :  { %16352 = shalt.err (!%p16349_p3)
}
  0x45   :  { %29 = dma.hbm_to_vmem [thread:$0]  %s18418_s0, 2048, %s16542_s12, [#allocation3], %s16457_s30, %s16457_s30, %s16458_s20  }
  0x46   :  { %s16459_s10 = smov [#allocation7]   ;;  %s16460_s13 = smov [#allocation10]  }
  0x47   :  { %s48_s11 = sshll.u32 %s16459_s10, 4  ;;  %s70_s14 = sshll.u32 %s16460_s13, 4  ;;  %s49_s11 = int_to_ptr.vmem [resolvable:$true] %s48_s11  ;;  %s71_s14 = int_to_ptr.vmem [resolvable:$true] %s70_s14 }
  0x48   :  { %s16353_s17 = scalar_lea.hbm %s18421_s3, 16 }
  0x49   :  { %p16354_p4 = scmp.ne.s32.totalorder %s18421_s3, %s16353_s17  ;;  %p16357_p5 = scmp.lt.u32.totalorder %s16353_s17, %s18421_s3 }
  0x4b   :  { %p16359_p6 = pnand %p16357_p5, %p16354_p4 }
  0x4d   :  { %16362 = shalt.err (!%p16359_p6)
}
  0x4e   :  { %s16363_s0 = scalar_lea.vmem %s49_s11, 16  ;;  %s16367_s12 = scalar_lea.vmem %s49_s11, 32 }
  0x4f   :  { %p16364_p7 = scmp.ne.s32.totalorder %s49_s11, %s16363_s0  ;;  %p16368_p8 = scmp.lt.s32.totalorder %s49_s11, %s49_s11 }
  0x50   :  { %p16369_p9 = scmp.lt.s32.totalorder %s16367_s12, %s16363_s0 }
  0x52   :  { %p16370_p10 = por %p16369_p9, %p16368_p8 }
  0x54   :  { %p16371_p11 = pnand %p16370_p10, %p16364_p7 }
  0x56   :  { %16374 = shalt.err (!%p16371_p11)
}
  0x57   :  { %51 = dma.hbm_to_vmem [thread:$0]  %s18421_s3, 16, %s49_s11, [#allocation6]  }
  0x58   :  { %s16375_s24 = scalar_lea.hbm %s18423_s5, 128 }
  0x59   :  { %p16376_p12 = scmp.ne.s32.totalorder %s18423_s5, %s16375_s24  ;;  %p16379_p13 = scmp.lt.u32.totalorder %s16375_s24, %s18423_s5 }
  0x5b   :  { %p16381_p0 = pnand %p16379_p13, %p16376_p12 }
  0x5d   :  { %16384 = shalt.err (!%p16381_p0)
}
  0x5e   :  { %s16385_s28 = scalar_lea.vmem %s71_s14, 128  ;;  %p16390_p2 = scmp.lt.s32.totalorder %s71_s14, %s71_s14 }
  0x5f   :  { %p16386_p1 = scmp.ne.s32.totalorder %s71_s14, %s16385_s28  ;;  %p16391_p3 = scmp.lt.s32.totalorder %s16385_s28, %s16385_s28 }
  0x61   :  { %p16392_p4 = por %p16391_p3, %p16390_p2 }
  0x63   :  { %p16393_p5 = pnand %p16392_p4, %p16386_p1 }
  0x65   :  { %16396 = shalt.err (!%p16393_p5)
}
  0x66   :  { %73 = dma.hbm_to_vmem [thread:$0]  %s18423_s5, 128, %s71_s14, [#allocation9]  }
  0x67   :  { %s16461_s6 = smov [#allocation13]   ;;  %s16397_s13 = scalar_lea.hbm %s18425_s7, 16 }
  0x68   :  { %s92_s9 = sshll.u32 %s16461_s6, 4  ;;  %p16398_p6 = scmp.ne.s32.totalorder %s18425_s7, %s16397_s13  ;;  %s93_s9 = int_to_ptr.vmem [resolvable:$true] %s92_s9 }
  0x69   :  { %p16401_p7 = scmp.lt.u32.totalorder %s16397_s13, %s18425_s7 }
  0x6b   :  { %p16403_p8 = pnand %p16401_p7, %p16398_p6 }
  0x6d   :  { %16406 = shalt.err (!%p16403_p8)
}
  0x6e   :  { %s16407_s19 = scalar_lea.vmem %s93_s9, 16  ;;  %s16411_s5 = scalar_lea.vmem %s93_s9, 32 }
  0x6f   :  { %p16408_p9 = scmp.ne.s32.totalorder %s93_s9, %s16407_s19  ;;  %p16412_p10 = scmp.lt.s32.totalorder %s93_s9, %s93_s9 }
  0x70   :  { %p16413_p11 = scmp.lt.s32.totalorder %s16411_s5, %s16407_s19 }
  0x72   :  { %p16414_p12 = por %p16413_p11, %p16412_p10 }
  0x74   :  { %p16415_p13 = pnand %p16414_p12, %p16408_p9 }
  0x76   :  { %16418 = shalt.err (!%p16415_p13)
}
  0x77   :  { %95 = dma.hbm_to_vmem [thread:$0]  %s18425_s7, 16, %s93_s9, [#allocation12]  }
  0x78   :  { %16441 = dma.done.wait [#allocation3], 2048  }
  0x79   :  { %16442 = vsyncadd [#allocation3], 4294965248 }
  0x7a   :  { %16443 = dma.done.wait [#allocation6], 48  }
  0x7b   :  { %16444 = vsyncadd [#allocation6], 4294967248 }
  0x7c   :  { %16445 = dma.done.wait [#allocation9], 131200  }
  0x7d   :  { %16446 = vsyncadd [#allocation9], 4294836096 }
  0x7e   :  { %16447 = dma.done.wait [#allocation12], 8208  }
  0x7f   :  { %16448 = vsyncadd [#allocation12], 4294959088  ;;  %v18427_v0 = vmov 0   ;;  %v16156_v1 = vld [vmem:[%s18419_s1] sm:$0xff]   ;;  %v16157_v2 = vld [vmem:[%s18419_s1 + $0x8] sm:$0xff]   ;;  %v212_v3 = vlaneseq  ;;  %vm434_vm0 = vcmask 556032  }
  0x80   :  { %463 = vmatprep.subr.bf16.mxu0 %v18427_v0  ;;  %v16158_v4 = vld [vmem:[%s18419_s1 + $0x10] sm:$0xff]   ;;  %v16159_v6 = vld [vmem:[%s18419_s1 + $0x18] sm:$0xff]   ;;  %v16160_v7 = vld [vmem:[%s18419_s1 + $0x20] sm:$0xff]   ;;  %vm459_vm1 = vcmask 1041408   ;;  %vm1672_vm2 = vcmask 31744   ;;  %vm2328_vm3 = vcmask 1041409  }
  0x81   :  { %464 = vmatpush1.bf16.msra.mxu0 %v16156_v1  ;;  %v16620_v5 = vshrl.u32 %v212_v3, 7  ;;  %v16249_v8 = vld.sshfl [vmem:[#allocation2] sm:$0xff pattern:$0x76325410]  ;;  %v16161_v10 = vld [vmem:[%s18419_s1 + $0x28] sm:$0xff]   ;;  %v16162_v12 = vld [vmem:[%s18419_s1 + $0x30] sm:$0xff]  }
  0x82   :  { %465 = vmatprep.subr.bf16.mxu0 %v18427_v0  ;;  %v16250_v9 = vld.sshfl [vmem:[#allocation2 + $0x8] sm:$0xff pattern:$0x76325410]  ;;  %v16168_v13 = vld [vmem:[%s18419_s1 + $0x60] ss:$0 sps:$4 sm:$0x33]  }
  0x83   :  { %18489 = vst [vmem:[#allocation20_spill] sm:$0xff] %v16620_v5  ;;  %v224_v11 = vcombine.high %v16249_v8, %v16250_v9  ;;  %v16163_v14 = vld [vmem:[%s18419_s1 + $0x38] sm:$0xff]   ;;  %v16164_v15 = vld [vmem:[%s18419_s1 + $0x40] sm:$0xff]   ;;  %v461_v16 = vsel %vm459_vm1, %v16168_v13, 0  ;;  %v16165_v17 = vld [vmem:[%s18419_s1 + $0x48] sm:$0xff]   ;;  %v223_v24 = vcombine.low %v16249_v8, %v16250_v9  ;;  %vm2331_vm4 = vcmask 1042434  }
  0x84   :  { %v16166_v18 = vld [vmem:[%s18419_s1 + $0x50] sm:$0xff]   ;;  %v16167_v19 = vld [vmem:[%s18419_s1 + $0x58] sm:$0xff]   ;;  %v16253_v22 = vld.sshfl [vmem:[#allocation2 + $0x20] sm:$0xff pattern:$0x76325410]  ;;  %vm2334_vm5 = vcmask 1043459  }
  0x85   :  { %466 = vmatpush1.bf16.msra.mxu0 %v16157_v2  ;;  %14093 = vmatprep.mubr.msk.bf16.mxu0 %vm434_vm0, %v224_v11  ;;  %v16251_v20 = vld.sshfl [vmem:[#allocation2 + $0x10] sm:$0xff pattern:$0x76325410]  ;;  %v16252_v21 = vld.sshfl [vmem:[#allocation2 + $0x18] sm:$0xff pattern:$0x76325410] }
  0x86   :  { %467 = vmatprep.subr.bf16.mxu0 %v18427_v0  ;;  %v16254_v23 = vld.sshfl [vmem:[#allocation2 + $0x28] sm:$0xff pattern:$0x76325410]  ;;  %v242_v25 = vcombine.high %v16251_v20, %v16252_v21  ;;  %v16255_v26 = vld.sshfl [vmem:[#allocation2 + $0x30] sm:$0xff pattern:$0x76325410]  ;;  %v241_v28 = vcombine.low %v16251_v20, %v16252_v21 }
  0x87   :  { %v16256_v27 = vld.sshfl [vmem:[#allocation2 + $0x38] sm:$0xff pattern:$0x76325410]  ;;  %v260_v29 = vcombine.high %v16253_v22, %v16254_v23  ;;  %v16257_v30 = vld.sshfl [vmem:[#allocation2 + $0x40] sm:$0xff pattern:$0x76325410]  ;;  %v259_v32 = vcombine.low %v16253_v22, %v16254_v23 }
  0x88   :  { %v16258_v31 = vld.sshfl [vmem:[#allocation2 + $0x48] sm:$0xff pattern:$0x76325410]  ;;  %v278_v33 = vcombine.high %v16255_v26, %v16256_v27  ;;  %v277_v34 = vcombine.low %v16255_v26, %v16256_v27  ;;  %v16259_v36 = vld.sshfl [vmem:[#allocation2 + $0x50] sm:$0xff pattern:$0x76325410] }
  0x89   :  { %468 = vmatpush1.bf16.msra.mxu0 %v16158_v4  ;;  %v296_v35 = vcombine.high %v16257_v30, %v16258_v31  ;;  %v16260_v37 = vld.sshfl [vmem:[#allocation2 + $0x58] sm:$0xff pattern:$0x76325410]  ;;  %v295_v38 = vcombine.low %v16257_v30, %v16258_v31  ;;  %v16261_v40 = vld.sshfl [vmem:[#allocation2 + $0x60] sm:$0xff pattern:$0x76325410] }
  0x8a   :  { %469 = vmatprep.subr.bf16.mxu0 %v18427_v0  ;;  %v314_v39 = vcombine.high %v16259_v36, %v16260_v37  ;;  %v16262_v41 = vld.sshfl [vmem:[#allocation2 + $0x68] sm:$0xff pattern:$0x76325410]  ;;  %v313_v42 = vcombine.low %v16259_v36, %v16260_v37  ;;  %v16263_v44 = vld.sshfl [vmem:[#allocation2 + $0x70] sm:$0xff pattern:$0x76325410] }
  0x8b   :  { %v332_v43 = vcombine.high %v16261_v40, %v16262_v41  ;;  %v16264_v45 = vld.sshfl [vmem:[#allocation2 + $0x78] sm:$0xff pattern:$0x76325410]  ;;  %v331_v46 = vcombine.low %v16261_v40, %v16262_v41  ;;  %v1664_v61 = vld [vmem:[#allocation5] sm:$0x3]  ;;  %vm2337_vm6 = vcmask 1044484  }
  0x8c   :  { %v350_v47 = vcombine.high %v16263_v44, %v16264_v45  ;;  %v349_v48 = vcombine.low %v16263_v44, %v16264_v45  ;;  %15946 = vmatprep.subr.msk.bf16.mxu1 %vm459_vm1, %v1664_v61  ;;  %v1770_v2 = vsel %vm459_vm1, %v1664_v61, 0  ;;  %vm2340_vm7 = vcmask 1045509   ;;  %v2176_v5 = vld [vmem:[#allocation8 + $0x98] sm:$0xff]  ;;  %s16463_s1 = smov [#allocation14]  }
  0x8d   :  { %470 = vmatpush1.bf16.msra.mxu0 %v16159_v6  ;;  %15369 = vmatpush3.bf16.msra.mxu1 %v1770_v2  ;;  %vm2343_vm8 = vcmask 1046534   ;;  %vm2346_vm9 = vcmask 1047559   ;;  %s14065_s5 = sshll.u32 %s16463_s1, 4  ;;  %s14066_s5 = int_to_ptr.vmem [resolvable:$true] %s14065_s5 }
  0x8e   :  { %471 = vmatprep.subr.bf16.mxu0 %v18427_v0  ;;  %s16419_s14 = scalar_lea.vmem %s14066_s5, 512  ;;  %p16424_p1 = scmp.lt.s32.totalorder %s14066_s5, %s14066_s5 }
  0x8f   :  { %p16420_p0 = scmp.ne.s32.totalorder %s14066_s5, %s16419_s14  ;;  %p16425_p2 = scmp.lt.s32.totalorder %s16419_s14, %s16419_s14 }
  0x91   :  { %472 = vmatpush1.bf16.msra.mxu0 %v16160_v7  ;;  %p16426_p3 = por %p16425_p2, %p16424_p1 }
  0x92   :  { %473 = vmatprep.subr.bf16.mxu0 %v18427_v0 }
  0x93   :  { %p16427_p4 = pnand %p16426_p3, %p16420_p0 }
  0x95   :  { %474 = vmatpush1.bf16.msra.mxu0 %v16161_v10 }
  0x96   :  { %475 = vmatprep.subr.bf16.mxu0 %v18427_v0 }
  0x99   :  { %476 = vmatpush1.bf16.msra.mxu0 %v16162_v12 }
  0x9a   :  { %477 = vmatprep.subr.bf16.mxu0 %v18427_v0 }
  0x9d   :  { %478 = vmatpush1.bf16.msra.mxu0 %v16163_v14 }
  0x9e   :  { %479 = vmatprep.subr.bf16.mxu0 %v18427_v0 }
  0xa1   :  { %480 = vmatpush1.bf16.msra.mxu0 %v16164_v15 }
  0xa2   :  { %481 = vmatprep.subr.bf16.mxu0 %v18427_v0 }
  0xa5   :  { %482 = vmatpush1.bf16.msra.mxu0 %v16165_v17 }
  0xa6   :  { %483 = vmatprep.subr.bf16.mxu0 %v18427_v0 }
  0xa9   :  { %484 = vmatpush1.bf16.msra.mxu0 %v16166_v18 }
  0xaa   :  { %485 = vmatprep.subr.bf16.mxu0 %v18427_v0 }
  0xad   :  { %486 = vmatpush1.bf16.msra.mxu0 %v16167_v19 }
  0xae   :  { %487 = vmatprep.subr.bf16.mxu0 %v18427_v0 }
  0xb1   :  { %488 = vmatpush1.bf16.msra.mxu0 %v461_v16 }
  0xb4   :  { %496 = vmatmul.mubr.bf16.vlgmr.msra.gmra.mrb[0].mxu0 %v223_v24 }
  0xb5   :  { %14094 = vmatprep.mubr.msk.bf16.mxu0 %vm434_vm0, %v242_v25 }
  0xbc   :  { %504 = vmatmul.mubr.bf16.gmra.mrb[4].mxu0 %v241_v28 }
  0xbd   :  { %14095 = vmatprep.mubr.msk.bf16.mxu0 %vm434_vm0, %v260_v29 }
  0xc4   :  { %512 = vmatmul.mubr.bf16.gmra.mrb[8].mxu0 %v259_v32 }
  0xc5   :  { %14096 = vmatprep.mubr.msk.bf16.mxu0 %vm434_vm0, %v278_v33 }
  0xcc   :  { %520 = vmatmul.mubr.bf16.gmra.mrb[12].mxu0 %v277_v34 }
  0xcd   :  { %14097 = vmatprep.mubr.msk.bf16.mxu0 %vm434_vm0, %v296_v35 }
  0xd4   :  { %528 = vmatmul.mubr.bf16.gmra.mrb[16].mxu0 %v295_v38 }
  0xd5   :  { %14098 = vmatprep.mubr.msk.bf16.mxu0 %vm434_vm0, %v314_v39 }
  0xdc   :  { %536 = vmatmul.mubr.bf16.gmra.mrb[20].mxu0 %v313_v42 }
  0xdd   :  { %14099 = vmatprep.mubr.msk.bf16.mxu0 %vm434_vm0, %v332_v43 }
  0xe4   :  { %544 = vmatmul.mubr.bf16.gmra.mrb[24].mxu0 %v331_v46 }
  0xe5   :  { %14100 = vmatprep.mubr.msk.bf16.mxu0 %vm434_vm0, %v350_v47 }
  0xec   :  { %552 = vmatmul.mubr.bf16.gmra.mrb[28].mxu0 %v349_v48 }
  0xed   :  { %2746 = vmatprep.mubr.bf16.mxu0 %v18427_v0 }
 0x187   :  { %v497_v49 = vpop.f32.mrb[0].mxu0 }
 0x188   :  { %v576_v50 = vcombine.high %v497_v49, %v497_v49  ;;  %v499_v51 = vpop.f32.mrb[1].mxu0 }
 0x189   :  { %v500_v52 = vpop.f32.mrb[2].mxu0 }
 0x18a   :  { %v502_v53 = vpop.f32.mrb[3].mxu0  ;;  %v15964_v54 = vpack.i.bf16 %v576_v50, %v497_v49  ;;  %v577_v55 = vcombine.high %v500_v52, %v500_v52 }
 0x18c   :  { %15965 = vxpose.xlu0.b32.start.end [1/1] (short) (narrow) %v15964_v54, 16  ;;  %v15976_v57 = vpack.i.bf16 %v577_v55, %v500_v52  ;;  %v2158_v54 = vld [vmem:[#allocation8 + $0x8] sm:$0xff] }
 0x18d   :  { %v2162_v55 = vld [vmem:[#allocation8 + $0x28] sm:$0xff] }
 0x18f   :  { %v505_v56 = vpop.f32.mrb[4].mxu0 }
 0x190   :  { %v578_v58 = vcombine.high %v505_v56, %v505_v56  ;;  %v507_v59 = vpop.f32.mrb[5].mxu0 }
 0x191   :  { %15977 = vxpose.xlu0.b32.start.end [1/1] (short) (narrow) %v15976_v57, 16  ;;  %v508_v60 = vpop.f32.mrb[6].mxu0 }
 0x192   :  { %v15988_v62 = vpack.i.bf16 %v578_v58, %v505_v56  ;;  %v579_v63 = vcombine.high %v508_v60, %v508_v60  ;;  %v510_v1 = vpop.f32.mrb[7].mxu0  ;;  %v14137_v56 = vcombine.high %v2158_v54, %v2162_v55 }
 0x193   :  { %v14136_v1 = vcombine.low %v2158_v54, %v2162_v55 }
 0x194   :  { %15989 = vxpose.xlu1.b32.start.end [1/1] (short) (narrow) %v15988_v62, 16  ;;  %v16000_v3 = vpack.i.bf16 %v579_v63, %v508_v60  ;;  %2767 = vmatprep.subr.bf16.mxu1 %v14137_v56 }
 0x197   :  { %v513_v4 = vpop.f32.mrb[8].mxu0 }
 0x198   :  { %v580_v6 = vcombine.high %v513_v4, %v513_v4  ;;  %v515_v7 = vpop.f32.mrb[9].mxu0 }
 0x199   :  { %16001 = vxpose.xlu1.b32.start.end [1/1] (short) (narrow) %v16000_v3, 16  ;;  %v516_v8 = vpop.f32.mrb[10].mxu0 }
 0x19a   :  { %v581_v9 = vcombine.high %v516_v8, %v516_v8  ;;  %v518_v10 = vpop.f32.mrb[11].mxu0  ;;  %v16012_v11 = vpack.i.bf16 %v580_v6, %v513_v4 }
 0x19c   :  { %16013 = vxpose.xlu0.b32.start.end [1/1] (short) (narrow) %v16012_v11, 16  ;;  %v16024_v12 = vpack.i.bf16 %v581_v9, %v516_v8 }
 0x19e   :  { %16025 = vxpose.xlu1.b32.start.end [1/1] (short) (narrow) %v16024_v12, 16 }
 0x19f   :  { %v521_v13 = vpop.f32.mrb[12].mxu0 }
 0x1a0   :  { %v582_v14 = vcombine.high %v521_v13, %v521_v13  ;;  %v523_v15 = vpop.f32.mrb[13].mxu0 }
 0x1a1   :  { %v524_v16 = vpop.f32.mrb[14].mxu0 }
 0x1a2   :  { %v583_v17 = vcombine.high %v524_v16, %v524_v16  ;;  %v526_v18 = vpop.f32.mrb[15].mxu0  ;;  %v16036_v19 = vpack.i.bf16 %v582_v14, %v521_v13 }
 0x1a4   :  { %16037 = vxpose.xlu0.b32.start.end [1/1] (short) (narrow) %v16036_v19, 16  ;;  %v16048_v20 = vpack.i.bf16 %v583_v17, %v524_v16 }
 0x1a6   :  { %16049 = vxpose.xlu1.b32.start.end [1/1] (short) (narrow) %v16048_v20, 16 }
 0x1a7   :  { %v529_v21 = vpop.f32.mrb[16].mxu0 }
 0x1a8   :  { %v584_v22 = vcombine.high %v529_v21, %v529_v21  ;;  %v531_v23 = vpop.f32.mrb[17].mxu0 }
 0x1a9   :  { %v532_v24 = vpop.f32.mrb[18].mxu0 }
 0x1aa   :  { %v585_v25 = vcombine.high %v532_v24, %v532_v24  ;;  %v534_v26 = vpop.f32.mrb[19].mxu0  ;;  %v16060_v27 = vpack.i.bf16 %v584_v22, %v529_v21 }
 0x1ac   :  { %16061 = vxpose.xlu0.b32.start.end [1/1] (short) (narrow) %v16060_v27, 16  ;;  %v16072_v28 = vpack.i.bf16 %v585_v25, %v532_v24 }
 0x1ae   :  { %16073 = vxpose.xlu1.b32.start.end [1/1] (short) (narrow) %v16072_v28, 16 }
 0x1af   :  { %v537_v29 = vpop.f32.mrb[20].mxu0 }
 0x1b0   :  { %v586_v30 = vcombine.high %v537_v29, %v537_v29  ;;  %v539_v31 = vpop.f32.mrb[21].mxu0 }
 0x1b1   :  { %v540_v32 = vpop.f32.mrb[22].mxu0 }
 0x1b2   :  { %v587_v33 = vcombine.high %v540_v32, %v540_v32  ;;  %v542_v34 = vpop.f32.mrb[23].mxu0  ;;  %v16084_v35 = vpack.i.bf16 %v586_v30, %v537_v29 }
 0x1b4   :  { %16085 = vxpose.xlu0.b32.start.end [1/1] (short) (narrow) %v16084_v35, 16  ;;  %v16096_v36 = vpack.i.bf16 %v587_v33, %v540_v32 }
 0x1b6   :  { %16097 = vxpose.xlu1.b32.start.end [1/1] (short) (narrow) %v16096_v36, 16 }
 0x1b7   :  { %v545_v37 = vpop.f32.mrb[24].mxu0 }
 0x1b8   :  { %v588_v38 = vcombine.high %v545_v37, %v545_v37  ;;  %v547_v39 = vpop.f32.mrb[25].mxu0 }
 0x1b9   :  { %v548_v40 = vpop.f32.mrb[26].mxu0 }
 0x1ba   :  { %v589_v41 = vcombine.high %v548_v40, %v548_v40  ;;  %v550_v42 = vpop.f32.mrb[27].mxu0  ;;  %v16108_v43 = vpack.i.bf16 %v588_v38, %v545_v37 }
 0x1bc   :  { %16109 = vxpose.xlu0.b32.start.end [1/1] (short) (narrow) %v16108_v43, 16  ;;  %v16120_v44 = vpack.i.bf16 %v589_v41, %v548_v40 }
 0x1be   :  { %16121 = vxpose.xlu1.b32.start.end [1/1] (short) (narrow) %v16120_v44, 16 }
 0x1bf   :  { %v553_v45 = vpop.f32.mrb[28].mxu0 }
 0x1c0   :  { %v590_v46 = vcombine.high %v553_v45, %v553_v45  ;;  %v555_v47 = vpop.f32.mrb[29].mxu0 }
 0x1c1   :  { %v556_v48 = vpop.f32.mrb[30].mxu0 }
 0x1c2   :  { %v591_v49 = vcombine.high %v556_v48, %v556_v48  ;;  %v558_v50 = vpop.f32.mrb[31].mxu0  ;;  %v16132_v51 = vpack.i.bf16 %v590_v46, %v553_v45 }
 0x1c4   :  { %16133 = vxpose.xlu0.b32.start.end [1/1] (short) (narrow) %v16132_v51, 16  ;;  %v16144_v52 = vpack.i.bf16 %v591_v49, %v556_v48 }
 0x1c6   :  { %16145 = vxpose.xlu1.b32.start.end [1/1] (short) (narrow) %v16144_v52, 16 }
 0x20c   :  { %v15966_v53 = vpop.trf.xlu0 }
 0x20d   :  { %v15970_v57 = vunpack.i.h.bf16 %v15966_v53  ;;  %v15967_v59 = vunpack.i.l.bf16 %v15966_v53 }
 0x210   :  { %v15971_v58 = vpop.trf.xlu0 }
 0x211   :  { %v15975_v60 = vunpack.i.h.bf16 %v15971_v58  ;;  %v15972_v61 = vunpack.i.l.bf16 %v15971_v58 }
 0x213   :  { %v1632_v62 = vpack.c.bf16 %v15972_v61, %v15967_v59  ;;  %v1633_v63 = vpack.c.bf16 %v15975_v60, %v15970_v57 }
 0x214   :  { %v15978_v2 = vpop.trf.xlu0  ;;  %v15990_v3 = vpop.trf.xlu1 }
 0x215   :  { %15370 = vmatprep.mubr.msk.bf16.mxu1 %vm1672_vm2, %v1632_v62  ;;  %v15982_v4 = vunpack.i.h.bf16 %v15978_v2  ;;  %v15979_v6 = vunpack.i.l.bf16 %v15978_v2  ;;  %v15991_v8 = vunpack.i.l.bf16 %v15990_v3  ;;  %v15994_v19 = vunpack.i.h.bf16 %v15990_v3 }
 0x216   :  { %15371 = vmatmul.mubr.msk.bf16.vlgmr.msra.gmra.mrb[0].mxu1 %vm1672_vm2, %v1633_v63 }
 0x217   :  { %2768 = vmatpush1.bf16.msra.mxu1 %v14136_v1 }
 0x218   :  { %v15983_v7 = vpop.trf.xlu0  ;;  %v15995_v9 = vpop.trf.xlu1 }
 0x219   :  { %v15987_v10 = vunpack.i.h.bf16 %v15983_v7  ;;  %v15984_v11 = vunpack.i.l.bf16 %v15983_v7  ;;  %v15996_v12 = vunpack.i.l.bf16 %v15995_v9  ;;  %v15999_v20 = vunpack.i.h.bf16 %v15995_v9 }
 0x21b   :  { %v1634_v13 = vpack.c.bf16 %v15984_v11, %v15979_v6  ;;  %v1635_v14 = vpack.c.bf16 %v15987_v10, %v15982_v4  ;;  %v1636_v16 = vpack.c.bf16 %v15996_v12, %v15991_v8  ;;  %v1637_v25 = vpack.c.bf16 %v15999_v20, %v15994_v19 }
 0x21c   :  { %v16002_v15 = vpop.trf.xlu1  ;;  %v16014_v17 = vpop.trf.xlu0 }
 0x21d   :  { %15374 = vmatprep.mubr.msk.bf16.mxu1 %vm1672_vm2, %v1634_v13  ;;  %v16003_v18 = vunpack.i.l.bf16 %v16002_v15  ;;  %v16015_v28 = vunpack.i.l.bf16 %v16014_v17  ;;  %v16006_v30 = vunpack.i.h.bf16 %v16002_v15  ;;  %v16018_v40 = vunpack.i.h.bf16 %v16014_v17 }
 0x21e   :  { %15375 = vmatmul.mubr.msk.bf16.gmra.mrb[4].mxu1 %vm1672_vm2, %v1635_v14 }
 0x21f   :  { %15378 = vmatprep.mubr.msk.bf16.mxu1 %vm1672_vm2, %v1636_v16 }
 0x220   :  { %v16007_v21 = vpop.trf.xlu1  ;;  %v16019_v22 = vpop.trf.xlu0 }
 0x221   :  { %v16008_v23 = vunpack.i.l.bf16 %v16007_v21  ;;  %v16020_v29 = vunpack.i.l.bf16 %v16019_v22  ;;  %v16011_v31 = vunpack.i.h.bf16 %v16007_v21  ;;  %v16023_v41 = vunpack.i.h.bf16 %v16019_v22 }
 0x223   :  { %v1638_v24 = vpack.c.bf16 %v16008_v23, %v16003_v18  ;;  %v1640_v34 = vpack.c.bf16 %v16020_v29, %v16015_v28  ;;  %v1639_v35 = vpack.c.bf16 %v16011_v31, %v16006_v30  ;;  %v1641_v45 = vpack.c.bf16 %v16023_v41, %v16018_v40 }
 0x224   :  { %v16026_v26 = vpop.trf.xlu1  ;;  %v16038_v27 = vpop.trf.xlu0 }
 0x225   :  { %v16027_v38 = vunpack.i.l.bf16 %v16026_v26  ;;  %v16039_v48 = vunpack.i.l.bf16 %v16038_v27  ;;  %v16030_v50 = vunpack.i.h.bf16 %v16026_v26  ;;  %v16042_v60 = vunpack.i.h.bf16 %v16038_v27 }
 0x226   :  { %15379 = vmatmul.mubr.msk.bf16.gmra.mrb[8].mxu1 %vm1672_vm2, %v1637_v25 }
 0x227   :  { %15382 = vmatprep.mubr.msk.bf16.mxu1 %vm1672_vm2, %v1638_v24 }
 0x228   :  { %v16031_v32 = vpop.trf.xlu1  ;;  %v16043_v33 = vpop.trf.xlu0 }
 0x229   :  { %v16032_v39 = vunpack.i.l.bf16 %v16031_v32  ;;  %v16044_v49 = vunpack.i.l.bf16 %v16043_v33  ;;  %v16035_v51 = vunpack.i.h.bf16 %v16031_v32  ;;  %v16047_v61 = vunpack.i.h.bf16 %v16043_v33 }
 0x22b   :  { %v1642_v44 = vpack.c.bf16 %v16032_v39, %v16027_v38  ;;  %v1644_v54 = vpack.c.bf16 %v16044_v49, %v16039_v48  ;;  %v1643_v55 = vpack.c.bf16 %v16035_v51, %v16030_v50  ;;  %v1645_v2 = vpack.c.bf16 %v16047_v61, %v16042_v60  ;;  %v2174_v61 = vld [vmem:[#allocation8 + $0x88] sm:$0xff] }
 0x22c   :  { %v16050_v36 = vpop.trf.xlu1  ;;  %v16062_v37 = vpop.trf.xlu0 }
 0x22d   :  { %v16051_v58 = vunpack.i.l.bf16 %v16050_v36  ;;  %v16063_v6 = vunpack.i.l.bf16 %v16062_v37  ;;  %v16054_v8 = vunpack.i.h.bf16 %v16050_v36  ;;  %v16066_v17 = vunpack.i.h.bf16 %v16062_v37 }
 0x22e   :  { %15383 = vmatmul.mubr.msk.bf16.gmra.mrb[12].mxu1 %vm1672_vm2, %v1639_v35 }
 0x22f   :  { %15386 = vmatprep.mubr.msk.bf16.mxu1 %vm1672_vm2, %v1640_v34 }
 0x230   :  { %v16055_v42 = vpop.trf.xlu1  ;;  %v16067_v43 = vpop.trf.xlu0 }
 0x231   :  { %v16056_v59 = vunpack.i.l.bf16 %v16055_v42  ;;  %v16068_v7 = vunpack.i.l.bf16 %v16067_v43  ;;  %v16059_v9 = vunpack.i.h.bf16 %v16055_v42  ;;  %v16071_v18 = vunpack.i.h.bf16 %v16067_v43 }
 0x233   :  { %v1646_v1 = vpack.c.bf16 %v16056_v59, %v16051_v58  ;;  %v1648_v12 = vpack.c.bf16 %v16068_v7, %v16063_v6  ;;  %v1647_v13 = vpack.c.bf16 %v16059_v9, %v16054_v8  ;;  %v1649_v21 = vpack.c.bf16 %v16071_v18, %v16066_v17  ;;  %v2161_v8 = vld [vmem:[#allocation8 + $0x20] sm:$0xff] }
 0x234   :  { %v16074_v46 = vpop.trf.xlu1  ;;  %v16086_v47 = vpop.trf.xlu0  ;;  %v2169_v17 = vld [vmem:[#allocation8 + $0x60] sm:$0xff] }
 0x235   :  { %v16075_v15 = vunpack.i.l.bf16 %v16074_v46  ;;  %v16087_v22 = vunpack.i.l.bf16 %v16086_v47  ;;  %v16078_v24 = vunpack.i.h.bf16 %v16074_v46  ;;  %v16090_v30 = vunpack.i.h.bf16 %v16086_v47  ;;  %v2170_v46 = vld [vmem:[#allocation8 + $0x68] sm:$0xff] }
 0x236   :  { %15387 = vmatmul.mubr.msk.bf16.gmra.mrb[16].mxu1 %vm1672_vm2, %v1641_v45  ;;  %v2166_v45 = vld [vmem:[#allocation8 + $0x48] sm:$0xff] }
 0x237   :  { %15390 = vmatprep.mubr.msk.bf16.mxu1 %vm1672_vm2, %v1642_v44  ;;  %v14144_v48 = vcombine.low %v2166_v45, %v2170_v46  ;;  %v14145_v49 = vcombine.high %v2166_v45, %v2170_v46  ;;  %v2206_v45 = vld [vmem:[#allocation8 + $0x188] sm:$0xff] }
 0x238   :  { %v16079_v52 = vpop.trf.xlu1  ;;  %v16091_v53 = vpop.trf.xlu0 }
 0x239   :  { %v16080_v16 = vunpack.i.l.bf16 %v16079_v52  ;;  %v16092_v23 = vunpack.i.l.bf16 %v16091_v53  ;;  %v16083_v25 = vunpack.i.h.bf16 %v16079_v52  ;;  %v16095_v31 = vunpack.i.h.bf16 %v16091_v53  ;;  %2769 = vmatprep.subr.bf16.mxu1 %v14145_v49 }
 0x23a   :  { %2770 = vmatpush1.bf16.msra.mxu1 %v14144_v48 }
 0x23b   :  { %v1650_v20 = vpack.c.bf16 %v16080_v16, %v16075_v15  ;;  %v1652_v26 = vpack.c.bf16 %v16092_v23, %v16087_v22  ;;  %v1651_v27 = vpack.c.bf16 %v16083_v25, %v16078_v24  ;;  %v1653_v33 = vpack.c.bf16 %v16095_v31, %v16090_v30  ;;  %v2165_v16 = vld [vmem:[#allocation8 + $0x40] sm:$0xff] }
 0x23c   :  { %v16098_v56 = vpop.trf.xlu1  ;;  %v16686_v57 = vpop.trf.xlu0  ;;  %v14142_v18 = vcombine.low %v2165_v16, %v2169_v17  ;;  %v2181_v23 = vld [vmem:[#allocation8 + $0xc0] sm:$0xff] }
 0x23d   :  { %v16099_v28 = vunpack.i.l.bf16 %v16098_v56  ;;  %v16111_v34 = vunpack.i.l.bf16 %v16686_v57  ;;  %v16102_v36 = vunpack.i.h.bf16 %v16098_v56  ;;  %v16114_v42 = vunpack.i.h.bf16 %v16686_v57  ;;  %v2185_v24 = vld [vmem:[#allocation8 + $0xe0] sm:$0xff] }
 0x23e   :  { %15391 = vmatmul.mubr.msk.bf16.gmra.mrb[20].mxu1 %vm1672_vm2, %v1643_v55  ;;  %v14159_v25 = vcombine.high %v2181_v23, %v2185_v24  ;;  %v2193_v31 = vld [vmem:[#allocation8 + $0x120] sm:$0xff] }
 0x23f   :  { %15394 = vmatprep.mubr.msk.bf16.mxu1 %vm1672_vm2, %v1644_v54 }
 0x240   :  { %v16103_v62 = vpop.trf.xlu1  ;;  %v16115_v63 = vpop.trf.xlu0 }
 0x241   :  { %v16104_v29 = vunpack.i.l.bf16 %v16103_v62  ;;  %v16116_v35 = vunpack.i.l.bf16 %v16115_v63  ;;  %v16107_v37 = vunpack.i.h.bf16 %v16103_v62  ;;  %v16119_v43 = vunpack.i.h.bf16 %v16115_v63  ;;  %v2178_v62 = vld [vmem:[#allocation8 + $0xa8] sm:$0xff] }
 0x243   :  { %v1654_v32 = vpack.c.bf16 %v16104_v29, %v16099_v28  ;;  %v1656_v38 = vpack.c.bf16 %v16116_v35, %v16111_v34  ;;  %v1655_v39 = vpack.c.bf16 %v16107_v37, %v16102_v36  ;;  %v1657_v47 = vpack.c.bf16 %v16119_v43, %v16114_v42  ;;  %v2194_v28 = vld [vmem:[#allocation8 + $0x128] sm:$0xff]  ;;  %v2189_v29 = vld [vmem:[#allocation8 + $0x100] sm:$0xff] }
 0x244   :  { %v16690_v3 = vpop.trf.xlu1  ;;  %v16692_v4 = vpop.trf.xlu0  ;;  %v14167_v34 = vcombine.high %v2189_v29, %v2193_v31  ;;  %v2197_v35 = vld [vmem:[#allocation8 + $0x140] sm:$0xff]  ;;  %v2198_v37 = vld [vmem:[#allocation8 + $0x148] sm:$0xff] }
 0x245   :  { %v16123_v40 = vunpack.i.l.bf16 %v16690_v3  ;;  %v16135_v50 = vunpack.i.l.bf16 %v16692_v4  ;;  %v16126_v52 = vunpack.i.h.bf16 %v16690_v3  ;;  %v16138_v58 = vunpack.i.h.bf16 %v16692_v4  ;;  %v2157_v4 = vld [vmem:[#allocation8] sm:$0xff] }
 0x246   :  { %15395 = vmatmul.mubr.msk.bf16.gmra.mrb[24].mxu1 %vm1672_vm2, %v1645_v2  ;;  %v14153_v2 = vcombine.high %v2174_v61, %v2178_v62  ;;  %v14135_v9 = vcombine.high %v2157_v4, %v2161_v8  ;;  %v2201_v36 = vld [vmem:[#allocation8 + $0x160] sm:$0xff] }
 0x247   :  { %15398 = vmatprep.mubr.msk.bf16.mxu1 %vm1672_vm2, %v1646_v1  ;;  %v14152_v1 = vcombine.low %v2174_v61, %v2178_v62  ;;  %v2205_v43 = vld [vmem:[#allocation8 + $0x180] sm:$0xff]  ;;  %v16736_v61 = vld [vmem:[#allocation8 + $0x18] sm:$0xff] }
 0x248   :  { %v16127_v10 = vpop.trf.xlu1  ;;  %v16696_v11 = vpop.trf.xlu0  ;;  %2771 = vmatprep.subr.bf16.mxu1 %v14153_v2  ;;  %2714 = vmatprep.subr.bf16.mxu0 %v14135_v9  ;;  %v2175_v2 = vld [vmem:[#allocation8 + $0x90] sm:$0xff] }
 0x249   :  { %v16128_v41 = vunpack.i.l.bf16 %v16127_v10  ;;  %v16140_v51 = vunpack.i.l.bf16 %v16696_v11  ;;  %v16131_v53 = vunpack.i.h.bf16 %v16127_v10  ;;  %v16143_v59 = vunpack.i.h.bf16 %v16696_v11  ;;  %2772 = vmatpush1.bf16.msra.mxu1 %v14152_v1  ;;  %v2182_v11 = vld [vmem:[#allocation8 + $0xc8] sm:$0xff]  ;;  %v2179_v1 = vld [vmem:[#allocation8 + $0xb0] sm:$0xff] }
 0x24a   :  { %v14134_v10 = vcombine.low %v2157_v4, %v2161_v8 }
 0x24b   :  { %v1658_v44 = vpack.c.bf16 %v16128_v41, %v16123_v40  ;;  %v1660_v54 = vpack.c.bf16 %v16140_v51, %v16135_v50  ;;  %v1659_v55 = vpack.c.bf16 %v16131_v53, %v16126_v52  ;;  %v1661_v63 = vpack.c.bf16 %v16143_v59, %v16138_v58  ;;  %v2213_v51 = vld [vmem:[#allocation8 + $0x1c0] sm:$0xff]  ;;  %v2214_v53 = vld [vmem:[#allocation8 + $0x1c8] sm:$0xff]  ;;  %v16732_v59 = vld [vmem:[#allocation8 + $0x10] sm:$0xff] }
 0x24c   :  { %v16698_v14 = vpop.trf.xlu1  ;;  %2715 = vmatpush1.bf16.msra.mxu0 %v14134_v10  ;;  %v14174_v40 = vcombine.low %v2197_v35, %v2201_v36  ;;  %v2217_v52 = vld [vmem:[#allocation8 + $0x1e0] sm:$0xff] }
 0x24d   :  { %v16147_v56 = vunpack.i.l.bf16 %v16698_v14  ;;  %v16150_v3 = vunpack.i.h.bf16 %v16698_v14  ;;  %v14143_v14 = vcombine.high %v2165_v16, %v2169_v17 }
 0x24e   :  { %15399 = vmatmul.mubr.msk.bf16.gmra.mrb[28].mxu1 %vm1672_vm2, %v1647_v13 }
 0x24f   :  { %15402 = vmatprep.mubr.msk.bf16.mxu1 %vm1672_vm2, %v1648_v12  ;;  %v2186_v12 = vld [vmem:[#allocation8 + $0xe8] sm:$0xff]  ;;  %2716 = vmatprep.subr.bf16.mxu0 %v14143_v14 }
 0x250   :  { %v16702_v19 = vpop.trf.xlu1  ;;  %v14160_v13 = vcombine.low %v2182_v11, %v2186_v12  ;;  %v14161_v15 = vcombine.high %v2182_v11, %v2186_v12  ;;  %2717 = vmatpush1.bf16.msra.mxu0 %v14142_v18 }
 0x251   :  { %v16152_v57 = vunpack.i.l.bf16 %v16702_v19  ;;  %v16155_v6 = vunpack.i.h.bf16 %v16702_v19  ;;  %v2173_v19 = vld [vmem:[#allocation8 + $0x80] sm:$0xff] }
 0x252   :  { %2773 = vmatprep.subr.bf16.mxu1 %v14161_v15 }
 0x253   :  { %v1662_v60 = vpack.c.bf16 %v16152_v57, %v16147_v56  ;;  %v1663_v7 = vpack.c.bf16 %v16155_v6, %v16150_v3  ;;  %2774 = vmatpush1.bf16.msra.mxu1 %v14160_v13  ;;  %v14190_v56 = vcombine.low %v2213_v51, %v2217_v52  ;;  %v16748_v6 = vld [vmem:[#allocation7] ss:$0 sm:$0xff] }
 0x256   :  { %15403 = vmatmul.mubr.msk.bf16.gmra.mrb[32].mxu1 %vm1672_vm2, %v1649_v21 }
 0x257   :  { %15406 = vmatprep.mubr.msk.bf16.mxu1 %vm1672_vm2, %v1650_v20  ;;  %v2177_v20 = vld [vmem:[#allocation8 + $0xa0] sm:$0xff] }
 0x258   :  { %v14151_v21 = vcombine.high %v2173_v19, %v2177_v20  ;;  %v14150_v22 = vcombine.low %v2173_v19, %v2177_v20 }
 0x25a   :  { %2718 = vmatprep.subr.bf16.mxu0 %v14151_v21 }
 0x25b   :  { %2719 = vmatpush1.bf16.msra.mxu0 %v14150_v22 }
 0x25c   :  { %2720 = vmatprep.subr.bf16.mxu0 %v14159_v25 }
 0x25e   :  { %15407 = vmatmul.mubr.msk.bf16.gmra.mrb[36].mxu1 %vm1672_vm2, %v1651_v27  ;;  %v2190_v27 = vld [vmem:[#allocation8 + $0x108] sm:$0xff] }
 0x25f   :  { %15410 = vmatprep.mubr.msk.bf16.mxu1 %vm1672_vm2, %v1652_v26  ;;  %v14158_v26 = vcombine.low %v2181_v23, %v2185_v24  ;;  %v14169_v30 = vcombine.high %v2190_v27, %v2194_v28 }
 0x261   :  { %2721 = vmatpush1.bf16.msra.mxu0 %v14158_v26  ;;  %2775 = vmatprep.subr.bf16.mxu1 %v14169_v30 }
 0x262   :  { %2722 = vmatprep.subr.bf16.mxu0 %v14167_v34 }
 0x266   :  { %15411 = vmatmul.mubr.msk.bf16.gmra.mrb[40].mxu1 %vm1672_vm2, %v1653_v33  ;;  %v14166_v33 = vcombine.low %v2189_v29, %v2193_v31 }
 0x267   :  { %15414 = vmatprep.mubr.msk.bf16.mxu1 %vm1672_vm2, %v1654_v32  ;;  %v14168_v32 = vcombine.low %v2190_v27, %v2194_v28 }
 0x268   :  { %2723 = vmatpush1.bf16.msra.mxu0 %v14166_v33 }
 0x269   :  { %2776 = vmatpush1.bf16.msra.mxu1 %v14168_v32 }
 0x26e   :  { %15415 = vmatmul.mubr.msk.bf16.gmra.mrb[44].mxu1 %vm1672_vm2, %v1655_v39  ;;  %v2202_v39 = vld [vmem:[#allocation8 + $0x168] sm:$0xff] }
 0x26f   :  { %15418 = vmatprep.mubr.msk.bf16.mxu1 %vm1672_vm2, %v1656_v38  ;;  %v14175_v38 = vcombine.high %v2197_v35, %v2201_v36  ;;  %v14176_v41 = vcombine.low %v2198_v37, %v2202_v39  ;;  %v14177_v42 = vcombine.high %v2198_v37, %v2202_v39 }
 0x271   :  { %2724 = vmatprep.subr.bf16.mxu0 %v14175_v38  ;;  %2777 = vmatprep.subr.bf16.mxu1 %v14177_v42 }
 0x272   :  { %2725 = vmatpush1.bf16.msra.mxu0 %v14174_v40  ;;  %2778 = vmatpush1.bf16.msra.mxu1 %v14176_v41 }
 0x276   :  { %15419 = vmatmul.mubr.msk.bf16.gmra.mrb[48].mxu1 %vm1672_vm2, %v1657_v47  ;;  %v2210_v47 = vld [vmem:[#allocation8 + $0x1a8] sm:$0xff] }
 0x277   :  { %15422 = vmatprep.mubr.msk.bf16.mxu1 %vm1672_vm2, %v1658_v44  ;;  %v2209_v44 = vld [vmem:[#allocation8 + $0x1a0] sm:$0xff]  ;;  %v14184_v49 = vcombine.low %v2206_v45, %v2210_v47  ;;  %v14185_v50 = vcombine.high %v2206_v45, %v2210_v47 }
 0x278   :  { %v14183_v46 = vcombine.high %v2205_v43, %v2209_v44  ;;  %v14182_v48 = vcombine.low %v2205_v43, %v2209_v44 }
 0x279   :  { %2779 = vmatprep.subr.bf16.mxu1 %v14185_v50 }
 0x27a   :  { %2726 = vmatprep.subr.bf16.mxu0 %v14183_v46  ;;  %2780 = vmatpush1.bf16.msra.mxu1 %v14184_v49 }
 0x27b   :  { %2727 = vmatpush1.bf16.msra.mxu0 %v14182_v48 }
 0x27e   :  { %15423 = vmatmul.mubr.msk.bf16.gmra.mrb[52].mxu1 %vm1672_vm2, %v1659_v55  ;;  %v2218_v55 = vld [vmem:[#allocation8 + $0x1e8] sm:$0xff] }
 0x27f   :  { %15426 = vmatprep.mubr.msk.bf16.mxu1 %vm1672_vm2, %v1660_v54  ;;  %v14191_v54 = vcombine.high %v2213_v51, %v2217_v52  ;;  %v14192_v57 = vcombine.low %v2214_v53, %v2218_v55  ;;  %v14193_v58 = vcombine.high %v2214_v53, %v2218_v55 }
 0x281   :  { %2728 = vmatprep.subr.bf16.mxu0 %v14191_v54  ;;  %2781 = vmatprep.subr.bf16.mxu1 %v14193_v58 }
 0x282   :  { %2729 = vmatpush1.bf16.msra.mxu0 %v14190_v56  ;;  %2782 = vmatpush1.bf16.msra.mxu1 %v14192_v57 }
 0x286   :  { %15427 = vmatmul.mubr.msk.bf16.gmra.mrb[56].mxu1 %vm1672_vm2, %v1661_v63  ;;  %v16740_v63 = vld [vmem:[#allocation8 + $0x38] sm:$0xff] }
 0x287   :  { %15430 = vmatprep.mubr.msk.bf16.mxu1 %vm1672_vm2, %v1662_v60  ;;  %v16734_v60 = vld [vmem:[#allocation8 + $0x30] sm:$0xff]  ;;  %v14141_v3 = vcombine.high %v16736_v61, %v16740_v63 }
 0x288   :  { %v14139_v62 = vcombine.high %v16732_v59, %v16734_v60 }
 0x289   :  { %2873 = vmatprep.subr.bf16.mxu1 %v14141_v3 }
 0x28a   :  { %2820 = vmatprep.subr.bf16.mxu0 %v14139_v62 }
 0x28e   :  { %15431 = vmatmul.mubr.msk.bf16.gmra.mrb[60].mxu1 %vm1672_vm2, %v1663_v7 }
 0x28f   :  { %2799 = vmatprep.mubr.bf16.mxu1 %v18427_v0 }
 0x2e9   :  { %v15372_v7 = vpop.f32.mrb[0].mxu1 }
 0x2ea   :  { %v1815_v4 = vadd.f32 %v15372_v7, %v16748_v6  ;;  %v1806_v8 = vpop.f32.mrb[1].mxu1 }
 0x2eb   :  { %v1807_v9 = vadd.f32 %v16748_v6, %v1806_v8  ;;  %v15373_v10 = vpop.f32.mrb[2].mxu1 }
 0x2ec   :  { %v1818_v11 = vadd.f32 %v15373_v10, %v16748_v6  ;;  %v1809_v12 = vpop.f32.mrb[3].mxu1  ;;  %v2063_v15 = vmax.f32 %v1815_v4, 0.0 }
 0x2ed   :  { %v1810_v13 = vadd.f32 %v16748_v6, %v1809_v12  ;;  %v2061_v17 = vmax.f32 %v1807_v9, 0.0 }
 0x2ee   :  { %v2064_v16 = vmax.f32 %v1818_v11, 0.0 }
 0x2ef   :  { %v2062_v14 = vmax.f32 %v1810_v13, 0.0 }
 0x2f0   :  { %v16754_v18 = vpack.c.bf16 %v2064_v16, %v2063_v15 }
 0x2f1   :  { %v16756_v19 = vpack.c.bf16 %v2062_v14, %v2061_v17  ;;  %v15376_v20 = vpop.f32.mrb[4].mxu1 }
 0x2f2   :  { %18490 = vst [vmem:[#allocation21_spill] sm:$0xff] %v16754_v18  ;;  %v1831_v21 = vadd.f32 %v15376_v20, %v16748_v6  ;;  %v1822_v22 = vpop.f32.mrb[5].mxu1 }
 0x2f3   :  { %18491 = vst [vmem:[#allocation22_spill] sm:$0xff] %v16756_v19  ;;  %v1823_v23 = vadd.f32 %v16748_v6, %v1822_v22  ;;  %v15377_v24 = vpop.f32.mrb[6].mxu1 }
 0x2f4   :  { %v1834_v25 = vadd.f32 %v15377_v24, %v16748_v6  ;;  %v1825_v26 = vpop.f32.mrb[7].mxu1  ;;  %v2067_v28 = vmax.f32 %v1831_v21, 0.0 }
 0x2f5   :  { %v1826_v27 = vadd.f32 %v16748_v6, %v1825_v26  ;;  %v2065_v30 = vmax.f32 %v1823_v23, 0.0 }
 0x2f6   :  { %v2068_v29 = vmax.f32 %v1834_v25, 0.0 }
 0x2f7   :  { %v2066_v31 = vmax.f32 %v1826_v27, 0.0 }
 0x2f8   :  { %v16762_v32 = vpack.c.bf16 %v2068_v29, %v2067_v28 }
 0x2f9   :  { %v16764_v33 = vpack.c.bf16 %v2066_v31, %v2065_v30  ;;  %v15380_v34 = vpop.f32.mrb[8].mxu1 }
 0x2fa   :  { %18492 = vst [vmem:[#allocation23_spill] sm:$0xff] %v16762_v32  ;;  %v1847_v35 = vadd.f32 %v15380_v34, %v16748_v6  ;;  %v1838_v36 = vpop.f32.mrb[9].mxu1 }
 0x2fb   :  { %18493 = vst [vmem:[#allocation24_spill] sm:$0xff] %v16764_v33  ;;  %v1839_v37 = vadd.f32 %v16748_v6, %v1838_v36  ;;  %v15381_v38 = vpop.f32.mrb[10].mxu1 }
 0x2fc   :  { %v1850_v39 = vadd.f32 %v15381_v38, %v16748_v6  ;;  %v1841_v40 = vpop.f32.mrb[11].mxu1  ;;  %v2071_v42 = vmax.f32 %v1847_v35, 0.0 }
 0x2fd   :  { %v1842_v41 = vadd.f32 %v16748_v6, %v1841_v40  ;;  %v2069_v44 = vmax.f32 %v1839_v37, 0.0 }
 0x2fe   :  { %v2072_v43 = vmax.f32 %v1850_v39, 0.0 }
 0x2ff   :  { %v2070_v45 = vmax.f32 %v1842_v41, 0.0 }
 0x300   :  { %v16770_v46 = vpack.c.bf16 %v2072_v43, %v2071_v42 }
 0x301   :  { %v16772_v47 = vpack.c.bf16 %v2070_v45, %v2069_v44  ;;  %v15384_v48 = vpop.f32.mrb[12].mxu1  ;;  %v16801_v44 = vunpack.c.l.b16 %v16754_v18 }
 0x302   :  { %18494 = vst [vmem:[#allocation25_spill] sm:$0xff] %v16770_v46  ;;  %v1863_v49 = vadd.f32 %v15384_v48, %v16748_v6  ;;  %v1854_v50 = vpop.f32.mrb[13].mxu1 }
 0x303   :  { %18495 = vst [vmem:[#allocation26_spill] sm:$0xff] %v16772_v47  ;;  %v1855_v51 = vadd.f32 %v16748_v6, %v1854_v50  ;;  %v15385_v52 = vpop.f32.mrb[14].mxu1 }
 0x304   :  { %v1866_v53 = vadd.f32 %v15385_v52, %v16748_v6  ;;  %v1857_v54 = vpop.f32.mrb[15].mxu1  ;;  %v2075_v56 = vmax.f32 %v1863_v49, 0.0  ;;  %v16805_v49 = vunpack.c.l.b16 %v16764_v33  ;;  %v2984_v33 = vld [vmem:[#allocation8 + $0x3c8] sm:$0xff] }
 0x305   :  { %v1858_v55 = vadd.f32 %v16748_v6, %v1857_v54  ;;  %v2073_v58 = vmax.f32 %v1855_v51, 0.0 }
 0x306   :  { %v2076_v57 = vmax.f32 %v1866_v53, 0.0 }
 0x307   :  { %v2074_v62 = vmax.f32 %v1858_v55, 0.0 }
 0x308   :  { %v16778_v3 = vpack.c.bf16 %v2076_v57, %v2075_v56  ;;  %v16815_v57 = vunpack.c.l.b16 %v16756_v19 }
 0x309   :  { %v16780_v7 = vpack.c.bf16 %v2074_v62, %v2073_v58  ;;  %v15388_v4 = vpop.f32.mrb[16].mxu1  ;;  %v16818_v58 = vunpack.c.l.b16 %v16762_v32  ;;  %v2988_v32 = vld [vmem:[#allocation8 + $0x3e8] sm:$0xff] }
 0x30a   :  { %18496 = vst [vmem:[#allocation27_spill] sm:$0xff] %v16778_v3  ;;  %v1879_v8 = vadd.f32 %v15388_v4, %v16748_v6  ;;  %v1870_v9 = vpop.f32.mrb[17].mxu1  ;;  %v2327_v4 = vrot.slane %v16801_v44, 7 }
 0x30b   :  { %18497 = vst [vmem:[#allocation28_spill] sm:$0xff] %v16780_v7  ;;  %v1871_v10 = vadd.f32 %v16748_v6, %v1870_v9  ;;  %v15389_v11 = vpop.f32.mrb[18].mxu1 }
 0x30c   :  { %v1882_v12 = vadd.f32 %v15389_v11, %v16748_v6  ;;  %v1873_v13 = vpop.f32.mrb[19].mxu1  ;;  %v2079_v16 = vmax.f32 %v1879_v8, 0.0  ;;  %v16824_v8 = vunpack.c.l.b16 %v16772_v47  ;;  %v2330_v11 = vrot.slane %v16805_v49, 6 }
 0x30d   :  { %v1874_v15 = vadd.f32 %v16748_v6, %v1873_v13  ;;  %v2077_v14 = vmax.f32 %v1871_v10, 0.0 }
 0x30e   :  { %v2080_v17 = vmax.f32 %v1882_v12, 0.0 }
 0x30f   :  { %v2078_v20 = vmax.f32 %v1874_v15, 0.0 }
 0x310   :  { %v16786_v21 = vpack.c.bf16 %v2080_v17, %v2079_v16 }
 0x311   :  { %v16788_v22 = vpack.c.bf16 %v2078_v20, %v2077_v14  ;;  %v15392_v23 = vpop.f32.mrb[20].mxu1 }
 0x312   :  { %18498 = vst [vmem:[#allocation29_spill] sm:$0xff] %v16786_v21  ;;  %v1895_v24 = vadd.f32 %v15392_v23, %v16748_v6  ;;  %v1886_v25 = vpop.f32.mrb[21].mxu1  ;;  %v16809_v51 = vunpack.c.l.b16 %v16786_v21 }
 0x313   :  { %18499 = vst [vmem:[#allocation30_spill] sm:$0xff] %v16788_v22  ;;  %v1887_v26 = vadd.f32 %v16748_v6, %v1886_v25  ;;  %v15393_v27 = vpop.f32.mrb[22].mxu1  ;;  %v16830_v12 = vunpack.c.l.b16 %v16788_v22 }
 0x314   :  { %v1898_v28 = vadd.f32 %v15393_v27, %v16748_v6  ;;  %v1889_v29 = vpop.f32.mrb[23].mxu1  ;;  %v2083_v31 = vmax.f32 %v1895_v24, 0.0  ;;  %v2348_v16 = vrot.slane %v16809_v51, 7  ;;  %v2329_v27 = vsel %vm2328_vm3, %v2327_v4, %v16815_v57 }
 0x315   :  { %v1890_v30 = vadd.f32 %v16748_v6, %v1889_v29  ;;  %v2081_v35 = vmax.f32 %v1887_v26, 0.0  ;;  %v16847_v29 = vunpack.c.l.b16 %v16780_v7 }
 0x316   :  { %v2084_v34 = vmax.f32 %v1898_v28, 0.0  ;;  %v2333_v28 = vrot.slane %v16818_v58, 5 }
 0x317   :  { %v2082_v36 = vmax.f32 %v1890_v30, 0.0 }
 0x318   :  { %v16794_v37 = vpack.c.bf16 %v2084_v34, %v2083_v31  ;;  %v2332_v31 = vsel %vm2331_vm4, %v2330_v11, %v2329_v27  ;;  %v2336_v34 = vrot.slane %v16824_v8, 4  ;;  %v2342_v11 = vrot.slane %v16847_v29, 2 }
 0x319   :  { %v16796_v38 = vpack.c.bf16 %v2082_v36, %v2081_v35  ;;  %v15396_v39 = vpop.f32.mrb[24].mxu1  ;;  %v16853_v35 = vunpack.c.l.b16 %v16770_v46  ;;  %v2997_v46 = vrot.slane %v16824_v8, 5 }
 0x31a   :  { %18500 = vst [vmem:[#allocation31_spill] sm:$0xff] %v16794_v37  ;;  %v1911_v40 = vadd.f32 %v15396_v39, %v16748_v6  ;;  %v1902_v41 = vpop.f32.mrb[25].mxu1  ;;  %v16840_v24 = vunpack.c.l.b16 %v16794_v37 }
 0x31b   :  { %18501 = vst [vmem:[#allocation32_spill] sm:$0xff] %v16796_v38  ;;  %v1903_v42 = vadd.f32 %v16748_v6, %v1902_v41  ;;  %v15397_v43 = vpop.f32.mrb[26].mxu1  ;;  %v16812_v54 = vunpack.c.l.b16 %v16796_v38  ;;  %18504 = vst [vmem:[#allocation35_spill] sm:$0xff] %v16853_v35 }
 0x31c   :  { %v1914_v45 = vadd.f32 %v15397_v43, %v16748_v6  ;;  %v1905_v48 = vpop.f32.mrb[27].mxu1  ;;  %v2087_v52 = vmax.f32 %v1911_v40, 0.0  ;;  %v2349_v40 = vsel %vm2328_vm3, %v2348_v16, %v16830_v12 }
 0x31d   :  { %v1906_v50 = vadd.f32 %v16748_v6, %v1905_v48  ;;  %v2085_v55 = vmax.f32 %v1903_v42, 0.0  ;;  %v2350_v23 = vrot.slane %v16812_v54, 6 }
 0x31e   :  { %v2088_v53 = vmax.f32 %v1914_v45, 0.0 }
 0x31f   :  { %v2086_v56 = vmax.f32 %v1906_v50, 0.0  ;;  %v2351_v43 = vsel %vm2331_vm4, %v2350_v23, %v2349_v40 }
 0x320   :  { %v16820_v62 = vpack.c.bf16 %v2088_v53, %v2087_v52  ;;  %v2335_v52 = vsel %vm2334_vm5, %v2333_v28, %v2332_v31  ;;  %v2352_v53 = vrot.slane %v16840_v24, 5 }
 0x321   :  { %v16826_v9 = vpack.c.bf16 %v2086_v56, %v2085_v55  ;;  %v15400_v10 = vpop.f32.mrb[28].mxu1  ;;  %v16867_v55 = vunpack.c.l.b16 %v16778_v3  ;;  %v2980_v3 = vld [vmem:[#allocation8 + $0x3a8] sm:$0xff] }
 0x322   :  { %18502 = vst [vmem:[#allocation33_spill] sm:$0xff] %v16820_v62  ;;  %v1927_v13 = vadd.f32 %v15400_v10, %v16748_v6  ;;  %v1918_v15 = vpop.f32.mrb[29].mxu1  ;;  %v16860_v48 = vunpack.c.l.b16 %v16820_v62  ;;  %v2338_v10 = vsel %vm2337_vm6, %v2336_v34, %v2335_v52 }
 0x323   :  { %18503 = vst [vmem:[#allocation34_spill] sm:$0xff] %v16826_v9  ;;  %v16835_v17 = vunpack.c.l.b16 %v16826_v9  ;;  %v1919_v14 = vadd.f32 %v16748_v6, %v1918_v15  ;;  %v15401_v20 = vpop.f32.mrb[30].mxu1  ;;  %18506 = vst [vmem:[#allocation37_spill] sm:$0xff] %v16867_v55  ;;  %v2345_v40 = vrot.slane %v16867_v55, 1  ;;  %v2188_v9 = vld [vmem:[#allocation8 + $0xf8] sm:$0xff] }
 0x324   :  { %v1930_v25 = vadd.f32 %v15401_v20, %v16748_v6  ;;  %v1921_v26 = vpop.f32.mrb[31].mxu1  ;;  %v2091_v36 = vmax.f32 %v1927_v13, 0.0  ;;  %v2353_v20 = vsel %vm2334_vm5, %v2352_v53, %v2351_v43  ;;  %v2356_v34 = vrot.slane %v16860_v48, 3 }
 0x325   :  { %v1922_v30 = vadd.f32 %v16748_v6, %v1921_v26  ;;  %v2089_v41 = vmax.f32 %v1919_v14, 0.0  ;;  %v2354_v45 = vrot.slane %v16835_v17, 4  ;;  %v2339_v14 = vrot.slane %v16853_v35, 3 }
 0x326   :  { %v2092_v39 = vmax.f32 %v1930_v25, 0.0 }
 0x327   :  { %v2090_v42 = vmax.f32 %v1922_v30, 0.0  ;;  %v2355_v27 = vsel %vm2337_vm6, %v2354_v45, %v2353_v20  ;;  %v2341_v31 = vsel %vm2340_vm7, %v2339_v14, %v2338_v10  ;;  %v2168_v10 = vld [vmem:[#allocation8 + $0x58] sm:$0xff] }
 0x328   :  { %v16862_v50 = vpack.c.bf16 %v2092_v39, %v2091_v36  ;;  %v2344_v39 = vsel %vm2343_vm8, %v2342_v11, %v2341_v31  ;;  %v2357_v45 = vsel %vm2340_vm7, %v2356_v34, %v2355_v27 }
 0x329   :  { %v16869_v56 = vpack.c.bf16 %v2090_v42, %v2089_v41  ;;  %v15404_v4 = vpop.f32.mrb[32].mxu1  ;;  %v2167_v42 = vld [vmem:[#allocation8 + $0x50] sm:$0xff] }
 0x32a   :  { %18505 = vst [vmem:[#allocation36_spill] sm:$0xff] %v16862_v50  ;;  %v16874_v13 = vunpack.c.l.b16 %v16862_v50  ;;  %v1943_v15 = vadd.f32 %v15404_v4, %v16748_v6  ;;  %v1934_v16 = vpop.f32.mrb[33].mxu1  ;;  %v2171_v4 = vld [vmem:[#allocation8 + $0x70] sm:$0xff]  ;;  %v2184_v50 = vld [vmem:[#allocation8 + $0xd8] sm:$0xff] }
 0x32b   :  { %18507 = vst [vmem:[#allocation38_spill] sm:$0xff] %v16869_v56  ;;  %v16880_v23 = vunpack.c.l.b16 %v16869_v56  ;;  %v1935_v25 = vadd.f32 %v16748_v6, %v1934_v16  ;;  %v15405_v26 = vpop.f32.mrb[34].mxu1  ;;  %v2172_v16 = vld [vmem:[#allocation8 + $0x78] sm:$0xff]  ;;  %v14147_v34 = vcombine.high %v2167_v42, %v2171_v4  ;;  %v2187_v56 = vld [vmem:[#allocation8 + $0xf0] sm:$0xff] }
 0x32c   :  { %18508 = vst [vmem:[#allocation39_spill] sm:$0xff] %v16874_v13  ;;  %v1946_v28 = vadd.f32 %v15405_v26, %v16748_v6  ;;  %v1937_v30 = vpop.f32.mrb[35].mxu1  ;;  %v2095_v43 = vmax.f32 %v1943_v15, 0.0  ;;  %v2360_v53 = vrot.slane %v16874_v13, 1  ;;  %v14149_v0 = vcombine.high %v2168_v10, %v2172_v16 }
 0x32d   :  { %18509 = vst [vmem:[#allocation40_spill] sm:$0xff] %v16880_v23  ;;  %v1938_v36 = vadd.f32 %v16748_v6, %v1937_v30  ;;  %v2358_v41 = vrot.slane %v16880_v23, 2  ;;  %v2093_v14 = vmax.f32 %v1935_v25, 0.0  ;;  %v2347_v30 = vsel %vm2346_vm9, %v2345_v40, %v2344_v39 }
 0x32e   :  { %v2096_v52 = vmax.f32 %v1946_v28, 0.0 }
 0x32f   :  { %v2094_v20 = vmax.f32 %v1938_v36, 0.0  ;;  %v2359_v26 = vsel %vm2343_vm8, %v2358_v41, %v2357_v45  ;;  %v2180_v41 = vld [vmem:[#allocation8 + $0xb8] sm:$0xff]  ;;  %v18512_v45 = vcombine.low %v16732_v59, %v16734_v60  ;;  %v18514_v59 = vmov 0  }
 0x330   :  { %v16894_v11 = vpack.c.bf16 %v2096_v52, %v2095_v43  ;;  %v2361_v31 = vsel %vm2346_vm9, %v2360_v53, %v2359_v26  ;;  %v18513_v53 = vcombine.low %v16736_v61, %v16740_v63 }
 0x331   :  { %v16898_v15 = vpack.c.bf16 %v2094_v20, %v2093_v14  ;;  %v15408_v28 = vpop.f32.mrb[36].mxu1  ;;  %v16900_v27 = vpack.c.b16 %v2361_v31, %v2347_v30  ;;  %v14146_v14 = vcombine.low %v2167_v42, %v2171_v4  ;;  %v14148_v20 = vcombine.low %v2168_v10, %v2172_v16 }
 0x332   :  { %18510 = vst [vmem:[#allocation41_spill] sm:$0xff] %v16894_v11  ;;  %v1959_v25 = vadd.f32 %v15408_v28, %v16748_v6  ;;  %v1950_v36 = vpop.f32.mrb[37].mxu1  ;;  %v14155_v30 = vcombine.high %v2175_v2, %v2179_v1  ;;  %v14157_v31 = vcombine.high %v2176_v5, %v2180_v41  ;;  %v2183_v28 = vld [vmem:[#allocation8 + $0xd0] sm:$0xff]  ;;  %v14154_v42 = vcombine.low %v2175_v2, %v2179_v1 }
 0x333   :  { %18511 = vst [vmem:[#allocation42_spill] sm:$0xff] %v16898_v15  ;;  %v1951_v43 = vadd.f32 %v16748_v6, %v1950_v36  ;;  %v15409_v52 = vpop.f32.mrb[38].mxu1  ;;  %2747 = vmatmul.mubr.bf16.vlgmr.msra.gmra.mrb[32].mxu0 %v16900_v27  ;;  %2800 = vmatmul.mubr.bf16.vlgmr.msra.gmra.mrb[64].mxu1 %v16900_v27  ;;  %v14163_v16 = vcombine.high %v2183_v28, %v2187_v56 }
 0x334   :  { %v1962_v39 = vadd.f32 %v15409_v52, %v16748_v6  ;;  %v1953_v40 = vpop.f32.mrb[39].mxu1  ;;  %2821 = vmatpush1.bf16.msra.mxu0 %v18512_v45  ;;  %2874 = vmatpush1.bf16.msra.mxu1 %v18513_v53  ;;  %v2099_v36 = vmax.f32 %v1959_v25, 0.0  ;;  %v2191_v25 = vld [vmem:[#allocation8 + $0x110] sm:$0xff]  ;;  %v2196_v53 = vld [vmem:[#allocation8 + $0x138] sm:$0xff]  ;;  %v14162_v2 = vcombine.low %v2183_v28, %v2187_v56 }
 0x335   :  { %v1954_v26 = vadd.f32 %v16748_v6, %v1953_v40  ;;  %2822 = vmatprep.subr.bf16.mxu0 %v14147_v34  ;;  %2875 = vmatprep.subr.bf16.mxu1 %v14149_v0  ;;  %v2097_v60 = vmax.f32 %v1951_v43, 0.0  ;;  %v14156_v0 = vcombine.low %v2176_v5, %v2180_v41  ;;  %v14165_v34 = vcombine.high %v2184_v50, %v2188_v9  ;;  %v2195_v45 = vld [vmem:[#allocation8 + $0x130] sm:$0xff]  ;;  %v2192_v43 = vld [vmem:[#allocation8 + $0x118] sm:$0xff] }
 0x336   :  { %v2100_v52 = vmax.f32 %v1962_v39, 0.0  ;;  %2756 = vmatprep.mubr.bf16.mxu0 %v18514_v59  ;;  %2809 = vmatprep.mubr.bf16.mxu1 %v18514_v59  ;;  %v14164_v41 = vcombine.low %v2184_v50, %v2188_v9  ;;  %v14170_v56 = vcombine.low %v2191_v25, %v2195_v45  ;;  %v14172_v9 = vcombine.low %v2192_v43, %v2196_v53 }
 0x337   :  { %v2098_v61 = vmax.f32 %v1954_v26, 0.0 }
 0x338   :  { %v16916_v63 = vpack.c.bf16 %v2100_v52, %v2099_v36  ;;  %2823 = vmatpush1.bf16.msra.mxu0 %v14146_v14  ;;  %2876 = vmatpush1.bf16.msra.mxu1 %v14148_v20  ;;  %v2199_v36 = vld [vmem:[#allocation8 + $0x150] sm:$0xff] }
 0x339   :  { %v16918_v4 = vpack.c.bf16 %v2098_v61, %v2097_v60  ;;  %v15412_v10 = vpop.f32.mrb[40].mxu1  ;;  %2824 = vmatprep.subr.bf16.mxu0 %v14155_v30  ;;  %2877 = vmatprep.subr.bf16.mxu1 %v14157_v31  ;;  %v14171_v30 = vcombine.high %v2191_v25, %v2195_v45  ;;  %v14173_v31 = vcombine.high %v2192_v43, %v2196_v53  ;;  %v2203_v61 = vld [vmem:[#allocation8 + $0x170] sm:$0xff] }
 0x33a   :  { %18515 = vst [vmem:[#allocation43_spill] sm:$0xff] %v16916_v63  ;;  %v1975_v39 = vadd.f32 %v15412_v10, %v16748_v6  ;;  %v1966_v40 = vpop.f32.mrb[41].mxu1  ;;  %v2200_v10 = vld [vmem:[#allocation8 + $0x158] sm:$0xff] }
 0x33b   :  { %18516 = vst [vmem:[#allocation44_spill] sm:$0xff] %v16918_v4  ;;  %v1967_v26 = vadd.f32 %v16748_v6, %v1966_v40  ;;  %v15413_v14 = vpop.f32.mrb[42].mxu1  ;;  %v2204_v40 = vld [vmem:[#allocation8 + $0x178] sm:$0xff] }
 0x33c   :  { %v1978_v1 = vadd.f32 %v15413_v14, %v16748_v6  ;;  %v1969_v5 = vpop.f32.mrb[43].mxu1  ;;  %2825 = vmatpush1.bf16.msra.mxu0 %v14154_v42  ;;  %2878 = vmatpush1.bf16.msra.mxu1 %v14156_v0  ;;  %v2103_v52 = vmax.f32 %v1975_v39, 0.0  ;;  %v14179_v42 = vcombine.high %v2199_v36, %v2203_v61  ;;  %v14181_v0 = vcombine.high %v2200_v10, %v2204_v40 }
 0x33d   :  { %v1970_v20 = vadd.f32 %v16748_v6, %v1969_v5  ;;  %2826 = vmatprep.subr.bf16.mxu0 %v14163_v16  ;;  %2879 = vmatprep.subr.bf16.mxu1 %v14165_v34  ;;  %v2101_v62 = vmax.f32 %v1967_v26, 0.0  ;;  %v2207_v16 = vld [vmem:[#allocation8 + $0x190] sm:$0xff]  ;;  %v2208_v26 = vld [vmem:[#allocation8 + $0x198] sm:$0xff] }
 0x33e   :  { %v2104_v60 = vmax.f32 %v1978_v1, 0.0  ;;  %v2211_v1 = vld [vmem:[#allocation8 + $0x1b0] sm:$0xff]  ;;  %v2212_v5 = vld [vmem:[#allocation8 + $0x1b8] sm:$0xff] }
 0x33f   :  { %v2102_v38 = vmax.f32 %v1970_v20, 0.0  ;;  %v14187_v53 = vcombine.high %v2207_v16, %v2211_v1 }
 0x340   :  { %v16924_v14 = vpack.c.bf16 %v2104_v60, %v2103_v52  ;;  %2827 = vmatpush1.bf16.msra.mxu0 %v14162_v2  ;;  %2880 = vmatpush1.bf16.msra.mxu1 %v14164_v41  ;;  %v14189_v41 = vcombine.high %v2208_v26, %v2212_v5  ;;  %v2219_v60 = vld [vmem:[#allocation8 + $0x1f0] sm:$0xff] }
 0x341   :  { %v16926_v50 = vpack.c.bf16 %v2102_v38, %v2101_v62  ;;  %v15416_v28 = vpop.f32.mrb[44].mxu1  ;;  %2828 = vmatprep.subr.bf16.mxu0 %v14171_v30  ;;  %2881 = vmatprep.subr.bf16.mxu1 %v14173_v31  ;;  %v14178_v38 = vcombine.low %v2199_v36, %v2203_v61  ;;  %v14180_v62 = vcombine.low %v2200_v10, %v2204_v40  ;;  %v2215_v30 = vld [vmem:[#allocation8 + $0x1d0] sm:$0xff] }
 0x342   :  { %18517 = vst [vmem:[#allocation45_spill] sm:$0xff] %v16924_v14  ;;  %v1991_v34 = vadd.f32 %v15416_v28, %v16748_v6  ;;  %v1982_v39 = vpop.f32.mrb[45].mxu1  ;;  %v2216_v28 = vld [vmem:[#allocation8 + $0x1d8] sm:$0xff]  ;;  %v14186_v36 = vcombine.low %v2207_v16, %v2211_v1  ;;  %v14188_v61 = vcombine.low %v2208_v26, %v2212_v5  ;;  %v14194_v26 = vcombine.low %v2215_v30, %v2219_v60 }
 0x343   :  { %18518 = vst [vmem:[#allocation46_spill] sm:$0xff] %v16926_v50  ;;  %v1983_v20 = vadd.f32 %v16748_v6, %v1982_v39  ;;  %v15417_v2 = vpop.f32.mrb[46].mxu1  ;;  %v2220_v39 = vld [vmem:[#allocation8 + $0x1f8] sm:$0xff] }
 0x344   :  { %v1994_v25 = vadd.f32 %v15417_v2, %v16748_v6  ;;  %v1985_v45 = vpop.f32.mrb[47].mxu1  ;;  %2829 = vmatpush1.bf16.msra.mxu0 %v14170_v56  ;;  %2882 = vmatpush1.bf16.msra.mxu1 %v14172_v9  ;;  %v2107_v31 = vmax.f32 %v1991_v34, 0.0  ;;  %v14195_v56 = vcombine.high %v2215_v30, %v2219_v60  ;;  %v14197_v9 = vcombine.high %v2216_v28, %v2220_v39 }
 0x345   :  { %v1986_v43 = vadd.f32 %v16748_v6, %v1985_v45  ;;  %2830 = vmatprep.subr.bf16.mxu0 %v14179_v42  ;;  %2883 = vmatprep.subr.bf16.mxu1 %v14181_v0  ;;  %v2105_v37 = vmax.f32 %v1983_v20, 0.0  ;;  %v16936_v42 = vld [vmem:[#allocation8 + $0x200] sm:$0xff]  ;;  %v16943_v45 = vld [vmem:[#allocation8 + $0x228] sm:$0xff]  ;;  %v14196_v5 = vcombine.low %v2216_v28, %v2220_v39 }
 0x346   :  { %v2108_v52 = vmax.f32 %v1994_v25, 0.0  ;;  %v16939_v20 = vld [vmem:[#allocation8 + $0x220] sm:$0xff]  ;;  %v16941_v25 = vld [vmem:[#allocation8 + $0x208] sm:$0xff] }
 0x347   :  { %v2106_v22 = vmax.f32 %v1986_v43, 0.0  ;;  %v14201_v43 = vcombine.high %v16941_v25, %v16943_v45 }
 0x348   :  { %v16932_v2 = vpack.c.bf16 %v2108_v52, %v2107_v31  ;;  %2831 = vmatpush1.bf16.msra.mxu0 %v14178_v38  ;;  %2884 = vmatpush1.bf16.msra.mxu1 %v14180_v62  ;;  %v14199_v62 = vcombine.high %v16936_v42, %v16939_v20 }
 0x349   :  { %v16934_v10 = vpack.c.bf16 %v2106_v22, %v2105_v37  ;;  %v15420_v40 = vpop.f32.mrb[48].mxu1  ;;  %2832 = vmatprep.subr.bf16.mxu0 %v14187_v53  ;;  %2885 = vmatprep.subr.bf16.mxu1 %v14189_v41 }
 0x34a   :  { %18519 = vst [vmem:[#allocation47_spill] sm:$0xff] %v16932_v2  ;;  %v2007_v0 = vadd.f32 %v15420_v40, %v16748_v6  ;;  %v1998_v34 = vpop.f32.mrb[49].mxu1 }
 0x34b   :  { %18520 = vst [vmem:[#allocation48_spill] sm:$0xff] %v16934_v10  ;;  %v1999_v16 = vadd.f32 %v16748_v6, %v1998_v34  ;;  %v15421_v22 = vpop.f32.mrb[50].mxu1 }
 0x34c   :  { %v2010_v37 = vadd.f32 %v15421_v22, %v16748_v6  ;;  %v2001_v1 = vpop.f32.mrb[51].mxu1  ;;  %2833 = vmatpush1.bf16.msra.mxu0 %v14186_v36  ;;  %2886 = vmatpush1.bf16.msra.mxu1 %v14188_v61  ;;  %v2111_v53 = vmax.f32 %v2007_v0, 0.0 }
 0x34d   :  { %v2002_v38 = vadd.f32 %v16748_v6, %v2001_v1  ;;  %2834 = vmatprep.subr.bf16.mxu0 %v14195_v56  ;;  %2887 = vmatprep.subr.bf16.mxu1 %v14197_v9  ;;  %v2109_v31 = vmax.f32 %v1999_v16, 0.0 }
 0x34e   :  { %v2112_v41 = vmax.f32 %v2010_v37, 0.0 }
 0x34f   :  { %v2110_v52 = vmax.f32 %v2002_v38, 0.0 }
 0x350   :  { %v16952_v40 = vpack.c.bf16 %v2112_v41, %v2111_v53  ;;  %2835 = vmatpush1.bf16.msra.mxu0 %v14194_v26  ;;  %2888 = vmatpush1.bf16.msra.mxu1 %v14196_v5  ;;  %v16967_v41 = vunpack.c.l.b16 %v16894_v11 }
 0x351   :  { %v16954_v30 = vpack.c.bf16 %v2110_v52, %v2109_v31  ;;  %v15424_v60 = vpop.f32.mrb[52].mxu1  ;;  %3371 = vmatprep.subr.bf16.mxu0 %v14199_v62  ;;  %3424 = vmatprep.subr.bf16.mxu1 %v14201_v43 }
 0x352   :  { %18521 = vst [vmem:[#allocation49_spill] sm:$0xff] %v16952_v40  ;;  %v2023_v28 = vadd.f32 %v15424_v60, %v16748_v6  ;;  %v2014_v39 = vpop.f32.mrb[53].mxu1  ;;  %18525 = vst [vmem:[#allocation53_spill] sm:$0xff] %v16967_v41  ;;  %v16971_v60 = vunpack.c.l.b16 %v16918_v4  ;;  %v17013_v4 = vunpack.c.l.b16 %v16934_v10 }
 0x353   :  { %18522 = vst [vmem:[#allocation50_spill] sm:$0xff] %v16954_v30  ;;  %v2015_v36 = vadd.f32 %v16748_v6, %v2014_v39  ;;  %v15425_v61 = vpop.f32.mrb[54].mxu1  ;;  %v16975_v39 = vunpack.c.l.b16 %v16952_v40 }
 0x354   :  { %v2026_v56 = vadd.f32 %v15425_v61, %v16748_v6  ;;  %v2017_v9 = vpop.f32.mrb[55].mxu1  ;;  %v2115_v34 = vmax.f32 %v2023_v28, 0.0 }
 0x355   :  { %v2018_v0 = vadd.f32 %v16748_v6, %v2017_v9  ;;  %v2113_v22 = vmax.f32 %v2015_v36, 0.0 }
 0x356   :  { %v2116_v16 = vmax.f32 %v2026_v56, 0.0 }
 0x357   :  { %v2114_v37 = vmax.f32 %v2018_v0, 0.0 }
 0x358   :  { %v16960_v1 = vpack.c.bf16 %v2116_v16, %v2115_v34  ;;  %v16981_v34 = vunpack.c.l.b16 %v16898_v15  ;;  %v16984_v16 = vunpack.c.l.b16 %v16916_v63 }
 0x359   :  { %v16962_v26 = vpack.c.bf16 %v2114_v37, %v2113_v22  ;;  %v15428_v5 = vpop.f32.mrb[56].mxu1  ;;  %v2362_v37 = vrot.slane %v16967_v41, 7 }
 0x35a   :  { %18523 = vst [vmem:[#allocation51_spill] sm:$0xff] %v16960_v1  ;;  %v2039_v38 = vadd.f32 %v15428_v5, %v16748_v6  ;;  %v2030_v62 = vpop.f32.mrb[57].mxu1  ;;  %18527 = vst [vmem:[#allocation55_spill] sm:$0xff] %v16981_v34  ;;  %v16990_v5 = vunpack.c.l.b16 %v16926_v50  ;;  %v2366_v50 = vrot.slane %v16984_v16, 5 }
 0x35b   :  { %18524 = vst [vmem:[#allocation52_spill] sm:$0xff] %v16962_v26  ;;  %v2031_v43 = vadd.f32 %v16748_v6, %v2030_v62  ;;  %v15429_v53 = vpop.f32.mrb[58].mxu1  ;;  %v16978_v56 = vunpack.c.l.b16 %v16962_v26 }
 0x35c   :  { %v2042_v31 = vadd.f32 %v15429_v53, %v16748_v6  ;;  %v2033_v52 = vpop.f32.mrb[59].mxu1  ;;  %v2119_v36 = vmax.f32 %v2039_v38, 0.0  ;;  %v2364_v53 = vrot.slane %v16971_v60, 6  ;;  %v2368_v63 = vrot.slane %v16990_v5, 4 }
 0x35d   :  { %v2034_v28 = vadd.f32 %v16748_v6, %v2033_v52  ;;  %18526 = vst [vmem:[#allocation54_spill] sm:$0xff] %v16978_v56  ;;  %v2117_v9 = vmax.f32 %v2031_v43, 0.0  ;;  %v16996_v43 = vunpack.c.l.b16 %v16954_v30 }
 0x35e   :  { %v2120_v61 = vmax.f32 %v2042_v31, 0.0 }
 0x35f   :  { %v2118_v0 = vmax.f32 %v2034_v28, 0.0  ;;  %v2376_v28 = vrot.slane %v16975_v39, 7 }
 0x360   :  { %v16986_v22 = vpack.c.bf16 %v2120_v61, %v2119_v36 }
 0x361   :  { %v16992_v38 = vpack.c.bf16 %v2118_v0, %v2117_v9  ;;  %v15432_v62 = vpop.f32.mrb[60].mxu1  ;;  %v2378_v9 = vrot.slane %v16978_v56, 6  ;;  %v17006_v0 = vunpack.c.l.b16 %v16960_v1  ;;  %v17019_v1 = vunpack.c.l.b16 %v16924_v14  ;;  %v2956_v14 = vld [vmem:[#allocation8 + $0x2e8] sm:$0xff] }
 0x362   :  { %18528 = vst [vmem:[#allocation56_spill] sm:$0xff] %v16986_v22  ;;  %v2055_v31 = vadd.f32 %v15432_v62, %v16748_v6  ;;  %v2046_v52 = vpop.f32.mrb[61].mxu1  ;;  %v2363_v62 = vsel %vm2328_vm3, %v2362_v37, %v16981_v34  ;;  %v2377_v11 = vsel %vm2328_vm3, %v2376_v28, %v16996_v43  ;;  %v2372_v28 = vrot.slane %v17013_v4, 2 }
 0x363   :  { %18529 = vst [vmem:[#allocation57_spill] sm:$0xff] %v16992_v38  ;;  %v17001_v36 = vunpack.c.l.b16 %v16992_v38  ;;  %v2047_v61 = vadd.f32 %v16748_v6, %v2046_v52  ;;  %v15433_v26 = vpop.f32.mrb[62].mxu1  ;;  %v2365_v52 = vsel %vm2331_vm4, %v2364_v53, %v2363_v62  ;;  %v2379_v21 = vsel %vm2331_vm4, %v2378_v9, %v2377_v11 }
 0x364   :  { %v2058_v40 = vadd.f32 %v15433_v26, %v16748_v6  ;;  %v2049_v30 = vpop.f32.mrb[63].mxu1  ;;  %v2123_v15 = vmax.f32 %v2055_v31, 0.0  ;;  %v2367_v53 = vsel %vm2334_vm5, %v2366_v50, %v2365_v52  ;;  %v2380_v62 = vrot.slane %v17006_v0, 5 }
 0x365   :  { %v2050_v38 = vadd.f32 %v16748_v6, %v2049_v30  ;;  %v2121_v37 = vmax.f32 %v2047_v61, 0.0  ;;  %v2382_v10 = vrot.slane %v17001_v36, 4  ;;  %v17026_v6 = vunpack.c.l.b16 %v16986_v22  ;;  %v2976_v22 = vld [vmem:[#allocation8 + $0x388] sm:$0xff] }
 0x366   :  { %v2124_v26 = vmax.f32 %v2058_v40, 0.0  ;;  %v2369_v40 = vsel %vm2337_vm6, %v2368_v63, %v2367_v53  ;;  %v2370_v61 = vrot.slane %v17019_v1, 3 }
 0x367   :  { %v2122_v7 = vmax.f32 %v2050_v38, 0.0  ;;  %v17037_v38 = vunpack.c.l.b16 %v16932_v2  ;;  %v2384_v63 = vrot.slane %v17026_v6, 3 }
 0x368   :  { %v17028_v30 = vpack.c.bf16 %v2124_v26, %v2123_v15  ;;  %v2381_v15 = vsel %vm2334_vm5, %v2380_v62, %v2379_v21  ;;  %v2371_v9 = vsel %vm2340_vm7, %v2370_v61, %v2369_v40  ;;  %v2935_v40 = vld [vmem:[#allocation8 + $0x240] sm:$0xff]  ;;  %v2936_v61 = vld [vmem:[#allocation8 + $0x248] sm:$0xff] }
 0x369   :  { %v17032_v31 = vpack.c.bf16 %v2122_v7, %v2121_v37  ;;  %v2383_v7 = vsel %vm2337_vm6, %v2382_v10, %v2381_v15  ;;  %v2373_v52 = vsel %vm2343_vm8, %v2372_v28, %v2371_v9  ;;  %v2374_v37 = vrot.slane %v17037_v38, 1  ;;  %v2939_v28 = vld [vmem:[#allocation8 + $0x260] sm:$0xff]  ;;  %v2940_v9 = vld [vmem:[#allocation8 + $0x268] sm:$0xff] }
 0x36a   :  { %18530 = vst [vmem:[#allocation58_spill] sm:$0xff] %v17028_v30  ;;  %v17040_v11 = vunpack.c.l.b16 %v17028_v30  ;;  %v2385_v53 = vsel %vm2340_vm7, %v2384_v63, %v2383_v7  ;;  %v14198_v7 = vcombine.low %v16936_v42, %v16939_v20  ;;  %v14200_v63 = vcombine.low %v16941_v25, %v16943_v45  ;;  %v2951_v30 = vld [vmem:[#allocation8 + $0x2c0] sm:$0xff]  ;;  %v2952_v45 = vld [vmem:[#allocation8 + $0x2c8] sm:$0xff] }
 0x36b   :  { %18531 = vst [vmem:[#allocation59_spill] sm:$0xff] %v17032_v31  ;;  %v17045_v50 = vunpack.c.l.b16 %v17032_v31  ;;  %v2375_v62 = vsel %vm2346_vm9, %v2374_v37, %v2373_v52  ;;  %v14207_v52 = vcombine.high %v2935_v40, %v2939_v28  ;;  %v2947_v37 = vld [vmem:[#allocation8 + $0x2a0] sm:$0xff] }
 0x36c   :  { %v2388_v2 = vrot.slane %v17040_v11, 1  ;;  %v2955_v25 = vld [vmem:[#allocation8 + $0x2e0] sm:$0xff] }
 0x36d   :  { %v2386_v26 = vrot.slane %v17045_v50, 2  ;;  %v3043_v19 = vrot.slane %v17045_v50, 3 }
 0x36f   :  { %v2387_v21 = vsel %vm2343_vm8, %v2386_v26, %v2385_v53  ;;  %v14209_v26 = vcombine.high %v2936_v61, %v2940_v9  ;;  %v2944_v53 = vld [vmem:[#allocation8 + $0x288] sm:$0xff] }
 0x370   :  { %v2389_v10 = vsel %vm2346_vm9, %v2388_v2, %v2387_v21  ;;  %v2943_v2 = vld [vmem:[#allocation8 + $0x280] sm:$0xff]  ;;  %v2948_v21 = vld [vmem:[#allocation8 + $0x2a8] sm:$0xff] }
 0x371   :  { %v2391_v15 = vpack.c.b16 %v2389_v10, %v2375_v62  ;;  %v14206_v62 = vcombine.low %v2935_v40, %v2939_v28  ;;  %v14208_v10 = vcombine.low %v2936_v61, %v2940_v9  ;;  %v14215_v42 = vcombine.high %v2943_v2, %v2947_v37  ;;  %v2959_v61 = vld [vmem:[#allocation8 + $0x300] sm:$0xff] }
 0x372   :  { %v14217_v20 = vcombine.high %v2944_v53, %v2948_v21  ;;  %v14214_v31 = vcombine.low %v2943_v2, %v2947_v37  ;;  %v14223_v40 = vcombine.high %v2951_v30, %v2955_v25  ;;  %v14225_v28 = vcombine.high %v2952_v45, %v2956_v14  ;;  %v2963_v9 = vld [vmem:[#allocation8 + $0x320] sm:$0xff] }
 0x373   :  { %2757 = vmatmul.mubr.bf16.gmra.mrb[36].mxu0 %v2391_v15  ;;  %2810 = vmatmul.mubr.bf16.gmra.mrb[68].mxu1 %v2391_v15  ;;  %v2967_v2 = vld [vmem:[#allocation8 + $0x340] sm:$0xff]  ;;  %v2991_v37 = vrot.slane %v16815_v57, 1 }
 0x374   :  { %2852 = vmatprep.mubr.bf16.mxu0 %v18514_v59  ;;  %2905 = vmatprep.mubr.bf16.mxu1 %v18514_v59 }
 0x37b   :  { %2853 = vmatmul.mubr.bf16.vlgmr.msra.gmra.mrb[40].mxu0 %v16900_v27  ;;  %2906 = vmatmul.mubr.bf16.vlgmr.msra.gmra.mrb[72].mxu1 %v16900_v27  ;;  %v14216_v27 = vcombine.low %v2944_v53, %v2948_v21  ;;  %v2971_v53 = vld [vmem:[#allocation8 + $0x360] sm:$0xff]  ;;  %v2968_v21 = vld [vmem:[#allocation8 + $0x348] sm:$0xff] }
 0x37c   :  { %3372 = vmatpush1.bf16.msra.mxu0 %v14198_v7  ;;  %3425 = vmatpush1.bf16.msra.mxu1 %v14200_v63  ;;  %v2960_v7 = vld [vmem:[#allocation8 + $0x308] sm:$0xff] }
 0x37d   :  { %3373 = vmatprep.subr.bf16.mxu0 %v14207_v52  ;;  %3426 = vmatprep.subr.bf16.mxu1 %v14209_v26  ;;  %v2964_v63 = vld [vmem:[#allocation8 + $0x328] sm:$0xff]  ;;  %v14222_v52 = vcombine.low %v2951_v30, %v2955_v25  ;;  %v14224_v26 = vcombine.low %v2952_v45, %v2956_v14  ;;  %v3007_v14 = vrot.slane %v16812_v54, 7  ;;  %v14230_v30 = vcombine.low %v2959_v61, %v2963_v9 }
 0x37e   :  { %2862 = vmatprep.mubr.bf16.mxu0 %v18514_v59  ;;  %2915 = vmatprep.mubr.bf16.mxu1 %v18514_v59  ;;  %v14239_v25 = vcombine.high %v2967_v2, %v2971_v53 }
 0x380   :  { %3374 = vmatpush1.bf16.msra.mxu0 %v14206_v62  ;;  %3427 = vmatpush1.bf16.msra.mxu1 %v14208_v10  ;;  %v14231_v62 = vcombine.high %v2959_v61, %v2963_v9  ;;  %v14233_v10 = vcombine.high %v2960_v7, %v2964_v63  ;;  %v2995_v61 = vrot.slane %v16818_v58, 6 }
 0x381   :  { %3375 = vmatprep.subr.bf16.mxu0 %v14215_v42  ;;  %3428 = vmatprep.subr.bf16.mxu1 %v14217_v20  ;;  %v2972_v42 = vld [vmem:[#allocation8 + $0x368] sm:$0xff]  ;;  %v14232_v20 = vcombine.low %v2960_v7, %v2964_v63  ;;  %v3011_v7 = vrot.slane %v16835_v17, 5  ;;  %v14238_v63 = vcombine.low %v2967_v2, %v2971_v53  ;;  %v3033_v2 = vrot.slane %v16996_v43, 1 }
 0x382   :  { %v14241_v45 = vcombine.high %v2968_v21, %v2972_v42  ;;  %v2999_v53 = vrot.slane %v16853_v35, 4 }
 0x383   :  { %2863 = vmatmul.mubr.bf16.gmra.mrb[44].mxu0 %v2391_v15  ;;  %2916 = vmatmul.mubr.bf16.gmra.mrb[76].mxu1 %v2391_v15  ;;  %v2993_v15 = vrot.slane %v16805_v49, 7 }
 0x384   :  { %3376 = vmatpush1.bf16.msra.mxu0 %v14214_v31  ;;  %3429 = vmatpush1.bf16.msra.mxu1 %v14216_v27  ;;  %v3005_v31 = vrot.slane %v16830_v12, 1  ;;  %v2975_v27 = vld [vmem:[#allocation8 + $0x380] sm:$0xff] }
 0x385   :  { %3377 = vmatprep.subr.bf16.mxu0 %v14223_v40  ;;  %3430 = vmatprep.subr.bf16.mxu1 %v14225_v28  ;;  %v2992_v40 = vsel %vm2328_vm3, %v16801_v44, %v2991_v37  ;;  %v2979_v28 = vld [vmem:[#allocation8 + $0x3a0] sm:$0xff]  ;;  %v14249_v37 = vcombine.high %v2976_v22, %v2980_v3 }
 0x386   :  { %3403 = vmatprep.mubr.bf16.mxu0 %v18514_v59  ;;  %3456 = vmatprep.mubr.bf16.mxu1 %v18514_v59  ;;  %v2994_v47 = vsel %vm2331_vm4, %v2993_v15, %v2992_v40  ;;  %v2983_v15 = vld [vmem:[#allocation8 + $0x3c0] sm:$0xff] }
 0x387   :  { %v2996_v40 = vsel %vm2334_vm5, %v2995_v61, %v2994_v47  ;;  %v14246_v47 = vcombine.low %v2975_v27, %v2979_v28 }
 0x388   :  { %3378 = vmatpush1.bf16.msra.mxu0 %v14222_v52  ;;  %3431 = vmatpush1.bf16.msra.mxu1 %v14224_v26  ;;  %v3006_v52 = vsel %vm2328_vm3, %v16809_v51, %v3005_v31  ;;  %v14240_v26 = vcombine.low %v2968_v21, %v2972_v42  ;;  %v2987_v31 = vld [vmem:[#allocation8 + $0x3e0] sm:$0xff]  ;;  %v3015_v42 = vrot.slane %v16880_v23, 3 }
 0x389   :  { %3379 = vmatprep.subr.bf16.mxu0 %v14231_v62  ;;  %3432 = vmatprep.subr.bf16.mxu1 %v14233_v10  ;;  %v3008_v9 = vsel %vm2331_vm4, %v3007_v14, %v3006_v52  ;;  %v3009_v62 = vrot.slane %v16840_v24, 6  ;;  %v14247_v10 = vcombine.high %v2975_v27, %v2979_v28  ;;  %v2998_v14 = vsel %vm2337_vm6, %v2997_v46, %v2996_v40  ;;  %v2929_v40 = vld [vmem:[#allocation8 + $0x210] sm:$0xff]  ;;  %v2934_v28 = vld [vmem:[#allocation8 + $0x238] sm:$0xff] }
 0x38a   :  { %v3001_v52 = vrot.slane %v16847_v29, 3  ;;  %v3013_v46 = vrot.slane %v16860_v48, 4  ;;  %v14255_v61 = vcombine.high %v2983_v15, %v2987_v31 }
 0x38c   :  { %3380 = vmatpush1.bf16.msra.mxu0 %v14230_v30  ;;  %3433 = vmatpush1.bf16.msra.mxu1 %v14232_v20  ;;  %v3010_v30 = vsel %vm2334_vm5, %v3009_v62, %v3008_v9  ;;  %v3035_v20 = vrot.slane %v16978_v56, 7  ;;  %v14257_v9 = vcombine.high %v2984_v33, %v2988_v32  ;;  %v3000_v62 = vsel %vm2340_vm7, %v2999_v53, %v2998_v14 }
 0x38d   :  { %3381 = vmatprep.subr.bf16.mxu0 %v14239_v25  ;;  %3434 = vmatprep.subr.bf16.mxu1 %v14241_v45  ;;  %v3012_v21 = vsel %vm2337_vm6, %v3011_v7, %v3010_v30  ;;  %v14248_v25 = vcombine.low %v2976_v22, %v2980_v3  ;;  %v3019_v45 = vrot.slane %v16981_v34, 1  ;;  %v3021_v7 = vrot.slane %v16971_v60, 7  ;;  %v2933_v3 = vld [vmem:[#allocation8 + $0x230] sm:$0xff]  ;;  %v2930_v22 = vld [vmem:[#allocation8 + $0x218] sm:$0xff] }
 0x38e   :  { %v3002_v30 = vsel %vm2343_vm8, %v3001_v52, %v3000_v62  ;;  %v3014_v27 = vsel %vm2340_vm7, %v3013_v46, %v3012_v21  ;;  %v3039_v53 = vrot.slane %v17001_v36, 5  ;;  %v14256_v52 = vcombine.low %v2984_v33, %v2988_v32  ;;  %v2938_v32 = vld [vmem:[#allocation8 + $0x258] sm:$0xff] }
 0x38f   :  { %v3017_v62 = vrot.slane %v16874_v13, 2  ;;  %v3020_v21 = vsel %vm2328_vm3, %v16967_v41, %v3019_v45  ;;  %v3037_v46 = vrot.slane %v17006_v0, 6  ;;  %v2942_v33 = vld [vmem:[#allocation8 + $0x278] sm:$0xff] }
 0x390   :  { %3382 = vmatpush1.bf16.msra.mxu0 %v14238_v63  ;;  %3435 = vmatpush1.bf16.msra.mxu1 %v14240_v26  ;;  %v3003_v63 = vrot.slane %v16867_v55, 2  ;;  %v3034_v26 = vsel %vm2328_vm3, %v16975_v39, %v3033_v2  ;;  %v14203_v2 = vcombine.high %v2929_v40, %v2933_v3 }
 0x391   :  { %3383 = vmatprep.subr.bf16.mxu0 %v14247_v10  ;;  %3436 = vmatprep.subr.bf16.mxu1 %v14249_v37  ;;  %v14254_v10 = vcombine.low %v2983_v15, %v2987_v31  ;;  %v3016_v37 = vsel %vm2343_vm8, %v3015_v42, %v3014_v27  ;;  %v3036_v14 = vsel %vm2331_vm4, %v3035_v20, %v3034_v26  ;;  %v2937_v31 = vld [vmem:[#allocation8 + $0x250] sm:$0xff]  ;;  %v3025_v27 = vrot.slane %v16990_v5, 5 }
 0x392   :  { %v14205_v15 = vcombine.high %v2930_v22, %v2934_v28  ;;  %v2941_v42 = vld [vmem:[#allocation8 + $0x270] sm:$0xff]  ;;  %v3022_v20 = vsel %vm2331_vm4, %v3021_v7, %v3020_v21  ;;  %v3038_v45 = vsel %vm2334_vm5, %v3037_v46, %v3036_v14  ;;  %v3004_v26 = vsel %vm2346_vm9, %v3003_v63, %v3002_v30 }
 0x393   :  { %v14204_v7 = vcombine.low %v2930_v22, %v2934_v28  ;;  %v14211_v21 = vcombine.high %v2937_v31, %v2941_v42  ;;  %v14213_v14 = vcombine.high %v2938_v32, %v2942_v33  ;;  %v2945_v63 = vld [vmem:[#allocation8 + $0x290] sm:$0xff]  ;;  %v2946_v28 = vld [vmem:[#allocation8 + $0x298] sm:$0xff]  ;;  %v14210_v46 = vcombine.low %v2937_v31, %v2941_v42 }
 0x394   :  { %3384 = vmatpush1.bf16.msra.mxu0 %v14246_v47  ;;  %3437 = vmatpush1.bf16.msra.mxu1 %v14248_v25  ;;  %v3018_v47 = vsel %vm2346_vm9, %v3017_v62, %v3016_v37  ;;  %v3023_v25 = vrot.slane %v16984_v16, 6  ;;  %v3041_v37 = vrot.slane %v17026_v6, 4  ;;  %v2949_v22 = vld [vmem:[#allocation8 + $0x2b0] sm:$0xff] }
 0x395   :  { %3385 = vmatprep.subr.bf16.mxu0 %v14255_v61  ;;  %3438 = vmatprep.subr.bf16.mxu1 %v14257_v9  ;;  %v14202_v61 = vcombine.low %v2929_v40, %v2933_v3  ;;  %v3040_v9 = vsel %vm2337_vm6, %v3039_v53, %v3038_v45  ;;  %v17119_v62 = vpack.c.b16 %v3018_v47, %v3004_v26  ;;  %v3029_v40 = vrot.slane %v17013_v4, 3  ;;  %v2950_v53 = vld [vmem:[#allocation8 + $0x2b8] sm:$0xff]  ;;  %v2957_v42 = vld [vmem:[#allocation8 + $0x2f0] sm:$0xff] }
 0x396   :  { %v3024_v18 = vsel %vm2334_vm5, %v3023_v25, %v3022_v20  ;;  %v3027_v3 = vrot.slane %v17019_v1, 4  ;;  %v14221_v47 = vcombine.high %v2946_v28, %v2950_v53  ;;  %v2953_v25 = vld [vmem:[#allocation8 + $0x2d0] sm:$0xff]  ;;  %v14218_v26 = vcombine.low %v2945_v63, %v2949_v22 }
 0x397   :  { %v3026_v30 = vsel %vm2337_vm6, %v3025_v27, %v3024_v18  ;;  %v14212_v18 = vcombine.low %v2938_v32, %v2942_v33  ;;  %v14219_v27 = vcombine.high %v2945_v63, %v2949_v22  ;;  %v2954_v32 = vld [vmem:[#allocation8 + $0x2d8] sm:$0xff] }
 0x398   :  { %3386 = vmatpush1.bf16.msra.mxu0 %v14254_v10  ;;  %3439 = vmatpush1.bf16.msra.mxu1 %v14256_v52  ;;  %v3042_v10 = vsel %vm2340_vm7, %v3041_v37, %v3040_v9  ;;  %v2958_v33 = vld [vmem:[#allocation8 + $0x2f8] sm:$0xff]  ;;  %v2961_v37 = vld [vmem:[#allocation8 + $0x310] sm:$0xff] }
 0x399   :  { %3477 = vmatprep.subr.bf16.mxu0 %v14203_v2  ;;  %3530 = vmatprep.subr.bf16.mxu1 %v14205_v15  ;;  %v3044_v52 = vsel %vm2343_vm8, %v3043_v19, %v3042_v10  ;;  %v3028_v2 = vsel %vm2340_vm7, %v3027_v3, %v3026_v30  ;;  %v3045_v15 = vrot.slane %v17040_v11, 2  ;;  %v3031_v19 = vrot.slane %v17037_v38, 2  ;;  %v2962_v30 = vld [vmem:[#allocation8 + $0x318] sm:$0xff] }
 0x39a   :  { %v3030_v20 = vsel %vm2343_vm8, %v3029_v40, %v3028_v2  ;;  %v2966_v40 = vld [vmem:[#allocation8 + $0x338] sm:$0xff]  ;;  %v14226_v3 = vcombine.low %v2953_v25, %v2957_v42  ;;  %v14228_v10 = vcombine.low %v2954_v32, %v2958_v33 }
 0x39b   :  { %3404 = vmatmul.mubr.bf16.vlgmr.msra.gmra.mrb[32].mxu0 %v17119_v62  ;;  %3457 = vmatmul.mubr.bf16.vlgmr.msra.gmra.mrb[64].mxu1 %v17119_v62  ;;  %v3046_v31 = vsel %vm2346_vm9, %v3045_v15, %v3044_v52  ;;  %v3032_v45 = vsel %vm2346_vm9, %v3031_v19, %v3030_v20  ;;  %v14237_v22 = vcombine.high %v2962_v30, %v2966_v40  ;;  %v2970_v52 = vld [vmem:[#allocation8 + $0x358] sm:$0xff] }
 0x39c   :  { %3478 = vmatpush1.bf16.msra.mxu0 %v14202_v61  ;;  %3531 = vmatpush1.bf16.msra.mxu1 %v14204_v7  ;;  %v14220_v61 = vcombine.low %v2946_v28, %v2950_v53  ;;  %v17136_v9 = vpack.c.b16 %v3046_v31, %v3032_v45  ;;  %v14227_v7 = vcombine.high %v2953_v25, %v2957_v42  ;;  %v2969_v28 = vld [vmem:[#allocation8 + $0x350] sm:$0xff]  ;;  %v2978_v25 = vld [vmem:[#allocation8 + $0x398] sm:$0xff] }
 0x39d   :  { %3479 = vmatprep.subr.bf16.mxu0 %v14211_v21  ;;  %3532 = vmatprep.subr.bf16.mxu1 %v14213_v14  ;;  %v14229_v21 = vcombine.high %v2954_v32, %v2958_v33  ;;  %v2965_v14 = vld [vmem:[#allocation8 + $0x330] sm:$0xff]  ;;  %v14236_v2 = vcombine.low %v2962_v30, %v2966_v40  ;;  %v2982_v19 = vld [vmem:[#allocation8 + $0x3b8] sm:$0xff]  ;;  %v3616_v40 = vld [vmem:[#allocation8 + $0x400] sm:$0xff] }
 0x39e   :  { %3413 = vmatprep.mubr.bf16.mxu0 %v18514_v59  ;;  %3466 = vmatprep.mubr.bf16.mxu1 %v18514_v59  ;;  %v14235_v63 = vcombine.high %v2961_v37, %v2965_v14  ;;  %v2973_v53 = vld [vmem:[#allocation8 + $0x370] sm:$0xff]  ;;  %v14253_v33 = vcombine.high %v2978_v25, %v2982_v19 }
 0x39f   :  { %v14243_v15 = vcombine.high %v2969_v28, %v2973_v53  ;;  %v14242_v31 = vcombine.low %v2969_v28, %v2973_v53  ;;  %v2985_v45 = vld [vmem:[#allocation8 + $0x3d0] sm:$0xff] }
 0x3a0   :  { %3480 = vmatpush1.bf16.msra.mxu0 %v14210_v46  ;;  %3533 = vmatpush1.bf16.msra.mxu1 %v14212_v18  ;;  %v2974_v46 = vld [vmem:[#allocation8 + $0x378] sm:$0xff]  ;;  %v14234_v18 = vcombine.low %v2961_v37, %v2965_v14  ;;  %v14252_v37 = vcombine.low %v2978_v25, %v2982_v19  ;;  %v3632_v19 = vld [vmem:[#allocation8 + $0x480] sm:$0xff] }
 0x3a1   :  { %3481 = vmatprep.subr.bf16.mxu0 %v14219_v27  ;;  %3534 = vmatprep.subr.bf16.mxu1 %v14221_v47  ;;  %v14245_v20 = vcombine.high %v2970_v52, %v2974_v46  ;;  %v2977_v27 = vld [vmem:[#allocation8 + $0x390] sm:$0xff]  ;;  %v14244_v42 = vcombine.low %v2970_v52, %v2974_v46  ;;  %v3624_v46 = vld [vmem:[#allocation8 + $0x440] sm:$0xff] }
 0x3a2   :  { %v2981_v47 = vld [vmem:[#allocation8 + $0x3b0] sm:$0xff] }
 0x3a3   :  { %3414 = vmatmul.mubr.bf16.gmra.mrb[36].mxu0 %v17136_v9  ;;  %3467 = vmatmul.mubr.bf16.gmra.mrb[68].mxu1 %v17136_v9  ;;  %v14251_v32 = vcombine.high %v2977_v27, %v2981_v47 }
 0x3a4   :  { %3482 = vmatpush1.bf16.msra.mxu0 %v14218_v26  ;;  %3535 = vmatpush1.bf16.msra.mxu1 %v14220_v61  ;;  %v2989_v26 = vld [vmem:[#allocation8 + $0x3f0] sm:$0xff]  ;;  %v2986_v61 = vld [vmem:[#allocation8 + $0x3d8] sm:$0xff] }
 0x3a5   :  { %3483 = vmatprep.subr.bf16.mxu0 %v14227_v7  ;;  %3536 = vmatprep.subr.bf16.mxu1 %v14229_v21  ;;  %v2990_v7 = vld [vmem:[#allocation8 + $0x3f8] sm:$0xff]  ;;  %v14250_v21 = vcombine.low %v2977_v27, %v2981_v47  ;;  %v14259_v14 = vcombine.high %v2985_v45, %v2989_v26 }
 0x3a6   :  { %3509 = vmatprep.mubr.bf16.mxu0 %v18514_v59  ;;  %3562 = vmatprep.mubr.bf16.mxu1 %v18514_v59  ;;  %v14261_v30 = vcombine.high %v2986_v61, %v2990_v7  ;;  %v14260_v28 = vcombine.low %v2986_v61, %v2990_v7  ;;  %v3640_v7 = vld [vmem:[#allocation8 + $0x4c0] sm:$0xff] }
 0x3a8   :  { %3484 = vmatpush1.bf16.msra.mxu0 %v14226_v3  ;;  %3537 = vmatpush1.bf16.msra.mxu1 %v14228_v10  ;;  %v3620_v3 = vld [vmem:[#allocation8 + $0x420] sm:$0xff]  ;;  %v3617_v10 = vld [vmem:[#allocation8 + $0x408] sm:$0xff] }
 0x3a9   :  { %3485 = vmatprep.subr.bf16.mxu0 %v14235_v63  ;;  %3538 = vmatprep.subr.bf16.mxu1 %v14237_v22  ;;  %v3621_v63 = vld [vmem:[#allocation8 + $0x428] sm:$0xff]  ;;  %v14258_v22 = vcombine.low %v2985_v45, %v2989_v26  ;;  %v14263_v53 = vcombine.high %v3616_v40, %v3620_v3 }
 0x3aa   :  { %v14265_v52 = vcombine.high %v3617_v10, %v3621_v63  ;;  %v14264_v27 = vcombine.low %v3617_v10, %v3621_v63  ;;  %v3648_v10 = vld [vmem:[#allocation8 + $0x500] sm:$0xff] }
 0x3ab   :  { %v3652_v63 = vld [vmem:[#allocation8 + $0x520] sm:$0xff] }
 0x3ac   :  { %3486 = vmatpush1.bf16.msra.mxu0 %v14234_v18  ;;  %3539 = vmatpush1.bf16.msra.mxu1 %v14236_v2  ;;  %v3628_v18 = vld [vmem:[#allocation8 + $0x460] sm:$0xff]  ;;  %v3625_v2 = vld [vmem:[#allocation8 + $0x448] sm:$0xff] }
 0x3ad   :  { %3487 = vmatprep.subr.bf16.mxu0 %v14243_v15  ;;  %3540 = vmatprep.subr.bf16.mxu1 %v14245_v20  ;;  %v3629_v15 = vld [vmem:[#allocation8 + $0x468] sm:$0xff]  ;;  %v14262_v20 = vcombine.low %v3616_v40, %v3620_v3  ;;  %v14271_v47 = vcombine.high %v3624_v46, %v3628_v18 }
 0x3ae   :  { %v14273_v25 = vcombine.high %v3625_v2, %v3629_v15  ;;  %v14272_v45 = vcombine.low %v3625_v2, %v3629_v15  ;;  %v3694_v2 = vrot.slane %v16830_v12, 2  ;;  %v3695_v15 = vrot.slane %v16809_v51, 1 }
 0x3b0   :  { %3488 = vmatpush1.bf16.msra.mxu0 %v14242_v31  ;;  %3541 = vmatpush1.bf16.msra.mxu1 %v14244_v42  ;;  %v3636_v31 = vld [vmem:[#allocation8 + $0x4a0] sm:$0xff]  ;;  %v3633_v42 = vld [vmem:[#allocation8 + $0x488] sm:$0xff] }
 0x3b1   :  { %3489 = vmatprep.subr.bf16.mxu0 %v14251_v32  ;;  %3542 = vmatprep.subr.bf16.mxu1 %v14253_v33  ;;  %v3637_v32 = vld [vmem:[#allocation8 + $0x4a8] sm:$0xff]  ;;  %v14270_v33 = vcombine.low %v3624_v46, %v3628_v18  ;;  %v14279_v26 = vcombine.high %v3632_v19, %v3636_v31 }
 0x3b2   :  { %v14281_v61 = vcombine.high %v3633_v42, %v3637_v32 }
 0x3b4   :  { %3490 = vmatpush1.bf16.msra.mxu0 %v14250_v21  ;;  %3543 = vmatpush1.bf16.msra.mxu1 %v14252_v37  ;;  %v3644_v21 = vld [vmem:[#allocation8 + $0x4e0] sm:$0xff]  ;;  %v3641_v37 = vld [vmem:[#allocation8 + $0x4c8] sm:$0xff] }
 0x3b5   :  { %3491 = vmatprep.subr.bf16.mxu0 %v14259_v14  ;;  %3544 = vmatprep.subr.bf16.mxu1 %v14261_v30  ;;  %v3645_v14 = vld [vmem:[#allocation8 + $0x4e8] sm:$0xff]  ;;  %v14278_v30 = vcombine.low %v3632_v19, %v3636_v31  ;;  %v14287_v40 = vcombine.high %v3640_v7, %v3644_v21  ;;  %v14286_v46 = vcombine.low %v3640_v7, %v3644_v21  ;;  %v3698_v7 = vrot.slane %v16840_v24, 7 }
 0x3b6   :  { %v14289_v3 = vcombine.high %v3641_v37, %v3645_v14  ;;  %v14288_v18 = vcombine.low %v3641_v37, %v3645_v14  ;;  %v3657_v19 = vld [vmem:[#allocation8 + $0x548] sm:$0xff]  ;;  %v3664_v14 = vld [vmem:[#allocation8 + $0x580] sm:$0xff] }
 0x3b7   :  { %v3661_v31 = vld [vmem:[#allocation8 + $0x568] sm:$0xff] }
 0x3b8   :  { %3492 = vmatpush1.bf16.msra.mxu0 %v14258_v22  ;;  %3545 = vmatpush1.bf16.msra.mxu1 %v14260_v28  ;;  %v3649_v22 = vld [vmem:[#allocation8 + $0x508] sm:$0xff]  ;;  %v14305_v37 = vcombine.high %v3657_v19, %v3661_v31 }
 0x3b9   :  { %4060 = vmatprep.subr.bf16.mxu0 %v14263_v53  ;;  %4113 = vmatprep.subr.bf16.mxu1 %v14265_v52  ;;  %v3653_v28 = vld [vmem:[#allocation8 + $0x528] sm:$0xff]  ;;  %v3680_v53 = vrot.slane %v16815_v57, 2  ;;  %v3681_v52 = vrot.slane %v16801_v44, 1 }
 0x3bb   :  { %3510 = vmatmul.mubr.bf16.vlgmr.msra.gmra.mrb[40].mxu0 %v17119_v62  ;;  %3563 = vmatmul.mubr.bf16.vlgmr.msra.gmra.mrb[72].mxu1 %v17119_v62  ;;  %v14280_v62 = vcombine.low %v3633_v42, %v3637_v32  ;;  %v3684_v42 = vrot.slane %v16818_v58, 7 }
 0x3bc   :  { %4061 = vmatpush1.bf16.msra.mxu0 %v14262_v20  ;;  %4114 = vmatpush1.bf16.msra.mxu1 %v14264_v27  ;;  %v14295_v20 = vcombine.high %v3648_v10, %v3652_v63  ;;  %v14297_v27 = vcombine.high %v3649_v22, %v3653_v28 }
 0x3bd   :  { %4062 = vmatprep.subr.bf16.mxu0 %v14271_v47  ;;  %4115 = vmatprep.subr.bf16.mxu1 %v14273_v25  ;;  %v3656_v47 = vld [vmem:[#allocation8 + $0x540] sm:$0xff] }
 0x3be   :  { %3519 = vmatprep.mubr.bf16.mxu0 %v18514_v59  ;;  %3572 = vmatprep.mubr.bf16.mxu1 %v18514_v59  ;;  %v3660_v25 = vld [vmem:[#allocation8 + $0x560] sm:$0xff] }
 0x3bf   :  { %v14303_v21 = vcombine.high %v3656_v47, %v3660_v25 }
 0x3c0   :  { %4063 = vmatpush1.bf16.msra.mxu0 %v14270_v33  ;;  %4116 = vmatpush1.bf16.msra.mxu1 %v14272_v45  ;;  %v3686_v33 = vrot.slane %v16824_v8, 6  ;;  %v14294_v45 = vcombine.low %v3648_v10, %v3652_v63 }
 0x3c1   :  { %4064 = vmatprep.subr.bf16.mxu0 %v14279_v26  ;;  %4117 = vmatprep.subr.bf16.mxu1 %v14281_v61  ;;  %v14296_v26 = vcombine.low %v3649_v22, %v3653_v28  ;;  %v3696_v61 = vsel %vm2328_vm3, %v3695_v15, %v3694_v2  ;;  %v14302_v22 = vcombine.low %v3656_v47, %v3660_v25  ;;  %v3672_v15 = vld [vmem:[#allocation8 + $0x5c0] sm:$0xff]  ;;  %v3722_v47 = vrot.slane %v16996_v43, 2 }
 0x3c2   :  { %v14304_v28 = vcombine.low %v3657_v19, %v3661_v31  ;;  %v3723_v25 = vrot.slane %v16975_v39, 1  ;;  %v3690_v31 = vrot.slane %v16847_v29, 4 }
 0x3c3   :  { %3520 = vmatmul.mubr.bf16.gmra.mrb[44].mxu0 %v17136_v9  ;;  %3573 = vmatmul.mubr.bf16.gmra.mrb[76].mxu1 %v17136_v9  ;;  %v3682_v9 = vsel %vm2328_vm3, %v3681_v52, %v3680_v53  ;;  %v3669_v53 = vld [vmem:[#allocation8 + $0x5a8] sm:$0xff]  ;;  %v3688_v52 = vrot.slane %v16853_v35, 5 }
 0x3c4   :  { %4065 = vmatpush1.bf16.msra.mxu0 %v14278_v30  ;;  %4118 = vmatpush1.bf16.msra.mxu1 %v14280_v62  ;;  %v3683_v32 = vsel %vm2331_vm4, %v16805_v49, %v3682_v9  ;;  %v3697_v30 = vsel %vm2331_vm4, %v16812_v54, %v3696_v61  ;;  %v3700_v62 = vrot.slane %v16835_v17, 6  ;;  %v3676_v9 = vld [vmem:[#allocation8 + $0x5e0] sm:$0xff] }
 0x3c5   :  { %4066 = vmatprep.subr.bf16.mxu0 %v14287_v40  ;;  %4119 = vmatprep.subr.bf16.mxu1 %v14289_v3  ;;  %v3668_v40 = vld [vmem:[#allocation8 + $0x5a0] sm:$0xff]  ;;  %v3665_v3 = vld [vmem:[#allocation8 + $0x588] sm:$0xff]  ;;  %v3685_v10 = vsel %vm2334_vm5, %v3684_v42, %v3683_v32 }
 0x3c6   :  { %4092 = vmatprep.mubr.bf16.mxu0 %v18514_v59  ;;  %4145 = vmatprep.mubr.bf16.mxu1 %v18514_v59  ;;  %v3687_v63 = vsel %vm2337_vm6, %v3686_v33, %v3685_v10  ;;  %v14313_v2 = vcombine.high %v3665_v3, %v3669_v53  ;;  %v3673_v42 = vld [vmem:[#allocation8 + $0x5c8] sm:$0xff]  ;;  %v3702_v33 = vrot.slane %v16860_v48, 5  ;;  %v14312_v61 = vcombine.low %v3665_v3, %v3669_v53  ;;  %v3618_v10 = vld [vmem:[#allocation8 + $0x410] sm:$0xff] }
 0x3c7   :  { %v3677_v32 = vld [vmem:[#allocation8 + $0x5e8] sm:$0xff]  ;;  %v3689_v19 = vsel %vm2340_vm7, %v3688_v52, %v3687_v63  ;;  %v3692_v63 = vrot.slane %v16867_v55, 3  ;;  %v3706_v52 = vrot.slane %v16874_v13, 3  ;;  %v14318_v3 = vcombine.low %v3672_v15, %v3676_v9 }
 0x3c8   :  { %4067 = vmatpush1.bf16.msra.mxu0 %v14286_v46  ;;  %4120 = vmatpush1.bf16.msra.mxu1 %v14288_v18  ;;  %v3699_v46 = vsel %vm2334_vm5, %v3698_v7, %v3697_v30  ;;  %v14311_v18 = vcombine.high %v3664_v14, %v3668_v40  ;;  %v14321_v30 = vcombine.high %v3673_v42, %v3677_v32 }
 0x3c9   :  { %4068 = vmatprep.subr.bf16.mxu0 %v14295_v20  ;;  %4121 = vmatprep.subr.bf16.mxu1 %v14297_v27  ;;  %v3701_v20 = vsel %vm2337_vm6, %v3700_v62, %v3699_v46  ;;  %v3704_v27 = vrot.slane %v16880_v23, 4  ;;  %v3622_v46 = vld [vmem:[#allocation8 + $0x430] sm:$0xff]  ;;  %v3691_v53 = vsel %vm2343_vm8, %v3690_v31, %v3689_v19  ;;  %v3714_v19 = vrot.slane %v16990_v5, 6 }
 0x3ca   :  { %v3703_v7 = vsel %vm2340_vm7, %v3702_v33, %v3701_v20  ;;  %v14320_v20 = vcombine.low %v3673_v42, %v3677_v32  ;;  %v3693_v31 = vsel %vm2346_vm9, %v3692_v63, %v3691_v53  ;;  %v3627_v42 = vld [vmem:[#allocation8 + $0x458] sm:$0xff] }
 0x3cb   :  { %v3705_v62 = vsel %vm2343_vm8, %v3704_v27, %v3703_v7  ;;  %v3712_v7 = vrot.slane %v16984_v16, 7  ;;  %v3631_v32 = vld [vmem:[#allocation8 + $0x478] sm:$0xff] }
 0x3cc   :  { %4069 = vmatpush1.bf16.msra.mxu0 %v14294_v45  ;;  %4122 = vmatpush1.bf16.msra.mxu1 %v14296_v26  ;;  %v3708_v45 = vrot.slane %v16981_v34, 2  ;;  %v14310_v26 = vcombine.low %v3664_v14, %v3668_v40  ;;  %v3724_v14 = vsel %vm2328_vm3, %v3723_v25, %v3722_v47  ;;  %v3726_v40 = vrot.slane %v17006_v0, 7 }
 0x3cd   :  { %4070 = vmatprep.subr.bf16.mxu0 %v14303_v21  ;;  %4123 = vmatprep.subr.bf16.mxu1 %v14305_v37  ;;  %v3709_v21 = vrot.slane %v16967_v41, 1  ;;  %v14319_v37 = vcombine.high %v3672_v15, %v3676_v9  ;;  %v3707_v27 = vsel %vm2346_vm9, %v3706_v52, %v3705_v62  ;;  %v14267_v47 = vcombine.high %v3618_v10, %v3622_v46  ;;  %v3626_v9 = vld [vmem:[#allocation8 + $0x450] sm:$0xff] }
 0x3ce   :  { %v14277_v53 = vcombine.high %v3627_v42, %v3631_v32 }
 0x3cf   :  { %v3710_v33 = vsel %vm2328_vm3, %v3709_v21, %v3708_v45  ;;  %v17195_v45 = vpack.c.b16 %v3707_v27, %v3693_v31  ;;  %v3634_v27 = vld [vmem:[#allocation8 + $0x490] sm:$0xff] }
 0x3d0   :  { %4071 = vmatpush1.bf16.msra.mxu0 %v14302_v22  ;;  %4124 = vmatpush1.bf16.msra.mxu1 %v14304_v28  ;;  %v3619_v22 = vld [vmem:[#allocation8 + $0x418] sm:$0xff]  ;;  %v3711_v25 = vsel %vm2331_vm4, %v16971_v60, %v3710_v33  ;;  %v14276_v33 = vcombine.low %v3627_v42, %v3631_v32  ;;  %v3642_v31 = vld [vmem:[#allocation8 + $0x4d0] sm:$0xff] }
 0x3d1   :  { %4072 = vmatprep.subr.bf16.mxu0 %v14311_v18  ;;  %4125 = vmatprep.subr.bf16.mxu1 %v14313_v2  ;;  %v3623_v28 = vld [vmem:[#allocation8 + $0x438] sm:$0xff]  ;;  %v3725_v18 = vsel %vm2331_vm4, %v16978_v56, %v3724_v14  ;;  %v3728_v2 = vrot.slane %v17001_v36, 6  ;;  %v3713_v52 = vsel %vm2334_vm5, %v3712_v7, %v3711_v25  ;;  %v3730_v14 = vrot.slane %v17026_v6, 5 }
 0x3d2   :  { %v14269_v15 = vcombine.high %v3619_v22, %v3623_v28  ;;  %v14268_v62 = vcombine.low %v3619_v22, %v3623_v28  ;;  %v3643_v42 = vld [vmem:[#allocation8 + $0x4d8] sm:$0xff] }
 0x3d3   :  { %v3647_v32 = vld [vmem:[#allocation8 + $0x4f8] sm:$0xff] }
 0x3d4   :  { %4073 = vmatpush1.bf16.msra.mxu0 %v14310_v26  ;;  %4126 = vmatpush1.bf16.msra.mxu1 %v14312_v61  ;;  %v3630_v26 = vld [vmem:[#allocation8 + $0x470] sm:$0xff]  ;;  %v3727_v61 = vsel %vm2334_vm5, %v3726_v40, %v3725_v18  ;;  %v3715_v40 = vsel %vm2337_vm6, %v3714_v19, %v3713_v52  ;;  %v3718_v18 = vrot.slane %v17013_v4, 4 }
 0x3d5   :  { %4074 = vmatprep.subr.bf16.mxu0 %v14319_v37  ;;  %4127 = vmatprep.subr.bf16.mxu1 %v14321_v30  ;;  %v3729_v21 = vsel %vm2337_vm6, %v3728_v2, %v3727_v61  ;;  %v3732_v37 = vrot.slane %v17045_v50, 4  ;;  %v14266_v30 = vcombine.low %v3618_v10, %v3622_v46  ;;  %v14275_v63 = vcombine.high %v3626_v9, %v3630_v26  ;;  %v3635_v10 = vld [vmem:[#allocation8 + $0x498] sm:$0xff] }
 0x3d6   :  { %v3716_v2 = vrot.slane %v17019_v1, 5  ;;  %v3639_v46 = vld [vmem:[#allocation8 + $0x4b8] sm:$0xff]  ;;  %v14274_v28 = vcombine.low %v3626_v9, %v3630_v26  ;;  %v3720_v61 = vrot.slane %v17037_v38, 3  ;;  %v3646_v26 = vld [vmem:[#allocation8 + $0x4f0] sm:$0xff] }
 0x3d7   :  { %v14285_v19 = vcombine.high %v3635_v10, %v3639_v46  ;;  %v14291_v52 = vcombine.high %v3642_v31, %v3646_v26 }
 0x3d8   :  { %4075 = vmatpush1.bf16.msra.mxu0 %v14318_v3  ;;  %4128 = vmatpush1.bf16.msra.mxu1 %v14320_v20  ;;  %v3731_v3 = vsel %vm2340_vm7, %v3730_v14, %v3729_v21  ;;  %v3638_v20 = vld [vmem:[#allocation8 + $0x4b0] sm:$0xff]  ;;  %v3717_v7 = vsel %vm2340_vm7, %v3716_v2, %v3715_v40  ;;  %v14293_v14 = vcombine.high %v3643_v42, %v3647_v32  ;;  %v3651_v40 = vld [vmem:[#allocation8 + $0x518] sm:$0xff] }
 0x3d9   :  { %4166 = vmatprep.subr.bf16.mxu0 %v14267_v47  ;;  %4219 = vmatprep.subr.bf16.mxu1 %v14269_v15  ;;  %v3733_v22 = vsel %vm2343_vm8, %v3732_v37, %v3731_v3  ;;  %v3734_v47 = vrot.slane %v17040_v11, 3  ;;  %v3719_v15 = vsel %vm2343_vm8, %v3718_v18, %v3717_v7  ;;  %v14283_v25 = vcombine.high %v3634_v27, %v3638_v20  ;;  %v3655_v18 = vld [vmem:[#allocation8 + $0x538] sm:$0xff] }
 0x3da   :  { %v3721_v21 = vsel %vm2346_vm9, %v3720_v61, %v3719_v15  ;;  %v14282_v37 = vcombine.low %v3634_v27, %v3638_v20  ;;  %v14290_v2 = vcombine.low %v3642_v31, %v3646_v26  ;;  %v14292_v3 = vcombine.low %v3643_v42, %v3647_v32  ;;  %v3667_v31 = vld [vmem:[#allocation8 + $0x598] sm:$0xff] }
 0x3db   :  { %4093 = vmatmul.mubr.bf16.vlgmr.msra.gmra.mrb[32].mxu0 %v17195_v45  ;;  %4146 = vmatmul.mubr.bf16.vlgmr.msra.gmra.mrb[64].mxu1 %v17195_v45  ;;  %v3735_v9 = vsel %vm2346_vm9, %v3734_v47, %v3733_v22  ;;  %v14301_v20 = vcombine.high %v3651_v40, %v3655_v18  ;;  %v3659_v22 = vld [vmem:[#allocation8 + $0x558] sm:$0xff]  ;;  %v14300_v7 = vcombine.low %v3651_v40, %v3655_v18  ;;  %v4305_v18 = vld [vmem:[#allocation8 + $0x600] sm:$0xff] }
 0x3dc   :  { %4167 = vmatpush1.bf16.msra.mxu0 %v14266_v30  ;;  %4220 = vmatpush1.bf16.msra.mxu1 %v14268_v62  ;;  %v14284_v30 = vcombine.low %v3635_v10, %v3639_v46  ;;  %v17216_v62 = vpack.c.b16 %v3735_v9, %v3721_v21  ;;  %v3658_v10 = vld [vmem:[#allocation8 + $0x550] sm:$0xff]  ;;  %v3671_v61 = vld [vmem:[#allocation8 + $0x5b8] sm:$0xff] }
 0x3dd   :  { %4168 = vmatprep.subr.bf16.mxu0 %v14275_v63  ;;  %4221 = vmatprep.subr.bf16.mxu1 %v14277_v53  ;;  %v3650_v63 = vld [vmem:[#allocation8 + $0x510] sm:$0xff]  ;;  %v14317_v32 = vcombine.high %v3667_v31, %v3671_v61 }
 0x3de   :  { %4102 = vmatprep.mubr.bf16.mxu0 %v18514_v59  ;;  %4155 = vmatprep.mubr.bf16.mxu1 %v18514_v59  ;;  %v3654_v53 = vld [vmem:[#allocation8 + $0x530] sm:$0xff] }
 0x3df   :  { %v14299_v27 = vcombine.high %v3650_v63, %v3654_v53  ;;  %v3662_v46 = vld [vmem:[#allocation8 + $0x570] sm:$0xff] }
 0x3e0   :  { %4169 = vmatpush1.bf16.msra.mxu0 %v14274_v28  ;;  %4222 = vmatpush1.bf16.msra.mxu1 %v14276_v33  ;;  %v3663_v28 = vld [vmem:[#allocation8 + $0x578] sm:$0xff]  ;;  %v14298_v33 = vcombine.low %v3650_v63, %v3654_v53  ;;  %v14307_v47 = vcombine.high %v3658_v10, %v3662_v46  ;;  %v14306_v9 = vcombine.low %v3658_v10, %v3662_v46  ;;  %v3674_v21 = vld [vmem:[#allocation8 + $0x5d0] sm:$0xff] }
 0x3e1   :  { %4170 = vmatprep.subr.bf16.mxu0 %v14283_v25  ;;  %4223 = vmatprep.subr.bf16.mxu1 %v14285_v19  ;;  %v14309_v15 = vcombine.high %v3659_v22, %v3663_v28  ;;  %v3666_v25 = vld [vmem:[#allocation8 + $0x590] sm:$0xff]  ;;  %v14308_v26 = vcombine.low %v3659_v22, %v3663_v28  ;;  %v14316_v63 = vcombine.low %v3667_v31, %v3671_v61  ;;  %v4313_v28 = vld [vmem:[#allocation8 + $0x640] sm:$0xff] }
 0x3e2   :  { %v3670_v19 = vld [vmem:[#allocation8 + $0x5b0] sm:$0xff]  ;;  %v4321_v61 = vld [vmem:[#allocation8 + $0x680] sm:$0xff] }
 0x3e3   :  { %4103 = vmatmul.mubr.bf16.gmra.mrb[36].mxu0 %v17216_v62  ;;  %4156 = vmatmul.mubr.bf16.gmra.mrb[68].mxu1 %v17216_v62  ;;  %v14315_v42 = vcombine.high %v3666_v25, %v3670_v19 }
 0x3e4   :  { %4171 = vmatpush1.bf16.msra.mxu0 %v14282_v37  ;;  %4224 = vmatpush1.bf16.msra.mxu1 %v14284_v30  ;;  %v3678_v37 = vld [vmem:[#allocation8 + $0x5f0] sm:$0xff]  ;;  %v3675_v30 = vld [vmem:[#allocation8 + $0x5d8] sm:$0xff] }
 0x3e5   :  { %4172 = vmatprep.subr.bf16.mxu0 %v14291_v52  ;;  %4225 = vmatprep.subr.bf16.mxu1 %v14293_v14  ;;  %v3679_v52 = vld [vmem:[#allocation8 + $0x5f8] sm:$0xff]  ;;  %v14314_v14 = vcombine.low %v3666_v25, %v3670_v19  ;;  %v14323_v53 = vcombine.high %v3674_v21, %v3678_v37 }
 0x3e6   :  { %4198 = vmatprep.mubr.bf16.mxu0 %v18514_v59  ;;  %4251 = vmatprep.mubr.bf16.mxu1 %v18514_v59  ;;  %v14325_v40 = vcombine.high %v3675_v30, %v3679_v52  ;;  %v14324_v10 = vcombine.low %v3675_v30, %v3679_v52  ;;  %v4329_v52 = vld [vmem:[#allocation8 + $0x6c0] sm:$0xff] }
 0x3e8   :  { %4173 = vmatpush1.bf16.msra.mxu0 %v14290_v2  ;;  %4226 = vmatpush1.bf16.msra.mxu1 %v14292_v3  ;;  %v4309_v2 = vld [vmem:[#allocation8 + $0x620] sm:$0xff]  ;;  %v4306_v3 = vld [vmem:[#allocation8 + $0x608] sm:$0xff] }
 0x3e9   :  { %4174 = vmatprep.subr.bf16.mxu0 %v14299_v27  ;;  %4227 = vmatprep.subr.bf16.mxu1 %v14301_v20  ;;  %v4310_v27 = vld [vmem:[#allocation8 + $0x628] sm:$0xff]  ;;  %v14322_v20 = vcombine.low %v3674_v21, %v3678_v37  ;;  %v14327_v46 = vcombine.high %v4305_v18, %v4309_v2 }
 0x3ea   :  { %v14329_v22 = vcombine.high %v4306_v3, %v4310_v27  ;;  %v14328_v25 = vcombine.low %v4306_v3, %v4310_v27  ;;  %v4337_v3 = vld [vmem:[#allocation8 + $0x700] sm:$0xff] }
 0x3eb   :  { %v4341_v27 = vld [vmem:[#allocation8 + $0x720] sm:$0xff] }
 0x3ec   :  { %4175 = vmatpush1.bf16.msra.mxu0 %v14298_v33  ;;  %4228 = vmatpush1.bf16.msra.mxu1 %v14300_v7  ;;  %v4317_v33 = vld [vmem:[#allocation8 + $0x660] sm:$0xff]  ;;  %v4314_v7 = vld [vmem:[#allocation8 + $0x648] sm:$0xff] }
 0x3ed   :  { %4176 = vmatprep.subr.bf16.mxu0 %v14307_v47  ;;  %4229 = vmatprep.subr.bf16.mxu1 %v14309_v15  ;;  %v4318_v47 = vld [vmem:[#allocation8 + $0x668] sm:$0xff]  ;;  %v14326_v15 = vcombine.low %v4305_v18, %v4309_v2  ;;  %v14335_v19 = vcombine.high %v4313_v28, %v4317_v33 }
 0x3ee   :  { %v14337_v31 = vcombine.high %v4314_v7, %v4318_v47  ;;  %v14336_v21 = vcombine.low %v4314_v7, %v4318_v47  ;;  %v4372_v7 = vrot.slane %v16805_v49, 1  ;;  %v14359_v47 = vcombine.high %v4337_v3, %v4341_v27 }
 0x3f0   :  { %4177 = vmatpush1.bf16.msra.mxu0 %v14306_v9  ;;  %4230 = vmatpush1.bf16.msra.mxu1 %v14308_v26  ;;  %v4325_v9 = vld [vmem:[#allocation8 + $0x6a0] sm:$0xff]  ;;  %v4322_v26 = vld [vmem:[#allocation8 + $0x688] sm:$0xff] }
 0x3f1   :  { %4178 = vmatprep.subr.bf16.mxu0 %v14315_v42  ;;  %4231 = vmatprep.subr.bf16.mxu1 %v14317_v32  ;;  %v4326_v42 = vld [vmem:[#allocation8 + $0x6a8] sm:$0xff]  ;;  %v14334_v32 = vcombine.low %v4313_v28, %v4317_v33  ;;  %v14343_v37 = vcombine.high %v4321_v61, %v4325_v9 }
 0x3f2   :  { %v14345_v30 = vcombine.high %v4322_v26, %v4326_v42 }
 0x3f4   :  { %4179 = vmatpush1.bf16.msra.mxu0 %v14314_v14  ;;  %4232 = vmatpush1.bf16.msra.mxu1 %v14316_v63  ;;  %v4333_v14 = vld [vmem:[#allocation8 + $0x6e0] sm:$0xff]  ;;  %v4330_v63 = vld [vmem:[#allocation8 + $0x6c8] sm:$0xff] }
 0x3f5   :  { %4180 = vmatprep.subr.bf16.mxu0 %v14323_v53  ;;  %4233 = vmatprep.subr.bf16.mxu1 %v14325_v40  ;;  %v4334_v53 = vld [vmem:[#allocation8 + $0x6e8] sm:$0xff]  ;;  %v14342_v40 = vcombine.low %v4321_v61, %v4325_v9  ;;  %v14351_v18 = vcombine.high %v4329_v52, %v4333_v14  ;;  %v14350_v28 = vcombine.low %v4329_v52, %v4333_v14 }
 0x3f6   :  { %v14353_v2 = vcombine.high %v4330_v63, %v4334_v53  ;;  %v14352_v33 = vcombine.low %v4330_v63, %v4334_v53  ;;  %v4346_v61 = vld [vmem:[#allocation8 + $0x748] sm:$0xff]  ;;  %v4353_v63 = vld [vmem:[#allocation8 + $0x780] sm:$0xff] }
 0x3f7   :  { %v4350_v9 = vld [vmem:[#allocation8 + $0x768] sm:$0xff] }
 0x3f8   :  { %4181 = vmatpush1.bf16.msra.mxu0 %v14322_v20  ;;  %4234 = vmatpush1.bf16.msra.mxu1 %v14324_v10  ;;  %v4338_v20 = vld [vmem:[#allocation8 + $0x708] sm:$0xff]  ;;  %v14369_v14 = vcombine.high %v4346_v61, %v4350_v9 }
 0x3f9   :  { %4749 = vmatprep.subr.bf16.mxu0 %v14327_v46  ;;  %4802 = vmatprep.subr.bf16.mxu1 %v14329_v22  ;;  %v4342_v10 = vld [vmem:[#allocation8 + $0x728] sm:$0xff]  ;;  %v4369_v46 = vrot.slane %v16815_v57, 3  ;;  %v4370_v22 = vrot.slane %v16801_v44, 2 }
 0x3fb   :  { %4199 = vmatmul.mubr.bf16.vlgmr.msra.gmra.mrb[40].mxu0 %v17195_v45  ;;  %4252 = vmatmul.mubr.bf16.vlgmr.msra.gmra.mrb[72].mxu1 %v17195_v45  ;;  %v14344_v45 = vcombine.low %v4322_v26, %v4326_v42  ;;  %v4386_v26 = vrot.slane %v16812_v54, 1  ;;  %v4371_v42 = vsel %vm2328_vm3, %v4370_v22, %v4369_v46  ;;  %v4389_v46 = vrot.slane %v16835_v17, 7 }
 0x3fc   :  { %4750 = vmatpush1.bf16.msra.mxu0 %v14326_v15  ;;  %4803 = vmatpush1.bf16.msra.mxu1 %v14328_v25  ;;  %v14361_v15 = vcombine.high %v4338_v20, %v4342_v10  ;;  %v4345_v25 = vld [vmem:[#allocation8 + $0x740] sm:$0xff]  ;;  %v4377_v22 = vrot.slane %v16853_v35, 6 }
 0x3fd   :  { %4751 = vmatprep.subr.bf16.mxu0 %v14335_v19  ;;  %4804 = vmatprep.subr.bf16.mxu1 %v14337_v31  ;;  %v4383_v19 = vrot.slane %v16830_v12, 3  ;;  %v4384_v31 = vrot.slane %v16809_v51, 2 }
 0x3fe   :  { %4208 = vmatprep.mubr.bf16.mxu0 %v18514_v59  ;;  %4261 = vmatprep.mubr.bf16.mxu1 %v18514_v59 }
 0x3ff   :  { %v4385_v53 = vsel %vm2328_vm3, %v4384_v31, %v4383_v19  ;;  %v4365_v19 = vld [vmem:[#allocation8 + $0x7e0] sm:$0xff]  ;;  %v4362_v31 = vld [vmem:[#allocation8 + $0x7c8] sm:$0xff] }
 0x400   :  { %4752 = vmatpush1.bf16.msra.mxu0 %v14334_v32  ;;  %4805 = vmatpush1.bf16.msra.mxu1 %v14336_v21  ;;  %v14358_v32 = vcombine.low %v4337_v3, %v4341_v27  ;;  %v14360_v21 = vcombine.low %v4338_v20, %v4342_v10  ;;  %v14368_v20 = vcombine.low %v4346_v61, %v4350_v9  ;;  %v4411_v61 = vrot.slane %v16996_v43, 3 }
 0x401   :  { %4753 = vmatprep.subr.bf16.mxu0 %v14343_v37  ;;  %4806 = vmatprep.subr.bf16.mxu1 %v14345_v30  ;;  %v4373_v37 = vsel %vm2331_vm4, %v4372_v7, %v4371_v42  ;;  %v4375_v30 = vrot.slane %v16824_v8, 7  ;;  %v4361_v7 = vld [vmem:[#allocation8 + $0x7c0] sm:$0xff]  ;;  %v4412_v9 = vrot.slane %v16975_v39, 2  ;;  %v4391_v42 = vrot.slane %v16860_v48, 6 }
 0x402   :  { %v4374_v3 = vsel %vm2334_vm5, %v16818_v58, %v4373_v37  ;;  %v4414_v37 = vrot.slane %v16978_v56, 1  ;;  %v4311_v56 = vld [vmem:[#allocation8 + $0x630] sm:$0xff] }
 0x403   :  { %4209 = vmatmul.mubr.bf16.gmra.mrb[44].mxu0 %v17216_v62  ;;  %4262 = vmatmul.mubr.bf16.gmra.mrb[76].mxu1 %v17216_v62  ;;  %v4349_v62 = vld [vmem:[#allocation8 + $0x760] sm:$0xff]  ;;  %v4376_v10 = vsel %vm2337_vm6, %v4375_v30, %v4374_v3 }
 0x404   :  { %4754 = vmatpush1.bf16.msra.mxu0 %v14342_v40  ;;  %4807 = vmatpush1.bf16.msra.mxu1 %v14344_v45  ;;  %v14367_v52 = vcombine.high %v4345_v25, %v4349_v62  ;;  %v4357_v40 = vld [vmem:[#allocation8 + $0x7a0] sm:$0xff]  ;;  %v4354_v45 = vld [vmem:[#allocation8 + $0x788] sm:$0xff]  ;;  %v14366_v27 = vcombine.low %v4345_v25, %v4349_v62  ;;  %v4393_v62 = vrot.slane %v16880_v23, 5 }
 0x405   :  { %4755 = vmatprep.subr.bf16.mxu0 %v14351_v18  ;;  %4808 = vmatprep.subr.bf16.mxu1 %v14353_v2  ;;  %v4358_v18 = vld [vmem:[#allocation8 + $0x7a8] sm:$0xff]  ;;  %v4387_v2 = vsel %vm2331_vm4, %v4386_v26, %v4385_v53  ;;  %v14374_v30 = vcombine.low %v4353_v63, %v4357_v40  ;;  %v4400_v53 = vrot.slane %v16971_v60, 1 }
 0x406   :  { %4781 = vmatprep.mubr.bf16.mxu0 %v18514_v59  ;;  %4834 = vmatprep.mubr.bf16.mxu1 %v18514_v59  ;;  %v4366_v26 = vld [vmem:[#allocation8 + $0x7e8] sm:$0xff] }
 0x408   :  { %4756 = vmatpush1.bf16.msra.mxu0 %v14350_v28  ;;  %4809 = vmatpush1.bf16.msra.mxu1 %v14352_v33  ;;  %v14375_v28 = vcombine.high %v4353_v63, %v4357_v40  ;;  %v14377_v33 = vcombine.high %v4354_v45, %v4358_v18  ;;  %v4413_v63 = vsel %vm2328_vm3, %v4412_v9, %v4411_v61  ;;  %v4395_v40 = vrot.slane %v16874_v13, 4  ;;  %v4315_v9 = vld [vmem:[#allocation8 + $0x650] sm:$0xff] }
 0x409   :  { %4757 = vmatprep.subr.bf16.mxu0 %v14359_v47  ;;  %4810 = vmatprep.subr.bf16.mxu1 %v14361_v15  ;;  %v4379_v47 = vrot.slane %v16847_v29, 5  ;;  %v4388_v15 = vsel %vm2334_vm5, %v16840_v24, %v4387_v2  ;;  %v14383_v2 = vcombine.high %v4361_v7, %v4365_v19 }
 0x40a   :  { %v4390_v25 = vsel %vm2337_vm6, %v4389_v46, %v4388_v15  ;;  %v14385_v46 = vcombine.high %v4362_v31, %v4366_v26  ;;  %v4307_v15 = vld [vmem:[#allocation8 + $0x610] sm:$0xff] }
 0x40b   :  { %v4392_v3 = vsel %vm2340_vm7, %v4391_v42, %v4390_v25  ;;  %v4403_v42 = vrot.slane %v16990_v5, 7 }
 0x40c   :  { %4758 = vmatpush1.bf16.msra.mxu0 %v14358_v32  ;;  %4811 = vmatpush1.bf16.msra.mxu1 %v14360_v21  ;;  %v4397_v32 = vrot.slane %v16981_v34, 3  ;;  %v4398_v21 = vrot.slane %v16967_v41, 2  ;;  %v4394_v41 = vsel %vm2343_vm8, %v4393_v62, %v4392_v3  ;;  %v14331_v62 = vcombine.high %v4307_v15, %v4311_v56 }
 0x40d   :  { %4759 = vmatprep.subr.bf16.mxu0 %v14367_v52  ;;  %4812 = vmatprep.subr.bf16.mxu1 %v14369_v14  ;;  %v14376_v52 = vcombine.low %v4354_v45, %v4358_v18  ;;  %v4378_v14 = vsel %vm2340_vm7, %v4377_v22, %v4376_v10  ;;  %v4415_v18 = vsel %vm2331_vm4, %v4414_v37, %v4413_v63  ;;  %v4417_v10 = vrot.slane %v17001_v36, 7  ;;  %v4320_v37 = vld [vmem:[#allocation8 + $0x678] sm:$0xff]  ;;  %v4323_v63 = vld [vmem:[#allocation8 + $0x690] sm:$0xff] }
 0x40e   :  { %v4380_v34 = vsel %vm2343_vm8, %v4379_v47, %v4378_v14  ;;  %v4399_v45 = vsel %vm2328_vm3, %v4398_v21, %v4397_v32  ;;  %v14382_v22 = vcombine.low %v4361_v7, %v4365_v19  ;;  %v4396_v25 = vsel %vm2346_vm9, %v4395_v40, %v4394_v41  ;;  %v4319_v32 = vld [vmem:[#allocation8 + $0x670] sm:$0xff]  ;;  %v4316_v21 = vld [vmem:[#allocation8 + $0x658] sm:$0xff] }
 0x40f   :  { %v4401_v47 = vsel %vm2331_vm4, %v4400_v53, %v4399_v45  ;;  %v4416_v7 = vsel %vm2334_vm5, %v17006_v0, %v4415_v18  ;;  %v4421_v41 = vrot.slane %v17045_v50, 5  ;;  %v4419_v53 = vrot.slane %v17026_v6, 6  ;;  %v4327_v18 = vld [vmem:[#allocation8 + $0x6b0] sm:$0xff] }
 0x410   :  { %4760 = vmatpush1.bf16.msra.mxu0 %v14366_v27  ;;  %4813 = vmatpush1.bf16.msra.mxu1 %v14368_v20  ;;  %v4308_v27 = vld [vmem:[#allocation8 + $0x618] sm:$0xff]  ;;  %v4407_v3 = vrot.slane %v17013_v4, 5  ;;  %v4405_v40 = vrot.slane %v17019_v1, 6 }
 0x411   :  { %4761 = vmatprep.subr.bf16.mxu0 %v14375_v28  ;;  %4814 = vmatprep.subr.bf16.mxu1 %v14377_v33  ;;  %v4312_v20 = vld [vmem:[#allocation8 + $0x638] sm:$0xff]  ;;  %v14384_v28 = vcombine.low %v4362_v31, %v4366_v26  ;;  %v4381_v33 = vrot.slane %v16867_v55, 4  ;;  %v4402_v31 = vsel %vm2334_vm5, %v16984_v16, %v4401_v47  ;;  %v4418_v26 = vsel %vm2337_vm6, %v4417_v10, %v4416_v7 }
 0x412   :  { %v14333_v61 = vcombine.high %v4308_v27, %v4312_v20  ;;  %v14332_v14 = vcombine.low %v4308_v27, %v4312_v20  ;;  %v4420_v45 = vsel %vm2340_vm7, %v4419_v53, %v4418_v26  ;;  %v4324_v10 = vld [vmem:[#allocation8 + $0x698] sm:$0xff]  ;;  %v14340_v27 = vcombine.low %v4316_v21, %v4320_v37 }
 0x413   :  { %v4382_v19 = vsel %vm2346_vm9, %v4381_v33, %v4380_v34  ;;  %v4404_v34 = vsel %vm2337_vm6, %v4403_v42, %v4402_v31  ;;  %v14347_v47 = vcombine.high %v4323_v63, %v4327_v18  ;;  %v4335_v42 = vld [vmem:[#allocation8 + $0x6f0] sm:$0xff]  ;;  %v14346_v7 = vcombine.low %v4323_v63, %v4327_v18  ;;  %v4340_v53 = vld [vmem:[#allocation8 + $0x718] sm:$0xff] }
 0x414   :  { %4762 = vmatpush1.bf16.msra.mxu0 %v14374_v30  ;;  %4815 = vmatpush1.bf16.msra.mxu1 %v14376_v52  ;;  %v17278_v30 = vpack.c.b16 %v4396_v25, %v4382_v19  ;;  %v14330_v52 = vcombine.low %v4307_v15, %v4311_v56  ;;  %v4422_v56 = vsel %vm2343_vm8, %v4421_v41, %v4420_v45  ;;  %v4351_v45 = vld [vmem:[#allocation8 + $0x770] sm:$0xff]  ;;  %v4348_v18 = vld [vmem:[#allocation8 + $0x758] sm:$0xff] }
 0x415   :  { %4763 = vmatprep.subr.bf16.mxu0 %v14383_v2  ;;  %4816 = vmatprep.subr.bf16.mxu1 %v14385_v46  ;;  %v14339_v2 = vcombine.high %v4315_v9, %v4319_v32  ;;  %v14341_v46 = vcombine.high %v4316_v21, %v4320_v37  ;;  %v14338_v15 = vcombine.low %v4315_v9, %v4319_v32  ;;  %v4332_v32 = vld [vmem:[#allocation8 + $0x6d8] sm:$0xff] }
 0x416   :  { %v4406_v20 = vsel %vm2340_vm7, %v4405_v40, %v4404_v34  ;;  %v4336_v21 = vld [vmem:[#allocation8 + $0x6f8] sm:$0xff]  ;;  %v4347_v40 = vld [vmem:[#allocation8 + $0x750] sm:$0xff] }
 0x417   :  { %v4408_v33 = vsel %vm2343_vm8, %v4407_v3, %v4406_v20  ;;  %v14357_v41 = vcombine.high %v4332_v32, %v4336_v21  ;;  %v14356_v34 = vcombine.low %v4332_v32, %v4336_v21  ;;  %v4355_v20 = vld [vmem:[#allocation8 + $0x790] sm:$0xff]  ;;  %v4364_v21 = vld [vmem:[#allocation8 + $0x7d8] sm:$0xff] }
 0x418   :  { %4764 = vmatpush1.bf16.msra.mxu0 %v14382_v22  ;;  %4817 = vmatpush1.bf16.msra.mxu1 %v14384_v28  ;;  %v4328_v22 = vld [vmem:[#allocation8 + $0x6b8] sm:$0xff]  ;;  %v4423_v28 = vrot.slane %v17040_v11, 4  ;;  %v4367_v32 = vld [vmem:[#allocation8 + $0x7f0] sm:$0xff] }
 0x419   :  { %4855 = vmatprep.subr.bf16.mxu0 %v14331_v62  ;;  %4908 = vmatprep.subr.bf16.mxu1 %v14333_v61  ;;  %v14349_v25 = vcombine.high %v4324_v10, %v4328_v22  ;;  %v4331_v62 = vld [vmem:[#allocation8 + $0x6d0] sm:$0xff]  ;;  %v4409_v61 = vrot.slane %v17037_v38, 4  ;;  %v14348_v19 = vcombine.low %v4324_v10, %v4328_v22  ;;  %v4352_v10 = vld [vmem:[#allocation8 + $0x778] sm:$0xff] }
 0x41a   :  { %v4424_v9 = vsel %vm2346_vm9, %v4423_v28, %v4422_v56  ;;  %v14355_v26 = vcombine.high %v4331_v62, %v4335_v42  ;;  %v4359_v28 = vld [vmem:[#allocation8 + $0x7b0] sm:$0xff] }
 0x41b   :  { %4782 = vmatmul.mubr.bf16.vlgmr.msra.gmra.mrb[32].mxu0 %v17278_v30  ;;  %4835 = vmatmul.mubr.bf16.vlgmr.msra.gmra.mrb[64].mxu1 %v17278_v30  ;;  %v4410_v37 = vsel %vm2346_vm9, %v4409_v61, %v4408_v33  ;;  %v4356_v33 = vld [vmem:[#allocation8 + $0x798] sm:$0xff]  ;;  %v14379_v61 = vcombine.high %v4355_v20, %v4359_v28 }
 0x41c   :  { %4856 = vmatpush1.bf16.msra.mxu0 %v14330_v52  ;;  %4909 = vmatpush1.bf16.msra.mxu1 %v14332_v14  ;;  %v17296_v31 = vpack.c.b16 %v4424_v9, %v4410_v37  ;;  %v4339_v52 = vld [vmem:[#allocation8 + $0x710] sm:$0xff]  ;;  %v4368_v37 = vld [vmem:[#allocation8 + $0x7f8] sm:$0xff] }
 0x41d   :  { %4857 = vmatprep.subr.bf16.mxu0 %v14339_v2  ;;  %4910 = vmatprep.subr.bf16.mxu1 %v14341_v46  ;;  %v4343_v14 = vld [vmem:[#allocation8 + $0x730] sm:$0xff]  ;;  %v4344_v2 = vld [vmem:[#allocation8 + $0x738] sm:$0xff]  ;;  %v14354_v46 = vcombine.low %v4331_v62, %v4335_v42  ;;  %v14372_v62 = vcombine.low %v4348_v18, %v4352_v10 }
 0x41e   :  { %4791 = vmatprep.mubr.bf16.mxu0 %v18514_v59  ;;  %4844 = vmatprep.mubr.bf16.mxu1 %v18514_v59  ;;  %v14363_v3 = vcombine.high %v4339_v52, %v4343_v14  ;;  %v14365_v63 = vcombine.high %v4340_v53, %v4344_v2  ;;  %v14362_v22 = vcombine.low %v4339_v52, %v4343_v14  ;;  %v4363_v42 = vld [vmem:[#allocation8 + $0x7d0] sm:$0xff]  ;;  %v4994_v52 = vld [vmem:[#allocation8 + $0x800] sm:$0xff] }
 0x41f   :  { %v14364_v56 = vcombine.low %v4340_v53, %v4344_v2  ;;  %v4998_v14 = vld [vmem:[#allocation8 + $0x820] sm:$0xff]  ;;  %v4995_v53 = vld [vmem:[#allocation8 + $0x808] sm:$0xff] }
 0x420   :  { %4858 = vmatpush1.bf16.msra.mxu0 %v14338_v15  ;;  %4911 = vmatpush1.bf16.msra.mxu1 %v14340_v27  ;;  %v14371_v15 = vcombine.high %v4347_v40, %v4351_v45  ;;  %v14373_v27 = vcombine.high %v4348_v18, %v4352_v10  ;;  %v4999_v2 = vld [vmem:[#allocation8 + $0x828] sm:$0xff] }
 0x421   :  { %4859 = vmatprep.subr.bf16.mxu0 %v14347_v47  ;;  %4912 = vmatprep.subr.bf16.mxu1 %v14349_v25  ;;  %v4360_v47 = vld [vmem:[#allocation8 + $0x7b8] sm:$0xff]  ;;  %v14370_v25 = vcombine.low %v4347_v40, %v4351_v45  ;;  %v5002_v40 = vld [vmem:[#allocation8 + $0x840] sm:$0xff]  ;;  %v5003_v18 = vld [vmem:[#allocation8 + $0x848] sm:$0xff] }
 0x422   :  { %v14381_v9 = vcombine.high %v4356_v33, %v4360_v47  ;;  %v5006_v45 = vld [vmem:[#allocation8 + $0x860] sm:$0xff]  ;;  %v5007_v10 = vld [vmem:[#allocation8 + $0x868] sm:$0xff] }
 0x423   :  { %4792 = vmatmul.mubr.bf16.gmra.mrb[36].mxu0 %v17296_v31  ;;  %4845 = vmatmul.mubr.bf16.gmra.mrb[68].mxu1 %v17296_v31 }
 0x424   :  { %4860 = vmatpush1.bf16.msra.mxu0 %v14346_v7  ;;  %4913 = vmatpush1.bf16.msra.mxu1 %v14348_v19  ;;  %v14378_v7 = vcombine.low %v4355_v20, %v4359_v28  ;;  %v14380_v19 = vcombine.low %v4356_v33, %v4360_v47  ;;  %v5010_v20 = vld [vmem:[#allocation8 + $0x880] sm:$0xff]  ;;  %v5011_v33 = vld [vmem:[#allocation8 + $0x888] sm:$0xff] }
 0x425   :  { %4861 = vmatprep.subr.bf16.mxu0 %v14355_v26  ;;  %4914 = vmatprep.subr.bf16.mxu1 %v14357_v41  ;;  %v14387_v26 = vcombine.high %v4363_v42, %v4367_v32  ;;  %v14389_v41 = vcombine.high %v4364_v21, %v4368_v37  ;;  %v5014_v28 = vld [vmem:[#allocation8 + $0x8a0] sm:$0xff]  ;;  %v5015_v47 = vld [vmem:[#allocation8 + $0x8a8] sm:$0xff] }
 0x426   :  { %4887 = vmatprep.mubr.bf16.mxu0 %v18514_v59  ;;  %4940 = vmatprep.mubr.bf16.mxu1 %v18514_v59 }
 0x428   :  { %4862 = vmatpush1.bf16.msra.mxu0 %v14354_v46  ;;  %4915 = vmatpush1.bf16.msra.mxu1 %v14356_v34  ;;  %v14386_v46 = vcombine.low %v4363_v42, %v4367_v32  ;;  %v14388_v34 = vcombine.low %v4364_v21, %v4368_v37  ;;  %v5018_v42 = vld [vmem:[#allocation8 + $0x8c0] sm:$0xff]  ;;  %v5019_v21 = vld [vmem:[#allocation8 + $0x8c8] sm:$0xff] }
 0x429   :  { %4863 = vmatprep.subr.bf16.mxu0 %v14363_v3  ;;  %4916 = vmatprep.subr.bf16.mxu1 %v14365_v63  ;;  %v14391_v3 = vcombine.high %v4994_v52, %v4998_v14  ;;  %v14393_v63 = vcombine.high %v4995_v53, %v4999_v2  ;;  %v5022_v32 = vld [vmem:[#allocation8 + $0x8e0] sm:$0xff]  ;;  %v5023_v37 = vld [vmem:[#allocation8 + $0x8e8] sm:$0xff] }
 0x42c   :  { %4864 = vmatpush1.bf16.msra.mxu0 %v14362_v22  ;;  %4917 = vmatpush1.bf16.msra.mxu1 %v14364_v56  ;;  %v14390_v22 = vcombine.low %v4994_v52, %v4998_v14  ;;  %v14392_v56 = vcombine.low %v4995_v53, %v4999_v2  ;;  %v5030_v52 = vld [vmem:[#allocation8 + $0x920] sm:$0xff]  ;;  %v5027_v14 = vld [vmem:[#allocation8 + $0x908] sm:$0xff]  ;;  %v5072_v2 = vrot.slane %v16830_v12, 4 }
 0x42d   :  { %4865 = vmatprep.subr.bf16.mxu0 %v14371_v15  ;;  %4918 = vmatprep.subr.bf16.mxu1 %v14373_v27  ;;  %v14399_v15 = vcombine.high %v5002_v40, %v5006_v45  ;;  %v14401_v27 = vcombine.high %v5003_v18, %v5007_v10  ;;  %v5031_v53 = vld [vmem:[#allocation8 + $0x928] sm:$0xff] }
 0x430   :  { %4866 = vmatpush1.bf16.msra.mxu0 %v14370_v25  ;;  %4919 = vmatpush1.bf16.msra.mxu1 %v14372_v62  ;;  %v14398_v25 = vcombine.low %v5002_v40, %v5006_v45  ;;  %v14400_v62 = vcombine.low %v5003_v18, %v5007_v10  ;;  %v14425_v45 = vcombine.high %v5027_v14, %v5031_v53  ;;  %v5034_v18 = vld [vmem:[#allocation8 + $0x940] sm:$0xff] }
 0x431   :  { %4867 = vmatprep.subr.bf16.mxu0 %v14379_v61  ;;  %4920 = vmatprep.subr.bf16.mxu1 %v14381_v9  ;;  %v14407_v61 = vcombine.high %v5010_v20, %v5014_v28  ;;  %v14409_v9 = vcombine.high %v5011_v33, %v5015_v47  ;;  %v5038_v10 = vld [vmem:[#allocation8 + $0x960] sm:$0xff] }
 0x434   :  { %4868 = vmatpush1.bf16.msra.mxu0 %v14378_v7  ;;  %4921 = vmatpush1.bf16.msra.mxu1 %v14380_v19  ;;  %v14406_v7 = vcombine.low %v5010_v20, %v5014_v28  ;;  %v14415_v19 = vcombine.high %v5018_v42, %v5022_v32 }
 0x435   :  { %4869 = vmatprep.subr.bf16.mxu0 %v14387_v26  ;;  %4922 = vmatprep.subr.bf16.mxu1 %v14389_v41  ;;  %v14417_v26 = vcombine.high %v5019_v21, %v5023_v37  ;;  %v5026_v41 = vld [vmem:[#allocation8 + $0x900] sm:$0xff] }
 0x436   :  { %v14423_v40 = vcombine.high %v5026_v41, %v5030_v52  ;;  %v14422_v28 = vcombine.low %v5026_v41, %v5030_v52  ;;  %v14430_v41 = vcombine.low %v5034_v18, %v5038_v10 }
 0x438   :  { %4870 = vmatpush1.bf16.msra.mxu0 %v14386_v46  ;;  %4923 = vmatpush1.bf16.msra.mxu1 %v14388_v34  ;;  %v5073_v46 = vrot.slane %v16809_v51, 3  ;;  %v14414_v34 = vcombine.low %v5018_v42, %v5022_v32  ;;  %v5046_v42 = vld [vmem:[#allocation8 + $0x9a0] sm:$0xff]  ;;  %v5043_v32 = vld [vmem:[#allocation8 + $0x988] sm:$0xff] }
 0x439   :  { %5438 = vmatprep.subr.bf16.mxu0 %v14391_v3  ;;  %5491 = vmatprep.subr.bf16.mxu1 %v14393_v63  ;;  %v14416_v3 = vcombine.low %v5019_v21, %v5023_v37  ;;  %v5075_v63 = vrot.slane %v16812_v54, 2  ;;  %v5047_v21 = vld [vmem:[#allocation8 + $0x9a8] sm:$0xff] }
 0x43a   :  { %v5074_v20 = vsel %vm2328_vm3, %v5073_v46, %v5072_v2  ;;  %v14441_v46 = vcombine.high %v5043_v32, %v5047_v21 }
 0x43b   :  { %4888 = vmatmul.mubr.bf16.vlgmr.msra.gmra.mrb[40].mxu0 %v17278_v30  ;;  %4941 = vmatmul.mubr.bf16.vlgmr.msra.gmra.mrb[72].mxu1 %v17278_v30  ;;  %v14408_v30 = vcombine.low %v5011_v33, %v5015_v47  ;;  %v14424_v33 = vcombine.low %v5027_v14, %v5031_v53  ;;  %v5076_v47 = vsel %vm2331_vm4, %v5075_v63, %v5074_v20  ;;  %v5082_v53 = vrot.slane %v16880_v23, 6  ;;  %v5054_v63 = vld [vmem:[#allocation8 + $0x9e0] sm:$0xff] }
 0x43c   :  { %5439 = vmatpush1.bf16.msra.mxu0 %v14390_v22  ;;  %5492 = vmatpush1.bf16.msra.mxu1 %v14392_v56  ;;  %v5035_v22 = vld [vmem:[#allocation8 + $0x948] sm:$0xff] }
 0x43d   :  { %5440 = vmatprep.subr.bf16.mxu0 %v14399_v15  ;;  %5493 = vmatprep.subr.bf16.mxu1 %v14401_v27  ;;  %v5039_v56 = vld [vmem:[#allocation8 + $0x968] sm:$0xff]  ;;  %v5059_v15 = vrot.slane %v16801_v44, 3  ;;  %v5061_v27 = vrot.slane %v16805_v49, 2 }
 0x43e   :  { %4897 = vmatprep.mubr.bf16.mxu0 %v18514_v59  ;;  %4950 = vmatprep.mubr.bf16.mxu1 %v18514_v59  ;;  %v14432_v52 = vcombine.low %v5035_v22, %v5039_v56 }
 0x440   :  { %5441 = vmatpush1.bf16.msra.mxu0 %v14398_v25  ;;  %5494 = vmatpush1.bf16.msra.mxu1 %v14400_v62  ;;  %v14431_v25 = vcombine.high %v5034_v18, %v5038_v10  ;;  %v14433_v62 = vcombine.high %v5035_v22, %v5039_v56  ;;  %v5068_v18 = vrot.slane %v16847_v29, 6  ;;  %v5100_v10 = vrot.slane %v16996_v43, 4 }
 0x441   :  { %5442 = vmatprep.subr.bf16.mxu0 %v14407_v61  ;;  %5495 = vmatprep.subr.bf16.mxu1 %v14409_v9  ;;  %v5042_v61 = vld [vmem:[#allocation8 + $0x980] sm:$0xff]  ;;  %v5077_v9 = vrot.slane %v16840_v24, 1  ;;  %v5101_v22 = vrot.slane %v16975_v39, 3 }
 0x442   :  { %v14439_v2 = vcombine.high %v5042_v61, %v5046_v42 }
 0x443   :  { %4898 = vmatmul.mubr.bf16.gmra.mrb[44].mxu0 %v17296_v31  ;;  %4951 = vmatmul.mubr.bf16.gmra.mrb[76].mxu1 %v17296_v31  ;;  %v5058_v31 = vrot.slane %v16815_v57, 4 }
 0x444   :  { %5443 = vmatpush1.bf16.msra.mxu0 %v14406_v7  ;;  %5496 = vmatpush1.bf16.msra.mxu1 %v14408_v30  ;;  %v5063_v30 = vrot.slane %v16818_v58, 1 }
 0x445   :  { %5444 = vmatprep.subr.bf16.mxu0 %v14415_v19  ;;  %5497 = vmatprep.subr.bf16.mxu1 %v14417_v26  ;;  %v5060_v37 = vsel %vm2328_vm3, %v5059_v15, %v5058_v31  ;;  %v5078_v19 = vsel %vm2334_vm5, %v5077_v9, %v5076_v47  ;;  %v5080_v26 = vrot.slane %v16860_v48, 7  ;;  %v14438_v47 = vcombine.low %v5042_v61, %v5046_v42  ;;  %v18534_v9 = vld [vmem:[#allocation53_spill] sm:$0xff] }
 0x446   :  { %5470 = vmatprep.mubr.bf16.mxu0 %v18514_v59  ;;  %5523 = vmatprep.mubr.bf16.mxu1 %v18514_v59  ;;  %v5062_v7 = vsel %vm2331_vm4, %v5061_v27, %v5060_v37  ;;  %v5079_v14 = vsel %vm2337_vm6, %v16835_v17, %v5078_v19  ;;  %v18532_v27 = vld [vmem:[#allocation55_spill] sm:$0xff]  ;;  %v5087_v37 = vrot.slane %v18534_v9, 3  ;;  %v5084_v19 = vrot.slane %v16874_v13, 5 }
 0x447   :  { %v5064_v31 = vsel %vm2334_vm5, %v5063_v30, %v5062_v7  ;;  %v5081_v15 = vsel %vm2340_vm7, %v5080_v26, %v5079_v14  ;;  %v5086_v20 = vrot.slane %v18532_v27, 4  ;;  %v5089_v26 = vrot.slane %v16971_v60, 2 }
 0x448   :  { %5445 = vmatpush1.bf16.msra.mxu0 %v14414_v34  ;;  %5498 = vmatpush1.bf16.msra.mxu1 %v14416_v3  ;;  %v5050_v34 = vld [vmem:[#allocation8 + $0x9c0] sm:$0xff]  ;;  %v5066_v3 = vrot.slane %v16853_v35, 7  ;;  %v5065_v56 = vsel %vm2337_vm6, %v16824_v8, %v5064_v31  ;;  %v4996_v31 = vld [vmem:[#allocation8 + $0x810] sm:$0xff]  ;;  %v5102_v61 = vsel %vm2328_vm3, %v5101_v22, %v5100_v10 }
 0x449   :  { %5446 = vmatprep.subr.bf16.mxu0 %v14423_v40  ;;  %5499 = vmatprep.subr.bf16.mxu1 %v14425_v45  ;;  %v5051_v40 = vld [vmem:[#allocation8 + $0x9c8] sm:$0xff]  ;;  %v14447_v7 = vcombine.high %v5050_v34, %v5054_v63  ;;  %v5000_v35 = vld [vmem:[#allocation8 + $0x830] sm:$0xff] }
 0x44a   :  { %v5055_v45 = vld [vmem:[#allocation8 + $0x9e8] sm:$0xff]  ;;  %v5067_v14 = vsel %vm2340_vm7, %v5066_v3, %v5065_v56  ;;  %v5105_v3 = vrot.slane %v17006_v0, 1  ;;  %v14395_v56 = vcombine.high %v4996_v31, %v5000_v35  ;;  %v5004_v22 = vld [vmem:[#allocation8 + $0x850] sm:$0xff] }
 0x44b   :  { %v14449_v30 = vcombine.high %v5051_v40, %v5055_v45  ;;  %v5069_v42 = vsel %vm2343_vm8, %v5068_v18, %v5067_v14 }
 0x44c   :  { %5447 = vmatpush1.bf16.msra.mxu0 %v14422_v28  ;;  %5500 = vmatpush1.bf16.msra.mxu1 %v14424_v33  ;;  %v18533_v28 = vld [vmem:[#allocation54_spill] sm:$0xff] }
 0x44d   :  { %5448 = vmatprep.subr.bf16.mxu0 %v14431_v25  ;;  %5501 = vmatprep.subr.bf16.mxu1 %v14433_v62  ;;  %v5103_v33 = vrot.slane %v18533_v28, 2  ;;  %v14440_v25 = vcombine.low %v5043_v32, %v5047_v21  ;;  %v5083_v62 = vsel %vm2343_vm8, %v5082_v53, %v5081_v15  ;;  %v5070_v32 = vrot.slane %v16867_v55, 5 }
 0x44e   :  { %v5085_v21 = vsel %vm2346_vm9, %v5084_v19, %v5083_v62  ;;  %v5088_v15 = vsel %vm2328_vm3, %v5087_v37, %v5086_v20  ;;  %v5008_v62 = vld [vmem:[#allocation8 + $0x870] sm:$0xff]  ;;  %v5005_v19 = vld [vmem:[#allocation8 + $0x858] sm:$0xff]  ;;  %v5110_v20 = vrot.slane %v17045_v50, 6 }
 0x44f   :  { %v5104_v53 = vsel %vm2331_vm4, %v5103_v33, %v5102_v61  ;;  %v5090_v18 = vsel %vm2331_vm4, %v5089_v26, %v5088_v15  ;;  %v5071_v14 = vsel %vm2346_vm9, %v5070_v32, %v5069_v42  ;;  %v5009_v33 = vld [vmem:[#allocation8 + $0x878] sm:$0xff]  ;;  %v14403_v26 = vcombine.high %v5004_v22, %v5008_v62 }
 0x450   :  { %5449 = vmatpush1.bf16.msra.mxu0 %v14430_v41  ;;  %5502 = vmatpush1.bf16.msra.mxu1 %v14432_v52  ;;  %v4997_v41 = vld [vmem:[#allocation8 + $0x818] sm:$0xff]  ;;  %v14405_v61 = vcombine.high %v5005_v19, %v5009_v33  ;;  %v5096_v32 = vrot.slane %v17013_v4, 6 }
 0x451   :  { %5450 = vmatprep.subr.bf16.mxu0 %v14439_v2  ;;  %5503 = vmatprep.subr.bf16.mxu1 %v14441_v46  ;;  %v5001_v52 = vld [vmem:[#allocation8 + $0x838] sm:$0xff]  ;;  %v14446_v2 = vcombine.low %v5050_v34, %v5054_v63  ;;  %v14448_v46 = vcombine.low %v5051_v40, %v5055_v45  ;;  %v5106_v34 = vsel %vm2334_vm5, %v5105_v3, %v5104_v53  ;;  %v5108_v63 = vrot.slane %v17026_v6, 7 }
 0x452   :  { %v14397_v10 = vcombine.high %v4997_v41, %v5001_v52  ;;  %v17354_v40 = vpack.c.b16 %v5085_v21, %v5071_v14  ;;  %v5107_v45 = vsel %vm2337_vm6, %v17001_v36, %v5106_v34  ;;  %v14396_v37 = vcombine.low %v4997_v41, %v5001_v52  ;;  %v5012_v21 = vld [vmem:[#allocation8 + $0x890] sm:$0xff] }
 0x453   :  { %v5109_v53 = vsel %vm2340_vm7, %v5108_v63, %v5107_v45  ;;  %v14402_v41 = vcombine.low %v5004_v22, %v5008_v62  ;;  %v14404_v52 = vcombine.low %v5005_v19, %v5009_v33  ;;  %v5112_v3 = vrot.slane %v17040_v11, 5  ;;  %v5020_v14 = vld [vmem:[#allocation8 + $0x8d0] sm:$0xff]  ;;  %v5021_v19 = vld [vmem:[#allocation8 + $0x8d8] sm:$0xff] }
 0x454   :  { %5451 = vmatpush1.bf16.msra.mxu0 %v14438_v47  ;;  %5504 = vmatpush1.bf16.msra.mxu1 %v14440_v25  ;;  %v5091_v47 = vrot.slane %v16984_v16, 1  ;;  %v14394_v25 = vcombine.low %v4996_v31, %v5000_v35  ;;  %v5017_v35 = vld [vmem:[#allocation8 + $0x8b8] sm:$0xff]  ;;  %v5111_v31 = vsel %vm2343_vm8, %v5110_v20, %v5109_v53  ;;  %v5024_v62 = vld [vmem:[#allocation8 + $0x8f0] sm:$0xff] }
 0x455   :  { %5452 = vmatprep.subr.bf16.mxu0 %v14447_v7  ;;  %5505 = vmatprep.subr.bf16.mxu1 %v14449_v30  ;;  %v5094_v30 = vrot.slane %v17019_v1, 7  ;;  %v5113_v22 = vsel %vm2346_vm9, %v5112_v3, %v5111_v31  ;;  %v5025_v33 = vld [vmem:[#allocation8 + $0x8f8] sm:$0xff] }
 0x456   :  { %v5092_v7 = vsel %vm2334_vm5, %v5091_v47, %v5090_v18  ;;  %v5098_v47 = vrot.slane %v17037_v38, 5  ;;  %v5041_v31 = vld [vmem:[#allocation8 + $0x978] sm:$0xff] }
 0x457   :  { %v5093_v42 = vsel %vm2337_vm6, %v16990_v5, %v5092_v7  ;;  %v5028_v7 = vld [vmem:[#allocation8 + $0x910] sm:$0xff] }
 0x458   :  { %5453 = vmatpush1.bf16.msra.mxu0 %v14446_v2  ;;  %5506 = vmatpush1.bf16.msra.mxu1 %v14448_v46  ;;  %v5016_v2 = vld [vmem:[#allocation8 + $0x8b0] sm:$0xff]  ;;  %v5013_v46 = vld [vmem:[#allocation8 + $0x898] sm:$0xff]  ;;  %v5095_v15 = vsel %vm2340_vm7, %v5094_v30, %v5093_v42  ;;  %v14418_v42 = vcombine.low %v5020_v14, %v5024_v62 }
 0x459   :  { %5544 = vmatprep.subr.bf16.mxu0 %v14395_v56  ;;  %5597 = vmatprep.subr.bf16.mxu1 %v14397_v10  ;;  %v5097_v56 = vsel %vm2343_vm8, %v5096_v32, %v5095_v15  ;;  %v14411_v10 = vcombine.high %v5012_v21, %v5016_v2  ;;  %v14413_v18 = vcombine.high %v5013_v46, %v5017_v35  ;;  %v5032_v30 = vld [vmem:[#allocation8 + $0x930] sm:$0xff] }
 0x45a   :  { %v5099_v34 = vsel %vm2346_vm9, %v5098_v47, %v5097_v56  ;;  %v14410_v63 = vcombine.low %v5012_v21, %v5016_v2  ;;  %v14412_v45 = vcombine.low %v5013_v46, %v5017_v35  ;;  %v14420_v32 = vcombine.low %v5021_v19, %v5025_v33  ;;  %v5036_v2 = vld [vmem:[#allocation8 + $0x950] sm:$0xff]  ;;  %v5037_v35 = vld [vmem:[#allocation8 + $0x958] sm:$0xff] }
 0x45b   :  { %5471 = vmatmul.mubr.bf16.vlgmr.msra.gmra.mrb[32].mxu0 %v17354_v40  ;;  %5524 = vmatmul.mubr.bf16.vlgmr.msra.gmra.mrb[64].mxu1 %v17354_v40  ;;  %v17376_v20 = vpack.c.b16 %v5113_v22, %v5099_v34  ;;  %v14427_v21 = vcombine.high %v5028_v7, %v5032_v30  ;;  %v5040_v46 = vld [vmem:[#allocation8 + $0x970] sm:$0xff]  ;;  %v14437_v3 = vcombine.high %v5037_v35, %v5041_v31 }
 0x45c   :  { %5545 = vmatpush1.bf16.msra.mxu0 %v14394_v25  ;;  %5598 = vmatpush1.bf16.msra.mxu1 %v14396_v37  ;;  %v14419_v25 = vcombine.high %v5020_v14, %v5024_v62  ;;  %v14421_v37 = vcombine.high %v5021_v19, %v5025_v33  ;;  %v14435_v15 = vcombine.high %v5036_v2, %v5040_v46  ;;  %v5044_v56 = vld [vmem:[#allocation8 + $0x990] sm:$0xff]  ;;  %v5049_v14 = vld [vmem:[#allocation8 + $0x9b8] sm:$0xff] }
 0x45d   :  { %5546 = vmatprep.subr.bf16.mxu0 %v14403_v26  ;;  %5599 = vmatprep.subr.bf16.mxu1 %v14405_v61  ;;  %v5029_v26 = vld [vmem:[#allocation8 + $0x918] sm:$0xff]  ;;  %v14434_v47 = vcombine.low %v5036_v2, %v5040_v46  ;;  %v14436_v22 = vcombine.low %v5037_v35, %v5041_v31  ;;  %v5052_v33 = vld [vmem:[#allocation8 + $0x9d0] sm:$0xff]  ;;  %v5691_v35 = vld [vmem:[#allocation8 + $0xa40] sm:$0xff] }
 0x45e   :  { %5480 = vmatprep.mubr.bf16.mxu0 %v18514_v59  ;;  %5533 = vmatprep.mubr.bf16.mxu1 %v18514_v59  ;;  %v5033_v61 = vld [vmem:[#allocation8 + $0x938] sm:$0xff]  ;;  %v5056_v34 = vld [vmem:[#allocation8 + $0x9f0] sm:$0xff]  ;;  %v5695_v31 = vld [vmem:[#allocation8 + $0xa60] sm:$0xff] }
 0x45f   :  { %v14429_v53 = vcombine.high %v5029_v26, %v5033_v61 }
 0x460   :  { %5547 = vmatpush1.bf16.msra.mxu0 %v14402_v41  ;;  %5600 = vmatpush1.bf16.msra.mxu1 %v14404_v52  ;;  %v14426_v41 = vcombine.low %v5028_v7, %v5032_v30  ;;  %v14428_v52 = vcombine.low %v5029_v26, %v5033_v61  ;;  %v14451_v7 = vcombine.high %v5052_v33, %v5056_v34  ;;  %v5683_v26 = vld [vmem:[#allocation8 + $0xa00] sm:$0xff] }
 0x461   :  { %5548 = vmatprep.subr.bf16.mxu0 %v14411_v10  ;;  %5601 = vmatprep.subr.bf16.mxu1 %v14413_v18  ;;  %v5048_v10 = vld [vmem:[#allocation8 + $0x9b0] sm:$0xff]  ;;  %v5045_v18 = vld [vmem:[#allocation8 + $0x998] sm:$0xff]  ;;  %v5687_v61 = vld [vmem:[#allocation8 + $0xa20] sm:$0xff] }
 0x462   :  { %v14443_v62 = vcombine.high %v5044_v56, %v5048_v10  ;;  %v14445_v19 = vcombine.high %v5045_v18, %v5049_v14  ;;  %v14455_v2 = vcombine.high %v5683_v26, %v5687_v61 }
 0x463   :  { %5481 = vmatmul.mubr.bf16.gmra.mrb[36].mxu0 %v17376_v20  ;;  %5534 = vmatmul.mubr.bf16.gmra.mrb[68].mxu1 %v17376_v20 }
 0x464   :  { %5549 = vmatpush1.bf16.msra.mxu0 %v14410_v63  ;;  %5602 = vmatpush1.bf16.msra.mxu1 %v14412_v45  ;;  %v5053_v63 = vld [vmem:[#allocation8 + $0x9d8] sm:$0xff] }
 0x465   :  { %5550 = vmatprep.subr.bf16.mxu0 %v14419_v25  ;;  %5603 = vmatprep.subr.bf16.mxu1 %v14421_v37  ;;  %v5057_v45 = vld [vmem:[#allocation8 + $0x9f8] sm:$0xff]  ;;  %v14442_v25 = vcombine.low %v5044_v56, %v5048_v10  ;;  %v14444_v37 = vcombine.low %v5045_v18, %v5049_v14  ;;  %v14463_v56 = vcombine.high %v5691_v35, %v5695_v31  ;;  %v5699_v18 = vld [vmem:[#allocation8 + $0xa80] sm:$0xff] }
 0x466   :  { %5576 = vmatprep.mubr.bf16.mxu0 %v18514_v59  ;;  %5629 = vmatprep.mubr.bf16.mxu1 %v18514_v59  ;;  %v14453_v30 = vcombine.high %v5053_v63, %v5057_v45  ;;  %v5703_v14 = vld [vmem:[#allocation8 + $0xaa0] sm:$0xff] }
 0x468   :  { %5551 = vmatpush1.bf16.msra.mxu0 %v14418_v42  ;;  %5604 = vmatpush1.bf16.msra.mxu1 %v14420_v32  ;;  %v5684_v42 = vld [vmem:[#allocation8 + $0xa08] sm:$0xff] }
 0x469   :  { %5552 = vmatprep.subr.bf16.mxu0 %v14427_v21  ;;  %5605 = vmatprep.subr.bf16.mxu1 %v14429_v53  ;;  %v5688_v32 = vld [vmem:[#allocation8 + $0xa28] sm:$0xff]  ;;  %v14450_v21 = vcombine.low %v5052_v33, %v5056_v34  ;;  %v14452_v53 = vcombine.low %v5053_v63, %v5057_v45  ;;  %v14471_v33 = vcombine.high %v5699_v18, %v5703_v14  ;;  %v5707_v63 = vld [vmem:[#allocation8 + $0xac0] sm:$0xff] }
 0x46a   :  { %v14457_v46 = vcombine.high %v5684_v42, %v5688_v32  ;;  %v5711_v45 = vld [vmem:[#allocation8 + $0xae0] sm:$0xff] }
 0x46c   :  { %5553 = vmatpush1.bf16.msra.mxu0 %v14426_v41  ;;  %5606 = vmatpush1.bf16.msra.mxu1 %v14428_v52  ;;  %v5692_v41 = vld [vmem:[#allocation8 + $0xa48] sm:$0xff] }
 0x46d   :  { %5554 = vmatprep.subr.bf16.mxu0 %v14435_v15  ;;  %5607 = vmatprep.subr.bf16.mxu1 %v14437_v3  ;;  %v5696_v52 = vld [vmem:[#allocation8 + $0xa68] sm:$0xff]  ;;  %v14454_v15 = vcombine.low %v5683_v26, %v5687_v61  ;;  %v14456_v3 = vcombine.low %v5684_v42, %v5688_v32  ;;  %v5715_v61 = vld [vmem:[#allocation8 + $0xb00] sm:$0xff] }
 0x46e   :  { %v14465_v10 = vcombine.high %v5692_v41, %v5696_v52  ;;  %v5719_v42 = vld [vmem:[#allocation8 + $0xb20] sm:$0xff]  ;;  %v5716_v32 = vld [vmem:[#allocation8 + $0xb08] sm:$0xff] }
 0x470   :  { %5555 = vmatpush1.bf16.msra.mxu0 %v14434_v47  ;;  %5608 = vmatpush1.bf16.msra.mxu1 %v14436_v22  ;;  %v5700_v47 = vld [vmem:[#allocation8 + $0xa88] sm:$0xff] }
 0x471   :  { %5556 = vmatprep.subr.bf16.mxu0 %v14443_v62  ;;  %5609 = vmatprep.subr.bf16.mxu1 %v14445_v19  ;;  %v5704_v22 = vld [vmem:[#allocation8 + $0xaa8] sm:$0xff]  ;;  %v14462_v62 = vcombine.low %v5691_v35, %v5695_v31  ;;  %v14464_v19 = vcombine.low %v5692_v41, %v5696_v52  ;;  %v5723_v31 = vld [vmem:[#allocation8 + $0xb40] sm:$0xff]  ;;  %v5761_v41 = vrot.slane %v16830_v12, 5  ;;  %v5762_v52 = vrot.slane %v16809_v51, 4 }
 0x472   :  { %v14473_v34 = vcombine.high %v5700_v47, %v5704_v22 }
 0x474   :  { %5557 = vmatpush1.bf16.msra.mxu0 %v14442_v25  ;;  %5610 = vmatpush1.bf16.msra.mxu1 %v14444_v37  ;;  %v5708_v25 = vld [vmem:[#allocation8 + $0xac8] sm:$0xff] }
 0x475   :  { %5558 = vmatprep.subr.bf16.mxu0 %v14451_v7  ;;  %5611 = vmatprep.subr.bf16.mxu1 %v14453_v30  ;;  %v5712_v37 = vld [vmem:[#allocation8 + $0xae8] sm:$0xff]  ;;  %v14470_v7 = vcombine.low %v5699_v18, %v5703_v14  ;;  %v14479_v30 = vcombine.high %v5707_v63, %v5711_v45  ;;  %v5764_v18 = vrot.slane %v16812_v54, 3  ;;  %v5750_v14 = vrot.slane %v16805_v49, 3 }
 0x476   :  { %v14481_v26 = vcombine.high %v5708_v25, %v5712_v37 }
 0x478   :  { %5559 = vmatpush1.bf16.msra.mxu0 %v14450_v21  ;;  %5612 = vmatpush1.bf16.msra.mxu1 %v14452_v53  ;;  %v5720_v21 = vld [vmem:[#allocation8 + $0xb28] sm:$0xff]  ;;  %v14478_v53 = vcombine.low %v5707_v63, %v5711_v45  ;;  %v5735_v63 = vld [vmem:[#allocation8 + $0xba0] sm:$0xff] }
 0x479   :  { %6127 = vmatprep.subr.bf16.mxu0 %v14455_v2  ;;  %6180 = vmatprep.subr.bf16.mxu1 %v14457_v46  ;;  %v14480_v2 = vcombine.low %v5708_v25, %v5712_v37  ;;  %v14487_v46 = vcombine.high %v5715_v61, %v5719_v42  ;;  %v14489_v35 = vcombine.high %v5716_v32, %v5720_v21  ;;  %v5732_v45 = vld [vmem:[#allocation8 + $0xb88] sm:$0xff] }
 0x47a   :  { %v5736_v25 = vld [vmem:[#allocation8 + $0xba8] sm:$0xff] }
 0x47b   :  { %5577 = vmatmul.mubr.bf16.vlgmr.msra.gmra.mrb[40].mxu0 %v17354_v40  ;;  %5630 = vmatmul.mubr.bf16.vlgmr.msra.gmra.mrb[72].mxu1 %v17354_v40  ;;  %v14472_v40 = vcombine.low %v5700_v47, %v5704_v22  ;;  %v14486_v47 = vcombine.low %v5715_v61, %v5719_v42  ;;  %v14488_v22 = vcombine.low %v5716_v32, %v5720_v21  ;;  %v5766_v61 = vrot.slane %v16840_v24, 2 }
 0x47c   :  { %6128 = vmatpush1.bf16.msra.mxu0 %v14454_v15  ;;  %6181 = vmatpush1.bf16.msra.mxu1 %v14456_v3  ;;  %v5727_v15 = vld [vmem:[#allocation8 + $0xb60] sm:$0xff]  ;;  %v5724_v3 = vld [vmem:[#allocation8 + $0xb48] sm:$0xff]  ;;  %v5752_v21 = vrot.slane %v16818_v58, 2 }
 0x47d   :  { %6129 = vmatprep.subr.bf16.mxu0 %v14463_v56  ;;  %6182 = vmatprep.subr.bf16.mxu1 %v14465_v10  ;;  %v5728_v56 = vld [vmem:[#allocation8 + $0xb68] sm:$0xff]  ;;  %v5748_v10 = vrot.slane %v16801_v44, 4  ;;  %v14494_v42 = vcombine.low %v5723_v31, %v5727_v15 }
 0x47e   :  { %5586 = vmatprep.mubr.bf16.mxu0 %v18514_v59  ;;  %5639 = vmatprep.mubr.bf16.mxu1 %v18514_v59  ;;  %v14496_v32 = vcombine.low %v5724_v3, %v5728_v56 }
 0x480   :  { %6130 = vmatpush1.bf16.msra.mxu0 %v14462_v62  ;;  %6183 = vmatpush1.bf16.msra.mxu1 %v14464_v19  ;;  %v14495_v62 = vcombine.high %v5723_v31, %v5727_v15  ;;  %v14497_v19 = vcombine.high %v5724_v3, %v5728_v56  ;;  %v5789_v15 = vrot.slane %v16996_v43, 5  ;;  %v5790_v3 = vrot.slane %v16975_v39, 4 }
 0x481   :  { %6131 = vmatprep.subr.bf16.mxu0 %v14471_v33  ;;  %6184 = vmatprep.subr.bf16.mxu1 %v14473_v34  ;;  %v5731_v33 = vld [vmem:[#allocation8 + $0xb80] sm:$0xff]  ;;  %v5763_v34 = vsel %vm2328_vm3, %v5762_v52, %v5761_v41  ;;  %v5771_v52 = vrot.slane %v16880_v23, 7  ;;  %v5796_v23 = vrot.slane %v17001_v36, 1 }
 0x483   :  { %5587 = vmatmul.mubr.bf16.gmra.mrb[44].mxu0 %v17376_v20  ;;  %5640 = vmatmul.mubr.bf16.gmra.mrb[76].mxu1 %v17376_v20  ;;  %v5747_v20 = vrot.slane %v16815_v57, 5 }
 0x484   :  { %6132 = vmatpush1.bf16.msra.mxu0 %v14470_v7  ;;  %6185 = vmatpush1.bf16.msra.mxu1 %v14472_v40  ;;  %v5765_v7 = vsel %vm2331_vm4, %v5764_v18, %v5763_v34  ;;  %v5768_v40 = vrot.slane %v16835_v17, 1  ;;  %v5744_v18 = vld [vmem:[#allocation8 + $0xbe8] sm:$0xff]  ;;  %v14504_v34 = vcombine.low %v5732_v45, %v5736_v25 }
 0x485   :  { %6133 = vmatprep.subr.bf16.mxu0 %v14479_v30  ;;  %6186 = vmatprep.subr.bf16.mxu1 %v14481_v26  ;;  %v5749_v37 = vsel %vm2328_vm3, %v5748_v10, %v5747_v20  ;;  %v5754_v26 = vrot.slane %v16824_v8, 1  ;;  %v5767_v41 = vsel %vm2334_vm5, %v5766_v61, %v5765_v7  ;;  %v5743_v20 = vld [vmem:[#allocation8 + $0xbe0] sm:$0xff]  ;;  %v5740_v10 = vld [vmem:[#allocation8 + $0xbc8] sm:$0xff]  ;;  %v5778_v7 = vrot.slane %v16971_v60, 3 }
 0x486   :  { %6159 = vmatprep.mubr.bf16.mxu0 %v18514_v59  ;;  %6212 = vmatprep.mubr.bf16.mxu1 %v18514_v59  ;;  %v5751_v30 = vsel %vm2331_vm4, %v5750_v14, %v5749_v37  ;;  %v5769_v31 = vsel %vm2337_vm6, %v5768_v40, %v5767_v41  ;;  %v5759_v37 = vrot.slane %v16867_v55, 6  ;;  %v5773_v61 = vrot.slane %v16874_v13, 6  ;;  %v18535_v41 = vld [vmem:[#allocation35_spill] sm:$0xff] }
 0x487   :  { %v5753_v14 = vsel %vm2334_vm5, %v5752_v21, %v5751_v30  ;;  %v14513_v30 = vcombine.high %v5740_v10, %v5744_v18  ;;  %v5685_v21 = vld [vmem:[#allocation8 + $0xa10] sm:$0xff]  ;;  %v14512_v55 = vcombine.low %v5740_v10, %v5744_v18  ;;  %v5799_v18 = vrot.slane %v17045_v50, 7 }
 0x488   :  { %6134 = vmatpush1.bf16.msra.mxu0 %v14478_v53  ;;  %6187 = vmatpush1.bf16.msra.mxu1 %v14480_v2  ;;  %v5757_v53 = vrot.slane %v16847_v29, 7  ;;  %v14503_v2 = vcombine.high %v5731_v33, %v5735_v63  ;;  %v5755_v56 = vsel %vm2337_vm6, %v5754_v26, %v5753_v14  ;;  %v5770_v26 = vsel %vm2340_vm7, %v16860_v48, %v5769_v31 }
 0x489   :  { %6135 = vmatprep.subr.bf16.mxu0 %v14487_v46  ;;  %6188 = vmatprep.subr.bf16.mxu1 %v14489_v35  ;;  %v14505_v46 = vcombine.high %v5732_v45, %v5736_v25  ;;  %v5739_v35 = vld [vmem:[#allocation8 + $0xbc0] sm:$0xff]  ;;  %v5686_v45 = vld [vmem:[#allocation8 + $0xa18] sm:$0xff] }
 0x48a   :  { %v14511_v40 = vcombine.high %v5739_v35, %v5743_v20  ;;  %v5690_v25 = vld [vmem:[#allocation8 + $0xa38] sm:$0xff] }
 0x48c   :  { %6136 = vmatpush1.bf16.msra.mxu0 %v14486_v47  ;;  %6189 = vmatpush1.bf16.msra.mxu1 %v14488_v22  ;;  %v5775_v47 = vrot.slane %v18532_v27, 5  ;;  %v5776_v22 = vrot.slane %v18534_v9, 4 }
 0x48d   :  { %6137 = vmatprep.subr.bf16.mxu0 %v14495_v62  ;;  %6190 = vmatprep.subr.bf16.mxu1 %v14497_v19  ;;  %v5792_v62 = vrot.slane %v18533_v28, 3  ;;  %v14502_v19 = vcombine.low %v5731_v33, %v5735_v63  ;;  %v5772_v33 = vsel %vm2343_vm8, %v5771_v52, %v5770_v26  ;;  %v5689_v63 = vld [vmem:[#allocation8 + $0xa30] sm:$0xff]  ;;  %v5794_v26 = vrot.slane %v17006_v0, 2 }
 0x48e   :  { %v5777_v14 = vsel %vm2328_vm3, %v5776_v22, %v5775_v47  ;;  %v5782_v47 = vrot.slane %v16990_v5, 1  ;;  %v5697_v22 = vld [vmem:[#allocation8 + $0xa70] sm:$0xff] }
 0x48f   :  { %v5779_v52 = vsel %vm2331_vm4, %v5778_v7, %v5777_v14  ;;  %v14458_v7 = vcombine.low %v5685_v21, %v5689_v63  ;;  %v5702_v14 = vld [vmem:[#allocation8 + $0xa98] sm:$0xff] }
 0x490   :  { %6138 = vmatpush1.bf16.msra.mxu0 %v14494_v42  ;;  %6191 = vmatpush1.bf16.msra.mxu1 %v14496_v32  ;;  %v5756_v42 = vsel %vm2340_vm7, %v18535_v41, %v5755_v56  ;;  %v5780_v32 = vrot.slane %v16984_v16, 2  ;;  %v14510_v56 = vcombine.low %v5739_v35, %v5743_v20 }
 0x491   :  { %6139 = vmatprep.subr.bf16.mxu0 %v14503_v2  ;;  %6192 = vmatprep.subr.bf16.mxu1 %v14505_v46  ;;  %v5791_v2 = vsel %vm2328_vm3, %v5790_v3, %v5789_v15  ;;  %v5758_v46 = vsel %vm2343_vm8, %v5757_v53, %v5756_v42  ;;  %v5774_v15 = vsel %vm2346_vm9, %v5773_v61, %v5772_v33  ;;  %v5693_v42 = vld [vmem:[#allocation8 + $0xa50] sm:$0xff] }
 0x492   :  { %v5793_v31 = vsel %vm2331_vm4, %v5792_v62, %v5791_v2  ;;  %v14459_v3 = vcombine.high %v5685_v21, %v5689_v63  ;;  %v14461_v53 = vcombine.high %v5686_v45, %v5690_v25  ;;  %v5694_v62 = vld [vmem:[#allocation8 + $0xa58] sm:$0xff]  ;;  %v5760_v35 = vsel %vm2346_vm9, %v5759_v37, %v5758_v46  ;;  %v5701_v46 = vld [vmem:[#allocation8 + $0xa90] sm:$0xff] }
 0x493   :  { %v5698_v2 = vld [vmem:[#allocation8 + $0xa78] sm:$0xff]  ;;  %v5781_v20 = vsel %vm2334_vm5, %v5780_v32, %v5779_v52  ;;  %v5785_v37 = vrot.slane %v17013_v4, 7  ;;  %v5705_v32 = vld [vmem:[#allocation8 + $0xab0] sm:$0xff]  ;;  %v14466_v21 = vcombine.low %v5693_v42, %v5697_v22 }
 0x494   :  { %6140 = vmatpush1.bf16.msra.mxu0 %v14502_v19  ;;  %6193 = vmatpush1.bf16.msra.mxu1 %v14504_v34  ;;  %v5795_v19 = vsel %vm2334_vm5, %v5794_v26, %v5793_v31  ;;  %v17438_v34 = vpack.c.b16 %v5774_v15, %v5760_v35  ;;  %v14469_v61 = vcombine.high %v5694_v62, %v5698_v2  ;;  %v5706_v31 = vld [vmem:[#allocation8 + $0xab8] sm:$0xff]  ;;  %v5709_v15 = vld [vmem:[#allocation8 + $0xad0] sm:$0xff] }
 0x495   :  { %6141 = vmatprep.subr.bf16.mxu0 %v14511_v40  ;;  %6194 = vmatprep.subr.bf16.mxu1 %v14513_v30  ;;  %v5797_v10 = vsel %vm2337_vm6, %v5796_v23, %v5795_v19  ;;  %v14460_v40 = vcombine.low %v5686_v45, %v5690_v25  ;;  %v14467_v30 = vcombine.high %v5693_v42, %v5697_v22  ;;  %v5801_v25 = vrot.slane %v17040_v11, 6  ;;  %v5713_v42 = vld [vmem:[#allocation8 + $0xaf0] sm:$0xff]  ;;  %v5714_v22 = vld [vmem:[#allocation8 + $0xaf8] sm:$0xff] }
 0x496   :  { %v5783_v33 = vsel %vm2337_vm6, %v5782_v47, %v5781_v20  ;;  %v5798_v23 = vsel %vm2340_vm7, %v17026_v6, %v5797_v10  ;;  %v14468_v63 = vcombine.low %v5694_v62, %v5698_v2  ;;  %v14475_v52 = vcombine.high %v5701_v46, %v5705_v32  ;;  %v5710_v47 = vld [vmem:[#allocation8 + $0xad8] sm:$0xff] }
 0x497   :  { %v5784_v45 = vsel %vm2340_vm7, %v17019_v1, %v5783_v33  ;;  %v14477_v26 = vcombine.high %v5702_v14, %v5706_v31  ;;  %v14474_v2 = vcombine.low %v5701_v46, %v5705_v32  ;;  %v14476_v19 = vcombine.low %v5702_v14, %v5706_v31  ;;  %v5729_v32 = vld [vmem:[#allocation8 + $0xb70] sm:$0xff]  ;;  %v5726_v14 = vld [vmem:[#allocation8 + $0xb58] sm:$0xff] }
 0x498   :  { %6142 = vmatpush1.bf16.msra.mxu0 %v14510_v56  ;;  %6195 = vmatpush1.bf16.msra.mxu1 %v14512_v55  ;;  %v5800_v55 = vsel %vm2343_vm8, %v5799_v18, %v5798_v23  ;;  %v5786_v56 = vsel %vm2343_vm8, %v5785_v37, %v5784_v45  ;;  %v14483_v20 = vcombine.high %v5709_v15, %v5713_v42  ;;  %v5717_v18 = vld [vmem:[#allocation8 + $0xb10] sm:$0xff]  ;;  %v5730_v31 = vld [vmem:[#allocation8 + $0xb78] sm:$0xff] }
 0x499   :  { %6233 = vmatprep.subr.bf16.mxu0 %v14459_v3  ;;  %6286 = vmatprep.subr.bf16.mxu1 %v14461_v53  ;;  %v5787_v3 = vrot.slane %v17037_v38, 6  ;;  %v5802_v53 = vsel %vm2346_vm9, %v5801_v25, %v5800_v55  ;;  %v14485_v10 = vcombine.high %v5710_v47, %v5714_v22  ;;  %v14484_v33 = vcombine.low %v5710_v47, %v5714_v22  ;;  %v5725_v23 = vld [vmem:[#allocation8 + $0xb50] sm:$0xff] }
 0x49a   :  { %v14501_v45 = vcombine.high %v5726_v14, %v5730_v31  ;;  %v5733_v25 = vld [vmem:[#allocation8 + $0xb90] sm:$0xff] }
 0x49b   :  { %6160 = vmatmul.mubr.bf16.vlgmr.msra.gmra.mrb[32].mxu0 %v17438_v34  ;;  %6213 = vmatmul.mubr.bf16.vlgmr.msra.gmra.mrb[64].mxu1 %v17438_v34  ;;  %v5788_v62 = vsel %vm2346_vm9, %v5787_v3, %v5786_v56  ;;  %v5737_v56 = vld [vmem:[#allocation8 + $0xbb0] sm:$0xff]  ;;  %v14500_v3 = vcombine.low %v5726_v14, %v5730_v31  ;;  %v6384_v14 = vld [vmem:[#allocation8 + $0xc60] sm:$0xff]  ;;  %v6381_v31 = vld [vmem:[#allocation8 + $0xc48] sm:$0xff] }
 0x49c   :  { %6234 = vmatpush1.bf16.msra.mxu0 %v14458_v7  ;;  %6287 = vmatpush1.bf16.msra.mxu1 %v14460_v40  ;;  %v17456_v35 = vpack.c.b16 %v5802_v53, %v5788_v62  ;;  %v5721_v7 = vld [vmem:[#allocation8 + $0xb30] sm:$0xff]  ;;  %v5718_v40 = vld [vmem:[#allocation8 + $0xb18] sm:$0xff]  ;;  %v14507_v53 = vcombine.high %v5733_v25, %v5737_v56 }
 0x49d   :  { %6235 = vmatprep.subr.bf16.mxu0 %v14467_v30  ;;  %6288 = vmatprep.subr.bf16.mxu1 %v14469_v61  ;;  %v5722_v30 = vld [vmem:[#allocation8 + $0xb38] sm:$0xff]  ;;  %v14482_v61 = vcombine.low %v5709_v15, %v5713_v42  ;;  %v14491_v37 = vcombine.high %v5717_v18, %v5721_v7  ;;  %v14490_v55 = vcombine.low %v5717_v18, %v5721_v7  ;;  %v5741_v47 = vld [vmem:[#allocation8 + $0xbd0] sm:$0xff]  ;;  %v6372_v7 = vld [vmem:[#allocation8 + $0xc00] sm:$0xff] }
 0x49e   :  { %6169 = vmatprep.mubr.bf16.mxu0 %v18514_v59  ;;  %6222 = vmatprep.mubr.bf16.mxu1 %v18514_v59  ;;  %v14493_v46 = vcombine.high %v5718_v40, %v5722_v30  ;;  %v14498_v15 = vcombine.low %v5725_v23, %v5729_v32  ;;  %v5745_v22 = vld [vmem:[#allocation8 + $0xbf0] sm:$0xff]  ;;  %v5742_v62 = vld [vmem:[#allocation8 + $0xbd8] sm:$0xff] }
 0x4a0   :  { %6236 = vmatpush1.bf16.msra.mxu0 %v14466_v21  ;;  %6289 = vmatpush1.bf16.msra.mxu1 %v14468_v63  ;;  %v14492_v21 = vcombine.low %v5718_v40, %v5722_v30  ;;  %v14499_v63 = vcombine.high %v5725_v23, %v5729_v32  ;;  %v6376_v40 = vld [vmem:[#allocation8 + $0xc20] sm:$0xff]  ;;  %v6373_v30 = vld [vmem:[#allocation8 + $0xc08] sm:$0xff] }
 0x4a1   :  { %6237 = vmatprep.subr.bf16.mxu0 %v14475_v52  ;;  %6290 = vmatprep.subr.bf16.mxu1 %v14477_v26  ;;  %v5734_v52 = vld [vmem:[#allocation8 + $0xb98] sm:$0xff]  ;;  %v6380_v32 = vld [vmem:[#allocation8 + $0xc40] sm:$0xff] }
 0x4a2   :  { %v5738_v26 = vld [vmem:[#allocation8 + $0xbb8] sm:$0xff] }
 0x4a3   :  { %6170 = vmatmul.mubr.bf16.gmra.mrb[36].mxu0 %v17456_v35  ;;  %6223 = vmatmul.mubr.bf16.gmra.mrb[68].mxu1 %v17456_v35  ;;  %v14509_v42 = vcombine.high %v5734_v52, %v5738_v26 }
 0x4a4   :  { %6238 = vmatpush1.bf16.msra.mxu0 %v14474_v2  ;;  %6291 = vmatpush1.bf16.msra.mxu1 %v14476_v19  ;;  %v5746_v2 = vld [vmem:[#allocation8 + $0xbf8] sm:$0xff]  ;;  %v14506_v19 = vcombine.low %v5733_v25, %v5737_v56  ;;  %v6388_v56 = vld [vmem:[#allocation8 + $0xc80] sm:$0xff] }
 0x4a5   :  { %6239 = vmatprep.subr.bf16.mxu0 %v14483_v20  ;;  %6292 = vmatprep.subr.bf16.mxu1 %v14485_v10  ;;  %v14508_v20 = vcombine.low %v5734_v52, %v5738_v26  ;;  %v14515_v10 = vcombine.high %v5741_v47, %v5745_v22  ;;  %v14517_v18 = vcombine.high %v5742_v62, %v5746_v2  ;;  %v6392_v52 = vld [vmem:[#allocation8 + $0xca0] sm:$0xff]  ;;  %v6389_v26 = vld [vmem:[#allocation8 + $0xc88] sm:$0xff] }
 0x4a6   :  { %6265 = vmatprep.mubr.bf16.mxu0 %v18514_v59  ;;  %6318 = vmatprep.mubr.bf16.mxu1 %v18514_v59 }
 0x4a8   :  { %6240 = vmatpush1.bf16.msra.mxu0 %v14482_v61  ;;  %6293 = vmatpush1.bf16.msra.mxu1 %v14484_v33  ;;  %v6377_v61 = vld [vmem:[#allocation8 + $0xc28] sm:$0xff]  ;;  %v14514_v33 = vcombine.low %v5741_v47, %v5745_v22  ;;  %v6396_v22 = vld [vmem:[#allocation8 + $0xcc0] sm:$0xff] }
 0x4a9   :  { %6241 = vmatprep.subr.bf16.mxu0 %v14491_v37  ;;  %6294 = vmatprep.subr.bf16.mxu1 %v14493_v46  ;;  %v14516_v37 = vcombine.low %v5742_v62, %v5746_v2  ;;  %v14519_v46 = vcombine.high %v6372_v7, %v6376_v40  ;;  %v14521_v23 = vcombine.high %v6373_v30, %v6377_v61  ;;  %v6400_v62 = vld [vmem:[#allocation8 + $0xce0] sm:$0xff]  ;;  %v6397_v2 = vld [vmem:[#allocation8 + $0xcc8] sm:$0xff] }
 0x4ac   :  { %6242 = vmatpush1.bf16.msra.mxu0 %v14490_v55  ;;  %6295 = vmatpush1.bf16.msra.mxu1 %v14492_v21  ;;  %v6385_v55 = vld [vmem:[#allocation8 + $0xc68] sm:$0xff]  ;;  %v14518_v21 = vcombine.low %v6372_v7, %v6376_v40  ;;  %v6404_v7 = vld [vmem:[#allocation8 + $0xd00] sm:$0xff] }
 0x4ad   :  { %6243 = vmatprep.subr.bf16.mxu0 %v14499_v63  ;;  %6296 = vmatprep.subr.bf16.mxu1 %v14501_v45  ;;  %v14520_v63 = vcombine.low %v6373_v30, %v6377_v61  ;;  %v14527_v45 = vcombine.high %v6380_v32, %v6384_v14  ;;  %v14529_v25 = vcombine.high %v6381_v31, %v6385_v55  ;;  %v6408_v40 = vld [vmem:[#allocation8 + $0xd20] sm:$0xff]  ;;  %v6405_v30 = vld [vmem:[#allocation8 + $0xd08] sm:$0xff] }
 0x4ae   :  { %v6409_v61 = vld [vmem:[#allocation8 + $0xd28] sm:$0xff] }
 0x4b0   :  { %6244 = vmatpush1.bf16.msra.mxu0 %v14498_v15  ;;  %6297 = vmatpush1.bf16.msra.mxu1 %v14500_v3  ;;  %v6393_v15 = vld [vmem:[#allocation8 + $0xca8] sm:$0xff]  ;;  %v14526_v3 = vcombine.low %v6380_v32, %v6384_v14  ;;  %v6439_v32 = vrot.slane %v16805_v49, 4  ;;  %v14551_v14 = vcombine.high %v6404_v7, %v6408_v40 }
 0x4b1   :  { %6245 = vmatprep.subr.bf16.mxu0 %v14507_v53  ;;  %6298 = vmatprep.subr.bf16.mxu1 %v14509_v42  ;;  %v14528_v53 = vcombine.low %v6381_v31, %v6385_v55  ;;  %v14535_v42 = vcombine.high %v6388_v56, %v6392_v52  ;;  %v14537_v47 = vcombine.high %v6389_v26, %v6393_v15  ;;  %v6412_v55 = vld [vmem:[#allocation8 + $0xd40] sm:$0xff] }
 0x4b2   :  { %v14553_v31 = vcombine.high %v6405_v30, %v6409_v61 }
 0x4b4   :  { %6246 = vmatpush1.bf16.msra.mxu0 %v14506_v19  ;;  %6299 = vmatpush1.bf16.msra.mxu1 %v14508_v20  ;;  %v6401_v19 = vld [vmem:[#allocation8 + $0xce8] sm:$0xff]  ;;  %v14534_v20 = vcombine.low %v6388_v56, %v6392_v52  ;;  %v6453_v56 = vrot.slane %v16812_v54, 4 }
 0x4b5   :  { %6247 = vmatprep.subr.bf16.mxu0 %v14515_v10  ;;  %6300 = vmatprep.subr.bf16.mxu1 %v14517_v18  ;;  %v14543_v10 = vcombine.high %v6396_v22, %v6400_v62  ;;  %v14545_v18 = vcombine.high %v6397_v2, %v6401_v19 }
 0x4b8   :  { %6248 = vmatpush1.bf16.msra.mxu0 %v14514_v33  ;;  %6301 = vmatpush1.bf16.msra.mxu1 %v14516_v37  ;;  %v6436_v33 = vrot.slane %v16815_v57, 6  ;;  %v6437_v37 = vrot.slane %v16801_v44, 5 }
 0x4b9   :  { %6816 = vmatprep.subr.bf16.mxu0 %v14519_v46  ;;  %6869 = vmatprep.subr.bf16.mxu1 %v14521_v23  ;;  %v14542_v46 = vcombine.low %v6396_v22, %v6400_v62  ;;  %v14544_v23 = vcombine.low %v6397_v2, %v6401_v19  ;;  %v6420_v22 = vld [vmem:[#allocation8 + $0xd80] sm:$0xff]  ;;  %v6441_v62 = vrot.slane %v16818_v58, 3 }
 0x4ba   :  { %v6438_v52 = vsel %vm2328_vm3, %v6437_v37, %v6436_v33  ;;  %v6424_v19 = vld [vmem:[#allocation8 + $0xda0] sm:$0xff] }
 0x4bb   :  { %6266 = vmatmul.mubr.bf16.vlgmr.msra.gmra.mrb[40].mxu0 %v17438_v34  ;;  %6319 = vmatmul.mubr.bf16.vlgmr.msra.gmra.mrb[72].mxu1 %v17438_v34  ;;  %v14536_v34 = vcombine.low %v6389_v26, %v6393_v15  ;;  %v14550_v26 = vcombine.low %v6404_v7, %v6408_v40  ;;  %v14552_v15 = vcombine.low %v6405_v30, %v6409_v61  ;;  %v6455_v40 = vrot.slane %v16840_v24, 3 }
 0x4bc   :  { %6817 = vmatpush1.bf16.msra.mxu0 %v14518_v21  ;;  %6870 = vmatpush1.bf16.msra.mxu1 %v14520_v63  ;;  %v6450_v21 = vrot.slane %v16830_v12, 6  ;;  %v6451_v63 = vrot.slane %v16809_v51, 5  ;;  %v14567_v37 = vcombine.high %v6420_v22, %v6424_v19 }
 0x4bd   :  { %6818 = vmatprep.subr.bf16.mxu0 %v14527_v45  ;;  %6871 = vmatprep.subr.bf16.mxu1 %v14529_v25  ;;  %v6413_v45 = vld [vmem:[#allocation8 + $0xd48] sm:$0xff] }
 0x4be   :  { %6275 = vmatprep.mubr.bf16.mxu0 %v18514_v59  ;;  %6328 = vmatprep.mubr.bf16.mxu1 %v18514_v59  ;;  %v6417_v25 = vld [vmem:[#allocation8 + $0xd68] sm:$0xff]  ;;  %v6452_v2 = vsel %vm2328_vm3, %v6451_v63, %v6450_v21  ;;  %v6445_v63 = vrot.slane %v18535_v41, 1 }
 0x4bf   :  { %v14560_v61 = vcombine.low %v6413_v45, %v6417_v25  ;;  %v6433_v21 = vld [vmem:[#allocation8 + $0xde8] sm:$0xff] }
 0x4c0   :  { %6819 = vmatpush1.bf16.msra.mxu0 %v14526_v3  ;;  %6872 = vmatpush1.bf16.msra.mxu1 %v14528_v53  ;;  %v6440_v3 = vsel %vm2331_vm4, %v6439_v32, %v6438_v52  ;;  %v6443_v53 = vrot.slane %v16824_v8, 2  ;;  %v6478_v52 = vrot.slane %v16996_v43, 6 }
 0x4c1   :  { %6820 = vmatprep.subr.bf16.mxu0 %v14535_v42  ;;  %6873 = vmatprep.subr.bf16.mxu1 %v14537_v47  ;;  %v14561_v47 = vcombine.high %v6413_v45, %v6417_v25  ;;  %v6442_v7 = vsel %vm2334_vm5, %v6441_v62, %v6440_v3  ;;  %v6464_v45 = vrot.slane %v18532_v27, 6  ;;  %v6465_v25 = vrot.slane %v18534_v9, 5 }
 0x4c2   :  { %v6444_v33 = vsel %vm2337_vm6, %v6443_v53, %v6442_v7 }
 0x4c3   :  { %6276 = vmatmul.mubr.bf16.gmra.mrb[44].mxu0 %v17456_v35  ;;  %6329 = vmatmul.mubr.bf16.gmra.mrb[76].mxu1 %v17456_v35  ;;  %v6416_v35 = vld [vmem:[#allocation8 + $0xd60] sm:$0xff]  ;;  %v6446_v53 = vsel %vm2340_vm7, %v6445_v63, %v6444_v33  ;;  %v6485_v63 = vrot.slane %v17001_v36, 2 }
 0x4c4   :  { %6821 = vmatpush1.bf16.msra.mxu0 %v14534_v20  ;;  %6874 = vmatpush1.bf16.msra.mxu1 %v14536_v34  ;;  %v14559_v42 = vcombine.high %v6412_v55, %v6416_v35  ;;  %v6421_v20 = vld [vmem:[#allocation8 + $0xd88] sm:$0xff]  ;;  %v14558_v30 = vcombine.low %v6412_v55, %v6416_v35  ;;  %v6479_v55 = vrot.slane %v16975_v39, 5  ;;  %v6459_v35 = vrot.slane %v16860_v48, 1 }
 0x4c5   :  { %6822 = vmatprep.subr.bf16.mxu0 %v14543_v10  ;;  %6875 = vmatprep.subr.bf16.mxu1 %v14545_v18  ;;  %v6425_v34 = vld [vmem:[#allocation8 + $0xda8] sm:$0xff]  ;;  %v6454_v10 = vsel %vm2331_vm4, %v6453_v56, %v6452_v2  ;;  %v6457_v18 = vrot.slane %v16835_v17, 2  ;;  %v6447_v7 = vsel %vm2343_vm8, %v16847_v29, %v6446_v53 }
 0x4c6   :  { %6848 = vmatprep.mubr.bf16.mxu0 %v18514_v59  ;;  %6901 = vmatprep.mubr.bf16.mxu1 %v18514_v59  ;;  %v6456_v32 = vsel %vm2334_vm5, %v6455_v40, %v6454_v10  ;;  %v14568_v3 = vcombine.low %v6421_v20, %v6425_v34  ;;  %v6462_v10 = vrot.slane %v16874_v13, 7  ;;  %v18536_v40 = vld [vmem:[#allocation37_spill] sm:$0xff]  ;;  %v6480_v33 = vsel %vm2328_vm3, %v6479_v55, %v6478_v52 }
 0x4c7   :  { %v6458_v56 = vsel %vm2337_vm6, %v6457_v18, %v6456_v32  ;;  %v6374_v18 = vld [vmem:[#allocation8 + $0xc10] sm:$0xff]  ;;  %v6387_v13 = vld [vmem:[#allocation8 + $0xc78] sm:$0xff] }
 0x4c8   :  { %6823 = vmatpush1.bf16.msra.mxu0 %v14542_v46  ;;  %6876 = vmatpush1.bf16.msra.mxu1 %v14544_v23  ;;  %v14569_v46 = vcombine.high %v6421_v20, %v6425_v34  ;;  %v6428_v23 = vld [vmem:[#allocation8 + $0xdc0] sm:$0xff]  ;;  %v6460_v2 = vsel %vm2340_vm7, %v6459_v35, %v6458_v56  ;;  %v6378_v20 = vld [vmem:[#allocation8 + $0xc30] sm:$0xff]  ;;  %v6375_v34 = vld [vmem:[#allocation8 + $0xc18] sm:$0xff] }
 0x4c9   :  { %6824 = vmatprep.subr.bf16.mxu0 %v14551_v14  ;;  %6877 = vmatprep.subr.bf16.mxu1 %v14553_v31  ;;  %v6432_v14 = vld [vmem:[#allocation8 + $0xde0] sm:$0xff]  ;;  %v6429_v31 = vld [vmem:[#allocation8 + $0xdc8] sm:$0xff]  ;;  %v14523_v55 = vcombine.high %v6374_v18, %v6378_v20 }
 0x4ca   :  { %v14577_v62 = vcombine.high %v6429_v31, %v6433_v21  ;;  %v14574_v56 = vcombine.low %v6428_v23, %v6432_v14  ;;  %v14576_v35 = vcombine.low %v6429_v31, %v6433_v21 }
 0x4cc   :  { %6825 = vmatpush1.bf16.msra.mxu0 %v14550_v26  ;;  %6878 = vmatpush1.bf16.msra.mxu1 %v14552_v15  ;;  %v6481_v26 = vrot.slane %v18533_v28, 4  ;;  %v14566_v15 = vcombine.low %v6420_v22, %v6424_v19  ;;  %v18537_v22 = vld [vmem:[#allocation40_spill] sm:$0xff] }
 0x4cd   :  { %6826 = vmatprep.subr.bf16.mxu0 %v14559_v42  ;;  %6879 = vmatprep.subr.bf16.mxu1 %v14561_v47  ;;  %v6467_v42 = vrot.slane %v16971_v60, 4  ;;  %v14575_v47 = vcombine.high %v6428_v23, %v6432_v14  ;;  %v6461_v19 = vsel %vm2343_vm8, %v18537_v22, %v6460_v2  ;;  %v6483_v2 = vrot.slane %v17006_v0, 3 }
 0x4ce   :  { %v6482_v32 = vsel %vm2331_vm4, %v6481_v26, %v6480_v33  ;;  %v6463_v52 = vsel %vm2346_vm9, %v6462_v10, %v6461_v19  ;;  %v6386_v26 = vld [vmem:[#allocation8 + $0xc70] sm:$0xff]  ;;  %v6383_v33 = vld [vmem:[#allocation8 + $0xc58] sm:$0xff] }
 0x4cf   :  { %v14533_v10 = vcombine.high %v6383_v33, %v6387_v13 }
 0x4d0   :  { %6827 = vmatpush1.bf16.msra.mxu0 %v14558_v30  ;;  %6880 = vmatpush1.bf16.msra.mxu1 %v14560_v61  ;;  %v6448_v30 = vrot.slane %v18536_v40, 7  ;;  %v6379_v61 = vld [vmem:[#allocation8 + $0xc38] sm:$0xff]  ;;  %v6471_v40 = vrot.slane %v16990_v5, 2 }
 0x4d1   :  { %6828 = vmatprep.subr.bf16.mxu0 %v14567_v37  ;;  %6881 = vmatprep.subr.bf16.mxu1 %v14569_v46  ;;  %v6466_v37 = vsel %vm2328_vm3, %v6465_v25, %v6464_v45  ;;  %v6469_v46 = vrot.slane %v16984_v16, 3  ;;  %v14525_v45 = vcombine.high %v6375_v34, %v6379_v61  ;;  %v6382_v25 = vld [vmem:[#allocation8 + $0xc50] sm:$0xff] }
 0x4d2   :  { %v6468_v53 = vsel %vm2331_vm4, %v6467_v42, %v6466_v37  ;;  %v6449_v23 = vsel %vm2346_vm9, %v6448_v30, %v6447_v7  ;;  %v14524_v42 = vcombine.low %v6375_v34, %v6379_v61  ;;  %v6390_v37 = vld [vmem:[#allocation8 + $0xc90] sm:$0xff]  ;;  %v6473_v7 = vrot.slane %v17019_v1, 1 }
 0x4d3   :  { %v6470_v14 = vsel %vm2334_vm5, %v6469_v46, %v6468_v53  ;;  %v17517_v21 = vpack.c.b16 %v6463_v52, %v6449_v23  ;;  %v6490_v46 = vrot.slane %v17040_v11, 7  ;;  %v6476_v61 = vrot.slane %v17037_v38, 7  ;;  %v6398_v52 = vld [vmem:[#allocation8 + $0xcd0] sm:$0xff] }
 0x4d4   :  { %6829 = vmatpush1.bf16.msra.mxu0 %v14566_v15  ;;  %6882 = vmatpush1.bf16.msra.mxu1 %v14568_v3  ;;  %v6484_v15 = vsel %vm2334_vm5, %v6483_v2, %v6482_v32  ;;  %v14522_v3 = vcombine.low %v6374_v18, %v6378_v20  ;;  %v6472_v19 = vsel %vm2337_vm6, %v6471_v40, %v6470_v14  ;;  %v6394_v32 = vld [vmem:[#allocation8 + $0xcb0] sm:$0xff] }
 0x4d5   :  { %6830 = vmatprep.subr.bf16.mxu0 %v14575_v47  ;;  %6883 = vmatprep.subr.bf16.mxu1 %v14577_v62  ;;  %v6486_v31 = vsel %vm2337_vm6, %v6485_v63, %v6484_v15  ;;  %v6487_v47 = vrot.slane %v17026_v6, 1  ;;  %v14531_v62 = vcombine.high %v6382_v25, %v6386_v26  ;;  %v6391_v63 = vld [vmem:[#allocation8 + $0xc98] sm:$0xff]  ;;  %v14530_v40 = vcombine.low %v6382_v25, %v6386_v26 }
 0x4d6   :  { %v14532_v20 = vcombine.low %v6383_v33, %v6387_v13  ;;  %v6474_v34 = vsel %vm2340_vm7, %v6473_v7, %v6472_v19  ;;  %v14539_v53 = vcombine.high %v6390_v37, %v6394_v32  ;;  %v6399_v13 = vld [vmem:[#allocation8 + $0xcd8] sm:$0xff]  ;;  %v14538_v33 = vcombine.low %v6390_v37, %v6394_v32 }
 0x4d7   :  { %v6488_v30 = vsel %vm2340_vm7, %v6487_v47, %v6486_v31  ;;  %v6403_v25 = vld [vmem:[#allocation8 + $0xcf8] sm:$0xff] }
 0x4d8   :  { %6831 = vmatpush1.bf16.msra.mxu0 %v14574_v56  ;;  %6884 = vmatpush1.bf16.msra.mxu1 %v14576_v35  ;;  %v6395_v56 = vld [vmem:[#allocation8 + $0xcb8] sm:$0xff]  ;;  %v6489_v18 = vsel %vm2343_vm8, %v17045_v50, %v6488_v30  ;;  %v6475_v35 = vsel %vm2343_vm8, %v17013_v4, %v6474_v34  ;;  %v14549_v31 = vcombine.high %v6399_v13, %v6403_v25  ;;  %v6414_v30 = vld [vmem:[#allocation8 + $0xd50] sm:$0xff] }
 0x4d9   :  { %6922 = vmatprep.subr.bf16.mxu0 %v14523_v55  ;;  %6975 = vmatprep.subr.bf16.mxu1 %v14525_v45  ;;  %v14541_v2 = vcombine.high %v6391_v63, %v6395_v56  ;;  %v6491_v55 = vsel %vm2346_vm9, %v6490_v46, %v6489_v18  ;;  %v6402_v45 = vld [vmem:[#allocation8 + $0xcf0] sm:$0xff]  ;;  %v6477_v26 = vsel %vm2346_vm9, %v6476_v61, %v6475_v35  ;;  %v6407_v47 = vld [vmem:[#allocation8 + $0xd18] sm:$0xff] }
 0x4da   :  { %v14540_v15 = vcombine.low %v6391_v63, %v6395_v56  ;;  %v17536_v23 = vpack.c.b16 %v6491_v55, %v6477_v26  ;;  %v14547_v14 = vcombine.high %v6398_v52, %v6402_v45  ;;  %v14548_v19 = vcombine.low %v6399_v13, %v6403_v25  ;;  %v6418_v46 = vld [vmem:[#allocation8 + $0xd70] sm:$0xff]  ;;  %v6415_v32 = vld [vmem:[#allocation8 + $0xd58] sm:$0xff] }
 0x4db   :  { %6849 = vmatmul.mubr.bf16.vlgmr.msra.gmra.mrb[32].mxu0 %v17517_v21  ;;  %6902 = vmatmul.mubr.bf16.vlgmr.msra.gmra.mrb[64].mxu1 %v17517_v21  ;;  %v6419_v63 = vld [vmem:[#allocation8 + $0xd78] sm:$0xff]  ;;  %v6422_v34 = vld [vmem:[#allocation8 + $0xd90] sm:$0xff] }
 0x4dc   :  { %6923 = vmatpush1.bf16.msra.mxu0 %v14522_v3  ;;  %6976 = vmatpush1.bf16.msra.mxu1 %v14524_v42  ;;  %v6406_v3 = vld [vmem:[#allocation8 + $0xd10] sm:$0xff]  ;;  %v6423_v35 = vld [vmem:[#allocation8 + $0xd98] sm:$0xff] }
 0x4dd   :  { %6924 = vmatprep.subr.bf16.mxu0 %v14531_v62  ;;  %6977 = vmatprep.subr.bf16.mxu1 %v14533_v10  ;;  %v6410_v42 = vld [vmem:[#allocation8 + $0xd30] sm:$0xff]  ;;  %v6411_v62 = vld [vmem:[#allocation8 + $0xd38] sm:$0xff]  ;;  %v14546_v10 = vcombine.low %v6398_v52, %v6402_v45  ;;  %v14564_v52 = vcombine.low %v6415_v32, %v6419_v63 }
 0x4de   :  { %6858 = vmatprep.mubr.bf16.mxu0 %v18514_v59  ;;  %6911 = vmatprep.mubr.bf16.mxu1 %v18514_v59  ;;  %v14555_v37 = vcombine.high %v6406_v3, %v6410_v42  ;;  %v14557_v7 = vcombine.high %v6407_v47, %v6411_v62  ;;  %v14554_v56 = vcombine.low %v6406_v3, %v6410_v42  ;;  %v6426_v61 = vld [vmem:[#allocation8 + $0xdb0] sm:$0xff]  ;;  %v6431_v26 = vld [vmem:[#allocation8 + $0xdd8] sm:$0xff]  ;;  %v7061_v42 = vld [vmem:[#allocation8 + $0xe00] sm:$0xff] }
 0x4df   :  { %v14556_v18 = vcombine.low %v6407_v47, %v6411_v62  ;;  %v14571_v55 = vcombine.high %v6422_v34, %v6426_v61  ;;  %v6430_v13 = vld [vmem:[#allocation8 + $0xdd0] sm:$0xff]  ;;  %v7065_v47 = vld [vmem:[#allocation8 + $0xe20] sm:$0xff]  ;;  %v7062_v62 = vld [vmem:[#allocation8 + $0xe08] sm:$0xff] }
 0x4e0   :  { %6925 = vmatpush1.bf16.msra.mxu0 %v14530_v40  ;;  %6978 = vmatpush1.bf16.msra.mxu1 %v14532_v20  ;;  %v14563_v40 = vcombine.high %v6414_v30, %v6418_v46  ;;  %v14565_v20 = vcombine.high %v6415_v32, %v6419_v63  ;;  %v6434_v25 = vld [vmem:[#allocation8 + $0xdf0] sm:$0xff]  ;;  %v7073_v32 = vld [vmem:[#allocation8 + $0xe60] sm:$0xff]  ;;  %v7070_v63 = vld [vmem:[#allocation8 + $0xe48] sm:$0xff] }
 0x4e1   :  { %6926 = vmatprep.subr.bf16.mxu0 %v14539_v53  ;;  %6979 = vmatprep.subr.bf16.mxu1 %v14541_v2  ;;  %v6427_v53 = vld [vmem:[#allocation8 + $0xdb8] sm:$0xff]  ;;  %v14562_v2 = vcombine.low %v6414_v30, %v6418_v46  ;;  %v7069_v46 = vld [vmem:[#allocation8 + $0xe40] sm:$0xff] }
 0x4e2   :  { %v14573_v45 = vcombine.high %v6423_v35, %v6427_v53 }
 0x4e3   :  { %6859 = vmatmul.mubr.bf16.gmra.mrb[36].mxu0 %v17536_v23  ;;  %6912 = vmatmul.mubr.bf16.gmra.mrb[68].mxu1 %v17536_v23 }
 0x4e4   :  { %6927 = vmatpush1.bf16.msra.mxu0 %v14538_v33  ;;  %6980 = vmatpush1.bf16.msra.mxu1 %v14540_v15  ;;  %v6435_v33 = vld [vmem:[#allocation8 + $0xdf8] sm:$0xff]  ;;  %v14570_v15 = vcombine.low %v6422_v34, %v6426_v61  ;;  %v7077_v61 = vld [vmem:[#allocation8 + $0xe80] sm:$0xff] }
 0x4e5   :  { %6928 = vmatprep.subr.bf16.mxu0 %v14547_v14  ;;  %6981 = vmatprep.subr.bf16.mxu1 %v14549_v31  ;;  %v14572_v14 = vcombine.low %v6423_v35, %v6427_v53  ;;  %v14579_v31 = vcombine.high %v6430_v13, %v6434_v25  ;;  %v14581_v3 = vcombine.high %v6431_v26, %v6435_v33  ;;  %v7081_v35 = vld [vmem:[#allocation8 + $0xea0] sm:$0xff]  ;;  %v7078_v53 = vld [vmem:[#allocation8 + $0xe88] sm:$0xff] }
 0x4e6   :  { %6954 = vmatprep.mubr.bf16.mxu0 %v18514_v59  ;;  %7007 = vmatprep.mubr.bf16.mxu1 %v18514_v59 }
 0x4e8   :  { %6929 = vmatpush1.bf16.msra.mxu0 %v14546_v10  ;;  %6982 = vmatpush1.bf16.msra.mxu1 %v14548_v19  ;;  %v7066_v10 = vld [vmem:[#allocation8 + $0xe28] sm:$0xff]  ;;  %v14578_v19 = vcombine.low %v6430_v13, %v6434_v25  ;;  %v7085_v25 = vld [vmem:[#allocation8 + $0xec0] sm:$0xff] }
 0x4e9   :  { %6930 = vmatprep.subr.bf16.mxu0 %v14555_v37  ;;  %6983 = vmatprep.subr.bf16.mxu1 %v14557_v7  ;;  %v14580_v37 = vcombine.low %v6431_v26, %v6435_v33  ;;  %v14583_v7 = vcombine.high %v7061_v42, %v7065_v47  ;;  %v14585_v30 = vcombine.high %v7062_v62, %v7066_v10  ;;  %v7089_v26 = vld [vmem:[#allocation8 + $0xee0] sm:$0xff]  ;;  %v7086_v33 = vld [vmem:[#allocation8 + $0xec8] sm:$0xff] }
 0x4ec   :  { %6931 = vmatpush1.bf16.msra.mxu0 %v14554_v56  ;;  %6984 = vmatpush1.bf16.msra.mxu1 %v14556_v18  ;;  %v7074_v56 = vld [vmem:[#allocation8 + $0xe68] sm:$0xff]  ;;  %v14582_v18 = vcombine.low %v7061_v42, %v7065_v47  ;;  %v7093_v42 = vld [vmem:[#allocation8 + $0xf00] sm:$0xff] }
 0x4ed   :  { %6932 = vmatprep.subr.bf16.mxu0 %v14563_v40  ;;  %6985 = vmatprep.subr.bf16.mxu1 %v14565_v20  ;;  %v14584_v40 = vcombine.low %v7062_v62, %v7066_v10  ;;  %v14591_v20 = vcombine.high %v7069_v46, %v7073_v32  ;;  %v14593_v34 = vcombine.high %v7070_v63, %v7074_v56  ;;  %v7097_v47 = vld [vmem:[#allocation8 + $0xf20] sm:$0xff]  ;;  %v7094_v62 = vld [vmem:[#allocation8 + $0xf08] sm:$0xff] }
 0x4ee   :  { %v7098_v10 = vld [vmem:[#allocation8 + $0xf28] sm:$0xff] }
 0x4f0   :  { %6933 = vmatpush1.bf16.msra.mxu0 %v14562_v2  ;;  %6986 = vmatpush1.bf16.msra.mxu1 %v14564_v52  ;;  %v7082_v2 = vld [vmem:[#allocation8 + $0xea8] sm:$0xff]  ;;  %v14590_v52 = vcombine.low %v7069_v46, %v7073_v32  ;;  %v14615_v46 = vcombine.high %v7093_v42, %v7097_v47  ;;  %v14617_v32 = vcombine.high %v7094_v62, %v7098_v10 }
 0x4f1   :  { %6934 = vmatprep.subr.bf16.mxu0 %v14571_v55  ;;  %6987 = vmatprep.subr.bf16.mxu1 %v14573_v45  ;;  %v14592_v55 = vcombine.low %v7070_v63, %v7074_v56  ;;  %v14599_v45 = vcombine.high %v7077_v61, %v7081_v35  ;;  %v14601_v13 = vcombine.high %v7078_v53, %v7082_v2  ;;  %v7101_v63 = vld [vmem:[#allocation8 + $0xf40] sm:$0xff]  ;;  %v7128_v56 = vrot.slane %v16805_v49, 5 }
 0x4f4   :  { %6935 = vmatpush1.bf16.msra.mxu0 %v14570_v15  ;;  %6988 = vmatpush1.bf16.msra.mxu1 %v14572_v14  ;;  %v7090_v15 = vld [vmem:[#allocation8 + $0xee8] sm:$0xff]  ;;  %v14598_v14 = vcombine.low %v7077_v61, %v7081_v35  ;;  %v14616_v61 = vcombine.low %v7094_v62, %v7098_v10 }
 0x4f5   :  { %6936 = vmatprep.subr.bf16.mxu0 %v14579_v31  ;;  %6989 = vmatprep.subr.bf16.mxu1 %v14581_v3  ;;  %v14607_v31 = vcombine.high %v7085_v25, %v7089_v26  ;;  %v14609_v3 = vcombine.high %v7086_v33, %v7090_v15  ;;  %v7118_v62 = vld [vmem:[#allocation8 + $0xfc8] sm:$0xff] }
 0x4f8   :  { %6937 = vmatpush1.bf16.msra.mxu0 %v14578_v19  ;;  %6990 = vmatpush1.bf16.msra.mxu1 %v14580_v37  ;;  %v14606_v19 = vcombine.low %v7085_v25, %v7089_v26  ;;  %v14608_v37 = vcombine.low %v7086_v33, %v7090_v15  ;;  %v7134_v25 = vrot.slane %v18535_v41, 2  ;;  %v7146_v33 = vrot.slane %v16835_v17, 3  ;;  %v7122_v17 = vld [vmem:[#allocation8 + $0xfe8] sm:$0xff] }
 0x4f9   :  { %7505 = vmatprep.subr.bf16.mxu0 %v14583_v7  ;;  %7558 = vmatprep.subr.bf16.mxu1 %v14585_v30  ;;  %v7125_v7 = vrot.slane %v16815_v57, 7  ;;  %v7126_v30 = vrot.slane %v16801_v44, 6  ;;  %v7140_v57 = vrot.slane %v16809_v51, 6  ;;  %v7142_v44 = vrot.slane %v16812_v54, 5  ;;  %v7114_v51 = vld [vmem:[#allocation8 + $0xfa8] sm:$0xff] }
 0x4fa   :  { %v7130_v54 = vrot.slane %v16818_v58, 4  ;;  %v7136_v41 = vrot.slane %v16847_v29, 1 }
 0x4fb   :  { %6955 = vmatmul.mubr.bf16.vlgmr.msra.gmra.mrb[40].mxu0 %v17517_v21  ;;  %7008 = vmatmul.mubr.bf16.vlgmr.msra.gmra.mrb[72].mxu1 %v17517_v21  ;;  %v14600_v21 = vcombine.low %v7078_v53, %v7082_v2  ;;  %v7127_v35 = vsel %vm2328_vm3, %v7126_v30, %v7125_v7  ;;  %v7109_v2 = vld [vmem:[#allocation8 + $0xf80] sm:$0xff]  ;;  %v7153_v30 = vrot.slane %v18532_v27, 7 }
 0x4fc   :  { %7506 = vmatpush1.bf16.msra.mxu0 %v14582_v18  ;;  %7559 = vmatpush1.bf16.msra.mxu1 %v14584_v40  ;;  %v7105_v18 = vld [vmem:[#allocation8 + $0xf60] sm:$0xff]  ;;  %v7102_v40 = vld [vmem:[#allocation8 + $0xf48] sm:$0xff] }
 0x4fd   :  { %7507 = vmatprep.subr.bf16.mxu0 %v14591_v20  ;;  %7560 = vmatprep.subr.bf16.mxu1 %v14593_v34  ;;  %v7106_v20 = vld [vmem:[#allocation8 + $0xf68] sm:$0xff]  ;;  %v14614_v34 = vcombine.low %v7093_v42, %v7097_v47  ;;  %v14623_v49 = vcombine.high %v7101_v63, %v7105_v18  ;;  %v14622_v15 = vcombine.low %v7101_v63, %v7105_v18  ;;  %v7121_v47 = vld [vmem:[#allocation8 + $0xfe0] sm:$0xff] }
 0x4fe   :  { %6964 = vmatprep.mubr.bf16.mxu0 %v18514_v59  ;;  %7017 = vmatprep.mubr.bf16.mxu1 %v18514_v59  ;;  %v14625_v53 = vcombine.high %v7102_v40, %v7106_v20 }
 0x500   :  { %7508 = vmatpush1.bf16.msra.mxu0 %v14590_v52  ;;  %7561 = vmatpush1.bf16.msra.mxu1 %v14592_v55  ;;  %v7129_v52 = vsel %vm2331_vm4, %v7128_v56, %v7127_v35  ;;  %v7132_v55 = vrot.slane %v16824_v8, 3  ;;  %v7144_v8 = vrot.slane %v16840_v24, 4  ;;  %v7168_v24 = vrot.slane %v16975_v39, 6 }
 0x501   :  { %7509 = vmatprep.subr.bf16.mxu0 %v14599_v45  ;;  %7562 = vmatprep.subr.bf16.mxu1 %v14601_v13  ;;  %v7110_v45 = vld [vmem:[#allocation8 + $0xf88] sm:$0xff]  ;;  %v7148_v56 = vrot.slane %v16860_v48, 2  ;;  %v14641_v39 = vcombine.high %v7118_v62, %v7122_v17 }
 0x502   :  { %v14633_v58 = vcombine.high %v7110_v45, %v7114_v51  ;;  %v14632_v63 = vcombine.low %v7110_v45, %v7114_v51  ;;  %v18538_v45 = vld [vmem:[#allocation39_spill] sm:$0xff] }
 0x503   :  { %6965 = vmatmul.mubr.bf16.gmra.mrb[44].mxu0 %v17536_v23  ;;  %7018 = vmatmul.mubr.bf16.gmra.mrb[76].mxu1 %v17536_v23  ;;  %v7139_v23 = vrot.slane %v16830_v12, 7  ;;  %v7113_v12 = vld [vmem:[#allocation8 + $0xfa0] sm:$0xff] }
 0x504   :  { %7510 = vmatpush1.bf16.msra.mxu0 %v14598_v14  ;;  %7563 = vmatpush1.bf16.msra.mxu1 %v14600_v21  ;;  %v14624_v14 = vcombine.low %v7102_v40, %v7106_v20  ;;  %v7131_v21 = vsel %vm2334_vm5, %v7130_v54, %v7129_v52  ;;  %v14630_v29 = vcombine.low %v7109_v2, %v7113_v12  ;;  %v7063_v40 = vld [vmem:[#allocation8 + $0xe10] sm:$0xff]  ;;  %v7064_v20 = vld [vmem:[#allocation8 + $0xe18] sm:$0xff] }
 0x505   :  { %7511 = vmatprep.subr.bf16.mxu0 %v14607_v31  ;;  %7564 = vmatprep.subr.bf16.mxu1 %v14609_v3  ;;  %v7141_v13 = vsel %vm2328_vm3, %v7140_v57, %v7139_v23  ;;  %v14631_v31 = vcombine.high %v7109_v2, %v7113_v12  ;;  %v7117_v3 = vld [vmem:[#allocation8 + $0xfc0] sm:$0xff]  ;;  %v7133_v42 = vsel %vm2337_vm6, %v7132_v55, %v7131_v21  ;;  %v7068_v23 = vld [vmem:[#allocation8 + $0xe38] sm:$0xff]  ;;  %v7160_v57 = vrot.slane %v16990_v5, 3  ;;  %v7071_v55 = vld [vmem:[#allocation8 + $0xe50] sm:$0xff] }
 0x506   :  { %7537 = vmatprep.mubr.bf16.mxu0 %v18514_v59  ;;  %7590 = vmatprep.mubr.bf16.mxu1 %v18514_v59  ;;  %v7143_v26 = vsel %vm2331_vm4, %v7142_v44, %v7141_v13  ;;  %v7135_v18 = vsel %vm2340_vm7, %v7134_v25, %v7133_v42  ;;  %v14638_v35 = vcombine.low %v7117_v3, %v7121_v47  ;;  %v7172_v2 = vrot.slane %v17006_v0, 4  ;;  %v7075_v54 = vld [vmem:[#allocation8 + $0xe70] sm:$0xff]  ;;  %v7076_v13 = vld [vmem:[#allocation8 + $0xe78] sm:$0xff] }
 0x507   :  { %v7145_v10 = vsel %vm2334_vm5, %v7144_v8, %v7143_v26  ;;  %v7137_v27 = vsel %vm2343_vm8, %v7136_v41, %v7135_v18  ;;  %v14589_v52 = vcombine.high %v7064_v20, %v7068_v23  ;;  %v7158_v12 = vrot.slane %v16984_v16, 4  ;;  %v18539_v26 = vld [vmem:[#allocation37_spill] sm:$0xff] }
 0x508   :  { %7512 = vmatpush1.bf16.msra.mxu0 %v14606_v19  ;;  %7565 = vmatpush1.bf16.msra.mxu1 %v14608_v37  ;;  %v7150_v19 = vrot.slane %v18537_v22, 1  ;;  %v7167_v37 = vrot.slane %v16996_v43, 7  ;;  %v7147_v7 = vsel %vm2337_vm6, %v7146_v33, %v7145_v10  ;;  %v7156_v22 = vrot.slane %v16971_v60, 5  ;;  %v7080_v10 = vld [vmem:[#allocation8 + $0xe98] sm:$0xff] }
 0x509   :  { %7513 = vmatprep.subr.bf16.mxu0 %v14615_v46  ;;  %7566 = vmatprep.subr.bf16.mxu1 %v14617_v32  ;;  %v7154_v46 = vrot.slane %v18534_v9, 6  ;;  %v7170_v32 = vrot.slane %v18533_v28, 5  ;;  %v14639_v43 = vcombine.high %v7117_v3, %v7121_v47  ;;  %v7149_v9 = vsel %vm2340_vm7, %v7148_v56, %v7147_v7  ;;  %v7067_v28 = vld [vmem:[#allocation8 + $0xe30] sm:$0xff]  ;;  %v7092_v56 = vld [vmem:[#allocation8 + $0xef8] sm:$0xff] }
 0x50a   :  { %v7169_v48 = vsel %vm2328_vm3, %v7168_v24, %v7167_v37  ;;  %v7151_v60 = vsel %vm2343_vm8, %v7150_v19, %v7149_v9  ;;  %v14587_v5 = vcombine.high %v7063_v40, %v7067_v28  ;;  %v7138_v33 = vsel %vm2346_vm9, %v18539_v26, %v7137_v27  ;;  %v7079_v47 = vld [vmem:[#allocation8 + $0xe90] sm:$0xff]  ;;  %v7084_v19 = vld [vmem:[#allocation8 + $0xeb8] sm:$0xff] }
 0x50b   :  { %v7155_v44 = vsel %vm2328_vm3, %v7154_v46, %v7153_v30  ;;  %v7152_v51 = vsel %vm2346_vm9, %v18538_v45, %v7151_v60  ;;  %v14586_v16 = vcombine.low %v7063_v40, %v7067_v28  ;;  %v14588_v21 = vcombine.low %v7064_v20, %v7068_v23  ;;  %v7087_v46 = vld [vmem:[#allocation8 + $0xed0] sm:$0xff]  ;;  %v7096_v20 = vld [vmem:[#allocation8 + $0xf18] sm:$0xff] }
 0x50c   :  { %7514 = vmatpush1.bf16.msra.mxu0 %v14614_v34  ;;  %7567 = vmatpush1.bf16.msra.mxu1 %v14616_v61  ;;  %v7171_v34 = vsel %vm2331_vm4, %v7170_v32, %v7169_v48  ;;  %v7174_v61 = vrot.slane %v17001_v36, 3  ;;  %v7072_v36 = vld [vmem:[#allocation8 + $0xe58] sm:$0xff]  ;;  %v14595_v3 = vcombine.high %v7071_v55, %v7075_v54  ;;  %v7164_v41 = vrot.slane %v17013_v4, 1  ;;  %v7095_v9 = vld [vmem:[#allocation8 + $0xf10] sm:$0xff] }
 0x50d   :  { %7515 = vmatprep.subr.bf16.mxu0 %v14623_v49  ;;  %7568 = vmatprep.subr.bf16.mxu1 %v14625_v53  ;;  %v14640_v49 = vcombine.low %v7118_v62, %v7122_v17  ;;  %v7157_v53 = vsel %vm2331_vm4, %v7156_v22, %v7155_v44  ;;  %v7173_v25 = vsel %vm2334_vm5, %v7172_v2, %v7171_v34  ;;  %v7162_v62 = vrot.slane %v17019_v1, 2  ;;  %v7083_v17 = vld [vmem:[#allocation8 + $0xeb0] sm:$0xff]  ;;  %v7104_v34 = vld [vmem:[#allocation8 + $0xf58] sm:$0xff] }
 0x50e   :  { %v7159_v0 = vsel %vm2334_vm5, %v7158_v12, %v7157_v53  ;;  %v14597_v42 = vcombine.high %v7072_v36, %v7076_v13  ;;  %v14594_v37 = vcombine.low %v7071_v55, %v7075_v54  ;;  %v14596_v24 = vcombine.low %v7072_v36, %v7076_v13  ;;  %v7099_v28 = vld [vmem:[#allocation8 + $0xf30] sm:$0xff]  ;;  %v7112_v55 = vld [vmem:[#allocation8 + $0xf98] sm:$0xff] }
 0x50f   :  { %v7161_v8 = vsel %vm2337_vm6, %v7160_v57, %v7159_v0  ;;  %v14603_v7 = vcombine.high %v7079_v47, %v7083_v17  ;;  %v14605_v30 = vcombine.high %v7080_v10, %v7084_v19  ;;  %v14619_v57 = vcombine.high %v7095_v9, %v7099_v28  ;;  %v7103_v60 = vld [vmem:[#allocation8 + $0xf50] sm:$0xff]  ;;  %v7116_v12 = vld [vmem:[#allocation8 + $0xfb8] sm:$0xff] }
 0x510   :  { %7516 = vmatpush1.bf16.msra.mxu0 %v14622_v15  ;;  %7569 = vmatpush1.bf16.msra.mxu1 %v14624_v14  ;;  %v7175_v15 = vsel %vm2337_vm6, %v7174_v61, %v7173_v25  ;;  %v7178_v14 = vrot.slane %v17045_v50, 1  ;;  %v7163_v4 = vsel %vm2340_vm7, %v7162_v62, %v7161_v8  ;;  %v7107_v44 = vld [vmem:[#allocation8 + $0xf70] sm:$0xff]  ;;  %v7108_v61 = vld [vmem:[#allocation8 + $0xf78] sm:$0xff]  ;;  %v14637_v36 = vcombine.high %v7112_v55, %v7116_v12  ;;  %v7754_v8 = vld [vmem:[#allocation8 + $0x1020] sm:$0xff] }
 0x511   :  { %7517 = vmatprep.subr.bf16.mxu0 %v14631_v31  ;;  %7570 = vmatprep.subr.bf16.mxu1 %v14633_v58  ;;  %v7176_v31 = vrot.slane %v17026_v6, 2  ;;  %v17600_v58 = vpack.c.b16 %v7152_v51, %v7138_v33  ;;  %v7165_v1 = vsel %vm2343_vm8, %v7164_v41, %v7163_v4  ;;  %v14627_v53 = vcombine.high %v7103_v60, %v7107_v44  ;;  %v7119_v13 = vld [vmem:[#allocation8 + $0xfd0] sm:$0xff]  ;;  %v7120_v26 = vld [vmem:[#allocation8 + $0xfd8] sm:$0xff] }
 0x512   :  { %v7166_v22 = vsel %vm2346_vm9, %v17037_v38, %v7165_v1  ;;  %v14629_v2 = vcombine.high %v7104_v34, %v7108_v61  ;;  %v14626_v45 = vcombine.low %v7103_v60, %v7107_v44  ;;  %v14628_v51 = vcombine.low %v7104_v34, %v7108_v61  ;;  %v7123_v25 = vld [vmem:[#allocation8 + $0xff0] sm:$0xff]  ;;  %v7124_v33 = vld [vmem:[#allocation8 + $0xff8] sm:$0xff]  ;;  %v7766_v1 = vld [vmem:[#allocation8 + $0x1080] sm:$0xff] }
 0x513   :  { %v7177_v50 = vsel %vm2340_vm7, %v7176_v31, %v7175_v15  ;;  %v14636_v15 = vcombine.low %v7112_v55, %v7116_v12  ;;  %v7751_v31 = vld [vmem:[#allocation8 + $0x1008] sm:$0xff]  ;;  %v14644_v41 = vcombine.low %v7120_v26, %v7124_v33  ;;  %v18546_v60 = vld [vmem:[#allocation26_spill] sm:$0xff] }
 0x514   :  { %7518 = vmatpush1.bf16.msra.mxu0 %v14630_v29  ;;  %7571 = vmatpush1.bf16.msra.mxu1 %v14632_v63  ;;  %v7179_v6 = vsel %vm2343_vm8, %v7178_v14, %v7177_v50  ;;  %v7091_v29 = vld [vmem:[#allocation8 + $0xef0] sm:$0xff]  ;;  %v7088_v63 = vld [vmem:[#allocation8 + $0xed8] sm:$0xff]  ;;  %v14643_v14 = vcombine.high %v7119_v13, %v7123_v25  ;;  %v7758_v50 = vld [vmem:[#allocation8 + $0x1040] sm:$0xff]  ;;  %v17644_v44 = vunpack.c.h.b16 %v18546_v60 }
 0x515   :  { %7519 = vmatprep.subr.bf16.mxu0 %v14639_v43  ;;  %7572 = vmatprep.subr.bf16.mxu1 %v14641_v39  ;;  %v7180_v32 = vsel %vm2346_vm9, %v17040_v11, %v7179_v6  ;;  %v14602_v43 = vcombine.low %v7079_v47, %v7083_v17  ;;  %v14604_v39 = vcombine.low %v7080_v10, %v7084_v19  ;;  %v7100_v11 = vld [vmem:[#allocation8 + $0xf38] sm:$0xff]  ;;  %v7762_v17 = vld [vmem:[#allocation8 + $0x1060] sm:$0xff]  ;;  %v7759_v10 = vld [vmem:[#allocation8 + $0x1048] sm:$0xff] }
 0x516   :  { %v17616_v18 = vpack.c.b16 %v7180_v32, %v7166_v22  ;;  %v14611_v40 = vcombine.high %v7087_v46, %v7091_v29  ;;  %v14613_v27 = vcombine.high %v7088_v63, %v7092_v56  ;;  %v14610_v23 = vcombine.low %v7087_v46, %v7091_v29  ;;  %v7763_v19 = vld [vmem:[#allocation8 + $0x1068] sm:$0xff]  ;;  %v17624_v22 = vld [vmem:[#allocation8 + $0x10c0] sm:$0xff] }
 0x517   :  { %v14612_v38 = vcombine.low %v7088_v63, %v7092_v56  ;;  %v14621_v48 = vcombine.high %v7096_v20, %v7100_v11  ;;  %v14657_v4 = vcombine.high %v7759_v10, %v7763_v19  ;;  %v7771_v46 = vld [vmem:[#allocation8 + $0x10a8] sm:$0xff]  ;;  %v14654_v32 = vcombine.low %v7758_v50, %v7762_v17  ;;  %v17653_v55 = vld [vmem:[#allocation8 + $0x1100] sm:$0xff] }
 0x518   :  { %7520 = vmatpush1.bf16.msra.mxu0 %v14638_v35  ;;  %7573 = vmatpush1.bf16.msra.mxu1 %v14640_v49  ;;  %v14618_v35 = vcombine.low %v7095_v9, %v7099_v28  ;;  %v14620_v49 = vcombine.low %v7096_v20, %v7100_v11  ;;  %v14656_v29 = vcombine.low %v7759_v10, %v7763_v19  ;;  %v18542_v20 = vld [vmem:[#allocation23_spill] sm:$0xff]  ;;  %v18550_v12 = vld [vmem:[#allocation28_spill] sm:$0xff]  ;;  %v18560_v10 = vld [vmem:[#allocation41_spill] sm:$0xff] }
 0x519   :  { %7611 = vmatprep.subr.bf16.mxu0 %v14587_v5  ;;  %7664 = vmatprep.subr.bf16.mxu1 %v14589_v52  ;;  %v7111_v5 = vld [vmem:[#allocation8 + $0xf90] sm:$0xff]  ;;  %v17635_v11 = vunpack.c.h.b16 %v18542_v20  ;;  %v17685_v19 = vunpack.c.h.b16 %v18560_v10 }
 0x51a   :  { %v7115_v52 = vld [vmem:[#allocation8 + $0xfb0] sm:$0xff] }
 0x51b   :  { %7538 = vmatmul.mubr.bf16.vlgmr.msra.gmra.mrb[32].mxu0 %v17600_v58  ;;  %7591 = vmatmul.mubr.bf16.vlgmr.msra.gmra.mrb[64].mxu1 %v17600_v58  ;;  %v14635_v54 = vcombine.high %v7111_v5, %v7115_v52  ;;  %v14634_v0 = vcombine.low %v7111_v5, %v7115_v52  ;;  %18561 = vst [vmem:[#allocation40_spill] sm:$0xff] %v17685_v19  ;;  %v18575_v10 = vld [vmem:[#allocation57_spill] sm:$0xff] }
 0x51c   :  { %7612 = vmatpush1.bf16.msra.mxu0 %v14586_v16  ;;  %7665 = vmatpush1.bf16.msra.mxu1 %v14588_v21  ;;  %v14645_v16 = vcombine.high %v7120_v26, %v7124_v33  ;;  %v7750_v21 = vld [vmem:[#allocation8 + $0x1000] sm:$0xff] }
 0x51d   :  { %7613 = vmatprep.subr.bf16.mxu0 %v14595_v3  ;;  %7666 = vmatprep.subr.bf16.mxu1 %v14597_v42  ;;  %v7755_v3 = vld [vmem:[#allocation8 + $0x1028] sm:$0xff]  ;;  %v14642_v42 = vcombine.low %v7119_v13, %v7123_v25  ;;  %v14647_v47 = vcombine.high %v7750_v21, %v7754_v8  ;;  %v14646_v6 = vcombine.low %v7750_v21, %v7754_v8  ;;  %v7786_v33 = vld [vmem:[#allocation8 + $0x1120] sm:$0xff] }
 0x51e   :  { %7547 = vmatprep.mubr.bf16.mxu0 %v18514_v59  ;;  %7600 = vmatprep.mubr.bf16.mxu1 %v18514_v59  ;;  %v14649_v62 = vcombine.high %v7751_v31, %v7755_v3  ;;  %v18553_v25 = vld [vmem:[#allocation32_spill] sm:$0xff]  ;;  %v18556_v21 = vld [vmem:[#allocation34_spill] sm:$0xff] }
 0x51f   :  { %v17665_v26 = vunpack.c.h.b16 %v18553_v25  ;;  %v17671_v8 = vunpack.c.h.b16 %v18556_v21 }
 0x520   :  { %7614 = vmatpush1.bf16.msra.mxu0 %v14594_v37  ;;  %7667 = vmatpush1.bf16.msra.mxu1 %v14596_v24  ;;  %v14648_v37 = vcombine.low %v7751_v31, %v7755_v3  ;;  %v14655_v24 = vcombine.high %v7758_v50, %v7762_v17  ;;  %v18557_v31 = vld [vmem:[#allocation36_spill] sm:$0xff] }
 0x521   :  { %7615 = vmatprep.subr.bf16.mxu0 %v14603_v7  ;;  %7668 = vmatprep.subr.bf16.mxu1 %v14605_v30  ;;  %v7770_v7 = vld [vmem:[#allocation8 + $0x10a0] sm:$0xff]  ;;  %v7767_v30 = vld [vmem:[#allocation8 + $0x1088] sm:$0xff]  ;;  %v17674_v3 = vunpack.c.h.b16 %v18557_v31  ;;  %v7866_v21 = vrot.slane %v17671_v8, 4 }
 0x522   :  { %v14663_v63 = vcombine.high %v7766_v1, %v7770_v7  ;;  %v14665_v56 = vcombine.high %v7767_v30, %v7771_v46  ;;  %v14662_v34 = vcombine.low %v7766_v1, %v7770_v7  ;;  %v14664_v61 = vcombine.low %v7767_v30, %v7771_v46  ;;  %v18564_v7 = vld [vmem:[#allocation43_spill] sm:$0xff]  ;;  %v18566_v46 = vld [vmem:[#allocation44_spill] sm:$0xff] }
 0x523   :  { %7548 = vmatmul.mubr.bf16.gmra.mrb[36].mxu0 %v17616_v18  ;;  %7601 = vmatmul.mubr.bf16.gmra.mrb[68].mxu1 %v17616_v18  ;;  %v17695_v30 = vunpack.c.h.b16 %v18564_v7  ;;  %v18572_v31 = vld [vmem:[#allocation52_spill] sm:$0xff] }
 0x524   :  { %7616 = vmatpush1.bf16.msra.mxu0 %v14602_v43  ;;  %7669 = vmatpush1.bf16.msra.mxu1 %v14604_v39  ;;  %v7778_v43 = vld [vmem:[#allocation8 + $0x10e0] sm:$0xff]  ;;  %v7775_v39 = vld [vmem:[#allocation8 + $0x10c8] sm:$0xff] }
 0x525   :  { %7617 = vmatprep.subr.bf16.mxu0 %v14611_v40  ;;  %7670 = vmatprep.subr.bf16.mxu1 %v14613_v27  ;;  %v7779_v40 = vld [vmem:[#allocation8 + $0x10e8] sm:$0xff]  ;;  %v18540_v27 = vld [vmem:[#allocation21_spill] sm:$0xff]  ;;  %v14671_v5 = vcombine.high %v17624_v22, %v7778_v43  ;;  %18565 = vst [vmem:[#allocation37_spill] sm:$0xff] %v17695_v30 }
 0x526   :  { %7643 = vmatprep.mubr.bf16.mxu0 %v18514_v59  ;;  %7696 = vmatprep.mubr.bf16.mxu1 %v18514_v59  ;;  %v17629_v9 = vunpack.c.h.b16 %v18540_v27  ;;  %v14673_v52 = vcombine.high %v7775_v39, %v7779_v40  ;;  %v14672_v50 = vcombine.low %v7775_v39, %v7779_v40  ;;  %v18568_v40 = vld [vmem:[#allocation48_spill] sm:$0xff] }
 0x527   :  { %v17707_v27 = vunpack.c.h.b16 %v18568_v40 }
 0x528   :  { %7618 = vmatpush1.bf16.msra.mxu0 %v14610_v23  ;;  %7671 = vmatpush1.bf16.msra.mxu1 %v14612_v38  ;;  %v18543_v23 = vld [vmem:[#allocation24_spill] sm:$0xff] }
 0x529   :  { %7619 = vmatprep.subr.bf16.mxu0 %v14619_v57  ;;  %7672 = vmatprep.subr.bf16.mxu1 %v14621_v48  ;;  %v17638_v38 = vunpack.c.h.b16 %v18543_v23  ;;  %v18544_v57 = vld [vmem:[#allocation25_spill] sm:$0xff] }
 0x52a   :  { %v17641_v48 = vunpack.c.h.b16 %v18544_v57  ;;  %v14678_v57 = vcombine.low %v17653_v55, %v7786_v33 }
 0x52b   :  { %v7848_v17 = vrot.slane %v17638_v38, 6 }
 0x52c   :  { %7620 = vmatpush1.bf16.msra.mxu0 %v14618_v35  ;;  %7673 = vmatpush1.bf16.msra.mxu1 %v14620_v49  ;;  %18545 = vst [vmem:[#allocation55_spill] sm:$0xff] %v17641_v48  ;;  %v18547_v35 = vld [vmem:[#allocation27_spill] sm:$0xff] }
 0x52d   :  { %7621 = vmatprep.subr.bf16.mxu0 %v14627_v53  ;;  %7674 = vmatprep.subr.bf16.mxu1 %v14629_v2  ;;  %v17647_v49 = vunpack.c.h.b16 %v18547_v35  ;;  %v18549_v53 = vld [vmem:[#allocation29_spill] sm:$0xff] }
 0x52e   :  { %v17650_v2 = vunpack.c.h.b16 %v18549_v53 }
 0x52f   :  { %18548 = vst [vmem:[#allocation54_spill] sm:$0xff] %v17647_v49 }
 0x530   :  { %7622 = vmatpush1.bf16.msra.mxu0 %v14626_v45  ;;  %7675 = vmatpush1.bf16.msra.mxu1 %v14628_v51  ;;  %v17656_v45 = vunpack.c.h.b16 %v18550_v12  ;;  %v18551_v51 = vld [vmem:[#allocation30_spill] sm:$0xff] }
 0x531   :  { %7623 = vmatprep.subr.bf16.mxu0 %v14635_v54  ;;  %7676 = vmatprep.subr.bf16.mxu1 %v14637_v36  ;;  %v17659_v54 = vunpack.c.h.b16 %v18551_v51  ;;  %v18552_v36 = vld [vmem:[#allocation31_spill] sm:$0xff]  ;;  %v18570_v51 = vld [vmem:[#allocation50_spill] sm:$0xff] }
 0x532   :  { %v17662_v13 = vunpack.c.h.b16 %v18552_v36  ;;  %v17722_v36 = vunpack.c.h.b16 %v18570_v51 }
 0x534   :  { %7624 = vmatpush1.bf16.msra.mxu0 %v14634_v0  ;;  %7677 = vmatpush1.bf16.msra.mxu1 %v14636_v15  ;;  %v7783_v0 = vld [vmem:[#allocation8 + $0x1108] sm:$0xff] }
 0x535   :  { %7625 = vmatprep.subr.bf16.mxu0 %v14643_v14  ;;  %7678 = vmatprep.subr.bf16.mxu1 %v14645_v16  ;;  %v7787_v15 = vld [vmem:[#allocation8 + $0x1128] sm:$0xff]  ;;  %v18554_v14 = vld [vmem:[#allocation33_spill] sm:$0xff] }
 0x536   :  { %v17668_v16 = vunpack.c.h.b16 %v18554_v14  ;;  %v14680_v60 = vcombine.low %v7783_v0, %v7787_v15 }
 0x538   :  { %7626 = vmatpush1.bf16.msra.mxu0 %v14642_v42  ;;  %7679 = vmatpush1.bf16.msra.mxu1 %v14644_v41  ;;  %18555 = vst [vmem:[#allocation53_spill] sm:$0xff] %v17668_v16  ;;  %v7846_v42 = vrot.slane %v17629_v9, 7  ;;  %v18558_v41 = vld [vmem:[#allocation38_spill] sm:$0xff] }
 0x539   :  { %8226 = vmatprep.subr.bf16.mxu0 %v14647_v47  ;;  %8279 = vmatprep.subr.bf16.mxu1 %v14649_v62  ;;  %v17680_v47 = vunpack.c.h.b16 %v18558_v41  ;;  %v14670_v62 = vcombine.low %v17624_v22, %v7778_v43  ;;  %v7862_v22 = vrot.slane %v17665_v26, 6  ;;  %v18567_v43 = vld [vmem:[#allocation46_spill] sm:$0xff]  ;;  %v18574_v41 = vld [vmem:[#allocation56_spill] sm:$0xff] }
 0x53a   :  { %v17704_v39 = vunpack.c.h.b16 %v18567_v43  ;;  %v7854_v43 = vrot.slane %v17641_v48, 3 }
 0x53b   :  { %7644 = vmatmul.mubr.bf16.vlgmr.msra.gmra.mrb[40].mxu0 %v17600_v58  ;;  %7697 = vmatmul.mubr.bf16.vlgmr.msra.gmra.mrb[72].mxu1 %v17600_v58  ;;  %v18541_v58 = vld [vmem:[#allocation22_spill] sm:$0xff]  ;;  %18559 = vst [vmem:[#allocation35_spill] sm:$0xff] %v17680_v47 }
 0x53c   :  { %8227 = vmatpush1.bf16.msra.mxu0 %v14646_v6  ;;  %8280 = vmatpush1.bf16.msra.mxu1 %v14648_v37  ;;  %v17632_v28 = vunpack.c.h.b16 %v18541_v58  ;;  %v14679_v6 = vcombine.high %v17653_v55, %v7786_v33  ;;  %v17688_v37 = vld [vmem:[#allocation8 + $0x1140] sm:$0xff]  ;;  %v18569_v58 = vld [vmem:[#allocation49_spill] sm:$0xff] }
 0x53d   :  { %8228 = vmatprep.subr.bf16.mxu0 %v14655_v24  ;;  %8281 = vmatprep.subr.bf16.mxu1 %v14657_v4  ;;  %v7860_v24 = vrot.slane %v17650_v2, 7  ;;  %v18562_v4 = vld [vmem:[#allocation42_spill] sm:$0xff]  ;;  %v17710_v20 = vunpack.c.h.b16 %v18569_v58  ;;  %v18571_v55 = vld [vmem:[#allocation51_spill] sm:$0xff] }
 0x53e   :  { %7653 = vmatprep.mubr.bf16.mxu0 %v18514_v59  ;;  %7706 = vmatprep.mubr.bf16.mxu1 %v18514_v59  ;;  %v17692_v1 = vunpack.c.h.b16 %v18562_v4  ;;  %v7847_v23 = vsel %vm2328_vm3, %v7846_v42, %v17632_v28  ;;  %v17725_v25 = vunpack.c.h.b16 %v18571_v55  ;;  %v7802_v33 = vld [vmem:[#allocation8 + $0x11a0] sm:$0xff]  ;;  %v17730_v42 = vunpack.c.h.b16 %v18572_v31 }
 0x53f   :  { %v7861_v12 = vsel %vm2328_vm3, %v7860_v24, %v17659_v54  ;;  %v7810_v58 = vld [vmem:[#allocation8 + $0x11e0] sm:$0xff]  ;;  %v7858_v31 = vrot.slane %v17647_v49, 1 }
 0x540   :  { %8229 = vmatpush1.bf16.msra.mxu0 %v14654_v32  ;;  %8282 = vmatpush1.bf16.msra.mxu1 %v14656_v29  ;;  %18563 = vst [vmem:[#allocation39_spill] sm:$0xff] %v17692_v1  ;;  %v17698_v32 = vunpack.c.h.b16 %v18566_v46  ;;  %v7794_v29 = vld [vmem:[#allocation8 + $0x1160] sm:$0xff]  ;;  %v7863_v14 = vsel %vm2331_vm4, %v7862_v22, %v7861_v12  ;;  %18573 = vst [vmem:[#allocation21_spill] sm:$0xff] %v17730_v42 }
 0x541   :  { %8230 = vmatprep.subr.bf16.mxu0 %v14663_v63  ;;  %8283 = vmatprep.subr.bf16.mxu1 %v14665_v56  ;;  %v7791_v63 = vld [vmem:[#allocation8 + $0x1148] sm:$0xff]  ;;  %v14687_v35 = vcombine.high %v17688_v37, %v7794_v29  ;;  %v7806_v22 = vld [vmem:[#allocation8 + $0x11c0] sm:$0xff] }
 0x542   :  { %v7795_v56 = vld [vmem:[#allocation8 + $0x1168] sm:$0xff]  ;;  %v7876_v55 = vrot.slane %v17698_v32, 6 }
 0x543   :  { %7654 = vmatmul.mubr.bf16.gmra.mrb[44].mxu0 %v17616_v18  ;;  %7707 = vmatmul.mubr.bf16.gmra.mrb[76].mxu1 %v17616_v18  ;;  %v14681_v18 = vcombine.high %v7783_v0, %v7787_v15  ;;  %v14689_v53 = vcombine.high %v7791_v63, %v7795_v56  ;;  %v7799_v0 = vld [vmem:[#allocation8 + $0x1188] sm:$0xff]  ;;  %v14688_v24 = vcombine.low %v7791_v63, %v7795_v56 }
 0x544   :  { %8231 = vmatpush1.bf16.msra.mxu0 %v14662_v34  ;;  %8284 = vmatpush1.bf16.msra.mxu1 %v14664_v61  ;;  %v7849_v34 = vsel %vm2331_vm4, %v7848_v17, %v7847_v23  ;;  %v7852_v61 = vrot.slane %v17644_v44, 4  ;;  %v7803_v15 = vld [vmem:[#allocation8 + $0x11a8] sm:$0xff]  ;;  %v7864_v17 = vrot.slane %v17662_v13, 5 }
 0x545   :  { %8232 = vmatprep.subr.bf16.mxu0 %v14671_v5  ;;  %8285 = vmatprep.subr.bf16.mxu1 %v14673_v52  ;;  %v7798_v5 = vld [vmem:[#allocation8 + $0x1180] sm:$0xff]  ;;  %v7850_v52 = vrot.slane %v17635_v11, 5  ;;  %v14697_v46 = vcombine.high %v7799_v0, %v7803_v15  ;;  %v7807_v23 = vld [vmem:[#allocation8 + $0x11c8] sm:$0xff]  ;;  %v14696_v12 = vcombine.low %v7799_v0, %v7803_v15  ;;  %v7753_v0 = vld [vmem:[#allocation8 + $0x1018] sm:$0xff] }
 0x546   :  { %8258 = vmatprep.mubr.bf16.mxu0 %v18514_v59  ;;  %8311 = vmatprep.mubr.bf16.mxu1 %v18514_v59  ;;  %v14695_v7 = vcombine.high %v7798_v5, %v7802_v33  ;;  %v7865_v40 = vsel %vm2334_vm5, %v7864_v17, %v7863_v14  ;;  %v18576_v63 = vld [vmem:[#allocation59_spill] sm:$0xff]  ;;  %v14703_v14 = vcombine.high %v7806_v22, %v7810_v58  ;;  %v7757_v15 = vld [vmem:[#allocation8 + $0x1038] sm:$0xff] }
 0x547   :  { %v17749_v56 = vunpack.c.h.b16 %v18576_v63  ;;  %v14653_v63 = vcombine.high %v7753_v0, %v7757_v15 }
 0x548   :  { %8233 = vmatpush1.bf16.msra.mxu0 %v14670_v62  ;;  %8286 = vmatpush1.bf16.msra.mxu1 %v14672_v50  ;;  %v17733_v62 = vunpack.c.h.b16 %v18574_v41  ;;  %v7851_v50 = vsel %vm2334_vm5, %v7850_v52, %v7849_v34  ;;  %v7811_v34 = vld [vmem:[#allocation8 + $0x11e8] sm:$0xff]  ;;  %v14694_v52 = vcombine.low %v7798_v5, %v7802_v33  ;;  %v7872_v5 = vrot.slane %v17674_v3, 1  ;;  %v7756_v33 = vld [vmem:[#allocation8 + $0x1030] sm:$0xff] }
 0x549   :  { %8234 = vmatprep.subr.bf16.mxu0 %v14679_v6  ;;  %8287 = vmatprep.subr.bf16.mxu1 %v14681_v18  ;;  %v17738_v6 = vunpack.c.h.b16 %v18575_v10  ;;  %v14686_v18 = vcombine.low %v17688_v37, %v7794_v29  ;;  %v7853_v4 = vsel %vm2337_vm6, %v7852_v61, %v7851_v50  ;;  %v7870_v37 = vrot.slane %v17680_v47, 2  ;;  %v7752_v50 = vld [vmem:[#allocation8 + $0x1010] sm:$0xff] }
 0x54a   :  { %v7888_v29 = vrot.slane %v17710_v20, 7  ;;  %v7868_v61 = vrot.slane %v17668_v16, 3  ;;  %v7855_v51 = vsel %vm2340_vm7, %v7854_v43, %v7853_v4  ;;  %v7878_v4 = vrot.slane %v17695_v30, 5 }
 0x54b   :  { %v14702_v43 = vcombine.low %v7806_v22, %v7810_v58  ;;  %v7764_v22 = vld [vmem:[#allocation8 + $0x1070] sm:$0xff]  ;;  %v7761_v58 = vld [vmem:[#allocation8 + $0x1058] sm:$0xff] }
 0x54c   :  { %8235 = vmatpush1.bf16.msra.mxu0 %v14678_v57  ;;  %8288 = vmatpush1.bf16.msra.mxu1 %v14680_v60  ;;  %v7856_v57 = vrot.slane %v17656_v45, 2  ;;  %v7867_v60 = vsel %vm2337_vm6, %v7866_v21, %v7865_v40  ;;  %v14705_v21 = vcombine.high %v7807_v23, %v7811_v34  ;;  %v14704_v40 = vcombine.low %v7807_v23, %v7811_v34  ;;  %v7765_v23 = vld [vmem:[#allocation8 + $0x1078] sm:$0xff] }
 0x54d   :  { %8236 = vmatprep.subr.bf16.mxu0 %v14687_v35  ;;  %8289 = vmatprep.subr.bf16.mxu1 %v14689_v53  ;;  %v7874_v35 = vrot.slane %v17685_v19, 7  ;;  %v7890_v53 = vrot.slane %v17730_v42, 6  ;;  %v7869_v41 = vsel %vm2340_vm7, %v7868_v61, %v7867_v60  ;;  %v7892_v60 = vrot.slane %v17725_v25, 5  ;;  %v7760_v61 = vld [vmem:[#allocation8 + $0x1050] sm:$0xff] }
 0x54e   :  { %v7857_v17 = vsel %vm2343_vm8, %v7856_v57, %v7855_v51  ;;  %v7871_v10 = vsel %vm2343_vm8, %v7870_v37, %v7869_v41  ;;  %v7898_v41 = vrot.slane %v17749_v56, 2 }
 0x54f   :  { %v7873_v37 = vsel %vm2346_vm9, %v7872_v5, %v7871_v10  ;;  %v14650_v5 = vcombine.low %v7752_v50, %v7756_v33 }
 0x550   :  { %8237 = vmatpush1.bf16.msra.mxu0 %v14686_v18  ;;  %8290 = vmatpush1.bf16.msra.mxu1 %v14688_v24  ;;  %v7889_v18 = vsel %vm2328_vm3, %v7888_v29, %v17722_v36  ;;  %v7875_v24 = vsel %vm2328_vm3, %v7874_v35, %v17692_v1  ;;  %v14651_v29 = vcombine.high %v7752_v50, %v7756_v33  ;;  %v7880_v35 = vrot.slane %v17704_v39, 4  ;;  %v7772_v50 = vld [vmem:[#allocation8 + $0x10b0] sm:$0xff]  ;;  %v7769_v33 = vld [vmem:[#allocation8 + $0x1098] sm:$0xff] }
 0x551   :  { %8238 = vmatprep.subr.bf16.mxu0 %v14695_v7  ;;  %8291 = vmatprep.subr.bf16.mxu1 %v14697_v46  ;;  %v7891_v7 = vsel %vm2331_vm4, %v7890_v53, %v7889_v18  ;;  %v7894_v46 = vrot.slane %v17738_v6, 4  ;;  %v7877_v57 = vsel %vm2331_vm4, %v7876_v55, %v7875_v24  ;;  %v18577_v53 = vld [vmem:[#allocation45_spill] sm:$0xff]  ;;  %v7859_v55 = vsel %vm2346_vm9, %v7858_v31, %v7857_v17 }
 0x552   :  { %v17773_v51 = vunpack.c.h.b16 %v18577_v53  ;;  %v7893_v34 = vsel %vm2334_vm5, %v7892_v60, %v7891_v7  ;;  %v17783_v10 = vpack.c.b16 %v7873_v37, %v7859_v55  ;;  %v14652_v18 = vcombine.low %v7753_v0, %v7757_v15  ;;  %v7773_v0 = vld [vmem:[#allocation8 + $0x10b8] sm:$0xff]  ;;  %v7776_v55 = vld [vmem:[#allocation8 + $0x10d0] sm:$0xff] }
 0x553   :  { %v7896_v24 = vrot.slane %v17733_v62, 3  ;;  %v14659_v53 = vcombine.high %v7760_v61, %v7764_v22  ;;  %v14661_v7 = vcombine.high %v7761_v58, %v7765_v23  ;;  %v7884_v17 = vrot.slane %v17707_v27, 2 }
 0x554   :  { %8239 = vmatpush1.bf16.msra.mxu0 %v14694_v52  ;;  %8292 = vmatpush1.bf16.msra.mxu1 %v14696_v12  ;;  %v18578_v52 = vld [vmem:[#allocation58_spill] sm:$0xff]  ;;  %v14658_v60 = vcombine.low %v7760_v61, %v7764_v22  ;;  %v14660_v37 = vcombine.low %v7761_v58, %v7765_v23  ;;  %v7780_v22 = vld [vmem:[#allocation8 + $0x10f0] sm:$0xff] }
 0x555   :  { %8240 = vmatprep.subr.bf16.mxu0 %v14703_v14  ;;  %8293 = vmatprep.subr.bf16.mxu1 %v14705_v21  ;;  %v17776_v12 = vunpack.c.h.b16 %v18578_v52  ;;  %v7879_v14 = vsel %vm2334_vm5, %v7878_v4, %v7877_v57  ;;  %v7895_v21 = vsel %vm2337_vm6, %v7894_v46, %v7893_v34  ;;  %v7768_v4 = vld [vmem:[#allocation8 + $0x1090] sm:$0xff]  ;;  %v18579_v46 = vld [vmem:[#allocation47_spill] sm:$0xff]  ;;  %v14669_v34 = vcombine.high %v7769_v33, %v7773_v0  ;;  %v7777_v58 = vld [vmem:[#allocation8 + $0x10d8] sm:$0xff] }
 0x556   :  { %v7881_v31 = vsel %vm2337_vm6, %v7880_v35, %v7879_v14  ;;  %v17789_v57 = vunpack.c.h.b16 %v18579_v46  ;;  %v14667_v52 = vcombine.high %v7768_v4, %v7772_v50  ;;  %v7781_v23 = vld [vmem:[#allocation8 + $0x10f8] sm:$0xff] }
 0x557   :  { %v7789_v46 = vld [vmem:[#allocation8 + $0x1138] sm:$0xff] }
 0x558   :  { %8241 = vmatpush1.bf16.msra.mxu0 %v14702_v43  ;;  %8294 = vmatpush1.bf16.msra.mxu1 %v14704_v40  ;;  %v7882_v43 = vrot.slane %v17773_v51, 3  ;;  %v7897_v40 = vsel %vm2340_vm7, %v7896_v24, %v7895_v21  ;;  %v7886_v14 = vrot.slane %v17789_v57, 1  ;;  %v14675_v24 = vcombine.high %v7776_v55, %v7780_v22 }
 0x559   :  { %8332 = vmatprep.subr.bf16.mxu0 %v14651_v29  ;;  %8385 = vmatprep.subr.bf16.mxu1 %v14653_v63  ;;  %v7899_v15 = vsel %vm2343_vm8, %v7898_v41, %v7897_v40  ;;  %v7900_v63 = vrot.slane %v17776_v12, 1  ;;  %v14666_v41 = vcombine.low %v7768_v4, %v7772_v50  ;;  %v14676_v40 = vcombine.low %v7777_v58, %v7781_v23 }
 0x55a   :  { %v7883_v29 = vsel %vm2340_vm7, %v7882_v43, %v7881_v31  ;;  %v7788_v31 = vld [vmem:[#allocation8 + $0x1130] sm:$0xff]  ;;  %v14674_v43 = vcombine.low %v7776_v55, %v7780_v22  ;;  %v7801_v55 = vld [vmem:[#allocation8 + $0x1198] sm:$0xff] }
 0x55b   :  { %8259 = vmatmul.mubr.bf16.vlgmr.msra.gmra.mrb[32].mxu0 %v17783_v10  ;;  %8312 = vmatmul.mubr.bf16.vlgmr.msra.gmra.mrb[64].mxu1 %v17783_v10  ;;  %v7885_v35 = vsel %vm2343_vm8, %v7884_v17, %v7883_v29  ;;  %v7901_v61 = vsel %vm2346_vm9, %v7900_v63, %v7899_v15  ;;  %v7785_v17 = vld [vmem:[#allocation8 + $0x1118] sm:$0xff] }
 0x55c   :  { %8333 = vmatpush1.bf16.msra.mxu0 %v14650_v5  ;;  %8386 = vmatpush1.bf16.msra.mxu1 %v14652_v18  ;;  %v7887_v21 = vsel %vm2346_vm9, %v7886_v14, %v7885_v35  ;;  %v14668_v5 = vcombine.low %v7769_v33, %v7773_v0  ;;  %v14685_v50 = vcombine.high %v7785_v17, %v7789_v46  ;;  %v7792_v33 = vld [vmem:[#allocation8 + $0x1150] sm:$0xff]  ;;  %v7793_v15 = vld [vmem:[#allocation8 + $0x1158] sm:$0xff] }
 0x55d   :  { %8334 = vmatprep.subr.bf16.mxu0 %v14659_v53  ;;  %8387 = vmatprep.subr.bf16.mxu1 %v14661_v7  ;;  %v17804_v18 = vpack.c.b16 %v7901_v61, %v7887_v21  ;;  %v14677_v53 = vcombine.high %v7777_v58, %v7781_v23  ;;  %v7784_v7 = vld [vmem:[#allocation8 + $0x1110] sm:$0xff]  ;;  %v14684_v29 = vcombine.low %v7785_v17, %v7789_v46  ;;  %v7805_v14 = vld [vmem:[#allocation8 + $0x11b8] sm:$0xff]  ;;  %v8471_v46 = vld [vmem:[#allocation8 + $0x1200] sm:$0xff] }
 0x55e   :  { %8268 = vmatprep.mubr.bf16.mxu0 %v18514_v59  ;;  %8321 = vmatprep.mubr.bf16.mxu1 %v18514_v59  ;;  %v14683_v4 = vcombine.high %v7784_v7, %v7788_v31  ;;  %v7796_v0 = vld [vmem:[#allocation8 + $0x1170] sm:$0xff]  ;;  %v14701_v23 = vcombine.high %v7801_v55, %v7805_v14 }
 0x55f   :  { %v14691_v63 = vcombine.high %v7792_v33, %v7796_v0  ;;  %v14690_v61 = vcombine.low %v7792_v33, %v7796_v0  ;;  %v7808_v21 = vld [vmem:[#allocation8 + $0x11d0] sm:$0xff] }
 0x560   :  { %8335 = vmatpush1.bf16.msra.mxu0 %v14658_v60  ;;  %8388 = vmatpush1.bf16.msra.mxu1 %v14660_v37  ;;  %v7797_v60 = vld [vmem:[#allocation8 + $0x1178] sm:$0xff]  ;;  %v14682_v37 = vcombine.low %v7784_v7, %v7788_v31  ;;  %v14700_v7 = vcombine.low %v7801_v55, %v7805_v14  ;;  %v8487_v14 = vld [vmem:[#allocation8 + $0x1280] sm:$0xff] }
 0x561   :  { %8336 = vmatprep.subr.bf16.mxu0 %v14667_v52  ;;  %8389 = vmatprep.subr.bf16.mxu1 %v14669_v34  ;;  %v14693_v35 = vcombine.high %v7793_v15, %v7797_v60  ;;  %v7800_v52 = vld [vmem:[#allocation8 + $0x1190] sm:$0xff]  ;;  %v14692_v22 = vcombine.low %v7793_v15, %v7797_v60  ;;  %v8479_v60 = vld [vmem:[#allocation8 + $0x1240] sm:$0xff] }
 0x562   :  { %v7804_v34 = vld [vmem:[#allocation8 + $0x11b0] sm:$0xff] }
 0x563   :  { %8269 = vmatmul.mubr.bf16.gmra.mrb[36].mxu0 %v17804_v18  ;;  %8322 = vmatmul.mubr.bf16.gmra.mrb[68].mxu1 %v17804_v18  ;;  %v14699_v58 = vcombine.high %v7800_v52, %v7804_v34 }
 0x564   :  { %8337 = vmatpush1.bf16.msra.mxu0 %v14666_v41  ;;  %8390 = vmatpush1.bf16.msra.mxu1 %v14668_v5  ;;  %v7812_v41 = vld [vmem:[#allocation8 + $0x11f0] sm:$0xff]  ;;  %v7809_v5 = vld [vmem:[#allocation8 + $0x11d8] sm:$0xff] }
 0x565   :  { %8338 = vmatprep.subr.bf16.mxu0 %v14675_v24  ;;  %8391 = vmatprep.subr.bf16.mxu1 %v14677_v53  ;;  %v7813_v24 = vld [vmem:[#allocation8 + $0x11f8] sm:$0xff]  ;;  %v14698_v53 = vcombine.low %v7800_v52, %v7804_v34  ;;  %v14707_v31 = vcombine.high %v7808_v21, %v7812_v41 }
 0x566   :  { %8364 = vmatprep.mubr.bf16.mxu0 %v18514_v59  ;;  %8417 = vmatprep.mubr.bf16.mxu1 %v18514_v59  ;;  %v14709_v17 = vcombine.high %v7809_v5, %v7813_v24  ;;  %v14708_v33 = vcombine.low %v7809_v5, %v7813_v24  ;;  %v8495_v24 = vld [vmem:[#allocation8 + $0x12c0] sm:$0xff] }
 0x568   :  { %8339 = vmatpush1.bf16.msra.mxu0 %v14674_v43  ;;  %8392 = vmatpush1.bf16.msra.mxu1 %v14676_v40  ;;  %v8475_v43 = vld [vmem:[#allocation8 + $0x1220] sm:$0xff]  ;;  %v8472_v40 = vld [vmem:[#allocation8 + $0x1208] sm:$0xff] }
 0x569   :  { %8340 = vmatprep.subr.bf16.mxu0 %v14683_v4  ;;  %8393 = vmatprep.subr.bf16.mxu1 %v14685_v50  ;;  %v8476_v4 = vld [vmem:[#allocation8 + $0x1228] sm:$0xff]  ;;  %v14706_v50 = vcombine.low %v7808_v21, %v7812_v41  ;;  %v14711_v0 = vcombine.high %v8471_v46, %v8475_v43 }
 0x56a   :  { %v14713_v15 = vcombine.high %v8472_v40, %v8476_v4  ;;  %v14712_v52 = vcombine.low %v8472_v40, %v8476_v4  ;;  %v8503_v40 = vld [vmem:[#allocation8 + $0x1300] sm:$0xff] }
 0x56b   :  { %v8507_v4 = vld [vmem:[#allocation8 + $0x1320] sm:$0xff] }
 0x56c   :  { %8341 = vmatpush1.bf16.msra.mxu0 %v14682_v37  ;;  %8394 = vmatpush1.bf16.msra.mxu1 %v14684_v29  ;;  %v8483_v37 = vld [vmem:[#allocation8 + $0x1260] sm:$0xff]  ;;  %v8480_v29 = vld [vmem:[#allocation8 + $0x1248] sm:$0xff] }
 0x56d   :  { %8342 = vmatprep.subr.bf16.mxu0 %v14691_v63  ;;  %8395 = vmatprep.subr.bf16.mxu1 %v14693_v35  ;;  %v8484_v63 = vld [vmem:[#allocation8 + $0x1268] sm:$0xff]  ;;  %v14710_v35 = vcombine.low %v8471_v46, %v8475_v43  ;;  %v14719_v34 = vcombine.high %v8479_v60, %v8483_v37 }
 0x56e   :  { %v14721_v55 = vcombine.high %v8480_v29, %v8484_v63  ;;  %v14720_v21 = vcombine.low %v8480_v29, %v8484_v63  ;;  %v8511_v63 = vld [vmem:[#allocation8 + $0x1340] sm:$0xff] }
 0x570   :  { %8343 = vmatpush1.bf16.msra.mxu0 %v14690_v61  ;;  %8396 = vmatpush1.bf16.msra.mxu1 %v14692_v22  ;;  %v8491_v61 = vld [vmem:[#allocation8 + $0x12a0] sm:$0xff]  ;;  %v8488_v22 = vld [vmem:[#allocation8 + $0x1288] sm:$0xff] }
 0x571   :  { %8344 = vmatprep.subr.bf16.mxu0 %v14699_v58  ;;  %8397 = vmatprep.subr.bf16.mxu1 %v14701_v23  ;;  %v8492_v58 = vld [vmem:[#allocation8 + $0x12a8] sm:$0xff]  ;;  %v14718_v23 = vcombine.low %v8479_v60, %v8483_v37  ;;  %v14727_v41 = vcombine.high %v8487_v14, %v8491_v61  ;;  %v8549_v60 = vrot.slane %v17659_v54, 1  ;;  %v14743_v37 = vcombine.high %v8503_v40, %v8507_v4 }
 0x572   :  { %v14729_v5 = vcombine.high %v8488_v22, %v8492_v58 }
 0x574   :  { %8345 = vmatpush1.bf16.msra.mxu0 %v14698_v53  ;;  %8398 = vmatpush1.bf16.msra.mxu1 %v14700_v7  ;;  %v8499_v53 = vld [vmem:[#allocation8 + $0x12e0] sm:$0xff]  ;;  %v8496_v7 = vld [vmem:[#allocation8 + $0x12c8] sm:$0xff] }
 0x575   :  { %8346 = vmatprep.subr.bf16.mxu0 %v14707_v31  ;;  %8399 = vmatprep.subr.bf16.mxu1 %v14709_v17  ;;  %v8500_v31 = vld [vmem:[#allocation8 + $0x12e8] sm:$0xff]  ;;  %v14726_v17 = vcombine.low %v8487_v14, %v8491_v61  ;;  %v14735_v46 = vcombine.high %v8495_v24, %v8499_v53  ;;  %v8537_v14 = vrot.slane %v17638_v38, 7  ;;  %v14742_v61 = vcombine.low %v8503_v40, %v8507_v4 }
 0x576   :  { %v14737_v43 = vcombine.high %v8496_v7, %v8500_v31 }
 0x578   :  { %8347 = vmatpush1.bf16.msra.mxu0 %v14706_v50  ;;  %8400 = vmatpush1.bf16.msra.mxu1 %v14708_v33  ;;  %v8504_v50 = vld [vmem:[#allocation8 + $0x1308] sm:$0xff] }
 0x579   :  { %8915 = vmatprep.subr.bf16.mxu0 %v14711_v0  ;;  %8968 = vmatprep.subr.bf16.mxu1 %v14713_v15  ;;  %v8508_v33 = vld [vmem:[#allocation8 + $0x1328] sm:$0xff]  ;;  %v14734_v0 = vcombine.low %v8495_v24, %v8499_v53  ;;  %v14736_v15 = vcombine.low %v8496_v7, %v8500_v31  ;;  %v8555_v24 = vrot.slane %v17671_v8, 5  ;;  %v8523_v53 = vld [vmem:[#allocation8 + $0x13a0] sm:$0xff] }
 0x57a   :  { %v14745_v29 = vcombine.high %v8504_v50, %v8508_v33  ;;  %v8520_v7 = vld [vmem:[#allocation8 + $0x1388] sm:$0xff] }
 0x57b   :  { %8365 = vmatmul.mubr.bf16.vlgmr.msra.gmra.mrb[40].mxu0 %v17783_v10  ;;  %8418 = vmatmul.mubr.bf16.vlgmr.msra.gmra.mrb[72].mxu1 %v17783_v10  ;;  %v14728_v10 = vcombine.low %v8488_v22, %v8492_v58  ;;  %v14744_v22 = vcombine.low %v8504_v50, %v8508_v33  ;;  %v8550_v58 = vsel %vm2328_vm3, %v17650_v2, %v8549_v60  ;;  %v8524_v31 = vld [vmem:[#allocation8 + $0x13a8] sm:$0xff]  ;;  %v8539_v50 = vrot.slane %v17635_v11, 6  ;;  %v8527_v60 = vld [vmem:[#allocation8 + $0x13c0] sm:$0xff] }
 0x57c   :  { %8916 = vmatpush1.bf16.msra.mxu0 %v14710_v35  ;;  %8969 = vmatpush1.bf16.msra.mxu1 %v14712_v52  ;;  %v8551_v35 = vrot.slane %v17665_v26, 7  ;;  %v8515_v52 = vld [vmem:[#allocation8 + $0x1360] sm:$0xff] }
 0x57d   :  { %8917 = vmatprep.subr.bf16.mxu0 %v14719_v34  ;;  %8970 = vmatprep.subr.bf16.mxu1 %v14721_v55  ;;  %v8512_v34 = vld [vmem:[#allocation8 + $0x1348] sm:$0xff]  ;;  %v14750_v40 = vcombine.low %v8511_v63, %v8515_v52 }
 0x57e   :  { %8374 = vmatprep.mubr.bf16.mxu0 %v18514_v59  ;;  %8427 = vmatprep.mubr.bf16.mxu1 %v18514_v59  ;;  %v8516_v55 = vld [vmem:[#allocation8 + $0x1368] sm:$0xff] }
 0x57f   :  { %v14752_v4 = vcombine.low %v8512_v34, %v8516_v55 }
 0x580   :  { %8918 = vmatpush1.bf16.msra.mxu0 %v14718_v23  ;;  %8971 = vmatpush1.bf16.msra.mxu1 %v14720_v21  ;;  %v14751_v23 = vcombine.high %v8511_v63, %v8515_v52  ;;  %v14753_v21 = vcombine.high %v8512_v34, %v8516_v55  ;;  %v8557_v63 = vrot.slane %v17668_v16, 4  ;;  %v8577_v52 = vrot.slane %v17722_v36, 1 }
 0x581   :  { %8919 = vmatprep.subr.bf16.mxu0 %v14727_v41  ;;  %8972 = vmatprep.subr.bf16.mxu1 %v14729_v5  ;;  %v8519_v41 = vld [vmem:[#allocation8 + $0x1380] sm:$0xff]  ;;  %v8552_v5 = vsel %vm2331_vm4, %v8551_v35, %v8550_v58  ;;  %v8545_v55 = vrot.slane %v17656_v45, 3  ;;  %v8579_v58 = vrot.slane %v17730_v42, 7 }
 0x582   :  { %v8531_v35 = vld [vmem:[#allocation8 + $0x13e0] sm:$0xff] }
 0x583   :  { %8375 = vmatmul.mubr.bf16.gmra.mrb[44].mxu0 %v17804_v18  ;;  %8428 = vmatmul.mubr.bf16.gmra.mrb[76].mxu1 %v17804_v18  ;;  %v8535_v18 = vrot.slane %v17632_v28, 1 }
 0x584   :  { %8920 = vmatpush1.bf16.msra.mxu0 %v14726_v17  ;;  %8973 = vmatpush1.bf16.msra.mxu1 %v14728_v10  ;;  %v8553_v10 = vrot.slane %v17662_v13, 6 }
 0x585   :  { %8921 = vmatprep.subr.bf16.mxu0 %v14735_v46  ;;  %8974 = vmatprep.subr.bf16.mxu1 %v14737_v43  ;;  %v8536_v17 = vsel %vm2328_vm3, %v17629_v9, %v8535_v18  ;;  %v8541_v43 = vrot.slane %v17644_v44, 5  ;;  %v8528_v18 = vld [vmem:[#allocation8 + $0x13c8] sm:$0xff] }
 0x586   :  { %8947 = vmatprep.mubr.bf16.mxu0 %v18514_v59  ;;  %9000 = vmatprep.mubr.bf16.mxu1 %v18514_v59  ;;  %v8538_v46 = vsel %vm2331_vm4, %v8537_v14, %v8536_v17  ;;  %v8554_v33 = vsel %vm2334_vm5, %v8553_v10, %v8552_v5  ;;  %v8532_v14 = vld [vmem:[#allocation8 + $0x13e8] sm:$0xff]  ;;  %v8543_v5 = vrot.slane %v17641_v48, 4  ;;  %v14767_v17 = vcombine.high %v8527_v60, %v8531_v35 }
 0x587   :  { %v14769_v10 = vcombine.high %v8528_v18, %v8532_v14 }
 0x588   :  { %8922 = vmatpush1.bf16.msra.mxu0 %v14734_v0  ;;  %8975 = vmatpush1.bf16.msra.mxu1 %v14736_v15  ;;  %v14759_v0 = vcombine.high %v8519_v41, %v8523_v53  ;;  %v14761_v15 = vcombine.high %v8520_v7, %v8524_v31 }
 0x589   :  { %8923 = vmatprep.subr.bf16.mxu0 %v14743_v37  ;;  %8976 = vmatprep.subr.bf16.mxu1 %v14745_v29  ;;  %v8556_v37 = vsel %vm2337_vm6, %v8555_v24, %v8554_v33  ;;  %v8559_v29 = vrot.slane %v17680_v47, 3 }
 0x58a   :  { %v8558_v24 = vsel %vm2340_vm7, %v8557_v63, %v8556_v37  ;;  %v14768_v63 = vcombine.low %v8528_v18, %v8532_v14 }
 0x58c   :  { %8924 = vmatpush1.bf16.msra.mxu0 %v14742_v61  ;;  %8977 = vmatpush1.bf16.msra.mxu1 %v14744_v22  ;;  %v8540_v61 = vsel %vm2334_vm5, %v8539_v50, %v8538_v46  ;;  %v8563_v22 = vrot.slane %v17692_v1, 1  ;;  %v8560_v46 = vsel %vm2343_vm8, %v8559_v29, %v8558_v24  ;;  %v8565_v50 = vrot.slane %v17698_v32, 7 }
 0x58d   :  { %8925 = vmatprep.subr.bf16.mxu0 %v14751_v23  ;;  %8978 = vmatprep.subr.bf16.mxu1 %v14753_v21  ;;  %v8542_v34 = vsel %vm2337_vm6, %v8541_v43, %v8540_v61  ;;  %v14758_v23 = vcombine.low %v8519_v41, %v8523_v53  ;;  %v14760_v21 = vcombine.low %v8520_v7, %v8524_v31  ;;  %v8473_v43 = vld [vmem:[#allocation8 + $0x1210] sm:$0xff]  ;;  %v8561_v41 = vrot.slane %v17674_v3, 2  ;;  %v8474_v7 = vld [vmem:[#allocation8 + $0x1218] sm:$0xff] }
 0x58e   :  { %v8544_v33 = vsel %vm2340_vm7, %v8543_v5, %v8542_v34  ;;  %v8477_v53 = vld [vmem:[#allocation8 + $0x1230] sm:$0xff]  ;;  %v8478_v31 = vld [vmem:[#allocation8 + $0x1238] sm:$0xff]  ;;  %v8583_v29 = vrot.slane %v17738_v6, 5  ;;  %v14766_v61 = vcombine.low %v8527_v60, %v8531_v35  ;;  %v8581_v5 = vrot.slane %v17725_v25, 6 }
 0x58f   :  { %v8562_v34 = vsel %vm2346_vm9, %v8561_v41, %v8560_v46  ;;  %v14717_v24 = vcombine.high %v8474_v7, %v8478_v31  ;;  %v8567_v60 = vrot.slane %v17695_v30, 6  ;;  %v14716_v46 = vcombine.low %v8474_v7, %v8478_v31 }
 0x590   :  { %8926 = vmatpush1.bf16.msra.mxu0 %v14750_v40  ;;  %8979 = vmatpush1.bf16.msra.mxu1 %v14752_v4  ;;  %v8547_v40 = vrot.slane %v17647_v49, 2  ;;  %v8578_v4 = vsel %vm2328_vm3, %v17710_v20, %v8577_v52  ;;  %v14715_v52 = vcombine.high %v8473_v43, %v8477_v53 }
 0x591   :  { %8927 = vmatprep.subr.bf16.mxu0 %v14759_v0  ;;  %8980 = vmatprep.subr.bf16.mxu1 %v14761_v15  ;;  %v8546_v0 = vsel %vm2343_vm8, %v8545_v55, %v8544_v33  ;;  %v8564_v15 = vsel %vm2328_vm3, %v17685_v19, %v8563_v22  ;;  %v8580_v37 = vsel %vm2331_vm4, %v8579_v58, %v8578_v4  ;;  %v8481_v55 = vld [vmem:[#allocation8 + $0x1250] sm:$0xff]  ;;  %v8569_v22 = vrot.slane %v17704_v39, 5 }
 0x592   :  { %v8566_v33 = vsel %vm2331_vm4, %v8565_v50, %v8564_v15  ;;  %v8548_v58 = vsel %vm2346_vm9, %v8547_v40, %v8546_v0  ;;  %v8485_v4 = vld [vmem:[#allocation8 + $0x1270] sm:$0xff]  ;;  %v8582_v35 = vsel %vm2334_vm5, %v8581_v5, %v8580_v37  ;;  %v8585_v40 = vrot.slane %v17733_v62, 4 }
 0x593   :  { %v17863_v18 = vpack.c.b16 %v8562_v34, %v8548_v58  ;;  %v8584_v14 = vsel %vm2337_vm6, %v8583_v29, %v8582_v35  ;;  %v8568_v50 = vsel %vm2334_vm5, %v8567_v60, %v8566_v33  ;;  %v14723_v41 = vcombine.high %v8481_v55, %v8485_v4  ;;  %v8489_v34 = vld [vmem:[#allocation8 + $0x1290] sm:$0xff] }
 0x594   :  { %8928 = vmatpush1.bf16.msra.mxu0 %v14758_v23  ;;  %8981 = vmatpush1.bf16.msra.mxu1 %v14760_v21  ;;  %v8482_v23 = vld [vmem:[#allocation8 + $0x1258] sm:$0xff]  ;;  %v8570_v15 = vsel %vm2337_vm6, %v8569_v22, %v8568_v50  ;;  %v8573_v37 = vrot.slane %v17707_v27, 3  ;;  %v8571_v29 = vrot.slane %v17773_v51, 4  ;;  %v14722_v31 = vcombine.low %v8481_v55, %v8485_v4  ;;  %v8497_v60 = vld [vmem:[#allocation8 + $0x12d0] sm:$0xff] }
 0x595   :  { %8929 = vmatprep.subr.bf16.mxu0 %v14767_v17  ;;  %8982 = vmatprep.subr.bf16.mxu1 %v14769_v10  ;;  %v8486_v21 = vld [vmem:[#allocation8 + $0x1278] sm:$0xff]  ;;  %v8587_v17 = vrot.slane %v17749_v56, 3  ;;  %v14714_v10 = vcombine.low %v8473_v43, %v8477_v53  ;;  %v8575_v35 = vrot.slane %v17789_v57, 2  ;;  %v8501_v4 = vld [vmem:[#allocation8 + $0x12f0] sm:$0xff] }
 0x596   :  { %v14725_v0 = vcombine.high %v8482_v23, %v8486_v21  ;;  %v8490_v43 = vld [vmem:[#allocation8 + $0x1298] sm:$0xff]  ;;  %v14724_v5 = vcombine.low %v8482_v23, %v8486_v21  ;;  %v14739_v50 = vcombine.high %v8497_v60, %v8501_v4 }
 0x597   :  { %v8494_v53 = vld [vmem:[#allocation8 + $0x12b8] sm:$0xff] }
 0x598   :  { %8930 = vmatpush1.bf16.msra.mxu0 %v14766_v61  ;;  %8983 = vmatpush1.bf16.msra.mxu1 %v14768_v63  ;;  %v8586_v61 = vsel %vm2340_vm7, %v8585_v40, %v8584_v14  ;;  %v8493_v63 = vld [vmem:[#allocation8 + $0x12b0] sm:$0xff]  ;;  %v14733_v58 = vcombine.high %v8490_v43, %v8494_v53  ;;  %v8498_v23 = vld [vmem:[#allocation8 + $0x12d8] sm:$0xff] }
 0x599   :  { %9021 = vmatprep.subr.bf16.mxu0 %v14715_v52  ;;  %9074 = vmatprep.subr.bf16.mxu1 %v14717_v24  ;;  %v8588_v7 = vsel %vm2343_vm8, %v8587_v17, %v8586_v61  ;;  %v8572_v52 = vsel %vm2340_vm7, %v8571_v29, %v8570_v15  ;;  %v8589_v24 = vrot.slane %v17776_v12, 2  ;;  %v14731_v22 = vcombine.high %v8489_v34, %v8493_v63  ;;  %v8502_v21 = vld [vmem:[#allocation8 + $0x12f8] sm:$0xff] }
 0x59a   :  { %v8574_v33 = vsel %vm2343_vm8, %v8573_v37, %v8572_v52  ;;  %v14730_v17 = vcombine.low %v8489_v34, %v8493_v63  ;;  %v14741_v40 = vcombine.high %v8498_v23, %v8502_v21  ;;  %v8506_v15 = vld [vmem:[#allocation8 + $0x1318] sm:$0xff]  ;;  %v14738_v29 = vcombine.low %v8497_v60, %v8501_v4 }
 0x59b   :  { %8948 = vmatmul.mubr.bf16.vlgmr.msra.gmra.mrb[32].mxu0 %v17863_v18  ;;  %9001 = vmatmul.mubr.bf16.vlgmr.msra.gmra.mrb[64].mxu1 %v17863_v18  ;;  %v8590_v55 = vsel %vm2346_vm9, %v8589_v24, %v8588_v7  ;;  %v8576_v14 = vsel %vm2346_vm9, %v8575_v35, %v8574_v33  ;;  %v8510_v37 = vld [vmem:[#allocation8 + $0x1338] sm:$0xff]  ;;  %v14740_v61 = vcombine.low %v8498_v23, %v8502_v21 }
 0x59c   :  { %9022 = vmatpush1.bf16.msra.mxu0 %v14714_v10  ;;  %9075 = vmatpush1.bf16.msra.mxu1 %v14716_v46  ;;  %v14732_v10 = vcombine.low %v8490_v43, %v8494_v53  ;;  %v17884_v46 = vpack.c.b16 %v8590_v55, %v8576_v14  ;;  %v14749_v63 = vcombine.high %v8506_v15, %v8510_v37  ;;  %v8513_v43 = vld [vmem:[#allocation8 + $0x1350] sm:$0xff]  ;;  %v8514_v7 = vld [vmem:[#allocation8 + $0x1358] sm:$0xff] }
 0x59d   :  { %9023 = vmatprep.subr.bf16.mxu0 %v14723_v41  ;;  %9076 = vmatprep.subr.bf16.mxu1 %v14725_v0  ;;  %v8505_v41 = vld [vmem:[#allocation8 + $0x1310] sm:$0xff]  ;;  %v14748_v52 = vcombine.low %v8506_v15, %v8510_v37  ;;  %v8522_v60 = vld [vmem:[#allocation8 + $0x1398] sm:$0xff]  ;;  %v9160_v37 = vld [vmem:[#allocation8 + $0x1400] sm:$0xff] }
 0x59e   :  { %8957 = vmatprep.mubr.bf16.mxu0 %v18514_v59  ;;  %9010 = vmatprep.mubr.bf16.mxu1 %v18514_v59  ;;  %v8509_v0 = vld [vmem:[#allocation8 + $0x1330] sm:$0xff]  ;;  %v8526_v35 = vld [vmem:[#allocation8 + $0x13b8] sm:$0xff] }
 0x59f   :  { %v14747_v34 = vcombine.high %v8505_v41, %v8509_v0  ;;  %v8517_v53 = vld [vmem:[#allocation8 + $0x1370] sm:$0xff]  ;;  %v14765_v21 = vcombine.high %v8522_v60, %v8526_v35 }
 0x5a0   :  { %9024 = vmatpush1.bf16.msra.mxu0 %v14722_v31  ;;  %9077 = vmatpush1.bf16.msra.mxu1 %v14724_v5  ;;  %v8518_v31 = vld [vmem:[#allocation8 + $0x1378] sm:$0xff]  ;;  %v14746_v5 = vcombine.low %v8505_v41, %v8509_v0  ;;  %v14755_v24 = vcombine.high %v8513_v43, %v8517_v53  ;;  %v14754_v55 = vcombine.low %v8513_v43, %v8517_v53  ;;  %v8529_v14 = vld [vmem:[#allocation8 + $0x13d0] sm:$0xff] }
 0x5a1   :  { %9025 = vmatprep.subr.bf16.mxu0 %v14731_v22  ;;  %9078 = vmatprep.subr.bf16.mxu1 %v14733_v58  ;;  %v14757_v33 = vcombine.high %v8514_v7, %v8518_v31  ;;  %v8521_v22 = vld [vmem:[#allocation8 + $0x1390] sm:$0xff]  ;;  %v14756_v4 = vcombine.low %v8514_v7, %v8518_v31  ;;  %v14764_v41 = vcombine.low %v8522_v60, %v8526_v35  ;;  %v9168_v31 = vld [vmem:[#allocation8 + $0x1440] sm:$0xff] }
 0x5a2   :  { %v8525_v58 = vld [vmem:[#allocation8 + $0x13b0] sm:$0xff]  ;;  %v9176_v35 = vld [vmem:[#allocation8 + $0x1480] sm:$0xff] }
 0x5a3   :  { %8958 = vmatmul.mubr.bf16.gmra.mrb[36].mxu0 %v17884_v46  ;;  %9011 = vmatmul.mubr.bf16.gmra.mrb[68].mxu1 %v17884_v46  ;;  %v14763_v23 = vcombine.high %v8521_v22, %v8525_v58 }
 0x5a4   :  { %9026 = vmatpush1.bf16.msra.mxu0 %v14730_v17  ;;  %9079 = vmatpush1.bf16.msra.mxu1 %v14732_v10  ;;  %v8533_v17 = vld [vmem:[#allocation8 + $0x13f0] sm:$0xff]  ;;  %v8530_v10 = vld [vmem:[#allocation8 + $0x13d8] sm:$0xff] }
 0x5a5   :  { %9027 = vmatprep.subr.bf16.mxu0 %v14739_v50  ;;  %9080 = vmatprep.subr.bf16.mxu1 %v14741_v40  ;;  %v8534_v50 = vld [vmem:[#allocation8 + $0x13f8] sm:$0xff]  ;;  %v14762_v40 = vcombine.low %v8521_v22, %v8525_v58  ;;  %v14771_v0 = vcombine.high %v8529_v14, %v8533_v17 }
 0x5a6   :  { %9053 = vmatprep.mubr.bf16.mxu0 %v18514_v59  ;;  %9106 = vmatprep.mubr.bf16.mxu1 %v18514_v59  ;;  %v14773_v15 = vcombine.high %v8530_v10, %v8534_v50  ;;  %v14772_v43 = vcombine.low %v8530_v10, %v8534_v50  ;;  %v9184_v50 = vld [vmem:[#allocation8 + $0x14c0] sm:$0xff] }
 0x5a8   :  { %9028 = vmatpush1.bf16.msra.mxu0 %v14738_v29  ;;  %9081 = vmatpush1.bf16.msra.mxu1 %v14740_v61  ;;  %v9164_v29 = vld [vmem:[#allocation8 + $0x1420] sm:$0xff]  ;;  %v9161_v61 = vld [vmem:[#allocation8 + $0x1408] sm:$0xff] }
 0x5a9   :  { %9029 = vmatprep.subr.bf16.mxu0 %v14747_v34  ;;  %9082 = vmatprep.subr.bf16.mxu1 %v14749_v63  ;;  %v9165_v34 = vld [vmem:[#allocation8 + $0x1428] sm:$0xff]  ;;  %v14770_v63 = vcombine.low %v8529_v14, %v8533_v17  ;;  %v14775_v53 = vcombine.high %v9160_v37, %v9164_v29 }
 0x5aa   :  { %v14777_v7 = vcombine.high %v9161_v61, %v9165_v34  ;;  %v14776_v22 = vcombine.low %v9161_v61, %v9165_v34  ;;  %v9192_v61 = vld [vmem:[#allocation8 + $0x1500] sm:$0xff] }
 0x5ab   :  { %v9196_v34 = vld [vmem:[#allocation8 + $0x1520] sm:$0xff] }
 0x5ac   :  { %9030 = vmatpush1.bf16.msra.mxu0 %v14746_v5  ;;  %9083 = vmatpush1.bf16.msra.mxu1 %v14748_v52  ;;  %v9172_v5 = vld [vmem:[#allocation8 + $0x1460] sm:$0xff]  ;;  %v9169_v52 = vld [vmem:[#allocation8 + $0x1448] sm:$0xff] }
 0x5ad   :  { %9031 = vmatprep.subr.bf16.mxu0 %v14755_v24  ;;  %9084 = vmatprep.subr.bf16.mxu1 %v14757_v33  ;;  %v9173_v24 = vld [vmem:[#allocation8 + $0x1468] sm:$0xff]  ;;  %v14774_v33 = vcombine.low %v9160_v37, %v9164_v29  ;;  %v14783_v58 = vcombine.high %v9168_v31, %v9172_v5 }
 0x5ae   :  { %v14785_v60 = vcombine.high %v9169_v52, %v9173_v24  ;;  %v14784_v14 = vcombine.low %v9169_v52, %v9173_v24  ;;  %v9200_v52 = vld [vmem:[#allocation8 + $0x1540] sm:$0xff]  ;;  %v9238_v24 = vrot.slane %v17659_v54, 2 }
 0x5b0   :  { %9032 = vmatpush1.bf16.msra.mxu0 %v14754_v55  ;;  %9085 = vmatpush1.bf16.msra.mxu1 %v14756_v4  ;;  %v9180_v55 = vld [vmem:[#allocation8 + $0x14a0] sm:$0xff]  ;;  %v9177_v4 = vld [vmem:[#allocation8 + $0x1488] sm:$0xff] }
 0x5b1   :  { %9033 = vmatprep.subr.bf16.mxu0 %v14763_v23  ;;  %9086 = vmatprep.subr.bf16.mxu1 %v14765_v21  ;;  %v9181_v23 = vld [vmem:[#allocation8 + $0x14a8] sm:$0xff]  ;;  %v14782_v21 = vcombine.low %v9168_v31, %v9172_v5  ;;  %v14791_v17 = vcombine.high %v9176_v35, %v9180_v55  ;;  %v14807_v31 = vcombine.high %v9192_v61, %v9196_v34 }
 0x5b2   :  { %v14793_v10 = vcombine.high %v9177_v4, %v9181_v23 }
 0x5b4   :  { %9034 = vmatpush1.bf16.msra.mxu0 %v14762_v40  ;;  %9087 = vmatpush1.bf16.msra.mxu1 %v14764_v41  ;;  %v9188_v40 = vld [vmem:[#allocation8 + $0x14e0] sm:$0xff]  ;;  %v9185_v41 = vld [vmem:[#allocation8 + $0x14c8] sm:$0xff] }
 0x5b5   :  { %9035 = vmatprep.subr.bf16.mxu0 %v14771_v0  ;;  %9088 = vmatprep.subr.bf16.mxu1 %v14773_v15  ;;  %v9189_v0 = vld [vmem:[#allocation8 + $0x14e8] sm:$0xff]  ;;  %v14790_v15 = vcombine.low %v9176_v35, %v9180_v55  ;;  %v14799_v37 = vcombine.high %v9184_v50, %v9188_v40  ;;  %v9225_v35 = vrot.slane %v17629_v9, 1  ;;  %v14806_v55 = vcombine.low %v9192_v61, %v9196_v34 }
 0x5b6   :  { %v14801_v29 = vcombine.high %v9185_v41, %v9189_v0  ;;  %v9230_v61 = vrot.slane %v17644_v44, 6 }
 0x5b8   :  { %9036 = vmatpush1.bf16.msra.mxu0 %v14770_v63  ;;  %9089 = vmatpush1.bf16.msra.mxu1 %v14772_v43  ;;  %v9193_v63 = vld [vmem:[#allocation8 + $0x1508] sm:$0xff] }
 0x5b9   :  { %9604 = vmatprep.subr.bf16.mxu0 %v14775_v53  ;;  %9657 = vmatprep.subr.bf16.mxu1 %v14777_v7  ;;  %v9197_v43 = vld [vmem:[#allocation8 + $0x1528] sm:$0xff]  ;;  %v14798_v53 = vcombine.low %v9184_v50, %v9188_v40  ;;  %v14800_v7 = vcombine.low %v9185_v41, %v9189_v0  ;;  %v9212_v50 = vld [vmem:[#allocation8 + $0x15a0] sm:$0xff] }
 0x5ba   :  { %v14809_v5 = vcombine.high %v9193_v63, %v9197_v43  ;;  %v9209_v40 = vld [vmem:[#allocation8 + $0x1588] sm:$0xff] }
 0x5bb   :  { %9054 = vmatmul.mubr.bf16.vlgmr.msra.gmra.mrb[40].mxu0 %v17863_v18  ;;  %9107 = vmatmul.mubr.bf16.vlgmr.msra.gmra.mrb[72].mxu1 %v17863_v18  ;;  %v14792_v18 = vcombine.low %v9177_v4, %v9181_v23  ;;  %v14808_v4 = vcombine.low %v9193_v63, %v9197_v43  ;;  %v9213_v41 = vld [vmem:[#allocation8 + $0x15a8] sm:$0xff]  ;;  %v9234_v43 = vrot.slane %v17656_v45, 4 }
 0x5bc   :  { %9605 = vmatpush1.bf16.msra.mxu0 %v14774_v33  ;;  %9658 = vmatpush1.bf16.msra.mxu1 %v14776_v22  ;;  %v9239_v33 = vrot.slane %v17650_v2, 1  ;;  %v9204_v22 = vld [vmem:[#allocation8 + $0x1560] sm:$0xff] }
 0x5bd   :  { %9606 = vmatprep.subr.bf16.mxu0 %v14783_v58  ;;  %9659 = vmatprep.subr.bf16.mxu1 %v14785_v60  ;;  %v9201_v58 = vld [vmem:[#allocation8 + $0x1548] sm:$0xff]  ;;  %v14815_v23 = vcombine.high %v9200_v52, %v9204_v22  ;;  %v14814_v34 = vcombine.low %v9200_v52, %v9204_v22  ;;  %v9266_v52 = vrot.slane %v17722_v36, 2  ;;  %v9267_v22 = vrot.slane %v17710_v20, 1 }
 0x5be   :  { %9063 = vmatprep.mubr.bf16.mxu0 %v18514_v59  ;;  %9116 = vmatprep.mubr.bf16.mxu1 %v18514_v59  ;;  %v9205_v60 = vld [vmem:[#allocation8 + $0x1568] sm:$0xff] }
 0x5bf   :  { %v14816_v63 = vcombine.low %v9201_v58, %v9205_v60 }
 0x5c0   :  { %9607 = vmatpush1.bf16.msra.mxu0 %v14782_v21  ;;  %9660 = vmatpush1.bf16.msra.mxu1 %v14784_v14  ;;  %v14817_v21 = vcombine.high %v9201_v58, %v9205_v60  ;;  %v9208_v14 = vld [vmem:[#allocation8 + $0x1580] sm:$0xff]  ;;  %v9246_v60 = vrot.slane %v17668_v16, 5 }
 0x5c1   :  { %9608 = vmatprep.subr.bf16.mxu0 %v14791_v17  ;;  %9661 = vmatprep.subr.bf16.mxu1 %v14793_v10  ;;  %v9240_v17 = vsel %vm2328_vm3, %v9239_v33, %v9238_v24  ;;  %v9242_v10 = vrot.slane %v17662_v13, 7  ;;  %v9248_v24 = vrot.slane %v17680_v47, 4  ;;  %v9220_v33 = vld [vmem:[#allocation8 + $0x15e0] sm:$0xff] }
 0x5c3   :  { %9064 = vmatmul.mubr.bf16.gmra.mrb[44].mxu0 %v17884_v46  ;;  %9117 = vmatmul.mubr.bf16.gmra.mrb[76].mxu1 %v17884_v46  ;;  %v9224_v46 = vrot.slane %v17632_v28, 2 }
 0x5c4   :  { %9609 = vmatpush1.bf16.msra.mxu0 %v14790_v15  ;;  %9662 = vmatpush1.bf16.msra.mxu1 %v14792_v18  ;;  %v9228_v15 = vrot.slane %v17635_v11, 7  ;;  %v9241_v18 = vsel %vm2331_vm4, %v17665_v26, %v9240_v17 }
 0x5c5   :  { %9610 = vmatprep.subr.bf16.mxu0 %v14799_v37  ;;  %9663 = vmatprep.subr.bf16.mxu1 %v14801_v29  ;;  %v9226_v0 = vsel %vm2328_vm3, %v9225_v35, %v9224_v46  ;;  %v9244_v37 = vrot.slane %v17671_v8, 6  ;;  %v9217_v46 = vld [vmem:[#allocation8 + $0x15c8] sm:$0xff] }
 0x5c6   :  { %9636 = vmatprep.mubr.bf16.mxu0 %v18514_v59  ;;  %9689 = vmatprep.mubr.bf16.mxu1 %v18514_v59  ;;  %v9227_v29 = vsel %vm2331_vm4, %v17638_v38, %v9226_v0  ;;  %v9221_v35 = vld [vmem:[#allocation8 + $0x15e8] sm:$0xff]  ;;  %v9232_v0 = vrot.slane %v17641_v48, 5 }
 0x5c7   :  { %v9229_v17 = vsel %vm2334_vm5, %v9228_v15, %v9227_v29  ;;  %v9250_v15 = vrot.slane %v17674_v3, 3 }
 0x5c8   :  { %9611 = vmatpush1.bf16.msra.mxu0 %v14798_v53  ;;  %9664 = vmatpush1.bf16.msra.mxu1 %v14800_v7  ;;  %v14823_v53 = vcombine.high %v9208_v14, %v9212_v50  ;;  %v14825_v7 = vcombine.high %v9209_v40, %v9213_v41  ;;  %v9231_v58 = vsel %vm2337_vm6, %v9230_v61, %v9229_v17  ;;  %v9162_v61 = vld [vmem:[#allocation8 + $0x1410] sm:$0xff] }
 0x5c9   :  { %9612 = vmatprep.subr.bf16.mxu0 %v14807_v31  ;;  %9665 = vmatprep.subr.bf16.mxu1 %v14809_v5  ;;  %v9216_v31 = vld [vmem:[#allocation8 + $0x15c0] sm:$0xff]  ;;  %v9243_v5 = vsel %vm2334_vm5, %v9242_v10, %v9241_v18  ;;  %v14824_v10 = vcombine.low %v9209_v40, %v9213_v41  ;;  %v9233_v17 = vsel %vm2340_vm7, %v9232_v0, %v9231_v58  ;;  %v9270_v41 = vrot.slane %v17725_v25, 7 }
 0x5ca   :  { %v14831_v18 = vcombine.high %v9216_v31, %v9220_v33  ;;  %v9268_v40 = vsel %vm2328_vm3, %v9267_v22, %v9266_v52  ;;  %v14830_v58 = vcombine.low %v9216_v31, %v9220_v33  ;;  %v9236_v0 = vrot.slane %v17647_v49, 3 }
 0x5cc   :  { %9613 = vmatpush1.bf16.msra.mxu0 %v14806_v55  ;;  %9666 = vmatpush1.bf16.msra.mxu1 %v14808_v4  ;;  %v9245_v55 = vsel %vm2337_vm6, %v9244_v37, %v9243_v5  ;;  %v9252_v4 = vrot.slane %v17692_v1, 2  ;;  %v14833_v37 = vcombine.high %v9217_v46, %v9221_v35  ;;  %v9256_v5 = vrot.slane %v17695_v30, 7 }
 0x5cd   :  { %9614 = vmatprep.subr.bf16.mxu0 %v14815_v23  ;;  %9667 = vmatprep.subr.bf16.mxu1 %v14817_v21  ;;  %v9253_v23 = vrot.slane %v17685_v19, 1  ;;  %v14822_v21 = vcombine.low %v9208_v14, %v9212_v50  ;;  %v9247_v29 = vsel %vm2340_vm7, %v9246_v60, %v9245_v55  ;;  %v9163_v14 = vld [vmem:[#allocation8 + $0x1418] sm:$0xff]  ;;  %v9269_v55 = vsel %vm2331_vm4, %v17730_v42, %v9268_v40 }
 0x5ce   :  { %v9167_v50 = vld [vmem:[#allocation8 + $0x1438] sm:$0xff]  ;;  %v9272_v60 = vrot.slane %v17738_v6, 6  ;;  %v9271_v31 = vsel %vm2334_vm5, %v9270_v41, %v9269_v55  ;;  %v9178_v55 = vld [vmem:[#allocation8 + $0x1490] sm:$0xff] }
 0x5cf   :  { %v9171_v40 = vld [vmem:[#allocation8 + $0x1458] sm:$0xff] }
 0x5d0   :  { %9615 = vmatpush1.bf16.msra.mxu0 %v14814_v34  ;;  %9668 = vmatpush1.bf16.msra.mxu1 %v14816_v63  ;;  %v9249_v34 = vsel %vm2343_vm8, %v9248_v24, %v9247_v29  ;;  %v9166_v63 = vld [vmem:[#allocation8 + $0x1430] sm:$0xff]  ;;  %v14832_v24 = vcombine.low %v9217_v46, %v9221_v35  ;;  %v9258_v29 = vrot.slane %v17704_v39, 6  ;;  %v9273_v35 = vsel %vm2337_vm6, %v9272_v60, %v9271_v31 }
 0x5d1   :  { %9616 = vmatprep.subr.bf16.mxu0 %v14823_v53  ;;  %9669 = vmatprep.subr.bf16.mxu1 %v14825_v7  ;;  %v9235_v53 = vsel %vm2343_vm8, %v9234_v43, %v9233_v17  ;;  %v9254_v7 = vsel %vm2328_vm3, %v9253_v23, %v9252_v4  ;;  %v9251_v43 = vsel %vm2346_vm9, %v9250_v15, %v9249_v34  ;;  %v9170_v23 = vld [vmem:[#allocation8 + $0x1450] sm:$0xff]  ;;  %v9274_v34 = vrot.slane %v17733_v62, 5 }
 0x5d2   :  { %v9255_v52 = vsel %vm2331_vm4, %v17698_v32, %v9254_v7  ;;  %v14779_v22 = vcombine.high %v9162_v61, %v9166_v63  ;;  %v14781_v4 = vcombine.high %v9163_v14, %v9167_v50  ;;  %v9174_v17 = vld [vmem:[#allocation8 + $0x1470] sm:$0xff]  ;;  %v9237_v33 = vsel %vm2346_vm9, %v9236_v0, %v9235_v53  ;;  %v9179_v0 = vld [vmem:[#allocation8 + $0x1498] sm:$0xff] }
 0x5d3   :  { %v9257_v46 = vsel %vm2334_vm5, %v9256_v5, %v9255_v52  ;;  %v17946_v15 = vpack.c.b16 %v9251_v43, %v9237_v33  ;;  %v14787_v7 = vcombine.high %v9170_v23, %v9174_v17  ;;  %v9262_v5 = vrot.slane %v17707_v27, 4  ;;  %v9183_v52 = vld [vmem:[#allocation8 + $0x14b8] sm:$0xff]  ;;  %v9186_v31 = vld [vmem:[#allocation8 + $0x14d0] sm:$0xff] }
 0x5d4   :  { %9617 = vmatpush1.bf16.msra.mxu0 %v14822_v21  ;;  %9670 = vmatpush1.bf16.msra.mxu1 %v14824_v10  ;;  %v9175_v21 = vld [vmem:[#allocation8 + $0x1478] sm:$0xff]  ;;  %v9276_v10 = vrot.slane %v17749_v56, 4  ;;  %v9259_v53 = vsel %vm2337_vm6, %v9258_v29, %v9257_v46  ;;  %v9260_v60 = vrot.slane %v17773_v51, 5  ;;  %v9278_v43 = vrot.slane %v17776_v12, 3 }
 0x5d5   :  { %9618 = vmatprep.subr.bf16.mxu0 %v14831_v18  ;;  %9671 = vmatprep.subr.bf16.mxu1 %v14833_v37  ;;  %v14778_v18 = vcombine.low %v9162_v61, %v9166_v63  ;;  %v14780_v37 = vcombine.low %v9163_v14, %v9167_v50  ;;  %v14789_v41 = vcombine.high %v9171_v40, %v9175_v21  ;;  %v9264_v33 = vrot.slane %v17789_v57, 3 }
 0x5d6   :  { %v14786_v63 = vcombine.low %v9170_v23, %v9174_v17  ;;  %v14788_v14 = vcombine.low %v9171_v40, %v9175_v21  ;;  %v9261_v50 = vsel %vm2340_vm7, %v9260_v60, %v9259_v53  ;;  %v14797_v29 = vcombine.high %v9179_v0, %v9183_v52  ;;  %v9190_v17 = vld [vmem:[#allocation8 + $0x14f0] sm:$0xff]  ;;  %v9187_v40 = vld [vmem:[#allocation8 + $0x14d8] sm:$0xff] }
 0x5d7   :  { %v9191_v21 = vld [vmem:[#allocation8 + $0x14f8] sm:$0xff]  ;;  %v14802_v60 = vcombine.low %v9186_v31, %v9190_v17 }
 0x5d8   :  { %9619 = vmatpush1.bf16.msra.mxu0 %v14830_v58  ;;  %9672 = vmatpush1.bf16.msra.mxu1 %v14832_v24  ;;  %v9275_v58 = vsel %vm2340_vm7, %v9274_v34, %v9273_v35  ;;  %v9182_v24 = vld [vmem:[#allocation8 + $0x14b0] sm:$0xff]  ;;  %v14805_v34 = vcombine.high %v9187_v40, %v9191_v21  ;;  %v9195_v53 = vld [vmem:[#allocation8 + $0x1518] sm:$0xff] }
 0x5d9   :  { %9710 = vmatprep.subr.bf16.mxu0 %v14779_v22  ;;  %9763 = vmatprep.subr.bf16.mxu1 %v14781_v4  ;;  %v9277_v61 = vsel %vm2343_vm8, %v9276_v10, %v9275_v58  ;;  %v9263_v22 = vsel %vm2343_vm8, %v9262_v5, %v9261_v50  ;;  %v14795_v4 = vcombine.high %v9178_v55, %v9182_v24  ;;  %v9199_v5 = vld [vmem:[#allocation8 + $0x1538] sm:$0xff] }
 0x5da   :  { %v9279_v23 = vsel %vm2346_vm9, %v9278_v43, %v9277_v61  ;;  %v9265_v46 = vsel %vm2346_vm9, %v9264_v33, %v9263_v22  ;;  %v14794_v35 = vcombine.low %v9178_v55, %v9182_v24  ;;  %v14796_v10 = vcombine.low %v9179_v0, %v9183_v52  ;;  %v9202_v0 = vld [vmem:[#allocation8 + $0x1550] sm:$0xff]  ;;  %v9203_v61 = vld [vmem:[#allocation8 + $0x1558] sm:$0xff] }
 0x5db   :  { %9637 = vmatmul.mubr.bf16.vlgmr.msra.gmra.mrb[32].mxu0 %v17946_v15  ;;  %9690 = vmatmul.mubr.bf16.vlgmr.msra.gmra.mrb[64].mxu1 %v17946_v15  ;;  %v14804_v58 = vcombine.low %v9187_v40, %v9191_v21  ;;  %v14813_v24 = vcombine.high %v9195_v53, %v9199_v5  ;;  %v9206_v52 = vld [vmem:[#allocation8 + $0x1570] sm:$0xff]  ;;  %v14812_v50 = vcombine.low %v9195_v53, %v9199_v5  ;;  %v9215_v33 = vld [vmem:[#allocation8 + $0x15b8] sm:$0xff]  ;;  %v9849_v5 = vld [vmem:[#allocation8 + $0x1600] sm:$0xff] }
 0x5dc   :  { %9711 = vmatpush1.bf16.msra.mxu0 %v14778_v18  ;;  %9764 = vmatpush1.bf16.msra.mxu1 %v14780_v37  ;;  %v17964_v18 = vpack.c.b16 %v9279_v23, %v9265_v46  ;;  %v14803_v37 = vcombine.high %v9186_v31, %v9190_v17  ;;  %v14819_v43 = vcombine.high %v9202_v0, %v9206_v52  ;;  %v9211_v31 = vld [vmem:[#allocation8 + $0x1598] sm:$0xff]  ;;  %v9218_v46 = vld [vmem:[#allocation8 + $0x15d0] sm:$0xff] }
 0x5dd   :  { %9712 = vmatprep.subr.bf16.mxu0 %v14787_v7  ;;  %9765 = vmatprep.subr.bf16.mxu1 %v14789_v41  ;;  %v9194_v7 = vld [vmem:[#allocation8 + $0x1510] sm:$0xff]  ;;  %v14818_v23 = vcombine.low %v9202_v0, %v9206_v52  ;;  %v14829_v21 = vcombine.high %v9211_v31, %v9215_v33 }
 0x5de   :  { %9646 = vmatprep.mubr.bf16.mxu0 %v18514_v59  ;;  %9699 = vmatprep.mubr.bf16.mxu1 %v18514_v59  ;;  %v9198_v41 = vld [vmem:[#allocation8 + $0x1530] sm:$0xff] }
 0x5df   :  { %v14811_v55 = vcombine.high %v9194_v7, %v9198_v41 }
 0x5e0   :  { %9713 = vmatpush1.bf16.msra.mxu0 %v14786_v63  ;;  %9766 = vmatpush1.bf16.msra.mxu1 %v14788_v14  ;;  %v9207_v63 = vld [vmem:[#allocation8 + $0x1578] sm:$0xff]  ;;  %v14810_v14 = vcombine.low %v9194_v7, %v9198_v41  ;;  %v14828_v7 = vcombine.low %v9211_v31, %v9215_v33  ;;  %v9865_v33 = vld [vmem:[#allocation8 + $0x1680] sm:$0xff] }
 0x5e1   :  { %9714 = vmatprep.subr.bf16.mxu0 %v14795_v4  ;;  %9767 = vmatprep.subr.bf16.mxu1 %v14797_v29  ;;  %v14821_v22 = vcombine.high %v9203_v61, %v9207_v63  ;;  %v9210_v4 = vld [vmem:[#allocation8 + $0x1590] sm:$0xff]  ;;  %v14820_v17 = vcombine.low %v9203_v61, %v9207_v63  ;;  %v9857_v63 = vld [vmem:[#allocation8 + $0x1640] sm:$0xff] }
 0x5e2   :  { %v9214_v29 = vld [vmem:[#allocation8 + $0x15b0] sm:$0xff] }
 0x5e3   :  { %9647 = vmatmul.mubr.bf16.gmra.mrb[36].mxu0 %v17964_v18  ;;  %9700 = vmatmul.mubr.bf16.gmra.mrb[68].mxu1 %v17964_v18  ;;  %v14827_v40 = vcombine.high %v9210_v4, %v9214_v29 }
 0x5e4   :  { %9715 = vmatpush1.bf16.msra.mxu0 %v14794_v35  ;;  %9768 = vmatpush1.bf16.msra.mxu1 %v14796_v10  ;;  %v9222_v35 = vld [vmem:[#allocation8 + $0x15f0] sm:$0xff]  ;;  %v9219_v10 = vld [vmem:[#allocation8 + $0x15d8] sm:$0xff] }
 0x5e5   :  { %9716 = vmatprep.subr.bf16.mxu0 %v14803_v37  ;;  %9769 = vmatprep.subr.bf16.mxu1 %v14805_v34  ;;  %v9223_v37 = vld [vmem:[#allocation8 + $0x15f8] sm:$0xff]  ;;  %v14826_v34 = vcombine.low %v9210_v4, %v9214_v29  ;;  %v14835_v41 = vcombine.high %v9218_v46, %v9222_v35 }
 0x5e6   :  { %9742 = vmatprep.mubr.bf16.mxu0 %v18514_v59  ;;  %9795 = vmatprep.mubr.bf16.mxu1 %v18514_v59  ;;  %v14837_v53 = vcombine.high %v9219_v10, %v9223_v37  ;;  %v14836_v0 = vcombine.low %v9219_v10, %v9223_v37  ;;  %v9873_v37 = vld [vmem:[#allocation8 + $0x16c0] sm:$0xff] }
 0x5e8   :  { %9717 = vmatpush1.bf16.msra.mxu0 %v14802_v60  ;;  %9770 = vmatpush1.bf16.msra.mxu1 %v14804_v58  ;;  %v9853_v60 = vld [vmem:[#allocation8 + $0x1620] sm:$0xff]  ;;  %v9850_v58 = vld [vmem:[#allocation8 + $0x1608] sm:$0xff] }
 0x5e9   :  { %9718 = vmatprep.subr.bf16.mxu0 %v14811_v55  ;;  %9771 = vmatprep.subr.bf16.mxu1 %v14813_v24  ;;  %v9854_v55 = vld [vmem:[#allocation8 + $0x1628] sm:$0xff]  ;;  %v14834_v24 = vcombine.low %v9218_v46, %v9222_v35  ;;  %v14839_v52 = vcombine.high %v9849_v5, %v9853_v60 }
 0x5ea   :  { %v14841_v61 = vcombine.high %v9850_v58, %v9854_v55  ;;  %v14840_v4 = vcombine.low %v9850_v58, %v9854_v55  ;;  %v9881_v58 = vld [vmem:[#allocation8 + $0x1700] sm:$0xff] }
 0x5eb   :  { %v9885_v55 = vld [vmem:[#allocation8 + $0x1720] sm:$0xff] }
 0x5ec   :  { %9719 = vmatpush1.bf16.msra.mxu0 %v14810_v14  ;;  %9772 = vmatpush1.bf16.msra.mxu1 %v14812_v50  ;;  %v9861_v14 = vld [vmem:[#allocation8 + $0x1660] sm:$0xff]  ;;  %v9858_v50 = vld [vmem:[#allocation8 + $0x1648] sm:$0xff] }
 0x5ed   :  { %9720 = vmatprep.subr.bf16.mxu0 %v14819_v43  ;;  %9773 = vmatprep.subr.bf16.mxu1 %v14821_v22  ;;  %v9862_v43 = vld [vmem:[#allocation8 + $0x1668] sm:$0xff]  ;;  %v14838_v22 = vcombine.low %v9849_v5, %v9853_v60  ;;  %v14847_v29 = vcombine.high %v9857_v63, %v9861_v14 }
 0x5ee   :  { %v14849_v31 = vcombine.high %v9858_v50, %v9862_v43  ;;  %v14848_v46 = vcombine.low %v9858_v50, %v9862_v43  ;;  %v9916_v50 = vrot.slane %v17638_v38, 1  ;;  %v14871_v43 = vcombine.high %v9881_v58, %v9885_v55 }
 0x5f0   :  { %9721 = vmatpush1.bf16.msra.mxu0 %v14818_v23  ;;  %9774 = vmatpush1.bf16.msra.mxu1 %v14820_v17  ;;  %v9869_v23 = vld [vmem:[#allocation8 + $0x16a0] sm:$0xff]  ;;  %v9866_v17 = vld [vmem:[#allocation8 + $0x1688] sm:$0xff] }
 0x5f1   :  { %9722 = vmatprep.subr.bf16.mxu0 %v14827_v40  ;;  %9775 = vmatprep.subr.bf16.mxu1 %v14829_v21  ;;  %v9870_v40 = vld [vmem:[#allocation8 + $0x16a8] sm:$0xff]  ;;  %v14846_v21 = vcombine.low %v9857_v63, %v9861_v14  ;;  %v14855_v35 = vcombine.high %v9865_v33, %v9869_v23 }
 0x5f2   :  { %v14857_v10 = vcombine.high %v9866_v17, %v9870_v40 }
 0x5f4   :  { %9723 = vmatpush1.bf16.msra.mxu0 %v14826_v34  ;;  %9776 = vmatpush1.bf16.msra.mxu1 %v14828_v7  ;;  %v9877_v34 = vld [vmem:[#allocation8 + $0x16e0] sm:$0xff]  ;;  %v9874_v7 = vld [vmem:[#allocation8 + $0x16c8] sm:$0xff] }
 0x5f5   :  { %9724 = vmatprep.subr.bf16.mxu0 %v14835_v41  ;;  %9777 = vmatprep.subr.bf16.mxu1 %v14837_v53  ;;  %v9878_v41 = vld [vmem:[#allocation8 + $0x16e8] sm:$0xff]  ;;  %v14854_v53 = vcombine.low %v9865_v33, %v9869_v23  ;;  %v14863_v5 = vcombine.high %v9873_v37, %v9877_v34  ;;  %v14862_v63 = vcombine.low %v9873_v37, %v9877_v34 }
 0x5f6   :  { %v14865_v60 = vcombine.high %v9874_v7, %v9878_v41  ;;  %v14864_v14 = vcombine.low %v9874_v7, %v9878_v41  ;;  %v9890_v33 = vld [vmem:[#allocation8 + $0x1748] sm:$0xff]  ;;  %v9897_v7 = vld [vmem:[#allocation8 + $0x1780] sm:$0xff] }
 0x5f7   :  { %v9894_v23 = vld [vmem:[#allocation8 + $0x1768] sm:$0xff] }
 0x5f8   :  { %9725 = vmatpush1.bf16.msra.mxu0 %v14834_v24  ;;  %9778 = vmatpush1.bf16.msra.mxu1 %v14836_v0  ;;  %v9882_v24 = vld [vmem:[#allocation8 + $0x1708] sm:$0xff]  ;;  %v14881_v34 = vcombine.high %v9890_v33, %v9894_v23 }
 0x5f9   :  { %10293 = vmatprep.subr.bf16.mxu0 %v14839_v52  ;;  %10346 = vmatprep.subr.bf16.mxu1 %v14841_v61  ;;  %v9886_v0 = vld [vmem:[#allocation8 + $0x1728] sm:$0xff]  ;;  %v9913_v52 = vrot.slane %v17632_v28, 3  ;;  %v9914_v61 = vrot.slane %v17629_v9, 2 }
 0x5fb   :  { %9743 = vmatmul.mubr.bf16.vlgmr.msra.gmra.mrb[40].mxu0 %v17946_v15  ;;  %9796 = vmatmul.mubr.bf16.vlgmr.msra.gmra.mrb[72].mxu1 %v17946_v15  ;;  %v14856_v15 = vcombine.low %v9866_v17, %v9870_v40  ;;  %v9930_v17 = vrot.slane %v17665_v26, 1  ;;  %v9915_v40 = vsel %vm2328_vm3, %v9914_v61, %v9913_v52  ;;  %v9933_v52 = vrot.slane %v17671_v8, 7 }
 0x5fc   :  { %10294 = vmatpush1.bf16.msra.mxu0 %v14838_v22  ;;  %10347 = vmatpush1.bf16.msra.mxu1 %v14840_v4  ;;  %v14873_v22 = vcombine.high %v9882_v24, %v9886_v0  ;;  %v9889_v4 = vld [vmem:[#allocation8 + $0x1740] sm:$0xff]  ;;  %v9921_v61 = vrot.slane %v17641_v48, 6 }
 0x5fd   :  { %10295 = vmatprep.subr.bf16.mxu0 %v14847_v29  ;;  %10348 = vmatprep.subr.bf16.mxu1 %v14849_v31  ;;  %v9927_v29 = vrot.slane %v17659_v54, 3  ;;  %v9928_v31 = vrot.slane %v17650_v2, 2 }
 0x5fe   :  { %9752 = vmatprep.mubr.bf16.mxu0 %v18514_v59  ;;  %9805 = vmatprep.mubr.bf16.mxu1 %v18514_v59 }
 0x5ff   :  { %v9929_v41 = vsel %vm2328_vm3, %v9928_v31, %v9927_v29  ;;  %v9909_v29 = vld [vmem:[#allocation8 + $0x17e0] sm:$0xff]  ;;  %v9906_v31 = vld [vmem:[#allocation8 + $0x17c8] sm:$0xff] }
 0x600   :  { %10296 = vmatpush1.bf16.msra.mxu0 %v14846_v21  ;;  %10349 = vmatpush1.bf16.msra.mxu1 %v14848_v46  ;;  %v14870_v21 = vcombine.low %v9881_v58, %v9885_v55  ;;  %v14872_v46 = vcombine.low %v9882_v24, %v9886_v0  ;;  %v14880_v24 = vcombine.low %v9890_v33, %v9894_v23  ;;  %v9955_v33 = vrot.slane %v17722_v36, 3 }
 0x601   :  { %10297 = vmatprep.subr.bf16.mxu0 %v14855_v35  ;;  %10350 = vmatprep.subr.bf16.mxu1 %v14857_v10  ;;  %v9917_v35 = vsel %vm2331_vm4, %v9916_v50, %v9915_v40  ;;  %v9919_v10 = vrot.slane %v17644_v44, 7  ;;  %v9905_v50 = vld [vmem:[#allocation8 + $0x17c0] sm:$0xff]  ;;  %v9956_v23 = vrot.slane %v17710_v20, 2  ;;  %v9935_v40 = vrot.slane %v17668_v16, 6 }
 0x602   :  { %v9918_v58 = vsel %vm2334_vm5, %v17635_v11, %v9917_v35  ;;  %v9958_v35 = vrot.slane %v17730_v42, 1  ;;  %v9855_v42 = vld [vmem:[#allocation8 + $0x1630] sm:$0xff] }
 0x603   :  { %9753 = vmatmul.mubr.bf16.gmra.mrb[44].mxu0 %v17964_v18  ;;  %9806 = vmatmul.mubr.bf16.gmra.mrb[76].mxu1 %v17964_v18  ;;  %v9893_v18 = vld [vmem:[#allocation8 + $0x1760] sm:$0xff]  ;;  %v9920_v0 = vsel %vm2337_vm6, %v9919_v10, %v9918_v58 }
 0x604   :  { %10298 = vmatpush1.bf16.msra.mxu0 %v14854_v53  ;;  %10351 = vmatpush1.bf16.msra.mxu1 %v14856_v15  ;;  %v14879_v37 = vcombine.high %v9889_v4, %v9893_v18  ;;  %v9901_v53 = vld [vmem:[#allocation8 + $0x17a0] sm:$0xff]  ;;  %v9898_v15 = vld [vmem:[#allocation8 + $0x1788] sm:$0xff]  ;;  %v14878_v55 = vcombine.low %v9889_v4, %v9893_v18  ;;  %v9937_v18 = vrot.slane %v17680_v47, 5 }
 0x605   :  { %10299 = vmatprep.subr.bf16.mxu0 %v14863_v5  ;;  %10352 = vmatprep.subr.bf16.mxu1 %v14865_v60  ;;  %v9902_v5 = vld [vmem:[#allocation8 + $0x17a8] sm:$0xff]  ;;  %v9931_v60 = vsel %vm2331_vm4, %v9930_v17, %v9929_v41  ;;  %v14886_v10 = vcombine.low %v9897_v7, %v9901_v53  ;;  %v9944_v41 = vrot.slane %v17698_v32, 1 }
 0x606   :  { %10325 = vmatprep.mubr.bf16.mxu0 %v18514_v59  ;;  %10378 = vmatprep.mubr.bf16.mxu1 %v18514_v59  ;;  %v9910_v17 = vld [vmem:[#allocation8 + $0x17e8] sm:$0xff] }
 0x608   :  { %10300 = vmatpush1.bf16.msra.mxu0 %v14862_v63  ;;  %10353 = vmatpush1.bf16.msra.mxu1 %v14864_v14  ;;  %v14887_v63 = vcombine.high %v9897_v7, %v9901_v53  ;;  %v14889_v14 = vcombine.high %v9898_v15, %v9902_v5  ;;  %v9957_v7 = vsel %vm2328_vm3, %v9956_v23, %v9955_v33  ;;  %v9939_v53 = vrot.slane %v17674_v3, 4  ;;  %v9859_v23 = vld [vmem:[#allocation8 + $0x1650] sm:$0xff] }
 0x609   :  { %10301 = vmatprep.subr.bf16.mxu0 %v14871_v43  ;;  %10354 = vmatprep.subr.bf16.mxu1 %v14873_v22  ;;  %v9923_v43 = vrot.slane %v17656_v45, 5  ;;  %v9932_v22 = vsel %vm2334_vm5, %v17662_v13, %v9931_v60  ;;  %v14895_v60 = vcombine.high %v9905_v50, %v9909_v29 }
 0x60a   :  { %v9934_v4 = vsel %vm2337_vm6, %v9933_v52, %v9932_v22  ;;  %v14897_v52 = vcombine.high %v9906_v31, %v9910_v17  ;;  %v9851_v22 = vld [vmem:[#allocation8 + $0x1610] sm:$0xff] }
 0x60b   :  { %v9936_v58 = vsel %vm2340_vm7, %v9935_v40, %v9934_v4  ;;  %v9947_v40 = vrot.slane %v17704_v39, 7 }
 0x60c   :  { %10302 = vmatpush1.bf16.msra.mxu0 %v14870_v21  ;;  %10355 = vmatpush1.bf16.msra.mxu1 %v14872_v46  ;;  %v9941_v21 = vrot.slane %v17692_v1, 3  ;;  %v9942_v46 = vrot.slane %v17685_v19, 2  ;;  %v9938_v19 = vsel %vm2343_vm8, %v9937_v18, %v9936_v58  ;;  %v14843_v18 = vcombine.high %v9851_v22, %v9855_v42 }
 0x60d   :  { %10303 = vmatprep.subr.bf16.mxu0 %v14879_v37  ;;  %10356 = vmatprep.subr.bf16.mxu1 %v14881_v34  ;;  %v14888_v37 = vcombine.low %v9898_v15, %v9902_v5  ;;  %v9922_v34 = vsel %vm2340_vm7, %v9921_v61, %v9920_v0  ;;  %v9959_v5 = vsel %vm2331_vm4, %v9958_v35, %v9957_v7  ;;  %v9961_v0 = vrot.slane %v17738_v6, 7  ;;  %v9864_v35 = vld [vmem:[#allocation8 + $0x1678] sm:$0xff]  ;;  %v9867_v7 = vld [vmem:[#allocation8 + $0x1690] sm:$0xff] }
 0x60e   :  { %v9924_v1 = vsel %vm2343_vm8, %v9923_v43, %v9922_v34  ;;  %v9943_v15 = vsel %vm2328_vm3, %v9942_v46, %v9941_v21  ;;  %v14894_v61 = vcombine.low %v9905_v50, %v9909_v29  ;;  %v9940_v4 = vsel %vm2346_vm9, %v9939_v53, %v9938_v19  ;;  %v9863_v21 = vld [vmem:[#allocation8 + $0x1670] sm:$0xff]  ;;  %v9860_v46 = vld [vmem:[#allocation8 + $0x1658] sm:$0xff] }
 0x60f   :  { %v9945_v43 = vsel %vm2331_vm4, %v9944_v41, %v9943_v15  ;;  %v9960_v50 = vsel %vm2334_vm5, %v17725_v25, %v9959_v5  ;;  %v9965_v19 = vrot.slane %v17749_v56, 5  ;;  %v9963_v41 = vrot.slane %v17733_v62, 6  ;;  %v9871_v5 = vld [vmem:[#allocation8 + $0x16b0] sm:$0xff] }
 0x610   :  { %10304 = vmatpush1.bf16.msra.mxu0 %v14878_v55  ;;  %10357 = vmatpush1.bf16.msra.mxu1 %v14880_v24  ;;  %v9852_v55 = vld [vmem:[#allocation8 + $0x1618] sm:$0xff]  ;;  %v9951_v58 = vrot.slane %v17707_v27, 5  ;;  %v9949_v53 = vrot.slane %v17773_v51, 6 }
 0x611   :  { %10305 = vmatprep.subr.bf16.mxu0 %v14887_v63  ;;  %10358 = vmatprep.subr.bf16.mxu1 %v14889_v14  ;;  %v9856_v24 = vld [vmem:[#allocation8 + $0x1638] sm:$0xff]  ;;  %v14896_v63 = vcombine.low %v9906_v31, %v9910_v17  ;;  %v9925_v14 = vrot.slane %v17647_v49, 4  ;;  %v9946_v31 = vsel %vm2334_vm5, %v17695_v30, %v9945_v43  ;;  %v9962_v17 = vsel %vm2337_vm6, %v9961_v0, %v9960_v50 }
 0x612   :  { %v14845_v33 = vcombine.high %v9852_v55, %v9856_v24  ;;  %v14844_v34 = vcombine.low %v9852_v55, %v9856_v24  ;;  %v9964_v15 = vsel %vm2340_vm7, %v9963_v41, %v9962_v17  ;;  %v9868_v0 = vld [vmem:[#allocation8 + $0x1698] sm:$0xff]  ;;  %v14852_v55 = vcombine.low %v9860_v46, %v9864_v35 }
 0x613   :  { %v9926_v29 = vsel %vm2346_vm9, %v9925_v14, %v9924_v1  ;;  %v9948_v1 = vsel %vm2337_vm6, %v9947_v40, %v9946_v31  ;;  %v14859_v43 = vcombine.high %v9867_v7, %v9871_v5  ;;  %v9879_v40 = vld [vmem:[#allocation8 + $0x16f0] sm:$0xff]  ;;  %v14858_v50 = vcombine.low %v9867_v7, %v9871_v5  ;;  %v9884_v41 = vld [vmem:[#allocation8 + $0x1718] sm:$0xff] }
 0x614   :  { %10306 = vmatpush1.bf16.msra.mxu0 %v14886_v10  ;;  %10359 = vmatpush1.bf16.msra.mxu1 %v14888_v37  ;;  %v18026_v10 = vpack.c.b16 %v9940_v4, %v9926_v29  ;;  %v14842_v37 = vcombine.low %v9851_v22, %v9855_v42  ;;  %v9966_v42 = vsel %vm2343_vm8, %v9965_v19, %v9964_v15  ;;  %v9895_v15 = vld [vmem:[#allocation8 + $0x1770] sm:$0xff]  ;;  %v9892_v5 = vld [vmem:[#allocation8 + $0x1758] sm:$0xff] }
 0x615   :  { %10307 = vmatprep.subr.bf16.mxu0 %v14895_v60  ;;  %10360 = vmatprep.subr.bf16.mxu1 %v14897_v52  ;;  %v14851_v60 = vcombine.high %v9859_v23, %v9863_v21  ;;  %v14853_v52 = vcombine.high %v9860_v46, %v9864_v35  ;;  %v14850_v22 = vcombine.low %v9859_v23, %v9863_v21  ;;  %v9876_v21 = vld [vmem:[#allocation8 + $0x16d8] sm:$0xff] }
 0x616   :  { %v9950_v24 = vsel %vm2340_vm7, %v9949_v53, %v9948_v1  ;;  %v9880_v46 = vld [vmem:[#allocation8 + $0x16f8] sm:$0xff]  ;;  %v9891_v53 = vld [vmem:[#allocation8 + $0x1750] sm:$0xff] }
 0x617   :  { %v9952_v14 = vsel %vm2343_vm8, %v9951_v58, %v9950_v24  ;;  %v14869_v19 = vcombine.high %v9876_v21, %v9880_v46  ;;  %v14868_v1 = vcombine.low %v9876_v21, %v9880_v46  ;;  %v9899_v24 = vld [vmem:[#allocation8 + $0x1790] sm:$0xff]  ;;  %v9908_v46 = vld [vmem:[#allocation8 + $0x17d8] sm:$0xff] }
 0x618   :  { %10308 = vmatpush1.bf16.msra.mxu0 %v14894_v61  ;;  %10361 = vmatpush1.bf16.msra.mxu1 %v14896_v63  ;;  %v9872_v61 = vld [vmem:[#allocation8 + $0x16b8] sm:$0xff]  ;;  %v9967_v63 = vrot.slane %v17776_v12, 4  ;;  %v9911_v21 = vld [vmem:[#allocation8 + $0x17f0] sm:$0xff] }
 0x619   :  { %10399 = vmatprep.subr.bf16.mxu0 %v14843_v18  ;;  %10452 = vmatprep.subr.bf16.mxu1 %v14845_v33  ;;  %v14861_v4 = vcombine.high %v9868_v0, %v9872_v61  ;;  %v9875_v18 = vld [vmem:[#allocation8 + $0x16d0] sm:$0xff]  ;;  %v9953_v33 = vrot.slane %v17789_v57, 4  ;;  %v14860_v29 = vcombine.low %v9868_v0, %v9872_v61  ;;  %v9896_v0 = vld [vmem:[#allocation8 + $0x1778] sm:$0xff] }
 0x61a   :  { %v9968_v23 = vsel %vm2346_vm9, %v9967_v63, %v9966_v42  ;;  %v14867_v17 = vcombine.high %v9875_v18, %v9879_v40  ;;  %v9903_v63 = vld [vmem:[#allocation8 + $0x17b0] sm:$0xff] }
 0x61b   :  { %10326 = vmatmul.mubr.bf16.vlgmr.msra.gmra.mrb[32].mxu0 %v18026_v10  ;;  %10379 = vmatmul.mubr.bf16.vlgmr.msra.gmra.mrb[64].mxu1 %v18026_v10  ;;  %v9954_v35 = vsel %vm2346_vm9, %v9953_v33, %v9952_v14  ;;  %v9900_v14 = vld [vmem:[#allocation8 + $0x1798] sm:$0xff]  ;;  %v14891_v33 = vcombine.high %v9899_v24, %v9903_v63 }
 0x61c   :  { %10400 = vmatpush1.bf16.msra.mxu0 %v14842_v37  ;;  %10453 = vmatpush1.bf16.msra.mxu1 %v14844_v34  ;;  %v18044_v31 = vpack.c.b16 %v9968_v23, %v9954_v35  ;;  %v9883_v37 = vld [vmem:[#allocation8 + $0x1710] sm:$0xff]  ;;  %v9912_v35 = vld [vmem:[#allocation8 + $0x17f8] sm:$0xff] }
 0x61d   :  { %10401 = vmatprep.subr.bf16.mxu0 %v14851_v60  ;;  %10454 = vmatprep.subr.bf16.mxu1 %v14853_v52  ;;  %v9887_v34 = vld [vmem:[#allocation8 + $0x1730] sm:$0xff]  ;;  %v9888_v60 = vld [vmem:[#allocation8 + $0x1738] sm:$0xff]  ;;  %v14866_v52 = vcombine.low %v9875_v18, %v9879_v40  ;;  %v14884_v18 = vcombine.low %v9892_v5, %v9896_v0 }
 0x61e   :  { %10335 = vmatprep.mubr.bf16.mxu0 %v18514_v59  ;;  %10388 = vmatprep.mubr.bf16.mxu1 %v18514_v59  ;;  %v14875_v58 = vcombine.high %v9883_v37, %v9887_v34  ;;  %v14877_v7 = vcombine.high %v9884_v41, %v9888_v60  ;;  %v14874_v61 = vcombine.low %v9883_v37, %v9887_v34  ;;  %v9907_v40 = vld [vmem:[#allocation8 + $0x17d0] sm:$0xff]  ;;  %v10538_v37 = vld [vmem:[#allocation8 + $0x1800] sm:$0xff] }
 0x61f   :  { %v14876_v42 = vcombine.low %v9884_v41, %v9888_v60  ;;  %v10542_v34 = vld [vmem:[#allocation8 + $0x1820] sm:$0xff]  ;;  %v10539_v41 = vld [vmem:[#allocation8 + $0x1808] sm:$0xff] }
 0x620   :  { %10402 = vmatpush1.bf16.msra.mxu0 %v14850_v22  ;;  %10455 = vmatpush1.bf16.msra.mxu1 %v14852_v55  ;;  %v14883_v22 = vcombine.high %v9891_v53, %v9895_v15  ;;  %v14885_v55 = vcombine.high %v9892_v5, %v9896_v0  ;;  %v10543_v60 = vld [vmem:[#allocation8 + $0x1828] sm:$0xff] }
 0x621   :  { %10403 = vmatprep.subr.bf16.mxu0 %v14859_v43  ;;  %10456 = vmatprep.subr.bf16.mxu1 %v14861_v4  ;;  %v9904_v43 = vld [vmem:[#allocation8 + $0x17b8] sm:$0xff]  ;;  %v14882_v4 = vcombine.low %v9891_v53, %v9895_v15  ;;  %v10546_v53 = vld [vmem:[#allocation8 + $0x1840] sm:$0xff]  ;;  %v10547_v5 = vld [vmem:[#allocation8 + $0x1848] sm:$0xff] }
 0x622   :  { %v14893_v23 = vcombine.high %v9900_v14, %v9904_v43  ;;  %v10550_v15 = vld [vmem:[#allocation8 + $0x1860] sm:$0xff]  ;;  %v10551_v0 = vld [vmem:[#allocation8 + $0x1868] sm:$0xff] }
 0x623   :  { %10336 = vmatmul.mubr.bf16.gmra.mrb[36].mxu0 %v18044_v31  ;;  %10389 = vmatmul.mubr.bf16.gmra.mrb[68].mxu1 %v18044_v31 }
 0x624   :  { %10404 = vmatpush1.bf16.msra.mxu0 %v14858_v50  ;;  %10457 = vmatpush1.bf16.msra.mxu1 %v14860_v29  ;;  %v14890_v50 = vcombine.low %v9899_v24, %v9903_v63  ;;  %v14892_v29 = vcombine.low %v9900_v14, %v9904_v43  ;;  %v10554_v24 = vld [vmem:[#allocation8 + $0x1880] sm:$0xff]  ;;  %v10555_v14 = vld [vmem:[#allocation8 + $0x1888] sm:$0xff] }
 0x625   :  { %10405 = vmatprep.subr.bf16.mxu0 %v14867_v17  ;;  %10458 = vmatprep.subr.bf16.mxu1 %v14869_v19  ;;  %v14899_v17 = vcombine.high %v9907_v40, %v9911_v21  ;;  %v14901_v19 = vcombine.high %v9908_v46, %v9912_v35  ;;  %v10558_v63 = vld [vmem:[#allocation8 + $0x18a0] sm:$0xff]  ;;  %v10559_v43 = vld [vmem:[#allocation8 + $0x18a8] sm:$0xff] }
 0x626   :  { %10431 = vmatprep.mubr.bf16.mxu0 %v18514_v59  ;;  %10484 = vmatprep.mubr.bf16.mxu1 %v18514_v59 }
 0x628   :  { %10406 = vmatpush1.bf16.msra.mxu0 %v14866_v52  ;;  %10459 = vmatpush1.bf16.msra.mxu1 %v14868_v1  ;;  %v14898_v52 = vcombine.low %v9907_v40, %v9911_v21  ;;  %v14900_v1 = vcombine.low %v9908_v46, %v9912_v35  ;;  %v10562_v40 = vld [vmem:[#allocation8 + $0x18c0] sm:$0xff]  ;;  %v10563_v46 = vld [vmem:[#allocation8 + $0x18c8] sm:$0xff] }
 0x629   :  { %10407 = vmatprep.subr.bf16.mxu0 %v14875_v58  ;;  %10460 = vmatprep.subr.bf16.mxu1 %v14877_v7  ;;  %v14903_v58 = vcombine.high %v10538_v37, %v10542_v34  ;;  %v14905_v7 = vcombine.high %v10539_v41, %v10543_v60  ;;  %v10566_v21 = vld [vmem:[#allocation8 + $0x18e0] sm:$0xff]  ;;  %v10567_v35 = vld [vmem:[#allocation8 + $0x18e8] sm:$0xff] }
 0x62c   :  { %10408 = vmatpush1.bf16.msra.mxu0 %v14874_v61  ;;  %10461 = vmatpush1.bf16.msra.mxu1 %v14876_v42  ;;  %v14902_v61 = vcombine.low %v10538_v37, %v10542_v34  ;;  %v14904_v42 = vcombine.low %v10539_v41, %v10543_v60  ;;  %v10574_v37 = vld [vmem:[#allocation8 + $0x1920] sm:$0xff]  ;;  %v10571_v34 = vld [vmem:[#allocation8 + $0x1908] sm:$0xff]  ;;  %v10602_v60 = vrot.slane %v17632_v28, 4 }
 0x62d   :  { %10409 = vmatprep.subr.bf16.mxu0 %v14883_v22  ;;  %10462 = vmatprep.subr.bf16.mxu1 %v14885_v55  ;;  %v14911_v22 = vcombine.high %v10546_v53, %v10550_v15  ;;  %v14913_v55 = vcombine.high %v10547_v5, %v10551_v0  ;;  %v10575_v41 = vld [vmem:[#allocation8 + $0x1928] sm:$0xff] }
 0x630   :  { %10410 = vmatpush1.bf16.msra.mxu0 %v14882_v4  ;;  %10463 = vmatpush1.bf16.msra.mxu1 %v14884_v18  ;;  %v14910_v4 = vcombine.low %v10546_v53, %v10550_v15  ;;  %v14912_v18 = vcombine.low %v10547_v5, %v10551_v0  ;;  %v14937_v15 = vcombine.high %v10571_v34, %v10575_v41  ;;  %v10578_v5 = vld [vmem:[#allocation8 + $0x1940] sm:$0xff]  ;;  %v10616_v0 = vrot.slane %v17659_v54, 4 }
 0x631   :  { %10411 = vmatprep.subr.bf16.mxu0 %v14891_v33  ;;  %10464 = vmatprep.subr.bf16.mxu1 %v14893_v23  ;;  %v14919_v33 = vcombine.high %v10554_v24, %v10558_v63  ;;  %v14921_v23 = vcombine.high %v10555_v14, %v10559_v43 }
 0x634   :  { %10412 = vmatpush1.bf16.msra.mxu0 %v14890_v50  ;;  %10465 = vmatpush1.bf16.msra.mxu1 %v14892_v29  ;;  %v14918_v50 = vcombine.low %v10554_v24, %v10558_v63  ;;  %v14927_v29 = vcombine.high %v10562_v40, %v10566_v21 }
 0x635   :  { %10413 = vmatprep.subr.bf16.mxu0 %v14899_v17  ;;  %10466 = vmatprep.subr.bf16.mxu1 %v14901_v19  ;;  %v14929_v17 = vcombine.high %v10563_v46, %v10567_v35  ;;  %v10570_v19 = vld [vmem:[#allocation8 + $0x1900] sm:$0xff] }
 0x636   :  { %v14935_v53 = vcombine.high %v10570_v19, %v10574_v37  ;;  %v14934_v63 = vcombine.low %v10570_v19, %v10574_v37 }
 0x638   :  { %10414 = vmatpush1.bf16.msra.mxu0 %v14898_v52  ;;  %10467 = vmatpush1.bf16.msra.mxu1 %v14900_v1  ;;  %v10603_v52 = vrot.slane %v17629_v9, 3  ;;  %v14926_v1 = vcombine.low %v10562_v40, %v10566_v21  ;;  %v10590_v40 = vld [vmem:[#allocation8 + $0x19a0] sm:$0xff]  ;;  %v10587_v21 = vld [vmem:[#allocation8 + $0x1988] sm:$0xff] }
 0x639   :  { %10982 = vmatprep.subr.bf16.mxu0 %v14903_v58  ;;  %11035 = vmatprep.subr.bf16.mxu1 %v14905_v7  ;;  %v14928_v58 = vcombine.low %v10563_v46, %v10567_v35  ;;  %v10605_v7 = vrot.slane %v17638_v38, 2  ;;  %v10591_v46 = vld [vmem:[#allocation8 + $0x19a8] sm:$0xff]  ;;  %v10607_v35 = vrot.slane %v17635_v11, 1 }
 0x63a   :  { %v10604_v24 = vsel %vm2328_vm3, %v10603_v52, %v10602_v60  ;;  %v14953_v60 = vcombine.high %v10587_v21, %v10591_v46  ;;  %v10594_v52 = vld [vmem:[#allocation8 + $0x19c0] sm:$0xff] }
 0x63b   :  { %10432 = vmatmul.mubr.bf16.vlgmr.msra.gmra.mrb[40].mxu0 %v18026_v10  ;;  %10485 = vmatmul.mubr.bf16.vlgmr.msra.gmra.mrb[72].mxu1 %v18026_v10  ;;  %v14920_v10 = vcombine.low %v10555_v14, %v10559_v43  ;;  %v14936_v14 = vcombine.low %v10571_v34, %v10575_v41  ;;  %v10606_v43 = vsel %vm2331_vm4, %v10605_v7, %v10604_v24  ;;  %v10612_v34 = vrot.slane %v17656_v45, 6  ;;  %v10598_v7 = vld [vmem:[#allocation8 + $0x19e0] sm:$0xff]  ;;  %v18581_v24 = vld [vmem:[#allocation40_spill] sm:$0xff] }
 0x63c   :  { %10983 = vmatpush1.bf16.msra.mxu0 %v14902_v61  ;;  %11036 = vmatpush1.bf16.msra.mxu1 %v14904_v42  ;;  %v10617_v61 = vrot.slane %v17650_v2, 3  ;;  %v10579_v42 = vld [vmem:[#allocation8 + $0x1948] sm:$0xff]  ;;  %v10608_v37 = vsel %vm2334_vm5, %v10607_v35, %v10606_v43  ;;  %v14959_v35 = vcombine.high %v10594_v52, %v10598_v7 }
 0x63d   :  { %10984 = vmatprep.subr.bf16.mxu0 %v14911_v22  ;;  %11037 = vmatprep.subr.bf16.mxu1 %v14913_v55  ;;  %v10583_v22 = vld [vmem:[#allocation8 + $0x1968] sm:$0xff]  ;;  %v10619_v55 = vrot.slane %v17665_v26, 2 }
 0x63e   :  { %10441 = vmatprep.mubr.bf16.mxu0 %v18514_v59  ;;  %10494 = vmatprep.mubr.bf16.mxu1 %v18514_v59  ;;  %v14944_v19 = vcombine.low %v10579_v42, %v10583_v22 }
 0x640   :  { %10985 = vmatpush1.bf16.msra.mxu0 %v14910_v4  ;;  %11038 = vmatpush1.bf16.msra.mxu1 %v14912_v18  ;;  %v14945_v18 = vcombine.high %v10579_v42, %v10583_v22  ;;  %v10609_v42 = vsel %vm2337_vm6, %v17644_v44, %v10608_v37  ;;  %v18580_v22 = vld [vmem:[#allocation39_spill] sm:$0xff] }
 0x641   :  { %10986 = vmatprep.subr.bf16.mxu0 %v14919_v33  ;;  %11039 = vmatprep.subr.bf16.mxu1 %v14921_v23  ;;  %v10586_v33 = vld [vmem:[#allocation8 + $0x1980] sm:$0xff]  ;;  %v10618_v23 = vsel %vm2328_vm3, %v10617_v61, %v10616_v0  ;;  %v10626_v0 = vrot.slane %v17680_v47, 6  ;;  %v10644_v61 = vrot.slane %v17722_v36, 4 }
 0x642   :  { %v14951_v41 = vcombine.high %v10586_v33, %v10590_v40 }
 0x643   :  { %10442 = vmatmul.mubr.bf16.gmra.mrb[44].mxu0 %v18044_v31  ;;  %10495 = vmatmul.mubr.bf16.gmra.mrb[76].mxu1 %v18044_v31  ;;  %v10582_v31 = vld [vmem:[#allocation8 + $0x1960] sm:$0xff] }
 0x644   :  { %10987 = vmatpush1.bf16.msra.mxu0 %v14918_v50  ;;  %11040 = vmatpush1.bf16.msra.mxu1 %v14920_v10  ;;  %v14943_v4 = vcombine.high %v10578_v5, %v10582_v31  ;;  %v10620_v50 = vsel %vm2331_vm4, %v10619_v55, %v10618_v23  ;;  %v10610_v10 = vrot.slane %v17641_v48, 7  ;;  %v10630_v55 = vrot.slane %v18580_v22, 4 }
 0x645   :  { %10988 = vmatprep.subr.bf16.mxu0 %v14927_v29  ;;  %11041 = vmatprep.subr.bf16.mxu1 %v14929_v17  ;;  %v10621_v29 = vrot.slane %v17662_v13, 1  ;;  %v14942_v17 = vcombine.low %v10578_v5, %v10582_v31  ;;  %v10645_v31 = vrot.slane %v17710_v20, 3  ;;  %v10633_v23 = vrot.slane %v17698_v32, 2 }
 0x646   :  { %11014 = vmatprep.mubr.bf16.mxu0 %v18514_v59  ;;  %11067 = vmatprep.mubr.bf16.mxu1 %v18514_v59  ;;  %v10611_v37 = vsel %vm2340_vm7, %v10610_v10, %v10609_v42  ;;  %v14958_v10 = vcombine.low %v10594_v52, %v10598_v7  ;;  %v10635_v42 = vrot.slane %v17695_v30, 1  ;;  %v10652_v52 = vrot.slane %v17733_v62, 7 }
 0x648   :  { %10989 = vmatpush1.bf16.msra.mxu0 %v14926_v1  ;;  %11042 = vmatpush1.bf16.msra.mxu1 %v14928_v58  ;;  %v10622_v1 = vsel %vm2334_vm5, %v10621_v29, %v10620_v50  ;;  %v10624_v58 = vrot.slane %v17668_v16, 7  ;;  %v10614_v16 = vrot.slane %v17647_v49, 5 }
 0x649   :  { %10990 = vmatprep.subr.bf16.mxu0 %v14935_v53  ;;  %11043 = vmatprep.subr.bf16.mxu1 %v14937_v15  ;;  %v10595_v53 = vld [vmem:[#allocation8 + $0x19c8] sm:$0xff]  ;;  %v10623_v5 = vsel %vm2337_vm6, %v17671_v8, %v10622_v1  ;;  %v10540_v1 = vld [vmem:[#allocation8 + $0x1810] sm:$0xff] }
 0x64a   :  { %v10599_v15 = vld [vmem:[#allocation8 + $0x19e8] sm:$0xff]  ;;  %v10625_v29 = vsel %vm2340_vm7, %v10624_v58, %v10623_v5  ;;  %v10649_v5 = vrot.slane %v17725_v25, 1 }
 0x64b   :  { %v14961_v50 = vcombine.high %v10595_v53, %v10599_v15  ;;  %v10627_v48 = vsel %vm2343_vm8, %v10626_v0, %v10625_v29 }
 0x64c   :  { %10991 = vmatpush1.bf16.msra.mxu0 %v14934_v63  ;;  %11044 = vmatpush1.bf16.msra.mxu1 %v14936_v14  ;;  %v10631_v63 = vrot.slane %v18581_v24, 3  ;;  %v18582_v14 = vld [vmem:[#allocation21_spill] sm:$0xff] }
 0x64d   :  { %10992 = vmatprep.subr.bf16.mxu0 %v14943_v4  ;;  %11045 = vmatprep.subr.bf16.mxu1 %v14945_v18  ;;  %v10647_v43 = vrot.slane %v18582_v14, 2  ;;  %v14950_v4 = vcombine.low %v10586_v33, %v10590_v40  ;;  %v14952_v18 = vcombine.low %v10587_v21, %v10591_v46  ;;  %v10544_v14 = vld [vmem:[#allocation8 + $0x1830] sm:$0xff]  ;;  %v10646_v33 = vsel %vm2328_vm3, %v10645_v31, %v10644_v61 }
 0x64e   :  { %v10613_v40 = vsel %vm2343_vm8, %v10612_v34, %v10611_v37  ;;  %v10628_v21 = vrot.slane %v17674_v3, 5  ;;  %v10632_v46 = vsel %vm2328_vm3, %v10631_v63, %v10630_v55  ;;  %v14907_v61 = vcombine.high %v10540_v1, %v10544_v14  ;;  %v10548_v31 = vld [vmem:[#allocation8 + $0x1850] sm:$0xff]  ;;  %v10549_v63 = vld [vmem:[#allocation8 + $0x1858] sm:$0xff] }
 0x64f   :  { %v10634_v58 = vsel %vm2331_vm4, %v10633_v23, %v10632_v46  ;;  %v10552_v55 = vld [vmem:[#allocation8 + $0x1870] sm:$0xff]  ;;  %v10615_v7 = vsel %vm2346_vm9, %v10614_v16, %v10613_v40  ;;  %v14906_v23 = vcombine.low %v10540_v1, %v10544_v14 }
 0x650   :  { %10993 = vmatpush1.bf16.msra.mxu0 %v14942_v17  ;;  %11046 = vmatpush1.bf16.msra.mxu1 %v14944_v19  ;;  %v10541_v17 = vld [vmem:[#allocation8 + $0x1818] sm:$0xff]  ;;  %v10629_v0 = vsel %vm2346_vm9, %v10628_v21, %v10627_v48  ;;  %v10654_v48 = vrot.slane %v17749_v56, 6  ;;  %v14915_v29 = vcombine.high %v10548_v31, %v10552_v55  ;;  %v10556_v40 = vld [vmem:[#allocation8 + $0x1890] sm:$0xff]  ;;  %v14914_v1 = vcombine.low %v10548_v31, %v10552_v55 }
 0x651   :  { %10994 = vmatprep.subr.bf16.mxu0 %v14951_v41  ;;  %11047 = vmatprep.subr.bf16.mxu1 %v14953_v60  ;;  %v10545_v19 = vld [vmem:[#allocation8 + $0x1838] sm:$0xff]  ;;  %v10648_v41 = vsel %vm2331_vm4, %v10647_v43, %v10646_v33  ;;  %v14960_v60 = vcombine.low %v10595_v53, %v10599_v15  ;;  %v10636_v53 = vsel %vm2334_vm5, %v10635_v42, %v10634_v58  ;;  %v10640_v33 = vrot.slane %v17707_v27, 6  ;;  %v10560_v46 = vld [vmem:[#allocation8 + $0x18b0] sm:$0xff] }
 0x652   :  { %v14909_v34 = vcombine.high %v10541_v17, %v10545_v19  ;;  %v10553_v43 = vld [vmem:[#allocation8 + $0x1878] sm:$0xff]  ;;  %v10637_v16 = vsel %vm2337_vm6, %v17704_v39, %v10636_v53  ;;  %v10568_v42 = vld [vmem:[#allocation8 + $0x18f0] sm:$0xff] }
 0x653   :  { %v14917_v37 = vcombine.high %v10549_v63, %v10553_v43  ;;  %v10565_v55 = vld [vmem:[#allocation8 + $0x18d8] sm:$0xff] }
 0x654   :  { %10995 = vmatpush1.bf16.msra.mxu0 %v14950_v4  ;;  %11048 = vmatpush1.bf16.msra.mxu1 %v14952_v18  ;;  %v10650_v4 = vsel %vm2334_vm5, %v10649_v5, %v10648_v41  ;;  %v18106_v18 = vpack.c.b16 %v10629_v0, %v10615_v7  ;;  %v10557_v41 = vld [vmem:[#allocation8 + $0x1898] sm:$0xff]  ;;  %v14923_v5 = vcombine.high %v10556_v40, %v10560_v46 }
 0x655   :  { %10996 = vmatprep.subr.bf16.mxu0 %v14959_v35  ;;  %11049 = vmatprep.subr.bf16.mxu1 %v14961_v50  ;;  %v10651_v15 = vsel %vm2337_vm6, %v17738_v6, %v10650_v4  ;;  %v14908_v35 = vcombine.low %v10541_v17, %v10545_v19  ;;  %v10638_v50 = vrot.slane %v17773_v51, 7  ;;  %v14916_v17 = vcombine.low %v10549_v63, %v10553_v43  ;;  %v10569_v63 = vld [vmem:[#allocation8 + $0x18f8] sm:$0xff] }
 0x656   :  { %v10653_v21 = vsel %vm2340_vm7, %v10652_v52, %v10651_v15  ;;  %v14922_v4 = vcombine.low %v10556_v40, %v10560_v46  ;;  %v14933_v15 = vcombine.high %v10565_v55, %v10569_v63  ;;  %v10580_v40 = vld [vmem:[#allocation8 + $0x1950] sm:$0xff]  ;;  %v10581_v46 = vld [vmem:[#allocation8 + $0x1958] sm:$0xff] }
 0x657   :  { %v10655_v14 = vsel %vm2343_vm8, %v10654_v48, %v10653_v21  ;;  %v10639_v19 = vsel %vm2340_vm7, %v10638_v50, %v10637_v16  ;;  %v10572_v48 = vld [vmem:[#allocation8 + $0x1910] sm:$0xff]  ;;  %v10577_v50 = vld [vmem:[#allocation8 + $0x1938] sm:$0xff] }
 0x658   :  { %10997 = vmatpush1.bf16.msra.mxu0 %v14958_v10  ;;  %11050 = vmatpush1.bf16.msra.mxu1 %v14960_v60  ;;  %v10561_v10 = vld [vmem:[#allocation8 + $0x18b8] sm:$0xff]  ;;  %v10656_v60 = vrot.slane %v17776_v12, 5  ;;  %v10641_v58 = vsel %vm2343_vm8, %v10640_v33, %v10639_v19  ;;  %v10584_v21 = vld [vmem:[#allocation8 + $0x1970] sm:$0xff] }
 0x659   :  { %11088 = vmatprep.subr.bf16.mxu0 %v14907_v61  ;;  %11141 = vmatprep.subr.bf16.mxu1 %v14909_v34  ;;  %v14925_v0 = vcombine.high %v10557_v41, %v10561_v10  ;;  %v10564_v61 = vld [vmem:[#allocation8 + $0x18d0] sm:$0xff]  ;;  %v10642_v34 = vrot.slane %v17789_v57, 5  ;;  %v14924_v52 = vcombine.low %v10557_v41, %v10561_v10  ;;  %v10585_v41 = vld [vmem:[#allocation8 + $0x1978] sm:$0xff] }
 0x65a   :  { %v10657_v31 = vsel %vm2346_vm9, %v10656_v60, %v10655_v14  ;;  %v14931_v53 = vcombine.high %v10564_v61, %v10568_v42  ;;  %v10588_v19 = vld [vmem:[#allocation8 + $0x1990] sm:$0xff] }
 0x65b   :  { %11015 = vmatmul.mubr.bf16.vlgmr.msra.gmra.mrb[32].mxu0 %v18106_v18  ;;  %11068 = vmatmul.mubr.bf16.vlgmr.msra.gmra.mrb[64].mxu1 %v18106_v18  ;;  %v10643_v43 = vsel %vm2346_vm9, %v10642_v34, %v10641_v58  ;;  %v10592_v60 = vld [vmem:[#allocation8 + $0x19b0] sm:$0xff]  ;;  %v10589_v58 = vld [vmem:[#allocation8 + $0x1998] sm:$0xff] }
 0x65c   :  { %11089 = vmatpush1.bf16.msra.mxu0 %v14906_v23  ;;  %11142 = vmatpush1.bf16.msra.mxu1 %v14908_v35  ;;  %v18124_v7 = vpack.c.b16 %v10657_v31, %v10643_v43  ;;  %v10576_v23 = vld [vmem:[#allocation8 + $0x1930] sm:$0xff]  ;;  %v10573_v35 = vld [vmem:[#allocation8 + $0x1918] sm:$0xff]  ;;  %v14955_v34 = vcombine.high %v10588_v19, %v10592_v60 }
 0x65d   :  { %11090 = vmatprep.subr.bf16.mxu0 %v14915_v29  ;;  %11143 = vmatprep.subr.bf16.mxu1 %v14917_v37  ;;  %v14930_v29 = vcombine.low %v10564_v61, %v10568_v42  ;;  %v14932_v37 = vcombine.low %v10565_v55, %v10569_v63  ;;  %v14939_v16 = vcombine.high %v10572_v48, %v10576_v23  ;;  %v10596_v42 = vld [vmem:[#allocation8 + $0x19d0] sm:$0xff]  ;;  %v10597_v63 = vld [vmem:[#allocation8 + $0x19d8] sm:$0xff] }
 0x65e   :  { %11024 = vmatprep.mubr.bf16.mxu0 %v18514_v59  ;;  %11077 = vmatprep.mubr.bf16.mxu1 %v18514_v59  ;;  %v14941_v33 = vcombine.high %v10573_v35, %v10577_v50  ;;  %v14938_v10 = vcombine.low %v10572_v48, %v10576_v23  ;;  %v14940_v14 = vcombine.low %v10573_v35, %v10577_v50  ;;  %v10600_v55 = vld [vmem:[#allocation8 + $0x19f0] sm:$0xff]  ;;  %v10601_v43 = vld [vmem:[#allocation8 + $0x19f8] sm:$0xff]  ;;  %v11227_v48 = vld [vmem:[#allocation8 + $0x1a00] sm:$0xff] }
 0x65f   :  { %v14948_v61 = vcombine.low %v10581_v46, %v10585_v41  ;;  %v11231_v23 = vld [vmem:[#allocation8 + $0x1a20] sm:$0xff]  ;;  %v11228_v35 = vld [vmem:[#allocation8 + $0x1a08] sm:$0xff] }
 0x660   :  { %11091 = vmatpush1.bf16.msra.mxu0 %v14914_v1  ;;  %11144 = vmatpush1.bf16.msra.mxu1 %v14916_v17  ;;  %v14947_v1 = vcombine.high %v10580_v40, %v10584_v21  ;;  %v14949_v17 = vcombine.high %v10581_v46, %v10585_v41  ;;  %v11232_v50 = vld [vmem:[#allocation8 + $0x1a28] sm:$0xff] }
 0x661   :  { %11092 = vmatprep.subr.bf16.mxu0 %v14923_v5  ;;  %11145 = vmatprep.subr.bf16.mxu1 %v14925_v0  ;;  %v10593_v5 = vld [vmem:[#allocation8 + $0x19b8] sm:$0xff]  ;;  %v14946_v0 = vcombine.low %v10580_v40, %v10584_v21  ;;  %v11235_v40 = vld [vmem:[#allocation8 + $0x1a40] sm:$0xff]  ;;  %v11236_v46 = vld [vmem:[#allocation8 + $0x1a48] sm:$0xff] }
 0x662   :  { %v14957_v31 = vcombine.high %v10589_v58, %v10593_v5  ;;  %v11239_v21 = vld [vmem:[#allocation8 + $0x1a60] sm:$0xff]  ;;  %v11240_v41 = vld [vmem:[#allocation8 + $0x1a68] sm:$0xff] }
 0x663   :  { %11025 = vmatmul.mubr.bf16.gmra.mrb[36].mxu0 %v18124_v7  ;;  %11078 = vmatmul.mubr.bf16.gmra.mrb[68].mxu1 %v18124_v7 }
 0x664   :  { %11093 = vmatpush1.bf16.msra.mxu0 %v14922_v4  ;;  %11146 = vmatpush1.bf16.msra.mxu1 %v14924_v52  ;;  %v14954_v4 = vcombine.low %v10588_v19, %v10592_v60  ;;  %v14956_v52 = vcombine.low %v10589_v58, %v10593_v5  ;;  %v11243_v19 = vld [vmem:[#allocation8 + $0x1a80] sm:$0xff]  ;;  %v11244_v58 = vld [vmem:[#allocation8 + $0x1a88] sm:$0xff] }
 0x665   :  { %11094 = vmatprep.subr.bf16.mxu0 %v14931_v53  ;;  %11147 = vmatprep.subr.bf16.mxu1 %v14933_v15  ;;  %v14963_v53 = vcombine.high %v10596_v42, %v10600_v55  ;;  %v14965_v15 = vcombine.high %v10597_v63, %v10601_v43  ;;  %v11247_v60 = vld [vmem:[#allocation8 + $0x1aa0] sm:$0xff]  ;;  %v11248_v5 = vld [vmem:[#allocation8 + $0x1aa8] sm:$0xff] }
 0x666   :  { %11120 = vmatprep.mubr.bf16.mxu0 %v18514_v59  ;;  %11173 = vmatprep.mubr.bf16.mxu1 %v18514_v59 }
 0x668   :  { %11095 = vmatpush1.bf16.msra.mxu0 %v14930_v29  ;;  %11148 = vmatpush1.bf16.msra.mxu1 %v14932_v37  ;;  %v14962_v29 = vcombine.low %v10596_v42, %v10600_v55  ;;  %v14964_v37 = vcombine.low %v10597_v63, %v10601_v43  ;;  %v11251_v42 = vld [vmem:[#allocation8 + $0x1ac0] sm:$0xff]  ;;  %v11252_v63 = vld [vmem:[#allocation8 + $0x1ac8] sm:$0xff] }
 0x669   :  { %11096 = vmatprep.subr.bf16.mxu0 %v14939_v16  ;;  %11149 = vmatprep.subr.bf16.mxu1 %v14941_v33  ;;  %v14967_v16 = vcombine.high %v11227_v48, %v11231_v23  ;;  %v14969_v33 = vcombine.high %v11228_v35, %v11232_v50  ;;  %v11255_v55 = vld [vmem:[#allocation8 + $0x1ae0] sm:$0xff]  ;;  %v11256_v43 = vld [vmem:[#allocation8 + $0x1ae8] sm:$0xff] }
 0x66c   :  { %11097 = vmatpush1.bf16.msra.mxu0 %v14938_v10  ;;  %11150 = vmatpush1.bf16.msra.mxu1 %v14940_v14  ;;  %v14966_v10 = vcombine.low %v11227_v48, %v11231_v23  ;;  %v14968_v14 = vcombine.low %v11228_v35, %v11232_v50  ;;  %v11263_v48 = vld [vmem:[#allocation8 + $0x1b20] sm:$0xff]  ;;  %v11260_v23 = vld [vmem:[#allocation8 + $0x1b08] sm:$0xff]  ;;  %v14990_v50 = vcombine.low %v11251_v42, %v11255_v55 }
 0x66d   :  { %11098 = vmatprep.subr.bf16.mxu0 %v14947_v1  ;;  %11151 = vmatprep.subr.bf16.mxu1 %v14949_v17  ;;  %v14975_v1 = vcombine.high %v11235_v40, %v11239_v21  ;;  %v14977_v17 = vcombine.high %v11236_v46, %v11240_v41  ;;  %v11264_v35 = vld [vmem:[#allocation8 + $0x1b28] sm:$0xff] }
 0x670   :  { %11099 = vmatpush1.bf16.msra.mxu0 %v14946_v0  ;;  %11152 = vmatpush1.bf16.msra.mxu1 %v14948_v61  ;;  %v14974_v0 = vcombine.low %v11235_v40, %v11239_v21  ;;  %v14976_v61 = vcombine.low %v11236_v46, %v11240_v41  ;;  %v15001_v40 = vcombine.high %v11260_v23, %v11264_v35  ;;  %v11267_v21 = vld [vmem:[#allocation8 + $0x1b40] sm:$0xff]  ;;  %v11294_v46 = vrot.slane %v17638_v38, 3 }
 0x671   :  { %11100 = vmatprep.subr.bf16.mxu0 %v14955_v34  ;;  %11153 = vmatprep.subr.bf16.mxu1 %v14957_v31  ;;  %v14983_v34 = vcombine.high %v11243_v19, %v11247_v60  ;;  %v14985_v31 = vcombine.high %v11244_v58, %v11248_v5  ;;  %v11271_v41 = vld [vmem:[#allocation8 + $0x1b60] sm:$0xff] }
 0x674   :  { %11101 = vmatpush1.bf16.msra.mxu0 %v14954_v4  ;;  %11154 = vmatpush1.bf16.msra.mxu1 %v14956_v52  ;;  %v14982_v4 = vcombine.low %v11243_v19, %v11247_v60  ;;  %v14991_v52 = vcombine.high %v11251_v42, %v11255_v55  ;;  %v15000_v60 = vcombine.low %v11260_v23, %v11264_v35  ;;  %v11279_v42 = vld [vmem:[#allocation8 + $0x1ba0] sm:$0xff]  ;;  %v11276_v55 = vld [vmem:[#allocation8 + $0x1b88] sm:$0xff]  ;;  %v11310_v23 = vrot.slane %v17662_v13, 2 }
 0x675   :  { %11102 = vmatprep.subr.bf16.mxu0 %v14963_v53  ;;  %11155 = vmatprep.subr.bf16.mxu1 %v14965_v15  ;;  %v14993_v53 = vcombine.high %v11252_v63, %v11256_v43  ;;  %v11259_v15 = vld [vmem:[#allocation8 + $0x1b00] sm:$0xff] }
 0x676   :  { %v14998_v19 = vcombine.low %v11259_v15, %v11263_v48 }
 0x678   :  { %11103 = vmatpush1.bf16.msra.mxu0 %v14962_v29  ;;  %11156 = vmatpush1.bf16.msra.mxu1 %v14964_v37  ;;  %v14992_v29 = vcombine.low %v11252_v63, %v11256_v43  ;;  %v11291_v37 = vrot.slane %v17632_v28, 5  ;;  %v11280_v63 = vld [vmem:[#allocation8 + $0x1ba8] sm:$0xff]  ;;  %v11296_v43 = vrot.slane %v17635_v11, 2 }
 0x679   :  { %11671 = vmatprep.subr.bf16.mxu0 %v14967_v16  ;;  %11724 = vmatprep.subr.bf16.mxu1 %v14969_v33  ;;  %v11292_v16 = vrot.slane %v17629_v9, 4  ;;  %v14999_v33 = vcombine.high %v11259_v15, %v11263_v48 }
 0x67b   :  { %11121 = vmatmul.mubr.bf16.vlgmr.msra.gmra.mrb[40].mxu0 %v18106_v18  ;;  %11174 = vmatmul.mubr.bf16.vlgmr.msra.gmra.mrb[72].mxu1 %v18106_v18  ;;  %v14984_v18 = vcombine.low %v11244_v58, %v11248_v5  ;;  %v11293_v58 = vsel %vm2328_vm3, %v11292_v16, %v11291_v37  ;;  %v15007_v5 = vcombine.high %v11267_v21, %v11271_v41  ;;  %v11301_v16 = vrot.slane %v17656_v45, 7 }
 0x67c   :  { %11672 = vmatpush1.bf16.msra.mxu0 %v14966_v10  ;;  %11725 = vmatpush1.bf16.msra.mxu1 %v14968_v14  ;;  %v11268_v10 = vld [vmem:[#allocation8 + $0x1b48] sm:$0xff] }
 0x67d   :  { %11673 = vmatprep.subr.bf16.mxu0 %v14975_v1  ;;  %11726 = vmatprep.subr.bf16.mxu1 %v14977_v17  ;;  %v11272_v14 = vld [vmem:[#allocation8 + $0x1b68] sm:$0xff]  ;;  %v11306_v1 = vrot.slane %v17650_v2, 4  ;;  %v11308_v17 = vrot.slane %v17665_v26, 3 }
 0x67e   :  { %11130 = vmatprep.mubr.bf16.mxu0 %v18514_v59  ;;  %11183 = vmatprep.mubr.bf16.mxu1 %v18514_v59  ;;  %v15008_v15 = vcombine.low %v11268_v10, %v11272_v14 }
 0x680   :  { %11674 = vmatpush1.bf16.msra.mxu0 %v14974_v0  ;;  %11727 = vmatpush1.bf16.msra.mxu1 %v14976_v61  ;;  %v15009_v0 = vcombine.high %v11268_v10, %v11272_v14  ;;  %v11275_v61 = vld [vmem:[#allocation8 + $0x1b80] sm:$0xff]  ;;  %v11334_v10 = vrot.slane %v17710_v20, 4 }
 0x681   :  { %11675 = vmatprep.subr.bf16.mxu0 %v14983_v34  ;;  %11728 = vmatprep.subr.bf16.mxu1 %v14985_v31  ;;  %v11295_v34 = vsel %vm2331_vm4, %v11294_v46, %v11293_v58  ;;  %v11298_v31 = vrot.slane %v17644_v44, 1  ;;  %v15015_v35 = vcombine.high %v11275_v61, %v11279_v42  ;;  %v11288_v46 = vld [vmem:[#allocation8 + $0x1be8] sm:$0xff]  ;;  %v15014_v58 = vcombine.low %v11275_v61, %v11279_v42  ;;  %v11230_v61 = vld [vmem:[#allocation8 + $0x1a18] sm:$0xff] }
 0x682   :  { %v11297_v48 = vsel %vm2334_vm5, %v11296_v43, %v11295_v34  ;;  %v18584_v43 = vld [vmem:[#allocation55_spill] sm:$0xff]  ;;  %v11234_v42 = vld [vmem:[#allocation8 + $0x1a38] sm:$0xff] }
 0x683   :  { %11131 = vmatmul.mubr.bf16.gmra.mrb[44].mxu0 %v18124_v7  ;;  %11184 = vmatmul.mubr.bf16.gmra.mrb[76].mxu1 %v18124_v7  ;;  %v11305_v7 = vrot.slane %v17659_v54, 5  ;;  %v11299_v37 = vsel %vm2337_vm6, %v11298_v31, %v11297_v48 }
 0x684   :  { %11676 = vmatpush1.bf16.msra.mxu0 %v14982_v4  ;;  %11729 = vmatpush1.bf16.msra.mxu1 %v14984_v18 }
 0x685   :  { %11677 = vmatprep.subr.bf16.mxu0 %v14991_v52  ;;  %11730 = vmatprep.subr.bf16.mxu1 %v14993_v53  ;;  %v11307_v4 = vsel %vm2328_vm3, %v11306_v1, %v11305_v7  ;;  %v11312_v52 = vrot.slane %v17671_v8, 1  ;;  %v15006_v53 = vcombine.low %v11267_v21, %v11271_v41  ;;  %v11315_v21 = vrot.slane %v17680_v47, 7 }
 0x686   :  { %11703 = vmatprep.mubr.bf16.mxu0 %v18514_v59  ;;  %11756 = vmatprep.mubr.bf16.mxu1 %v18514_v59  ;;  %v11309_v18 = vsel %vm2331_vm4, %v11308_v17, %v11307_v4  ;;  %v11333_v41 = vrot.slane %v17722_v36, 5  ;;  %v11319_v1 = vrot.slane %v18580_v22, 5  ;;  %v11320_v17 = vrot.slane %v18581_v24, 4 }
 0x687   :  { %v11311_v7 = vsel %vm2334_vm5, %v11310_v23, %v11309_v18  ;;  %v11300_v4 = vsel %vm2340_vm7, %v18584_v43, %v11299_v37  ;;  %v11317_v18 = vrot.slane %v17674_v3, 6  ;;  %v18585_v23 = vld [vmem:[#allocation53_spill] sm:$0xff]  ;;  %v11338_v47 = vrot.slane %v17725_v25, 2 }
 0x688   :  { %11678 = vmatpush1.bf16.msra.mxu0 %v14990_v50  ;;  %11731 = vmatpush1.bf16.msra.mxu1 %v14992_v29  ;;  %v15017_v50 = vcombine.high %v11276_v55, %v11280_v63  ;;  %v11283_v29 = vld [vmem:[#allocation8 + $0x1bc0] sm:$0xff]  ;;  %v11313_v14 = vsel %vm2337_vm6, %v11312_v52, %v11311_v7  ;;  %v11229_v52 = vld [vmem:[#allocation8 + $0x1a10] sm:$0xff]  ;;  %v11302_v48 = vsel %vm2343_vm8, %v11301_v16, %v11300_v4  ;;  %v11340_v7 = vrot.slane %v17738_v6, 1 }
 0x689   :  { %11679 = vmatprep.subr.bf16.mxu0 %v14999_v33  ;;  %11732 = vmatprep.subr.bf16.mxu1 %v15001_v40  ;;  %v11287_v33 = vld [vmem:[#allocation8 + $0x1be0] sm:$0xff]  ;;  %v11284_v40 = vld [vmem:[#allocation8 + $0x1bc8] sm:$0xff] }
 0x68a   :  { %v15023_v34 = vcombine.high %v11283_v29, %v11287_v33  ;;  %v15025_v31 = vcombine.high %v11284_v40, %v11288_v46  ;;  %v15022_v16 = vcombine.low %v11283_v29, %v11287_v33  ;;  %v15024_v4 = vcombine.low %v11284_v40, %v11288_v46 }
 0x68c   :  { %11680 = vmatpush1.bf16.msra.mxu0 %v14998_v19  ;;  %11733 = vmatpush1.bf16.msra.mxu1 %v15000_v60  ;;  %v18583_v19 = vld [vmem:[#allocation21_spill] sm:$0xff] }
 0x68d   :  { %11681 = vmatprep.subr.bf16.mxu0 %v15007_v5  ;;  %11734 = vmatprep.subr.bf16.mxu1 %v15009_v0  ;;  %v11336_v60 = vrot.slane %v18583_v19, 3  ;;  %v15016_v5 = vcombine.low %v11276_v55, %v11280_v63  ;;  %v11322_v0 = vrot.slane %v17698_v32, 3  ;;  %v11326_v55 = vrot.slane %v17704_v39, 1 }
 0x68e   :  { %v11335_v63 = vsel %vm2328_vm3, %v11334_v10, %v11333_v41  ;;  %v11303_v41 = vrot.slane %v17647_v49, 6 }
 0x68f   :  { %v11337_v37 = vsel %vm2331_vm4, %v11336_v60, %v11335_v63  ;;  %v11241_v60 = vld [vmem:[#allocation8 + $0x1a70] sm:$0xff] }
 0x690   :  { %11682 = vmatpush1.bf16.msra.mxu0 %v15006_v53  ;;  %11735 = vmatpush1.bf16.msra.mxu1 %v15008_v15  ;;  %v11314_v53 = vsel %vm2340_vm7, %v18585_v23, %v11313_v14  ;;  %v11233_v15 = vld [vmem:[#allocation8 + $0x1a30] sm:$0xff]  ;;  %v11339_v29 = vsel %vm2334_vm5, %v11338_v47, %v11337_v37  ;;  %v11304_v33 = vsel %vm2346_vm9, %v11303_v41, %v11302_v48  ;;  %v11329_v48 = vrot.slane %v17707_v27, 7 }
 0x691   :  { %11683 = vmatprep.subr.bf16.mxu0 %v15015_v35  ;;  %11736 = vmatprep.subr.bf16.mxu1 %v15017_v50  ;;  %v11316_v35 = vsel %vm2343_vm8, %v11315_v21, %v11314_v53  ;;  %v11321_v50 = vsel %vm2328_vm3, %v11320_v17, %v11319_v1  ;;  %v14971_v10 = vcombine.high %v11229_v52, %v11233_v15  ;;  %v11237_v53 = vld [vmem:[#allocation8 + $0x1a50] sm:$0xff]  ;;  %v11324_v1 = vrot.slane %v17695_v30, 2 }
 0x692   :  { %v11323_v14 = vsel %vm2331_vm4, %v11322_v0, %v11321_v50  ;;  %v14973_v21 = vcombine.high %v11230_v61, %v11234_v42  ;;  %v11318_v17 = vsel %vm2346_vm9, %v11317_v18, %v11316_v35  ;;  %v11341_v46 = vsel %vm2337_vm6, %v11340_v7, %v11339_v29  ;;  %v11245_v50 = vld [vmem:[#allocation8 + $0x1a90] sm:$0xff] }
 0x693   :  { %v11325_v40 = vsel %vm2334_vm5, %v11324_v1, %v11323_v14  ;;  %v11343_v0 = vrot.slane %v17749_v56, 7  ;;  %v18187_v18 = vpack.c.b16 %v11318_v17, %v11304_v33  ;;  %v14979_v35 = vcombine.high %v11237_v53, %v11241_v60  ;;  %v11249_v7 = vld [vmem:[#allocation8 + $0x1ab0] sm:$0xff]  ;;  %v11246_v14 = vld [vmem:[#allocation8 + $0x1a98] sm:$0xff] }
 0x694   :  { %11684 = vmatpush1.bf16.msra.mxu0 %v15014_v58  ;;  %11737 = vmatpush1.bf16.msra.mxu1 %v15016_v5  ;;  %v11238_v58 = vld [vmem:[#allocation8 + $0x1a58] sm:$0xff]  ;;  %v11327_v63 = vsel %vm2337_vm6, %v11326_v55, %v11325_v40  ;;  %v11342_v37 = vsel %vm2340_vm7, %v17733_v62, %v11341_v46  ;;  %v11345_v55 = vrot.slane %v17776_v12, 6  ;;  %v14987_v41 = vcombine.high %v11245_v50, %v11249_v7  ;;  %v11257_v17 = vld [vmem:[#allocation8 + $0x1af0] sm:$0xff] }
 0x695   :  { %11685 = vmatprep.subr.bf16.mxu0 %v15023_v34  ;;  %11738 = vmatprep.subr.bf16.mxu1 %v15025_v31  ;;  %v11242_v5 = vld [vmem:[#allocation8 + $0x1a78] sm:$0xff]  ;;  %v14970_v34 = vcombine.low %v11229_v52, %v11233_v15  ;;  %v14972_v31 = vcombine.low %v11230_v61, %v11234_v42  ;;  %v11344_v52 = vsel %vm2343_vm8, %v11343_v0, %v11342_v37  ;;  %v11331_v1 = vrot.slane %v17789_v57, 6 }
 0x696   :  { %v14981_v47 = vcombine.high %v11238_v58, %v11242_v5  ;;  %v14978_v15 = vcombine.low %v11237_v53, %v11241_v60  ;;  %v14980_v61 = vcombine.low %v11238_v58, %v11242_v5  ;;  %v11328_v42 = vsel %vm2340_vm7, %v17773_v51, %v11327_v63  ;;  %v11254_v60 = vld [vmem:[#allocation8 + $0x1ad8] sm:$0xff] }
 0x697   :  { %v11346_v53 = vsel %vm2346_vm9, %v11345_v55, %v11344_v52  ;;  %v11258_v58 = vld [vmem:[#allocation8 + $0x1af8] sm:$0xff]  ;;  %v14986_v29 = vcombine.low %v11245_v50, %v11249_v7  ;;  %v11269_v7 = vld [vmem:[#allocation8 + $0x1b50] sm:$0xff] }
 0x698   :  { %11686 = vmatpush1.bf16.msra.mxu0 %v15022_v16  ;;  %11739 = vmatpush1.bf16.msra.mxu1 %v15024_v4  ;;  %v11250_v16 = vld [vmem:[#allocation8 + $0x1ab8] sm:$0xff]  ;;  %v11330_v4 = vsel %vm2343_vm8, %v11329_v48, %v11328_v42  ;;  %v14997_v0 = vcombine.high %v11254_v60, %v11258_v58  ;;  %v14996_v48 = vcombine.low %v11254_v60, %v11258_v58  ;;  %v11285_v58 = vld [vmem:[#allocation8 + $0x1bd0] sm:$0xff] }
 0x699   :  { %11777 = vmatprep.subr.bf16.mxu0 %v14971_v10  ;;  %11830 = vmatprep.subr.bf16.mxu1 %v14973_v21  ;;  %v14989_v10 = vcombine.high %v11246_v14, %v11250_v16  ;;  %v11253_v21 = vld [vmem:[#allocation8 + $0x1ad0] sm:$0xff]  ;;  %v11332_v5 = vsel %vm2346_vm9, %v11331_v1, %v11330_v4  ;;  %v14988_v33 = vcombine.low %v11246_v14, %v11250_v16  ;;  %v11262_v63 = vld [vmem:[#allocation8 + $0x1b18] sm:$0xff] }
 0x69a   :  { %v18204_v40 = vpack.c.b16 %v11346_v53, %v11332_v5  ;;  %v14995_v46 = vcombine.high %v11253_v21, %v11257_v17  ;;  %v11273_v14 = vld [vmem:[#allocation8 + $0x1b70] sm:$0xff]  ;;  %v11270_v16 = vld [vmem:[#allocation8 + $0x1b58] sm:$0xff] }
 0x69b   :  { %11704 = vmatmul.mubr.bf16.vlgmr.msra.gmra.mrb[32].mxu0 %v18187_v18  ;;  %11757 = vmatmul.mubr.bf16.vlgmr.msra.gmra.mrb[64].mxu1 %v18187_v18  ;;  %v11274_v52 = vld [vmem:[#allocation8 + $0x1b78] sm:$0xff]  ;;  %v15011_v42 = vcombine.high %v11269_v7, %v11273_v14  ;;  %v11277_v4 = vld [vmem:[#allocation8 + $0x1b90] sm:$0xff]  ;;  %v15010_v1 = vcombine.low %v11269_v7, %v11273_v14 }
 0x69c   :  { %11778 = vmatpush1.bf16.msra.mxu0 %v14970_v34  ;;  %11831 = vmatpush1.bf16.msra.mxu1 %v14972_v31  ;;  %v11261_v34 = vld [vmem:[#allocation8 + $0x1b10] sm:$0xff]  ;;  %v15013_v55 = vcombine.high %v11270_v16, %v11274_v52  ;;  %v15012_v53 = vcombine.low %v11270_v16, %v11274_v52  ;;  %v11924_v16 = vld [vmem:[#allocation8 + $0x1c40] sm:$0xff] }
 0x69d   :  { %11779 = vmatprep.subr.bf16.mxu0 %v14979_v35  ;;  %11832 = vmatprep.subr.bf16.mxu1 %v14981_v47  ;;  %v11265_v31 = vld [vmem:[#allocation8 + $0x1b30] sm:$0xff]  ;;  %v11266_v35 = vld [vmem:[#allocation8 + $0x1b38] sm:$0xff]  ;;  %v14994_v47 = vcombine.low %v11253_v21, %v11257_v17  ;;  %v11928_v52 = vld [vmem:[#allocation8 + $0x1c60] sm:$0xff] }
 0x69e   :  { %11713 = vmatprep.mubr.bf16.mxu0 %v18514_v59  ;;  %11766 = vmatprep.mubr.bf16.mxu1 %v18514_v59  ;;  %v15003_v50 = vcombine.high %v11261_v34, %v11265_v31  ;;  %v15005_v37 = vcombine.high %v11262_v63, %v11266_v35  ;;  %v11282_v21 = vld [vmem:[#allocation8 + $0x1bb8] sm:$0xff]  ;;  %v11289_v5 = vld [vmem:[#allocation8 + $0x1bf0] sm:$0xff] }
 0x6a0   :  { %11780 = vmatpush1.bf16.msra.mxu0 %v14978_v15  ;;  %11833 = vmatpush1.bf16.msra.mxu1 %v14980_v61  ;;  %v15002_v15 = vcombine.low %v11261_v34, %v11265_v31  ;;  %v15004_v61 = vcombine.low %v11262_v63, %v11266_v35  ;;  %v15027_v34 = vcombine.high %v11285_v58, %v11289_v5  ;;  %v11916_v63 = vld [vmem:[#allocation8 + $0x1c00] sm:$0xff] }
 0x6a1   :  { %11781 = vmatprep.subr.bf16.mxu0 %v14987_v41  ;;  %11834 = vmatprep.subr.bf16.mxu1 %v14989_v10  ;;  %v11281_v41 = vld [vmem:[#allocation8 + $0x1bb0] sm:$0xff]  ;;  %v11278_v10 = vld [vmem:[#allocation8 + $0x1b98] sm:$0xff]  ;;  %v11920_v35 = vld [vmem:[#allocation8 + $0x1c20] sm:$0xff] }
 0x6a2   :  { %v15019_v17 = vcombine.high %v11277_v4, %v11281_v41  ;;  %v15021_v60 = vcombine.high %v11278_v10, %v11282_v21  ;;  %v15031_v7 = vcombine.high %v11916_v63, %v11920_v35 }
 0x6a3   :  { %11714 = vmatmul.mubr.bf16.gmra.mrb[36].mxu0 %v18204_v40  ;;  %11767 = vmatmul.mubr.bf16.gmra.mrb[68].mxu1 %v18204_v40 }
 0x6a4   :  { %11782 = vmatpush1.bf16.msra.mxu0 %v14986_v29  ;;  %11835 = vmatpush1.bf16.msra.mxu1 %v14988_v33  ;;  %v11286_v29 = vld [vmem:[#allocation8 + $0x1bd8] sm:$0xff] }
 0x6a5   :  { %11783 = vmatprep.subr.bf16.mxu0 %v14995_v46  ;;  %11836 = vmatprep.subr.bf16.mxu1 %v14997_v0  ;;  %v11290_v33 = vld [vmem:[#allocation8 + $0x1bf8] sm:$0xff]  ;;  %v15018_v46 = vcombine.low %v11277_v4, %v11281_v41  ;;  %v15020_v0 = vcombine.low %v11278_v10, %v11282_v21  ;;  %v15039_v4 = vcombine.high %v11924_v16, %v11928_v52  ;;  %v11932_v10 = vld [vmem:[#allocation8 + $0x1c80] sm:$0xff] }
 0x6a6   :  { %11809 = vmatprep.mubr.bf16.mxu0 %v18514_v59  ;;  %11862 = vmatprep.mubr.bf16.mxu1 %v18514_v59  ;;  %v15029_v31 = vcombine.high %v11286_v29, %v11290_v33  ;;  %v11936_v21 = vld [vmem:[#allocation8 + $0x1ca0] sm:$0xff] }
 0x6a8   :  { %11784 = vmatpush1.bf16.msra.mxu0 %v14994_v47  ;;  %11837 = vmatpush1.bf16.msra.mxu1 %v14996_v48  ;;  %v11917_v47 = vld [vmem:[#allocation8 + $0x1c08] sm:$0xff] }
 0x6a9   :  { %11785 = vmatprep.subr.bf16.mxu0 %v15003_v50  ;;  %11838 = vmatprep.subr.bf16.mxu1 %v15005_v37  ;;  %v11921_v48 = vld [vmem:[#allocation8 + $0x1c28] sm:$0xff]  ;;  %v15026_v50 = vcombine.low %v11285_v58, %v11289_v5  ;;  %v15028_v37 = vcombine.low %v11286_v29, %v11290_v33  ;;  %v15047_v58 = vcombine.high %v11932_v10, %v11936_v21  ;;  %v11940_v29 = vld [vmem:[#allocation8 + $0x1cc0] sm:$0xff] }
 0x6aa   :  { %v15033_v14 = vcombine.high %v11917_v47, %v11921_v48  ;;  %v11944_v33 = vld [vmem:[#allocation8 + $0x1ce0] sm:$0xff] }
 0x6ac   :  { %11786 = vmatpush1.bf16.msra.mxu0 %v15002_v15  ;;  %11839 = vmatpush1.bf16.msra.mxu1 %v15004_v61  ;;  %v11925_v15 = vld [vmem:[#allocation8 + $0x1c48] sm:$0xff] }
 0x6ad   :  { %11787 = vmatprep.subr.bf16.mxu0 %v15011_v42  ;;  %11840 = vmatprep.subr.bf16.mxu1 %v15013_v55  ;;  %v11929_v61 = vld [vmem:[#allocation8 + $0x1c68] sm:$0xff]  ;;  %v15030_v42 = vcombine.low %v11916_v63, %v11920_v35  ;;  %v15032_v55 = vcombine.low %v11917_v47, %v11921_v48  ;;  %v11948_v35 = vld [vmem:[#allocation8 + $0x1d00] sm:$0xff] }
 0x6ae   :  { %v15041_v41 = vcombine.high %v11925_v15, %v11929_v61  ;;  %v11952_v47 = vld [vmem:[#allocation8 + $0x1d20] sm:$0xff]  ;;  %v11949_v48 = vld [vmem:[#allocation8 + $0x1d08] sm:$0xff] }
 0x6b0   :  { %11788 = vmatpush1.bf16.msra.mxu0 %v15010_v1  ;;  %11841 = vmatpush1.bf16.msra.mxu1 %v15012_v53  ;;  %v11933_v1 = vld [vmem:[#allocation8 + $0x1c88] sm:$0xff] }
 0x6b1   :  { %11789 = vmatprep.subr.bf16.mxu0 %v15019_v17  ;;  %11842 = vmatprep.subr.bf16.mxu1 %v15021_v60  ;;  %v11937_v53 = vld [vmem:[#allocation8 + $0x1ca8] sm:$0xff]  ;;  %v15038_v17 = vcombine.low %v11924_v16, %v11928_v52  ;;  %v15040_v60 = vcombine.low %v11925_v15, %v11929_v61  ;;  %v11983_v52 = vrot.slane %v17638_v38, 4  ;;  %v15063_v15 = vcombine.high %v11948_v35, %v11952_v47 }
 0x6b2   :  { %v15049_v5 = vcombine.high %v11933_v1, %v11937_v53 }
 0x6b4   :  { %11790 = vmatpush1.bf16.msra.mxu0 %v15018_v46  ;;  %11843 = vmatpush1.bf16.msra.mxu1 %v15020_v0  ;;  %v11941_v46 = vld [vmem:[#allocation8 + $0x1cc8] sm:$0xff] }
 0x6b5   :  { %11791 = vmatprep.subr.bf16.mxu0 %v15027_v34  ;;  %11844 = vmatprep.subr.bf16.mxu1 %v15029_v31  ;;  %v11945_v0 = vld [vmem:[#allocation8 + $0x1ce8] sm:$0xff]  ;;  %v15046_v34 = vcombine.low %v11932_v10, %v11936_v21  ;;  %v15055_v31 = vcombine.high %v11940_v29, %v11944_v33  ;;  %v11997_v21 = vrot.slane %v17665_v26, 4 }
 0x6b6   :  { %v15057_v63 = vcombine.high %v11941_v46, %v11945_v0  ;;  %v15056_v16 = vcombine.low %v11941_v46, %v11945_v0  ;;  %v11961_v10 = vld [vmem:[#allocation8 + $0x1d68] sm:$0xff]  ;;  %v11985_v46 = vrot.slane %v17635_v11, 3 }
 0x6b8   :  { %11792 = vmatpush1.bf16.msra.mxu0 %v15026_v50  ;;  %11845 = vmatpush1.bf16.msra.mxu1 %v15028_v37  ;;  %v11953_v50 = vld [vmem:[#allocation8 + $0x1d28] sm:$0xff]  ;;  %v11980_v37 = vrot.slane %v17632_v28, 6 }
 0x6b9   :  { %12360 = vmatprep.subr.bf16.mxu0 %v15031_v7  ;;  %12413 = vmatprep.subr.bf16.mxu1 %v15033_v14  ;;  %v11981_v7 = vrot.slane %v17629_v9, 5  ;;  %v15054_v14 = vcombine.low %v11940_v29, %v11944_v33  ;;  %v15065_v61 = vcombine.high %v11949_v48, %v11953_v50  ;;  %v11964_v33 = vld [vmem:[#allocation8 + $0x1d80] sm:$0xff] }
 0x6bb   :  { %11810 = vmatmul.mubr.bf16.vlgmr.msra.gmra.mrb[40].mxu0 %v18187_v18  ;;  %11863 = vmatmul.mubr.bf16.vlgmr.msra.gmra.mrb[72].mxu1 %v18187_v18  ;;  %v15048_v18 = vcombine.low %v11933_v1, %v11937_v53  ;;  %v11982_v1 = vsel %vm2328_vm3, %v11981_v7, %v11980_v37  ;;  %v15062_v53 = vcombine.low %v11948_v35, %v11952_v47  ;;  %v12001_v35 = vrot.slane %v17671_v8, 2 }
 0x6bc   :  { %12361 = vmatpush1.bf16.msra.mxu0 %v15030_v42  ;;  %12414 = vmatpush1.bf16.msra.mxu1 %v15032_v55  ;;  %v11956_v42 = vld [vmem:[#allocation8 + $0x1d40] sm:$0xff]  ;;  %v11994_v55 = vrot.slane %v17659_v54, 6 }
 0x6bd   :  { %12362 = vmatprep.subr.bf16.mxu0 %v15039_v4  ;;  %12415 = vmatprep.subr.bf16.mxu1 %v15041_v41  ;;  %v11995_v4 = vrot.slane %v17650_v2, 5  ;;  %v11957_v41 = vld [vmem:[#allocation8 + $0x1d48] sm:$0xff] }
 0x6be   :  { %11819 = vmatprep.mubr.bf16.mxu0 %v18514_v59  ;;  %11872 = vmatprep.mubr.bf16.mxu1 %v18514_v59  ;;  %v15073_v29 = vcombine.high %v11957_v41, %v11961_v10  ;;  %v15072_v37 = vcombine.low %v11957_v41, %v11961_v10  ;;  %v12008_v41 = vrot.slane %v18580_v22, 6  ;;  %v12009_v10 = vrot.slane %v18581_v24, 5 }
 0x6bf   :  { %v11996_v0 = vsel %vm2328_vm3, %v11995_v4, %v11994_v55  ;;  %v11973_v55 = vld [vmem:[#allocation8 + $0x1dc8] sm:$0xff] }
 0x6c0   :  { %12363 = vmatpush1.bf16.msra.mxu0 %v15038_v17  ;;  %12416 = vmatpush1.bf16.msra.mxu1 %v15040_v60  ;;  %v15064_v17 = vcombine.low %v11949_v48, %v11953_v50  ;;  %v11984_v60 = vsel %vm2331_vm4, %v11983_v52, %v11982_v1  ;;  %v11999_v48 = vrot.slane %v17662_v13, 3  ;;  %v11972_v52 = vld [vmem:[#allocation8 + $0x1dc0] sm:$0xff]  ;;  %v11977_v4 = vld [vmem:[#allocation8 + $0x1de8] sm:$0xff] }
 0x6c1   :  { %12364 = vmatprep.subr.bf16.mxu0 %v15047_v58  ;;  %12417 = vmatprep.subr.bf16.mxu1 %v15049_v5  ;;  %v11987_v58 = vrot.slane %v17644_v44, 2  ;;  %v11986_v47 = vsel %vm2334_vm5, %v11985_v46, %v11984_v60 }
 0x6c3   :  { %11820 = vmatmul.mubr.bf16.gmra.mrb[44].mxu0 %v18204_v40  ;;  %11873 = vmatmul.mubr.bf16.gmra.mrb[76].mxu1 %v18204_v40  ;;  %v11960_v40 = vld [vmem:[#allocation8 + $0x1d60] sm:$0xff]  ;;  %v11988_v7 = vsel %vm2337_vm6, %v11987_v58, %v11986_v47  ;;  %v11918_v47 = vld [vmem:[#allocation8 + $0x1c10] sm:$0xff] }
 0x6c4   :  { %12365 = vmatpush1.bf16.msra.mxu0 %v15046_v34  ;;  %12418 = vmatpush1.bf16.msra.mxu1 %v15048_v18  ;;  %v15071_v5 = vcombine.high %v11956_v42, %v11960_v40  ;;  %v11968_v34 = vld [vmem:[#allocation8 + $0x1da0] sm:$0xff]  ;;  %v11965_v18 = vld [vmem:[#allocation8 + $0x1d88] sm:$0xff]  ;;  %v15070_v50 = vcombine.low %v11956_v42, %v11960_v40  ;;  %v12023_v42 = vrot.slane %v17710_v20, 5  ;;  %v12003_v40 = vrot.slane %v18585_v23, 1 }
 0x6c5   :  { %12366 = vmatprep.subr.bf16.mxu0 %v15055_v31  ;;  %12419 = vmatprep.subr.bf16.mxu1 %v15057_v63  ;;  %v11969_v31 = vld [vmem:[#allocation8 + $0x1da8] sm:$0xff]  ;;  %v11998_v63 = vsel %vm2331_vm4, %v11997_v21, %v11996_v0  ;;  %v11989_v21 = vrot.slane %v18584_v43, 1  ;;  %v15078_v60 = vcombine.low %v11964_v33, %v11968_v34  ;;  %v15089_v0 = vcombine.high %v11973_v55, %v11977_v4 }
 0x6c6   :  { %12392 = vmatprep.mubr.bf16.mxu0 %v18514_v59  ;;  %12445 = vmatprep.mubr.bf16.mxu1 %v18514_v59  ;;  %v15080_v58 = vcombine.low %v11965_v18, %v11969_v31 }
 0x6c8   :  { %12367 = vmatpush1.bf16.msra.mxu0 %v15054_v14  ;;  %12420 = vmatpush1.bf16.msra.mxu1 %v15056_v16  ;;  %v15079_v14 = vcombine.high %v11964_v33, %v11968_v34  ;;  %v15081_v16 = vcombine.high %v11965_v18, %v11969_v31  ;;  %v18586_v33 = vld [vmem:[#allocation35_spill] sm:$0xff]  ;;  %v11922_v18 = vld [vmem:[#allocation8 + $0x1c30] sm:$0xff]  ;;  %v11919_v31 = vld [vmem:[#allocation8 + $0x1c18] sm:$0xff] }
 0x6c9   :  { %12368 = vmatprep.subr.bf16.mxu0 %v15063_v15  ;;  %12421 = vmatprep.subr.bf16.mxu1 %v15065_v61  ;;  %v12000_v15 = vsel %vm2334_vm5, %v11999_v48, %v11998_v63  ;;  %v11976_v61 = vld [vmem:[#allocation8 + $0x1de0] sm:$0xff] }
 0x6ca   :  { %v12002_v1 = vsel %vm2337_vm6, %v12001_v35, %v12000_v15  ;;  %v15087_v46 = vcombine.high %v11972_v52, %v11976_v61  ;;  %v12006_v35 = vrot.slane %v17674_v3, 7 }
 0x6cb   :  { %v12004_v63 = vsel %vm2340_vm7, %v12003_v40, %v12002_v1  ;;  %v15086_v1 = vcombine.low %v11972_v52, %v11976_v61  ;;  %v15088_v40 = vcombine.low %v11973_v55, %v11977_v4 }
 0x6cc   :  { %12369 = vmatpush1.bf16.msra.mxu0 %v15062_v53  ;;  %12422 = vmatpush1.bf16.msra.mxu1 %v15064_v17  ;;  %v12022_v53 = vrot.slane %v17722_v36, 6  ;;  %v12025_v17 = vrot.slane %v18583_v19, 4  ;;  %v12005_v34 = vsel %vm2343_vm8, %v18586_v33, %v12004_v63  ;;  %v12027_v63 = vrot.slane %v17725_v25, 3 }
 0x6cd   :  { %12370 = vmatprep.subr.bf16.mxu0 %v15071_v5  ;;  %12423 = vmatprep.subr.bf16.mxu1 %v15073_v29  ;;  %v11990_v5 = vsel %vm2340_vm7, %v11989_v21, %v11988_v7  ;;  %v12011_v29 = vrot.slane %v17698_v32, 4  ;;  %v12029_v21 = vrot.slane %v17738_v6, 2 }
 0x6ce   :  { %v11991_v48 = vsel %vm2343_vm8, %v17656_v45, %v11990_v5  ;;  %v12024_v7 = vsel %vm2328_vm3, %v12023_v42, %v12022_v53  ;;  %v12007_v53 = vsel %vm2346_vm9, %v12006_v35, %v12005_v34  ;;  %v15035_v42 = vcombine.high %v11918_v47, %v11922_v18 }
 0x6cf   :  { %v12026_v15 = vsel %vm2331_vm4, %v12025_v17, %v12024_v7  ;;  %v11930_v17 = vld [vmem:[#allocation8 + $0x1c70] sm:$0xff]  ;;  %v11927_v7 = vld [vmem:[#allocation8 + $0x1c58] sm:$0xff] }
 0x6d0   :  { %12371 = vmatpush1.bf16.msra.mxu0 %v15070_v50  ;;  %12424 = vmatpush1.bf16.msra.mxu1 %v15072_v37  ;;  %v11992_v50 = vrot.slane %v17647_v49, 7  ;;  %v11923_v37 = vld [vmem:[#allocation8 + $0x1c38] sm:$0xff] }
 0x6d1   :  { %12372 = vmatprep.subr.bf16.mxu0 %v15079_v14  ;;  %12425 = vmatprep.subr.bf16.mxu1 %v15081_v16  ;;  %v12010_v14 = vsel %vm2328_vm3, %v12009_v10, %v12008_v41  ;;  %v12013_v16 = vrot.slane %v17695_v30, 3  ;;  %v15037_v41 = vcombine.high %v11919_v31, %v11923_v37  ;;  %v11926_v10 = vld [vmem:[#allocation8 + $0x1c50] sm:$0xff]  ;;  %v12015_v30 = vrot.slane %v17704_v39, 2  ;;  %v11931_v49 = vld [vmem:[#allocation8 + $0x1c78] sm:$0xff] }
 0x6d2   :  { %v12012_v5 = vsel %vm2331_vm4, %v12011_v29, %v12010_v14  ;;  %v11993_v52 = vsel %vm2346_vm9, %v11992_v50, %v11991_v48  ;;  %v15036_v29 = vcombine.low %v11919_v31, %v11923_v37  ;;  %v15045_v35 = vcombine.high %v11927_v7, %v11931_v49  ;;  %v11934_v14 = vld [vmem:[#allocation8 + $0x1c90] sm:$0xff] }
 0x6d3   :  { %v12014_v61 = vsel %vm2334_vm5, %v12013_v16, %v12012_v5  ;;  %v18265_v4 = vpack.c.b16 %v12007_v53, %v11993_v52  ;;  %v12017_v48 = vrot.slane %v17773_v51, 1  ;;  %v12034_v16 = vrot.slane %v17776_v12, 7  ;;  %v11942_v53 = vld [vmem:[#allocation8 + $0x1cd0] sm:$0xff] }
 0x6d4   :  { %12373 = vmatpush1.bf16.msra.mxu0 %v15078_v60  ;;  %12426 = vmatpush1.bf16.msra.mxu1 %v15080_v58  ;;  %v12028_v60 = vsel %vm2334_vm5, %v12027_v63, %v12026_v15  ;;  %v15034_v58 = vcombine.low %v11918_v47, %v11922_v18  ;;  %v12016_v34 = vsel %vm2337_vm6, %v12015_v30, %v12014_v61  ;;  %v11938_v15 = vld [vmem:[#allocation8 + $0x1cb0] sm:$0xff]  ;;  %v12020_v37 = vrot.slane %v17789_v57, 7 }
 0x6d5   :  { %12374 = vmatprep.subr.bf16.mxu0 %v15087_v46  ;;  %12427 = vmatprep.subr.bf16.mxu1 %v15089_v0  ;;  %v12030_v55 = vsel %vm2337_vm6, %v12029_v21, %v12028_v60  ;;  %v12031_v46 = vrot.slane %v17733_v62, 1  ;;  %v15043_v0 = vcombine.high %v11926_v10, %v11930_v17  ;;  %v11935_v21 = vld [vmem:[#allocation8 + $0x1c98] sm:$0xff]  ;;  %v15042_v30 = vcombine.low %v11926_v10, %v11930_v17 }
 0x6d6   :  { %v15044_v18 = vcombine.low %v11927_v7, %v11931_v49  ;;  %v12018_v31 = vsel %vm2340_vm7, %v12017_v48, %v12016_v34  ;;  %v15051_v5 = vcombine.high %v11934_v14, %v11938_v15  ;;  %v11943_v49 = vld [vmem:[#allocation8 + $0x1cd8] sm:$0xff]  ;;  %v15050_v7 = vcombine.low %v11934_v14, %v11938_v15 }
 0x6d7   :  { %v12032_v50 = vsel %vm2340_vm7, %v12031_v46, %v12030_v55  ;;  %v11947_v10 = vld [vmem:[#allocation8 + $0x1cf8] sm:$0xff] }
 0x6d8   :  { %12375 = vmatpush1.bf16.msra.mxu0 %v15086_v1  ;;  %12428 = vmatpush1.bf16.msra.mxu1 %v15088_v40  ;;  %v11939_v1 = vld [vmem:[#allocation8 + $0x1cb8] sm:$0xff]  ;;  %v12033_v47 = vsel %vm2343_vm8, %v17749_v56, %v12032_v50  ;;  %v12019_v40 = vsel %vm2343_vm8, %v17707_v27, %v12018_v31  ;;  %v15061_v55 = vcombine.high %v11943_v49, %v11947_v10  ;;  %v11958_v50 = vld [vmem:[#allocation8 + $0x1d50] sm:$0xff] }
 0x6d9   :  { %12466 = vmatprep.subr.bf16.mxu0 %v15035_v42  ;;  %12519 = vmatprep.subr.bf16.mxu1 %v15037_v41  ;;  %v15053_v63 = vcombine.high %v11935_v21, %v11939_v1  ;;  %v12035_v42 = vsel %vm2346_vm9, %v12034_v16, %v12033_v47  ;;  %v11946_v41 = vld [vmem:[#allocation8 + $0x1cf0] sm:$0xff]  ;;  %v12021_v17 = vsel %vm2346_vm9, %v12020_v37, %v12019_v40  ;;  %v11951_v46 = vld [vmem:[#allocation8 + $0x1d18] sm:$0xff] }
 0x6da   :  { %v15052_v60 = vcombine.low %v11935_v21, %v11939_v1  ;;  %v18284_v52 = vpack.c.b16 %v12035_v42, %v12021_v17  ;;  %v15059_v61 = vcombine.high %v11942_v53, %v11946_v41  ;;  %v15060_v34 = vcombine.low %v11943_v49, %v11947_v10  ;;  %v11962_v16 = vld [vmem:[#allocation8 + $0x1d70] sm:$0xff]  ;;  %v11959_v15 = vld [vmem:[#allocation8 + $0x1d58] sm:$0xff] }
 0x6db   :  { %12393 = vmatmul.mubr.bf16.vlgmr.msra.gmra.mrb[32].mxu0 %v18265_v4  ;;  %12446 = vmatmul.mubr.bf16.vlgmr.msra.gmra.mrb[64].mxu1 %v18265_v4  ;;  %v11963_v21 = vld [vmem:[#allocation8 + $0x1d78] sm:$0xff]  ;;  %v11966_v31 = vld [vmem:[#allocation8 + $0x1d90] sm:$0xff] }
 0x6dc   :  { %12467 = vmatpush1.bf16.msra.mxu0 %v15034_v58  ;;  %12520 = vmatpush1.bf16.msra.mxu1 %v15036_v29  ;;  %v11950_v58 = vld [vmem:[#allocation8 + $0x1d10] sm:$0xff]  ;;  %v11967_v40 = vld [vmem:[#allocation8 + $0x1d98] sm:$0xff] }
 0x6dd   :  { %12468 = vmatprep.subr.bf16.mxu0 %v15043_v0  ;;  %12521 = vmatprep.subr.bf16.mxu1 %v15045_v35  ;;  %v11954_v29 = vld [vmem:[#allocation8 + $0x1d30] sm:$0xff]  ;;  %v11955_v0 = vld [vmem:[#allocation8 + $0x1d38] sm:$0xff]  ;;  %v15058_v35 = vcombine.low %v11942_v53, %v11946_v41  ;;  %v15076_v53 = vcombine.low %v11959_v15, %v11963_v21 }
 0x6de   :  { %12402 = vmatprep.mubr.bf16.mxu0 %v18514_v59  ;;  %12455 = vmatprep.mubr.bf16.mxu1 %v18514_v59  ;;  %v15067_v14 = vcombine.high %v11950_v58, %v11954_v29  ;;  %v15069_v48 = vcombine.high %v11951_v46, %v11955_v0  ;;  %v15066_v1 = vcombine.low %v11950_v58, %v11954_v29  ;;  %v11970_v37 = vld [vmem:[#allocation8 + $0x1db0] sm:$0xff]  ;;  %v11975_v17 = vld [vmem:[#allocation8 + $0x1dd8] sm:$0xff]  ;;  %v12605_v29 = vld [vmem:[#allocation8 + $0x1e00] sm:$0xff] }
 0x6df   :  { %v15068_v47 = vcombine.low %v11951_v46, %v11955_v0  ;;  %v15083_v42 = vcombine.high %v11966_v31, %v11970_v37  ;;  %v11974_v49 = vld [vmem:[#allocation8 + $0x1dd0] sm:$0xff]  ;;  %v12609_v46 = vld [vmem:[#allocation8 + $0x1e20] sm:$0xff]  ;;  %v12606_v0 = vld [vmem:[#allocation8 + $0x1e08] sm:$0xff] }
 0x6e0   :  { %12469 = vmatpush1.bf16.msra.mxu0 %v15042_v30  ;;  %12522 = vmatpush1.bf16.msra.mxu1 %v15044_v18  ;;  %v15075_v30 = vcombine.high %v11958_v50, %v11962_v16  ;;  %v15077_v18 = vcombine.high %v11959_v15, %v11963_v21  ;;  %v11978_v10 = vld [vmem:[#allocation8 + $0x1df0] sm:$0xff]  ;;  %v12617_v15 = vld [vmem:[#allocation8 + $0x1e60] sm:$0xff]  ;;  %v12614_v21 = vld [vmem:[#allocation8 + $0x1e48] sm:$0xff] }
 0x6e1   :  { %12470 = vmatprep.subr.bf16.mxu0 %v15051_v5  ;;  %12523 = vmatprep.subr.bf16.mxu1 %v15053_v63  ;;  %v11971_v5 = vld [vmem:[#allocation8 + $0x1db8] sm:$0xff]  ;;  %v15074_v63 = vcombine.low %v11958_v50, %v11962_v16  ;;  %v12613_v16 = vld [vmem:[#allocation8 + $0x1e40] sm:$0xff] }
 0x6e2   :  { %v15085_v41 = vcombine.high %v11967_v40, %v11971_v5 }
 0x6e3   :  { %12403 = vmatmul.mubr.bf16.gmra.mrb[36].mxu0 %v18284_v52  ;;  %12456 = vmatmul.mubr.bf16.gmra.mrb[68].mxu1 %v18284_v52 }
 0x6e4   :  { %12471 = vmatpush1.bf16.msra.mxu0 %v15050_v7  ;;  %12524 = vmatpush1.bf16.msra.mxu1 %v15052_v60  ;;  %v11979_v7 = vld [vmem:[#allocation8 + $0x1df8] sm:$0xff]  ;;  %v15082_v60 = vcombine.low %v11966_v31, %v11970_v37  ;;  %v12621_v37 = vld [vmem:[#allocation8 + $0x1e80] sm:$0xff] }
 0x6e5   :  { %12472 = vmatprep.subr.bf16.mxu0 %v15059_v61  ;;  %12525 = vmatprep.subr.bf16.mxu1 %v15061_v55  ;;  %v15084_v61 = vcombine.low %v11967_v40, %v11971_v5  ;;  %v15091_v55 = vcombine.high %v11974_v49, %v11978_v10  ;;  %v15093_v58 = vcombine.high %v11975_v17, %v11979_v7  ;;  %v12625_v40 = vld [vmem:[#allocation8 + $0x1ea0] sm:$0xff]  ;;  %v12622_v5 = vld [vmem:[#allocation8 + $0x1e88] sm:$0xff] }
 0x6e6   :  { %12498 = vmatprep.mubr.bf16.mxu0 %v18514_v59  ;;  %12551 = vmatprep.mubr.bf16.mxu1 %v18514_v59 }
 0x6e8   :  { %12473 = vmatpush1.bf16.msra.mxu0 %v15058_v35  ;;  %12526 = vmatpush1.bf16.msra.mxu1 %v15060_v34  ;;  %v12610_v35 = vld [vmem:[#allocation8 + $0x1e28] sm:$0xff]  ;;  %v15090_v34 = vcombine.low %v11974_v49, %v11978_v10  ;;  %v12629_v10 = vld [vmem:[#allocation8 + $0x1ec0] sm:$0xff] }
 0x6e9   :  { %12474 = vmatprep.subr.bf16.mxu0 %v15067_v14  ;;  %12527 = vmatprep.subr.bf16.mxu1 %v15069_v48  ;;  %v15092_v14 = vcombine.low %v11975_v17, %v11979_v7  ;;  %v15095_v48 = vcombine.high %v12605_v29, %v12609_v46  ;;  %v15097_v50 = vcombine.high %v12606_v0, %v12610_v35  ;;  %v12633_v17 = vld [vmem:[#allocation8 + $0x1ee0] sm:$0xff]  ;;  %v12630_v7 = vld [vmem:[#allocation8 + $0x1ec8] sm:$0xff] }
 0x6ec   :  { %12475 = vmatpush1.bf16.msra.mxu0 %v15066_v1  ;;  %12528 = vmatpush1.bf16.msra.mxu1 %v15068_v47  ;;  %v12618_v1 = vld [vmem:[#allocation8 + $0x1e68] sm:$0xff]  ;;  %v15094_v47 = vcombine.low %v12605_v29, %v12609_v46  ;;  %v12637_v29 = vld [vmem:[#allocation8 + $0x1f00] sm:$0xff] }
 0x6ed   :  { %12476 = vmatprep.subr.bf16.mxu0 %v15075_v30  ;;  %12529 = vmatprep.subr.bf16.mxu1 %v15077_v18  ;;  %v15096_v30 = vcombine.low %v12606_v0, %v12610_v35  ;;  %v15103_v18 = vcombine.high %v12613_v16, %v12617_v15  ;;  %v15105_v31 = vcombine.high %v12614_v21, %v12618_v1  ;;  %v12641_v46 = vld [vmem:[#allocation8 + $0x1f20] sm:$0xff]  ;;  %v12638_v0 = vld [vmem:[#allocation8 + $0x1f08] sm:$0xff] }
 0x6ee   :  { %v12642_v35 = vld [vmem:[#allocation8 + $0x1f28] sm:$0xff] }
 0x6f0   :  { %12477 = vmatpush1.bf16.msra.mxu0 %v15074_v63  ;;  %12530 = vmatpush1.bf16.msra.mxu1 %v15076_v53  ;;  %v12626_v63 = vld [vmem:[#allocation8 + $0x1ea8] sm:$0xff]  ;;  %v15102_v53 = vcombine.low %v12613_v16, %v12617_v15  ;;  %v15127_v16 = vcombine.high %v12637_v29, %v12641_v46  ;;  %v15129_v15 = vcombine.high %v12638_v0, %v12642_v35 }
 0x6f1   :  { %12478 = vmatprep.subr.bf16.mxu0 %v15083_v42  ;;  %12531 = vmatprep.subr.bf16.mxu1 %v15085_v41  ;;  %v15104_v42 = vcombine.low %v12614_v21, %v12618_v1  ;;  %v15111_v41 = vcombine.high %v12621_v37, %v12625_v40  ;;  %v15113_v49 = vcombine.high %v12622_v5, %v12626_v63  ;;  %v12645_v21 = vld [vmem:[#allocation8 + $0x1f40] sm:$0xff]  ;;  %v12686_v1 = vrot.slane %v17665_v26, 5 }
 0x6f4   :  { %12479 = vmatpush1.bf16.msra.mxu0 %v15082_v60  ;;  %12532 = vmatpush1.bf16.msra.mxu1 %v15084_v61  ;;  %v12634_v60 = vld [vmem:[#allocation8 + $0x1ee8] sm:$0xff]  ;;  %v15110_v61 = vcombine.low %v12621_v37, %v12625_v40  ;;  %v15128_v37 = vcombine.low %v12638_v0, %v12642_v35 }
 0x6f5   :  { %12480 = vmatprep.subr.bf16.mxu0 %v15091_v55  ;;  %12533 = vmatprep.subr.bf16.mxu1 %v15093_v58  ;;  %v15119_v55 = vcombine.high %v12629_v10, %v12633_v17  ;;  %v15121_v58 = vcombine.high %v12630_v7, %v12634_v60  ;;  %v12662_v0 = vld [vmem:[#allocation8 + $0x1fc8] sm:$0xff] }
 0x6f8   :  { %12481 = vmatpush1.bf16.msra.mxu0 %v15090_v34  ;;  %12534 = vmatpush1.bf16.msra.mxu1 %v15092_v14  ;;  %v15118_v34 = vcombine.low %v12629_v10, %v12633_v17  ;;  %v15120_v14 = vcombine.low %v12630_v7, %v12634_v60  ;;  %v12674_v17 = vrot.slane %v17635_v11, 4  ;;  %v12676_v7 = vrot.slane %v17644_v44, 3  ;;  %v12665_v11 = vld [vmem:[#allocation8 + $0x1fe0] sm:$0xff]  ;;  %v12666_v44 = vld [vmem:[#allocation8 + $0x1fe8] sm:$0xff] }
 0x6f9   :  { %13049 = vmatprep.subr.bf16.mxu0 %v15095_v48  ;;  %13102 = vmatprep.subr.bf16.mxu1 %v15097_v50  ;;  %v12683_v48 = vrot.slane %v17659_v54, 7  ;;  %v12684_v50 = vrot.slane %v17650_v2, 6  ;;  %v12670_v54 = vrot.slane %v17629_v9, 6  ;;  %v12672_v2 = vrot.slane %v17638_v38, 5  ;;  %v12658_v9 = vld [vmem:[#allocation8 + $0x1fa8] sm:$0xff] }
 0x6fb   :  { %12499 = vmatmul.mubr.bf16.vlgmr.msra.gmra.mrb[40].mxu0 %v18265_v4  ;;  %12552 = vmatmul.mubr.bf16.vlgmr.msra.gmra.mrb[72].mxu1 %v18265_v4  ;;  %v15112_v4 = vcombine.low %v12622_v5, %v12626_v63  ;;  %v12685_v40 = vsel %vm2328_vm3, %v12684_v50, %v12683_v48  ;;  %v12653_v63 = vld [vmem:[#allocation8 + $0x1f80] sm:$0xff]  ;;  %v12697_v50 = vrot.slane %v18580_v22, 7  ;;  %v12700_v22 = vrot.slane %v17698_v32, 5 }
 0x6fc   :  { %13050 = vmatpush1.bf16.msra.mxu0 %v15094_v47  ;;  %13103 = vmatpush1.bf16.msra.mxu1 %v15096_v30  ;;  %v12649_v47 = vld [vmem:[#allocation8 + $0x1f60] sm:$0xff]  ;;  %v12646_v30 = vld [vmem:[#allocation8 + $0x1f48] sm:$0xff] }
 0x6fd   :  { %13051 = vmatprep.subr.bf16.mxu0 %v15103_v18  ;;  %13104 = vmatprep.subr.bf16.mxu1 %v15105_v31  ;;  %v12650_v18 = vld [vmem:[#allocation8 + $0x1f68] sm:$0xff]  ;;  %v15126_v31 = vcombine.low %v12637_v29, %v12641_v46  ;;  %v15135_v26 = vcombine.high %v12645_v21, %v12649_v47  ;;  %v15134_v60 = vcombine.low %v12645_v21, %v12649_v47  ;;  %v12661_v29 = vld [vmem:[#allocation8 + $0x1fc0] sm:$0xff]  ;;  %v12694_v46 = vrot.slane %v18586_v33, 1 }
 0x6fe   :  { %12508 = vmatprep.mubr.bf16.mxu0 %v18514_v59  ;;  %12561 = vmatprep.mubr.bf16.mxu1 %v18514_v59  ;;  %v15137_v5 = vcombine.high %v12646_v30, %v12650_v18 }
 0x700   :  { %13052 = vmatpush1.bf16.msra.mxu0 %v15102_v53  ;;  %13105 = vmatpush1.bf16.msra.mxu1 %v15104_v42  ;;  %v12687_v53 = vsel %vm2331_vm4, %v12686_v1, %v12685_v40  ;;  %v12690_v42 = vrot.slane %v17671_v8, 3  ;;  %v12678_v1 = vrot.slane %v18584_v43, 2  ;;  %v15150_v40 = vcombine.low %v12661_v29, %v12665_v11 }
 0x701   :  { %13053 = vmatprep.subr.bf16.mxu0 %v15111_v41  ;;  %13106 = vmatprep.subr.bf16.mxu1 %v15113_v49  ;;  %v12654_v41 = vld [vmem:[#allocation8 + $0x1f88] sm:$0xff]  ;;  %v12688_v49 = vrot.slane %v17662_v13, 4 }
 0x702   :  { %v15144_v21 = vcombine.low %v12654_v41, %v12658_v9 }
 0x703   :  { %12509 = vmatmul.mubr.bf16.gmra.mrb[44].mxu0 %v18284_v52  ;;  %12562 = vmatmul.mubr.bf16.gmra.mrb[76].mxu1 %v18284_v52  ;;  %v12669_v52 = vrot.slane %v17632_v28, 7  ;;  %v12657_v28 = vld [vmem:[#allocation8 + $0x1fa0] sm:$0xff]  ;;  %v12689_v8 = vsel %vm2334_vm5, %v12688_v49, %v12687_v53  ;;  %v12616_v49 = vld [vmem:[#allocation8 + $0x1e58] sm:$0xff] }
 0x704   :  { %13054 = vmatpush1.bf16.msra.mxu0 %v15110_v61  ;;  %13107 = vmatpush1.bf16.msra.mxu1 %v15112_v4  ;;  %v15136_v61 = vcombine.low %v12646_v30, %v12650_v18  ;;  %v12680_v4 = vrot.slane %v17656_v45, 1  ;;  %v12691_v13 = vsel %vm2337_vm6, %v12690_v42, %v12689_v8  ;;  %v12711_v45 = vrot.slane %v17722_v36, 7  ;;  %v12607_v30 = vld [vmem:[#allocation8 + $0x1e10] sm:$0xff]  ;;  %v12608_v18 = vld [vmem:[#allocation8 + $0x1e18] sm:$0xff] }
 0x705   :  { %13055 = vmatprep.subr.bf16.mxu0 %v15119_v55  ;;  %13108 = vmatprep.subr.bf16.mxu1 %v15121_v58  ;;  %v12671_v38 = vsel %vm2328_vm3, %v12670_v54, %v12669_v52  ;;  %v15143_v55 = vcombine.high %v12653_v63, %v12657_v28  ;;  %v15145_v58 = vcombine.high %v12654_v41, %v12658_v9  ;;  %v12612_v52 = vld [vmem:[#allocation8 + $0x1e38] sm:$0xff]  ;;  %v12615_v42 = vld [vmem:[#allocation8 + $0x1e50] sm:$0xff]  ;;  %v12704_v41 = vrot.slane %v17704_v39, 3 }
 0x706   :  { %13081 = vmatprep.mubr.bf16.mxu0 %v18514_v59  ;;  %13134 = vmatprep.mubr.bf16.mxu1 %v18514_v59  ;;  %v12673_v10 = vsel %vm2331_vm4, %v12672_v2, %v12671_v38  ;;  %v15142_v33 = vcombine.low %v12653_v63, %v12657_v28  ;;  %v15151_v36 = vcombine.high %v12661_v29, %v12665_v11  ;;  %v18587_v9 = vld [vmem:[#allocation54_spill] sm:$0xff]  ;;  %v12619_v38 = vld [vmem:[#allocation8 + $0x1e70] sm:$0xff] }
 0x707   :  { %v12675_v35 = vsel %vm2334_vm5, %v12674_v17, %v12673_v10  ;;  %v15101_v53 = vcombine.high %v12608_v18, %v12612_v52  ;;  %v12620_v10 = vld [vmem:[#allocation8 + $0x1e78] sm:$0xff]  ;;  %v15100_v39 = vcombine.low %v12608_v18, %v12612_v52  ;;  %v12623_v11 = vld [vmem:[#allocation8 + $0x1e90] sm:$0xff] }
 0x708   :  { %13056 = vmatpush1.bf16.msra.mxu0 %v15118_v34  ;;  %13109 = vmatpush1.bf16.msra.mxu1 %v15120_v14  ;;  %v12692_v34 = vrot.slane %v18585_v23, 2  ;;  %v12712_v14 = vrot.slane %v17710_v20, 6  ;;  %v12677_v48 = vsel %vm2337_vm6, %v12676_v7, %v12675_v35  ;;  %v15153_v20 = vcombine.high %v12662_v0, %v12666_v44  ;;  %v18588_v17 = vld [vmem:[#allocation37_spill] sm:$0xff] }
 0x709   :  { %13057 = vmatprep.subr.bf16.mxu0 %v15127_v16  ;;  %13110 = vmatprep.subr.bf16.mxu1 %v15129_v15  ;;  %v12698_v16 = vrot.slane %v18581_v24, 6  ;;  %v12714_v15 = vrot.slane %v18583_v19, 5  ;;  %v12679_v24 = vsel %vm2340_vm7, %v12678_v1, %v12677_v48  ;;  %v12611_v19 = vld [vmem:[#allocation8 + $0x1e30] sm:$0xff]  ;;  %v12702_v7 = vrot.slane %v18588_v17, 4  ;;  %v12624_v35 = vld [vmem:[#allocation8 + $0x1e98] sm:$0xff] }
 0x70a   :  { %v12693_v23 = vsel %vm2340_vm7, %v12692_v34, %v12691_v13  ;;  %v12713_v54 = vsel %vm2328_vm3, %v12712_v14, %v12711_v45  ;;  %v12681_v43 = vsel %vm2343_vm8, %v12680_v4, %v12679_v24  ;;  %v15099_v63 = vcombine.high %v12607_v30, %v12611_v19  ;;  %v12628_v34 = vld [vmem:[#allocation8 + $0x1eb8] sm:$0xff]  ;;  %v12639_v24 = vld [vmem:[#allocation8 + $0x1f10] sm:$0xff] }
 0x70b   :  { %v12695_v47 = vsel %vm2343_vm8, %v12694_v46, %v12693_v23  ;;  %v12699_v2 = vsel %vm2328_vm3, %v12698_v16, %v12697_v50  ;;  %v15098_v4 = vcombine.low %v12607_v30, %v12611_v19  ;;  %v15109_v29 = vcombine.high %v12616_v49, %v12620_v10  ;;  %v12631_v16 = vld [vmem:[#allocation8 + $0x1ed0] sm:$0xff]  ;;  %v12636_v1 = vld [vmem:[#allocation8 + $0x1ef8] sm:$0xff] }
 0x70c   :  { %13058 = vmatpush1.bf16.msra.mxu0 %v15126_v31  ;;  %13111 = vmatpush1.bf16.msra.mxu1 %v15128_v37  ;;  %v12715_v31 = vsel %vm2331_vm4, %v12714_v15, %v12713_v54  ;;  %v12718_v37 = vrot.slane %v17738_v6, 3  ;;  %v12696_v32 = vsel %vm2346_vm9, %v17674_v3, %v12695_v47  ;;  %v12701_v28 = vsel %vm2331_vm4, %v12700_v22, %v12699_v2  ;;  %v12643_v19 = vld [vmem:[#allocation8 + $0x1f30] sm:$0xff]  ;;  %v12640_v18 = vld [vmem:[#allocation8 + $0x1f18] sm:$0xff] }
 0x70d   :  { %13059 = vmatprep.subr.bf16.mxu0 %v15135_v26  ;;  %13112 = vmatprep.subr.bf16.mxu1 %v15137_v5  ;;  %v15152_v26 = vcombine.low %v12662_v0, %v12666_v44  ;;  %v12716_v5 = vrot.slane %v17725_v25, 4  ;;  %v12682_v6 = vsel %vm2346_vm9, %v18587_v9, %v12681_v43  ;;  %v12703_v8 = vsel %vm2334_vm5, %v12702_v7, %v12701_v28  ;;  %v12627_v44 = vld [vmem:[#allocation8 + $0x1eb0] sm:$0xff]  ;;  %v12656_v28 = vld [vmem:[#allocation8 + $0x1f98] sm:$0xff] }
 0x70e   :  { %v18343_v25 = vpack.c.b16 %v12696_v32, %v12682_v6  ;;  %v12705_v13 = vsel %vm2337_vm6, %v12704_v41, %v12703_v8  ;;  %v12708_v46 = vrot.slane %v17707_v27, 1  ;;  %v12706_v0 = vrot.slane %v17773_v51, 2  ;;  %v12647_v2 = vld [vmem:[#allocation8 + $0x1f50] sm:$0xff]  ;;  %v12660_v41 = vld [vmem:[#allocation8 + $0x1fb8] sm:$0xff] }
 0x70f   :  { %v12717_v3 = vsel %vm2334_vm5, %v12716_v5, %v12715_v31  ;;  %v15106_v45 = vcombine.low %v12615_v42, %v12619_v38  ;;  %v15108_v14 = vcombine.low %v12616_v49, %v12620_v10  ;;  %v15115_v48 = vcombine.high %v12623_v11, %v12627_v44  ;;  %v12651_v31 = vld [vmem:[#allocation8 + $0x1f70] sm:$0xff]  ;;  %v12664_v7 = vld [vmem:[#allocation8 + $0x1fd8] sm:$0xff] }
 0x710   :  { %13060 = vmatpush1.bf16.msra.mxu0 %v15134_v60  ;;  %13113 = vmatpush1.bf16.msra.mxu1 %v15136_v61  ;;  %v12719_v60 = vsel %vm2337_vm6, %v12718_v37, %v12717_v3  ;;  %v12722_v61 = vrot.slane %v17749_v56, 1  ;;  %v12707_v27 = vsel %vm2340_vm7, %v12706_v0, %v12705_v13  ;;  %v15117_v50 = vcombine.high %v12624_v35, %v12628_v34  ;;  %v12648_v37 = vld [vmem:[#allocation8 + $0x1f58] sm:$0xff]  ;;  %v12663_v10 = vld [vmem:[#allocation8 + $0x1fd0] sm:$0xff]  ;;  %v16187_v13 = vld [vmem:[#allocation11] sm:$0xff]  }
 0x711   :  { %13061 = vmatprep.subr.bf16.mxu0 %v15143_v55  ;;  %13114 = vmatprep.subr.bf16.mxu1 %v15145_v58  ;;  %v12720_v55 = vrot.slane %v17733_v62, 2  ;;  %v15107_v58 = vcombine.high %v12615_v42, %v12619_v38  ;;  %v12709_v51 = vsel %vm2343_vm8, %v12708_v46, %v12707_v27  ;;  %v15131_v54 = vcombine.high %v12639_v24, %v12643_v19  ;;  %v12659_v42 = vld [vmem:[#allocation8 + $0x1fb0] sm:$0xff]  ;;  %v12668_v3 = vld [vmem:[#allocation8 + $0x1ff8] sm:$0xff]  ;;  %v16188_v46 = vld [vmem:[#allocation11 + $0x80] sm:$0xff]  }
 0x712   :  { %v12710_v23 = vsel %vm2346_vm9, %v17789_v57, %v12709_v51  ;;  %v15139_v5 = vcombine.high %v12647_v2, %v12651_v31  ;;  %v15138_v9 = vcombine.low %v12647_v2, %v12651_v31  ;;  %v15149_v49 = vcombine.high %v12656_v28, %v12660_v41  ;;  %v12667_v17 = vld [vmem:[#allocation8 + $0x1ff0] sm:$0xff]  ;;  %v16200_v27 = vld [vmem:[#allocation11 + $0x98] sm:$0xff]   ;;  %v16201_v51 = vld [vmem:[#allocation11 + $0x60] sm:$0xff]  }
 0x713   :  { %v12721_v56 = vsel %vm2340_vm7, %v12720_v55, %v12719_v60  ;;  %v15154_v8 = vcombine.low %v12663_v10, %v12667_v17  ;;  %v15156_v55 = vcombine.low %v12664_v7, %v12668_v3  ;;  %v16190_v0 = vld [vmem:[#allocation11 + $0xc8] sm:$0xff]  }
 0x714   :  { %13062 = vmatpush1.bf16.msra.mxu0 %v15142_v33  ;;  %13115 = vmatpush1.bf16.msra.mxu1 %v15144_v21  ;;  %v12723_v62 = vsel %vm2343_vm8, %v12722_v61, %v12721_v56  ;;  %v12635_v33 = vld [vmem:[#allocation8 + $0x1ef0] sm:$0xff]  ;;  %v12632_v21 = vld [vmem:[#allocation8 + $0x1ed8] sm:$0xff]  ;;  %v15148_v61 = vcombine.low %v12656_v28, %v12660_v41 }
 0x715   :  { %13063 = vmatprep.subr.bf16.mxu0 %v15151_v36  ;;  %13116 = vmatprep.subr.bf16.mxu1 %v15153_v20  ;;  %v12724_v15 = vsel %vm2346_vm9, %v17776_v12, %v12723_v62  ;;  %v15114_v36 = vcombine.low %v12623_v11, %v12627_v44  ;;  %v15116_v20 = vcombine.low %v12624_v35, %v12628_v34  ;;  %v12644_v12 = vld [vmem:[#allocation8 + $0x1f38] sm:$0xff]  ;;  %v16189_v11 = vld [vmem:[#allocation11 + $0x48] sm:$0xff]  }
 0x716   :  { %v18364_v47 = vpack.c.b16 %v12724_v15, %v12710_v23  ;;  %v15123_v30 = vcombine.high %v12631_v16, %v12635_v33  ;;  %v15125_v22 = vcombine.high %v12632_v21, %v12636_v1  ;;  %v15122_v52 = vcombine.low %v12631_v16, %v12635_v33  ;;  %v16191_v56 = vld [vmem:[#allocation11 + $0x8] sm:$0xff]   ;;  %v16193_v35 = vld [vmem:[#allocation11 + $0x50] sm:$0xff]   ;;  %v16204_v16 = vld [vmem:[#allocation11 + $0xa0] sm:$0xff]  }
 0x717   :  { %v15124_v57 = vcombine.low %v12632_v21, %v12636_v1  ;;  %v15133_v43 = vcombine.high %v12640_v18, %v12644_v12  ;;  %v15132_v32 = vcombine.low %v12640_v18, %v12644_v12  ;;  %v16192_v44 = vld [vmem:[#allocation11 + $0x88] sm:$0xff]   ;;  %v16194_v34 = vld [vmem:[#allocation11 + $0xd0] sm:$0xff]   ;;  %v16217_v18 = vld [vmem:[#allocation11 + $0x140] sm:$0xff]  }
 0x718   :  { %13064 = vmatpush1.bf16.msra.mxu0 %v15150_v40  ;;  %13117 = vmatpush1.bf16.msra.mxu1 %v15152_v26  ;;  %v12652_v40 = vld [vmem:[#allocation8 + $0x1f78] sm:$0xff]  ;;  %v15130_v26 = vcombine.low %v12639_v24, %v12643_v19  ;;  %v16205_v15 = vld [vmem:[#allocation11 + $0x68] sm:$0xff]   ;;  %v16215_v24 = vld [vmem:[#allocation11 + $0x38] sm:$0xff]  }
 0x719   :  { %13155 = vmatprep.subr.bf16.mxu0 %v15099_v63  ;;  %13208 = vmatprep.subr.bf16.mxu1 %v15101_v53  ;;  %v15141_v63 = vcombine.high %v12648_v37, %v12652_v40  ;;  %v12655_v53 = vld [vmem:[#allocation8 + $0x1f90] sm:$0xff]  ;;  %v15140_v6 = vcombine.low %v12648_v37, %v12652_v40  ;;  %v16195_v62 = vld [vmem:[#allocation11 + $0x10] sm:$0xff]   ;;  %v16216_v19 = vld [vmem:[#allocation11 + $0xb8] sm:$0xff]  }
 0x71a   :  { %v15147_v38 = vcombine.high %v12655_v53, %v12659_v42  ;;  %v15146_v60 = vcombine.low %v12655_v53, %v12659_v42  ;;  %v16206_v33 = vld [vmem:[#allocation11 + $0xe8] sm:$0xff]   ;;  %v16209_v23 = vld [vmem:[#allocation11 + $0x70] sm:$0xff]   ;;  %v16218_v12 = vld [vmem:[#allocation11 + $0x1c0] sm:$0xff]  }
 0x71b   :  { %13082 = vmatmul.mubr.bf16.vlgmr.msra.gmra.mrb[32].mxu0 %v18343_v25  ;;  %13135 = vmatmul.mubr.bf16.vlgmr.msra.gmra.mrb[64].mxu1 %v18343_v25  ;;  %v16207_v21 = vld [vmem:[#allocation11 + $0x28] sm:$0xff]  }
 0x71c   :  { %13156 = vmatpush1.bf16.msra.mxu0 %v15098_v4  ;;  %13209 = vmatpush1.bf16.msra.mxu1 %v15100_v39  ;;  %v15155_v4 = vcombine.high %v12663_v10, %v12667_v17  ;;  %v15157_v39 = vcombine.high %v12664_v7, %v12668_v3  ;;  %v16208_v1 = vld [vmem:[#allocation11 + $0xa8] sm:$0xff]  }
 0x71d   :  { %13157 = vmatprep.subr.bf16.mxu0 %v15107_v58  ;;  %13210 = vmatprep.subr.bf16.mxu1 %v15109_v29  ;;  %v16185_v58 = vld [vmem:[#allocation11 + $0x40] sm:$0xff]  }
 0x71e   :  { %13091 = vmatprep.mubr.bf16.mxu0 %v18514_v59  ;;  %13144 = vmatprep.mubr.bf16.mxu1 %v18514_v59  ;;  %v16186_v29 = vld [vmem:[#allocation11 + $0xc0] sm:$0xff]  }
 0x720   :  { %13158 = vmatpush1.bf16.msra.mxu0 %v15106_v45  ;;  %13211 = vmatpush1.bf16.msra.mxu1 %v15108_v14  ;;  %v16196_v45 = vld [vmem:[#allocation11 + $0x90] sm:$0xff]   ;;  %v16197_v14 = vld [vmem:[#allocation11 + $0x58] sm:$0xff]  }
 0x721   :  { %13159 = vmatprep.subr.bf16.mxu0 %v15115_v48  ;;  %13212 = vmatprep.subr.bf16.mxu1 %v15117_v50  ;;  %v16202_v48 = vld [vmem:[#allocation11 + $0xe0] sm:$0xff]  }
 0x722   :  { %v16203_v50 = vld [vmem:[#allocation11 + $0x20] sm:$0xff]  }
 0x723   :  { %13092 = vmatmul.mubr.bf16.gmra.mrb[36].mxu0 %v18364_v47  ;;  %13145 = vmatmul.mubr.bf16.gmra.mrb[68].mxu1 %v18364_v47 }
 0x724   :  { %13160 = vmatpush1.bf16.msra.mxu0 %v15114_v36  ;;  %13213 = vmatpush1.bf16.msra.mxu1 %v15116_v20  ;;  %v16210_v36 = vld [vmem:[#allocation11 + $0xf0] sm:$0xff]  }
 0x725   :  { %13161 = vmatprep.subr.bf16.mxu0 %v15123_v30  ;;  %13214 = vmatprep.subr.bf16.mxu1 %v15125_v22  ;;  %v16211_v20 = vld [vmem:[#allocation11 + $0x30] sm:$0xff]   ;;  %v16213_v30 = vld [vmem:[#allocation11 + $0x78] sm:$0xff]  }
 0x726   :  { %13187 = vmatprep.mubr.bf16.mxu0 %v18514_v59  ;;  %13240 = vmatprep.mubr.bf16.mxu1 %v18514_v59  ;;  %v16214_v22 = vld [vmem:[#allocation11 + $0xf8] sm:$0xff]  }
 0x728   :  { %13162 = vmatpush1.bf16.msra.mxu0 %v15122_v52  ;;  %13215 = vmatpush1.bf16.msra.mxu1 %v15124_v57  ;;  %v18589_v52 = vld [vmem:[#allocation20_spill] sm:$0xff] }
 0x729   :  { %13163 = vmatprep.subr.bf16.mxu0 %v15131_v54  ;;  %13216 = vmatprep.subr.bf16.mxu1 %v15133_v43  ;;  %v2225_v57 = vsub.s32 0, %v18589_v52  ;;  %v2233_v54 = vsub.s32 2, %v18589_v52  ;;  %v18378_v43 = vld [vmem:[#allocation10] sm:$0xff]  ;;  %v2229_v2 = vsub.s32 1, %v18589_v52  ;;  %v2237_v31 = vsub.s32 3, %v18589_v52 }
 0x72b   :  { %v2226_v37 = vrot.slane %v18378_v43, %v2225_v57  ;;  %v2234_v40 = vrot.slane %v18378_v43, %v2233_v54  ;;  %v16225_v57 = vld [vmem:[#allocation11 + $0x150] sm:$0xff]  }
 0x72c   :  { %13164 = vmatpush1.bf16.msra.mxu0 %v15130_v26  ;;  %13217 = vmatpush1.bf16.msra.mxu1 %v15132_v32  ;;  %v2230_v26 = vrot.slane %v18378_v43, %v2229_v2  ;;  %v2238_v32 = vrot.slane %v18378_v43, %v2237_v31  ;;  %v16226_v54 = vld [vmem:[#allocation11 + $0x1d0] sm:$0xff]  }
 0x72d   :  { %13165 = vmatprep.subr.bf16.mxu0 %v15139_v5  ;;  %13218 = vmatprep.subr.bf16.mxu1 %v15141_v63 }
 0x730   :  { %13166 = vmatpush1.bf16.msra.mxu0 %v15138_v9  ;;  %13219 = vmatpush1.bf16.msra.mxu1 %v15140_v6 }
 0x731   :  { %13167 = vmatprep.subr.bf16.mxu0 %v15147_v38  ;;  %13220 = vmatprep.subr.bf16.mxu1 %v15149_v49 }
 0x734   :  { %13168 = vmatpush1.bf16.msra.mxu0 %v15146_v60  ;;  %13221 = vmatpush1.bf16.msra.mxu1 %v15148_v61 }
 0x735   :  { %13169 = vmatprep.subr.bf16.mxu0 %v15155_v4  ;;  %13222 = vmatprep.subr.bf16.mxu1 %v15157_v39 }
 0x738   :  { %13170 = vmatpush1.bf16.msra.mxu0 %v15154_v8  ;;  %13223 = vmatpush1.bf16.msra.mxu1 %v15156_v55 }
 0x739   :  { %15256 = vmatprep.subr.bf16.mxu0 %v16185_v58  ;;  %15284 = vmatprep.subr.bf16.mxu1 %v16186_v29 }
 0x73b   :  { %13188 = vmatmul.mubr.bf16.vlgmr.msra.gmra.mrb[40].mxu0 %v18343_v25  ;;  %13241 = vmatmul.mubr.bf16.vlgmr.msra.gmra.mrb[72].mxu1 %v18343_v25  ;;  %v16198_v25 = vld [vmem:[#allocation11 + $0xd8] sm:$0xff]  }
 0x73c   :  { %13197 = vmatprep.mubr.bf16.mxu0 %v18514_v59  ;;  %13250 = vmatprep.mubr.bf16.mxu1 %v18514_v59  ;;  %v16199_v59 = vld [vmem:[#allocation11 + $0x18] sm:$0xff]  }
 0x73d   :  { %15257 = vmatpush3.bf16.msra.mxu0 %v16187_v13  ;;  %15285 = vmatpush3.bf16.msra.mxu1 %v16188_v46 }
 0x73e   :  { %15258 = vmatprep.subr.bf16.mxu0 %v16189_v11  ;;  %15286 = vmatprep.subr.bf16.mxu1 %v16190_v0 }
 0x741   :  { %15259 = vmatpush3.bf16.msra.mxu0 %v16191_v56  ;;  %15287 = vmatpush3.bf16.msra.mxu1 %v16192_v44 }
 0x742   :  { %15260 = vmatprep.subr.bf16.mxu0 %v16193_v35  ;;  %15288 = vmatprep.subr.bf16.mxu1 %v16194_v34 }
 0x743   :  { %13198 = vmatmul.mubr.bf16.gmra.mrb[44].mxu0 %v18364_v47  ;;  %13251 = vmatmul.mubr.bf16.gmra.mrb[76].mxu1 %v18364_v47  ;;  %v16212_v47 = vld [vmem:[#allocation11 + $0xb0] sm:$0xff]  }
 0x745   :  { %15261 = vmatpush3.bf16.msra.mxu0 %v16195_v62  ;;  %15289 = vmatpush3.bf16.msra.mxu1 %v16196_v45  ;;  %v16219_v62 = vld [vmem:[#allocation11 + $0x100] sm:$0xff]  }
 0x746   :  { %15262 = vmatprep.subr.bf16.mxu0 %v16197_v14  ;;  %15290 = vmatprep.subr.bf16.mxu1 %v16198_v25  ;;  %v16220_v45 = vld [vmem:[#allocation11 + $0x180] sm:$0xff]  }
 0x749   :  { %15263 = vmatpush3.bf16.msra.mxu0 %v16199_v59  ;;  %15291 = vmatpush3.bf16.msra.mxu1 %v16200_v27 }
 0x74a   :  { %15264 = vmatprep.subr.bf16.mxu0 %v16201_v51  ;;  %15292 = vmatprep.subr.bf16.mxu1 %v16202_v48  ;;  %v16221_v51 = vld [vmem:[#allocation11 + $0x148] sm:$0xff]  }
 0x74b   :  { %v16222_v48 = vld [vmem:[#allocation11 + $0x1c8] sm:$0xff]  }
 0x74d   :  { %15265 = vmatpush3.bf16.msra.mxu0 %v16203_v50  ;;  %15293 = vmatpush3.bf16.msra.mxu1 %v16204_v16 }
 0x74e   :  { %15266 = vmatprep.subr.bf16.mxu0 %v16205_v15  ;;  %15294 = vmatprep.subr.bf16.mxu1 %v16206_v33 }
 0x751   :  { %15267 = vmatpush3.bf16.msra.mxu0 %v16207_v21  ;;  %15295 = vmatpush3.bf16.msra.mxu1 %v16208_v1 }
 0x752   :  { %15268 = vmatprep.subr.bf16.mxu0 %v16209_v23  ;;  %15296 = vmatprep.subr.bf16.mxu1 %v16210_v36 }
 0x755   :  { %15269 = vmatpush3.bf16.msra.mxu0 %v16211_v20  ;;  %15297 = vmatpush3.bf16.msra.mxu1 %v16212_v47 }
 0x756   :  { %15270 = vmatprep.subr.bf16.mxu0 %v16213_v30  ;;  %15298 = vmatprep.subr.bf16.mxu1 %v16214_v22  ;;  %v16223_v30 = vld [vmem:[#allocation11 + $0x108] sm:$0xff]  }
 0x757   :  { %v16224_v22 = vld [vmem:[#allocation11 + $0x188] sm:$0xff]  }
 0x759   :  { %15271 = vmatpush3.bf16.msra.mxu0 %v16215_v24  ;;  %15299 = vmatpush3.bf16.msra.mxu1 %v16216_v19 }
 0x75a   :  { %15312 = vmatprep.subr.bf16.mxu0 %v16217_v18  ;;  %15340 = vmatprep.subr.bf16.mxu1 %v16218_v12 }
 0x7ee   :  { %v13083_v5 = vpop.f32.mrb[32].mxu0  ;;  %v13136_v63 = vpop.f32.mrb[64].mxu1 }
 0x7ef   :  { %v15434_v53 = vadd.f32 %v13083_v5, %v2226_v37  ;;  %v15442_v42 = vadd.f32 %v13136_v63, %v2234_v40  ;;  %v13085_v28 = vpop.f32.mrb[33].mxu0  ;;  %v13138_v41 = vpop.f32.mrb[65].mxu1 }
 0x7f0   :  { %v15435_v9 = vadd.f32 %v13085_v28, %v2230_v26  ;;  %v15443_v6 = vadd.f32 %v13138_v41, %v2238_v32  ;;  %v13087_v38 = vpop.f32.mrb[34].mxu0  ;;  %v13140_v49 = vpop.f32.mrb[66].mxu1  ;;  %v16229_v28 = vld [vmem:[#allocation11 + $0x158] sm:$0xff]  }
 0x7f1   :  { %v15436_v10 = vadd.f32 %v13087_v38, %v2226_v37  ;;  %v15444_v17 = vadd.f32 %v13140_v49, %v2234_v40  ;;  %v13089_v7 = vpop.f32.mrb[35].mxu0  ;;  %v13142_v3 = vpop.f32.mrb[67].mxu1  ;;  %v13293_v4 = vmax.f32 %v15434_v53, 0.0  ;;  %v13295_v39 = vmax.f32 %v15442_v42, 0.0  ;;  %v16227_v53 = vld [vmem:[#allocation11 + $0x110] sm:$0xff]   ;;  %v16230_v41 = vld [vmem:[#allocation11 + $0x1d8] sm:$0xff]  }
 0x7f2   :  { %v15437_v60 = vadd.f32 %v13089_v7, %v2230_v26  ;;  %v15445_v61 = vadd.f32 %v13142_v3, %v2238_v32  ;;  %v13294_v58 = vmax.f32 %v15435_v9, 0.0  ;;  %v13296_v29 = vmax.f32 %v15443_v6, 0.0  ;;  %v16228_v42 = vld [vmem:[#allocation11 + $0x190] sm:$0xff]   ;;  %v16231_v9 = vld [vmem:[#allocation11 + $0x118] sm:$0xff]   ;;  %v16233_v38 = vld [vmem:[#allocation11 + $0x160] sm:$0xff]  }
 0x7f3   :  { %v13301_v8 = vmax.f32 %v15436_v10, 0.0  ;;  %v13303_v55 = vmax.f32 %v15444_v17, 0.0  ;;  %v16232_v6 = vld [vmem:[#allocation11 + $0x198] sm:$0xff]   ;;  %v16234_v49 = vld [vmem:[#allocation11 + $0x1e0] sm:$0xff]   ;;  %v16237_v7 = vld [vmem:[#allocation11 + $0x168] sm:$0xff]  }
 0x7f4   :  { %v13302_v13 = vmax.f32 %v15437_v60, 0.0  ;;  %v13304_v46 = vmax.f32 %v15445_v61, 0.0  ;;  %v16235_v10 = vld [vmem:[#allocation11 + $0x120] sm:$0xff]   ;;  %v16238_v3 = vld [vmem:[#allocation11 + $0x1e8] sm:$0xff]   ;;  %v2241_v60 = vsub.s32 4, %v18589_v52  ;;  %v2249_v61 = vsub.s32 6, %v18589_v52 }
 0x7f5   :  { %v13325_v11 = vpack.c.bf16 %v13301_v8, %v13293_v4  ;;  %v13327_v0 = vpack.c.bf16 %v13303_v55, %v13295_v39  ;;  %v16236_v17 = vld [vmem:[#allocation11 + $0x1a0] sm:$0xff]   ;;  %v2245_v4 = vsub.s32 5, %v18589_v52  ;;  %v2253_v39 = vsub.s32 7, %v18589_v52  ;;  %v16239_v8 = vld [vmem:[#allocation11 + $0x128] sm:$0xff]  }
 0x7f6   :  { %v13326_v56 = vpack.c.bf16 %v13302_v13, %v13294_v58  ;;  %v13328_v44 = vpack.c.bf16 %v13304_v46, %v13296_v29  ;;  %v13093_v35 = vpop.f32.mrb[36].mxu0  ;;  %v13146_v34 = vpop.f32.mrb[68].mxu1  ;;  %v16240_v55 = vld [vmem:[#allocation11 + $0x1a8] sm:$0xff]   ;;  %v2242_v58 = vrot.slane %v18378_v43, %v2241_v60  ;;  %v2250_v29 = vrot.slane %v18378_v43, %v2249_v61  ;;  %v16241_v13 = vld [vmem:[#allocation11 + $0x170] sm:$0xff]  }
 0x7f7   :  { %v15438_v14 = vadd.f32 %v13093_v35, %v2226_v37  ;;  %v15446_v25 = vadd.f32 %v13146_v34, %v2234_v40  ;;  %v13095_v59 = vpop.f32.mrb[37].mxu0  ;;  %v13148_v27 = vpop.f32.mrb[69].mxu1  ;;  %v16242_v46 = vld [vmem:[#allocation11 + $0x1f0] sm:$0xff]  }
 0x7f8   :  { %v15439_v50 = vadd.f32 %v13095_v59, %v2230_v26  ;;  %v15447_v16 = vadd.f32 %v13148_v27, %v2238_v32  ;;  %v13097_v15 = vpop.f32.mrb[38].mxu0  ;;  %v13150_v33 = vpop.f32.mrb[70].mxu1  ;;  %13892 = vmatprep.mubr.bf16.mxu0 %v13326_v56  ;;  %13941 = vmatprep.mubr.bf16.mxu1 %v13328_v44  ;;  %v16243_v44 = vld [vmem:[#allocation11 + $0x130] sm:$0xff]   ;;  %v16246_v59 = vld [vmem:[#allocation11 + $0x1f8] sm:$0xff]  }
 0x7f9   :  { %v15440_v21 = vadd.f32 %v13097_v15, %v2226_v37  ;;  %v15448_v1 = vadd.f32 %v13150_v33, %v2234_v40  ;;  %v13099_v23 = vpop.f32.mrb[39].mxu0  ;;  %v13152_v36 = vpop.f32.mrb[71].mxu1  ;;  %13893 = vmatmul.mubr.bf16.vlgmr.msra.gmra.mrb[48].mxu0 %v13325_v11  ;;  %13942 = vmatmul.mubr.bf16.vlgmr.msra.gmra.mrb[80].mxu1 %v13327_v0  ;;  %v13309_v24 = vmax.f32 %v15438_v14, 0.0  ;;  %v13311_v19 = vmax.f32 %v15446_v25, 0.0  ;;  %v16244_v35 = vld [vmem:[#allocation11 + $0x1b0] sm:$0xff]   ;;  %v16245_v25 = vld [vmem:[#allocation11 + $0x178] sm:$0xff]  }
 0x7fa   :  { %v15441_v20 = vadd.f32 %v13099_v23, %v2230_v26  ;;  %v15449_v47 = vadd.f32 %v13152_v36, %v2238_v32  ;;  %15313 = vmatpush3.bf16.msra.mxu0 %v16219_v62  ;;  %15341 = vmatpush3.bf16.msra.mxu1 %v16220_v45  ;;  %v13310_v2 = vmax.f32 %v15439_v50, 0.0  ;;  %v13312_v31 = vmax.f32 %v15447_v16, 0.0  ;;  %v16247_v23 = vld [vmem:[#allocation11 + $0x138] sm:$0xff]  }
 0x7fb   :  { %v13317_v18 = vmax.f32 %v15440_v21, 0.0  ;;  %v13319_v12 = vmax.f32 %v15448_v1, 0.0  ;;  %15314 = vmatprep.subr.bf16.mxu0 %v16221_v51  ;;  %15342 = vmatprep.subr.bf16.mxu1 %v16222_v48  ;;  %v18393_v11 = vrot.slane %v18378_v43, %v2245_v4  ;;  %v18396_v0 = vrot.slane %v18378_v43, %v2253_v39  ;;  %v16248_v36 = vld [vmem:[#allocation11 + $0x1b8] sm:$0xff]  }
 0x7fc   :  { %v13318_v37 = vmax.f32 %v15441_v20, 0.0  ;;  %v13320_v40 = vmax.f32 %v15449_v47, 0.0 }
 0x7fd   :  { %v13333_v5 = vpack.c.bf16 %v13317_v18, %v13309_v24  ;;  %v13335_v63 = vpack.c.bf16 %v13319_v12, %v13311_v19 }
 0x7fe   :  { %v13334_v26 = vpack.c.bf16 %v13318_v37, %v13310_v2  ;;  %v13336_v32 = vpack.c.bf16 %v13320_v40, %v13312_v31  ;;  %15315 = vmatpush3.bf16.msra.mxu0 %v16223_v30  ;;  %15343 = vmatpush3.bf16.msra.mxu1 %v16224_v22 }
 0x7ff   :  { %15316 = vmatprep.subr.bf16.mxu0 %v16225_v57  ;;  %15344 = vmatprep.subr.bf16.mxu1 %v16226_v54 }
 0x800   :  { %13900 = vmatprep.mubr.bf16.mxu0 %v13334_v26  ;;  %13949 = vmatprep.mubr.bf16.mxu1 %v13336_v32 }
 0x801   :  { %13901 = vmatmul.mubr.bf16.gmra.mrb[52].mxu0 %v13333_v5  ;;  %13950 = vmatmul.mubr.bf16.gmra.mrb[84].mxu1 %v13335_v63 }
 0x802   :  { %15317 = vmatpush3.bf16.msra.mxu0 %v16227_v53  ;;  %15345 = vmatpush3.bf16.msra.mxu1 %v16228_v42 }
 0x803   :  { %15318 = vmatprep.subr.bf16.mxu0 %v16229_v28  ;;  %15346 = vmatprep.subr.bf16.mxu1 %v16230_v41 }
 0x806   :  { %15319 = vmatpush3.bf16.msra.mxu0 %v16231_v9  ;;  %15347 = vmatpush3.bf16.msra.mxu1 %v16232_v6 }
 0x807   :  { %15320 = vmatprep.subr.bf16.mxu0 %v16233_v38  ;;  %15348 = vmatprep.subr.bf16.mxu1 %v16234_v49 }
 0x80a   :  { %15321 = vmatpush3.bf16.msra.mxu0 %v16235_v10  ;;  %15349 = vmatpush3.bf16.msra.mxu1 %v16236_v17 }
 0x80b   :  { %15322 = vmatprep.subr.bf16.mxu0 %v16237_v7  ;;  %15350 = vmatprep.subr.bf16.mxu1 %v16238_v3 }
 0x80e   :  { %v13189_v56 = vpop.f32.mrb[40].mxu0  ;;  %v13242_v52 = vpop.f32.mrb[72].mxu1  ;;  %15323 = vmatpush3.bf16.msra.mxu0 %v16239_v8  ;;  %15351 = vmatpush3.bf16.msra.mxu1 %v16240_v55 }
 0x80f   :  { %v15450_v34 = vadd.f32 %v13189_v56, %v2242_v58  ;;  %v15458_v62 = vadd.f32 %v13242_v52, %v2250_v29  ;;  %v13191_v45 = vpop.f32.mrb[41].mxu0  ;;  %v13244_v14 = vpop.f32.mrb[73].mxu1  ;;  %15324 = vmatprep.subr.bf16.mxu0 %v16241_v13  ;;  %15352 = vmatprep.subr.bf16.mxu1 %v16242_v46  ;;  %v15158_v52 = vld [vmem:[#allocation13] ss:$0 sm:$0xff] }
 0x810   :  { %v15451_v27 = vadd.f32 %v13191_v45, %v18393_v11  ;;  %v15459_v51 = vadd.f32 %v13244_v14, %v18396_v0  ;;  %v13193_v43 = vpop.f32.mrb[42].mxu0  ;;  %v13246_v48 = vpop.f32.mrb[74].mxu1 }
 0x811   :  { %v15452_v50 = vadd.f32 %v13193_v43, %v2242_v58  ;;  %v15460_v16 = vadd.f32 %v13246_v48, %v2250_v29  ;;  %v13195_v15 = vpop.f32.mrb[43].mxu0  ;;  %v13248_v33 = vpop.f32.mrb[75].mxu1  ;;  %v13297_v20 = vmax.f32 %v15450_v34, 0.0  ;;  %v13299_v47 = vmax.f32 %v15458_v62, 0.0 }
 0x812   :  { %v15453_v21 = vadd.f32 %v13195_v15, %v18393_v11  ;;  %v15461_v1 = vadd.f32 %v13248_v33, %v18396_v0  ;;  %15325 = vmatpush3.bf16.msra.mxu0 %v16243_v44  ;;  %15353 = vmatpush3.bf16.msra.mxu1 %v16244_v35  ;;  %v13298_v24 = vmax.f32 %v15451_v27, 0.0  ;;  %v13300_v19 = vmax.f32 %v15459_v51, 0.0 }
 0x813   :  { %v13305_v30 = vmax.f32 %v15452_v50, 0.0  ;;  %v13307_v22 = vmax.f32 %v15460_v16, 0.0  ;;  %15326 = vmatprep.subr.bf16.mxu0 %v16245_v25  ;;  %15354 = vmatprep.subr.bf16.mxu1 %v16246_v59 }
 0x814   :  { %v13306_v18 = vmax.f32 %v15453_v21, 0.0  ;;  %v13308_v12 = vmax.f32 %v15461_v1, 0.0 }
 0x815   :  { %v13329_v57 = vpack.c.bf16 %v13305_v30, %v13297_v20  ;;  %v13331_v54 = vpack.c.bf16 %v13307_v22, %v13299_v47 }
 0x816   :  { %v13330_v2 = vpack.c.bf16 %v13306_v18, %v13298_v24  ;;  %v13332_v31 = vpack.c.bf16 %v13308_v12, %v13300_v19  ;;  %v13199_v37 = vpop.f32.mrb[44].mxu0  ;;  %v13252_v40 = vpop.f32.mrb[76].mxu1  ;;  %15327 = vmatpush3.bf16.msra.mxu0 %v16247_v23  ;;  %15355 = vmatpush3.bf16.msra.mxu1 %v16248_v36 }
 0x817   :  { %v15454_v5 = vadd.f32 %v13199_v37, %v2242_v58  ;;  %v15462_v63 = vadd.f32 %v13252_v40, %v2250_v29  ;;  %v13201_v26 = vpop.f32.mrb[45].mxu0  ;;  %v13254_v32 = vpop.f32.mrb[77].mxu1 }
 0x818   :  { %v15455_v53 = vadd.f32 %v13201_v26, %v18393_v11  ;;  %v15463_v42 = vadd.f32 %v13254_v32, %v18396_v0  ;;  %v13203_v28 = vpop.f32.mrb[46].mxu0  ;;  %v13256_v41 = vpop.f32.mrb[78].mxu1  ;;  %13990 = vmatprep.mubr.bf16.mxu0 %v13330_v2  ;;  %14039 = vmatprep.mubr.bf16.mxu1 %v13332_v31 }
 0x819   :  { %v15456_v9 = vadd.f32 %v13203_v28, %v2242_v58  ;;  %v15464_v6 = vadd.f32 %v13256_v41, %v2250_v29  ;;  %v13205_v38 = vpop.f32.mrb[47].mxu0  ;;  %v13258_v49 = vpop.f32.mrb[79].mxu1  ;;  %13991 = vmatmul.mubr.bf16.vlgmr.msra.gmra.mrb[56].mxu0 %v13329_v57  ;;  %14040 = vmatmul.mubr.bf16.vlgmr.msra.gmra.mrb[88].mxu1 %v13331_v54  ;;  %v13313_v7 = vmax.f32 %v15454_v5, 0.0  ;;  %v13315_v3 = vmax.f32 %v15462_v63, 0.0 }
 0x81a   :  { %v15457_v10 = vadd.f32 %v13205_v38, %v18393_v11  ;;  %v15465_v17 = vadd.f32 %v13258_v49, %v18396_v0  ;;  %v13314_v4 = vmax.f32 %v15455_v53, 0.0  ;;  %v13316_v39 = vmax.f32 %v15463_v42, 0.0 }
 0x81b   :  { %v13321_v60 = vmax.f32 %v15456_v9, 0.0  ;;  %v13323_v61 = vmax.f32 %v15464_v6, 0.0 }
 0x81c   :  { %v13322_v8 = vmax.f32 %v15457_v10, 0.0  ;;  %v13324_v55 = vmax.f32 %v15465_v17, 0.0 }
 0x81d   :  { %v13337_v13 = vpack.c.bf16 %v13321_v60, %v13313_v7  ;;  %v13339_v46 = vpack.c.bf16 %v13323_v61, %v13315_v3 }
 0x81e   :  { %v13338_v58 = vpack.c.bf16 %v13322_v8, %v13314_v4  ;;  %v13340_v29 = vpack.c.bf16 %v13324_v55, %v13316_v39 }
 0x820   :  { %13998 = vmatprep.mubr.bf16.mxu0 %v13338_v58  ;;  %14047 = vmatprep.mubr.bf16.mxu1 %v13340_v29 }
 0x821   :  { %13999 = vmatmul.mubr.bf16.gmra.mrb[60].mxu0 %v13337_v13  ;;  %14048 = vmatmul.mubr.bf16.gmra.mrb[92].mxu1 %v13339_v46 }
 0x8cc   :  { %v15272_v56 = vpop.f32.mrb[48].mxu0  ;;  %v15300_v11 = vpop.f32.mrb[80].mxu1 }
 0x8cd   :  { %v15273_v0 = vpop.f32.mrb[49].mxu0  ;;  %v15301_v44 = vpop.f32.mrb[81].mxu1 }
 0x8ce   :  { %v15274_v35 = vadd.f32 %v15273_v0, %v15272_v56  ;;  %v15302_v34 = vadd.f32 %v15301_v44, %v15300_v11  ;;  %v15275_v62 = vpop.f32.mrb[50].mxu0  ;;  %v15303_v45 = vpop.f32.mrb[82].mxu1 }
 0x8cf   :  { %v15276_v14 = vpop.f32.mrb[51].mxu0  ;;  %v15304_v25 = vpop.f32.mrb[83].mxu1 }
 0x8d0   :  { %v13895_v59 = vadd.f32 %v15274_v35, %v15158_v52  ;;  %v15277_v27 = vadd.f32 %v15276_v14, %v15275_v62  ;;  %v15305_v51 = vadd.f32 %v15304_v25, %v15303_v45 }
 0x8d2   :  { %v13944_v43 = vadd.f32 %v15302_v34, %v13895_v59  ;;  %v13898_v48 = vadd.f32 %v15277_v27, %v15158_v52 }
 0x8d4   :  { %v13947_v50 = vadd.f32 %v15305_v51, %v13898_v48  ;;  %v15278_v16 = vpop.f32.mrb[52].mxu0  ;;  %v15306_v15 = vpop.f32.mrb[84].mxu1 }
 0x8d5   :  { %v15279_v33 = vpop.f32.mrb[53].mxu0  ;;  %v15307_v21 = vpop.f32.mrb[85].mxu1 }
 0x8d6   :  { %v15280_v1 = vadd.f32 %v15279_v33, %v15278_v16  ;;  %v15308_v23 = vadd.f32 %v15307_v21, %v15306_v15  ;;  %v15281_v36 = vpop.f32.mrb[54].mxu0  ;;  %v15309_v20 = vpop.f32.mrb[86].mxu1 }
 0x8d7   :  { %v15282_v47 = vpop.f32.mrb[55].mxu0  ;;  %v15310_v30 = vpop.f32.mrb[87].mxu1 }
 0x8d8   :  { %v13903_v22 = vadd.f32 %v15280_v1, %v15158_v52  ;;  %v15283_v24 = vadd.f32 %v15282_v47, %v15281_v36  ;;  %v15311_v19 = vadd.f32 %v15310_v30, %v15309_v20 }
 0x8da   :  { %v13952_v18 = vadd.f32 %v15308_v23, %v13903_v22  ;;  %v13906_v12 = vadd.f32 %v15283_v24, %v15158_v52 }
 0x8dc   :  { %v13955_v57 = vadd.f32 %v15311_v19, %v13906_v12 }
 0x8ec   :  { %v15328_v54 = vpop.f32.mrb[56].mxu0  ;;  %v15356_v2 = vpop.f32.mrb[88].mxu1 }
 0x8ed   :  { %v15329_v31 = vpop.f32.mrb[57].mxu0  ;;  %v15357_v37 = vpop.f32.mrb[89].mxu1 }
 0x8ee   :  { %v15330_v40 = vadd.f32 %v15329_v31, %v15328_v54  ;;  %v15358_v5 = vadd.f32 %v15357_v37, %v15356_v2  ;;  %v15331_v63 = vpop.f32.mrb[58].mxu0  ;;  %v15359_v26 = vpop.f32.mrb[90].mxu1 }
 0x8ef   :  { %v15332_v32 = vpop.f32.mrb[59].mxu0  ;;  %v15360_v53 = vpop.f32.mrb[91].mxu1 }
 0x8f0   :  { %v13993_v42 = vadd.f32 %v15330_v40, %v13944_v43  ;;  %v15333_v28 = vadd.f32 %v15332_v32, %v15331_v63  ;;  %v15361_v41 = vadd.f32 %v15360_v53, %v15359_v26 }
 0x8f2   :  { %v14042_v9 = vadd.f32 %v15358_v5, %v13993_v42  ;;  %v13996_v6 = vadd.f32 %v15333_v28, %v13947_v50 }
 0x8f4   :  { %14056 = vst [vmem:[#allocation14] sm:$0xff] %v14042_v9  ;;  %v14045_v38 = vadd.f32 %v15361_v41, %v13996_v6  ;;  %v15334_v49 = vpop.f32.mrb[60].mxu0  ;;  %v15362_v10 = vpop.f32.mrb[92].mxu1 }
 0x8f5   :  { %v15335_v17 = vpop.f32.mrb[61].mxu0  ;;  %v15363_v7 = vpop.f32.mrb[93].mxu1 }
 0x8f6   :  { %14057 = vst [vmem:[#allocation14 + $0x8] sm:$0xff] %v14045_v38  ;;  %v15336_v3 = vadd.f32 %v15335_v17, %v15334_v49  ;;  %v15364_v60 = vadd.f32 %v15363_v7, %v15362_v10  ;;  %v15337_v61 = vpop.f32.mrb[62].mxu0  ;;  %v15365_v4 = vpop.f32.mrb[94].mxu1 }
 0x8f7   :  { %v15338_v39 = vpop.f32.mrb[63].mxu0  ;;  %v15366_v8 = vpop.f32.mrb[95].mxu1 }
 0x8f8   :  { %v14001_v55 = vadd.f32 %v15336_v3, %v13952_v18  ;;  %v15339_v13 = vadd.f32 %v15338_v39, %v15337_v61  ;;  %v15367_v46 = vadd.f32 %v15366_v8, %v15365_v4 }
 0x8fa   :  { %v14050_v58 = vadd.f32 %v15364_v60, %v14001_v55  ;;  %v14004_v29 = vadd.f32 %v15339_v13, %v13955_v57 }
 0x8fc   :  { %14058 = vst [vmem:[#allocation14 + $0x10] sm:$0xff] %v14050_v58  ;;  %v14053_v56 = vadd.f32 %v15367_v46, %v14004_v29 }
 0x8fe   :  { %14059 = vst [vmem:[#allocation14 + $0x18] sm:$0xff] %v14053_v56 }
 0x8ff   :  { %16430 = shalt.err (!%p16427_p4)
}
 0x900   :  { %s16431_s0 = scalar_lea.hbm %s18426_s8, 512 }
 0x901   :  { %p16432_p5 = scmp.ne.s32.totalorder %s18426_s8, %s16431_s0  ;;  %p16435_p6 = scmp.lt.u32.totalorder %s16431_s0, %s18426_s8 }
 0x903   :  { %p16437_p7 = pnand %p16435_p6, %p16432_p5 }
 0x905   :  { %16440 = shalt.err (!%p16437_p7)
}
 0x906   :  { %s16464_s22 = smov 128   ;;  %s16465_s23 = smov 8  }
 0x907   :  { %14071 = dma.vmem_to_hbm [thread:$0]  %s14066_s5, 512, %s18426_s8, [#allocation4], %s16464_s22, %s16464_s22, %s16465_s23  }
 0x908   :  { %16449 = dma.done.wait [#allocation4], 512  }
 0x909   :  { %16450 = vsyncadd [#allocation4], 4294966784 }
 0x90a   :  { %14075 = vsyncpa [#allocation3], 1 }
 0x90b   :  { %14076 = vsyncpa [#allocation6], 1 }
 0x90c   :  { %14077 = vsyncpa [#allocation9], 1 }
 0x90d   :  { %14078 = vsyncpa [#allocation12], 1 }
 0x90e   :  { %14079 = vsyncpa [#allocation4], 1 }

</bundles_post_ra>
